<compile_context>
chip_gen: v5e
topology: v5e:2x2
jax: 0.10.0
libtpu: 0.0.40
codegen_flags: <defaults>
</compile_context>

<pallas_src>
import jax
import jax.numpy as jnp
import numpy as np
from jax import lax
from jax.experimental import pallas as pl
from jax.experimental.pallas import tpu as pltpu

H = W = 7
CIN = 184
COUT = 1104
KH = KW = 5
PAD = 2
EPS = 1e-3

RB = 16                      # sublanes per spatial-row block (7 data + 9 zeros)
NPOS = H * RB                # 112 matmul rows
CIN_PAD = 256                # 184 -> lane multiple
NBLK = 2                     # channel blocks (grid); both TCs busy on v7x
CBLK = 640                   # channels per block (multiple of 128)
COUT_PAD = NBLK * CBLK       # 1280
OUT_RB = 8                   # output row block (7 cols + 1 junk) -> aligned stores


def fused_kernel(x_ref, w1_ref, g_ref, b_ref, wd_ref, o_ref, y_scr, sh_scr):
    # ---- Phase 1: 1x1 conv == a single MXU matmul over all 112 positions ----
    y_scr[...] = jnp.dot(x_ref[...], w1_ref[...],
                         preferred_element_type=jnp.float32)

    # ---- Phase 2: BatchNorm batch statistics over the 49 valid positions ----
    # Padded rows/cols/channels of x are zero, so they contribute nothing.
    s1 = jnp.zeros((1, CBLK), jnp.float32)
    s2 = jnp.zeros((1, CBLK), jnp.float32)
    for h in range(H):
        yr = y_scr[pl.ds(RB * h, RB), :]
        s1 = s1 + jnp.sum(yr, axis=0, keepdims=True)
        s2 = s2 + jnp.sum(yr * yr, axis=0, keepdims=True)
    inv_n = jnp.float32(1.0 / (H * W))
    mean = s1 * inv_n
    var = jnp.maximum(s2 * inv_n - mean * mean, 0.0)
    scale = lax.rsqrt(var + EPS) * g_ref[...]          # (1, CBLK)
    shift = b_ref[...] - mean * scale                  # (1, CBLK)

    # Inside a 16-row block only sublanes 0..6 are real columns.
    row_in_blk = lax.broadcasted_iota(jnp.int32, (RB, CBLK), 0)
    col_valid = row_in_blk < W

    # ---- Phase 3: normalize + ReLU per spatial row and emit the five ----
    # column-shifted, zero-extended copies needed by the 5x5 depthwise conv.
    # The >=2 zero sublanes on both sides of the data inside each 16-row block
    # make a circular roll identical to a zero-padded shift on the 8 sublanes
    # we keep.
    for h in range(H):
        yr = y_scr[pl.ds(RB * h, RB), :]
        ar = jnp.maximum(yr * scale + shift, 0.0)
        ar = jnp.where(col_valid, ar, 0.0)             # (RB, CBLK)
        for dj in range(KW):
            s = dj - PAD                               # column offset -2..2
            shifted = ar if s == 0 else pltpu.roll(ar, (-s) % RB, 0)
            sh_scr[pl.ds(dj * H * OUT_RB + OUT_RB * h, OUT_RB), :] = shifted[:OUT_RB, :]

    # ---- Phase 4: depthwise 5x5, one output row at a time ----
    # Accumulate in registers; a single aligned (8, CBLK) store per output row.
    for i in range(H):
        acc = jnp.zeros((OUT_RB, CBLK), jnp.float32)
        for di in range(KH):
            r = i + di - PAD
            if r < 0 or r >= H:
                continue                               # zero row padding
            for dj in range(KW):
                win = sh_scr[pl.ds(dj * H * OUT_RB + OUT_RB * r, OUT_RB), :]  # (8, CBLK)
                tap = wd_ref[pl.ds(di * KW + dj, 1), :]                       # (1, CBLK)
                acc = acc + win * tap
        o_ref[pl.ds(OUT_RB * i, OUT_RB), :] = acc


def prepare_params(w1, gamma, beta, w_dw):
    """One-time weight re-layout (hoisted out of the per-inference path)."""
    w1m = jnp.transpose(w1[:, :, 0, 0], (1, 0))                        # (184, 1104)
    w1m = jnp.pad(w1m, ((0, CIN_PAD - CIN), (0, COUT_PAD - COUT)))     # (256, 1280)
    g = jnp.pad(gamma, (0, COUT_PAD - COUT)).reshape(1, COUT_PAD)
    b = jnp.pad(beta, (0, COUT_PAD - COUT)).reshape(1, COUT_PAD)
    wd = jnp.transpose(w_dw[:, 0].reshape(COUT, KH * KW), (1, 0))      # (25, 1104)
    wd = jnp.pad(wd, ((0, 0), (0, COUT_PAD - COUT)))                   # (25, 1280)
    return w1m, g, b, wd


@jax.jit
def forward(x_nchw, w1m, g, b, wd):
    """x_nchw: (1, 184, 7, 7) -> (1, 1104, 7, 7)."""
    # input -> channels-last, 16-wide row blocks (zeros in the pad region)
    x = jnp.transpose(x_nchw[0], (1, 2, 0))                             # (7, 7, 184)
    x = jnp.pad(x, ((0, 0), (0, RB - W), (0, CIN_PAD - CIN)))           # (7, 16, 256)
    x = x.reshape(NPOS, CIN_PAD)                                        # (112, 256)

    out = pl.pallas_call(
        fused_kernel,
        out_shape=jax.ShapeDtypeStruct((H * OUT_RB, COUT_PAD), jnp.float32),
        grid_spec=pltpu.PrefetchScalarGridSpec(
            num_scalar_prefetch=0,
            grid=(NBLK,),
            in_specs=[
                pl.BlockSpec((NPOS, CIN_PAD), lambda c: (0, 0)),        # x (shared)
                pl.BlockSpec((CIN_PAD, CBLK), lambda c: (0, c)),        # w1
                pl.BlockSpec((1, CBLK), lambda c: (0, c)),              # gamma
                pl.BlockSpec((1, CBLK), lambda c: (0, c)),              # beta
                pl.BlockSpec((KH * KW, CBLK), lambda c: (0, c)),        # dw taps
            ],
            out_specs=pl.BlockSpec((H * OUT_RB, CBLK), lambda c: (0, c)),
            scratch_shapes=[
                pltpu.VMEM((NPOS, CBLK), jnp.float32),                  # raw 1x1-conv output
                pltpu.VMEM((KW * H * OUT_RB, CBLK), jnp.float32),       # 5 shifted act copies
            ],
        ),
        compiler_params=pltpu.CompilerParams(
            dimension_semantics=("parallel",)),
    )(x, w1m, g, b, wd)

    out = out.reshape(H, OUT_RB, COUT_PAD)[:, :W, :COUT]                # (7, 7, 1104)
    return jnp.transpose(out, (2, 0, 1))[None]                          # (1, 1104, 7, 7)


def reference(x, w1, gamma, beta, w_dw):
    """Pure-JAX reference matching the PyTorch forward (training-mode BN)."""
    y = lax.conv_general_dilated(
        x, w1, (1, 1), "VALID",
        dimension_numbers=("NCHW", "OIHW", "NCHW"),
        precision=lax.Precision.HIGHEST)
    mean = jnp.mean(y, axis=(0, 2, 3), keepdims=True)
    var = jnp.mean((y - mean) ** 2, axis=(0, 2, 3), keepdims=True)
    yn = (y - mean) / jnp.sqrt(var + EPS) * gamma[None, :, None, None] + beta[None, :, None, None]
    a = jnp.maximum(yn, 0.0)
    return lax.conv_general_dilated(
        a, w_dw, (1, 1), ((PAD, PAD), (PAD, PAD)),
        dimension_numbers=("NCHW", "OIHW", "NCHW"),
        feature_group_count=COUT,
        precision=lax.Precision.HIGHEST)


if __name__ == "__main__":
    key = jax.random.PRNGKey(0)
    k_x, k_w1, k_g, k_b, k_dw = jax.random.split(key, 5)

    # Deterministic synthetic parameters (shapes from the module __init__).
    x178 = jax.random.normal(k_x, (1, CIN, H, W), dtype=jnp.float32)
    w1 = jax.random.normal(k_w1, (COUT, CIN, 1, 1), dtype=jnp.float32) * 0.05
    gamma = 1.0 + 0.1 * jax.random.normal(k_g, (COUT,), dtype=jnp.float32)
    beta = 0.1 * jax.random.normal(k_b, (COUT,), dtype=jnp.float32)
    w_dw = jax.random.normal(k_dw, (COUT, 1, KH, KW), dtype=jnp.float32) * 0.1

    params = prepare_params(w1, gamma, beta, w_dw)
    out = jax.block_until_ready(forward(x178, *params))
    ref = jax.block_until_ready(reference(x178, w1, gamma, beta, w_dw))

    assert out.shape == (1, COUT, H, W), out.shape
    np.testing.assert_allclose(np.asarray(out), np.asarray(ref), rtol=1e-2, atol=1e-2)
    print("KERNEL_OK")
</pallas_src>

<mosaic_0001>
module attributes {stable_mosaic.version = 11 : i64} {
  func.func @fused_kernel(%arg0: i32, %arg1: memref<112x256xf32, #tpu.memory_space<vmem>>, %arg2: memref<256x640xf32, #tpu.memory_space<vmem>>, %arg3: memref<1x640xf32, #tpu.memory_space<vmem>>, %arg4: memref<1x640xf32, #tpu.memory_space<vmem>>, %arg5: memref<25x640xf32, #tpu.memory_space<vmem>>, %arg6: memref<56x640xf32, #tpu.memory_space<vmem>>, %arg7: memref<112x640xf32, #tpu.memory_space<vmem>>, %arg8: memref<280x640xf32, #tpu.memory_space<vmem>>) attributes {dimension_semantics = [#tpu.dimension_semantics<parallel>], iteration_bounds = array<i64: 2>, scalar_prefetch = 0 : i64, scratch_operands = 2 : i64, tpu.core_type = #tpu.core_type<tc>, window_params = [{pipeline_mode = #tpu.pipeline_mode<synchronous>, transform_indices = @transform_0, window_bounds = array<i64: 112, 256>}, {transform_indices = @transform_1, window_bounds = array<i64: 256, 640>}, {transform_indices = @transform_2, window_bounds = array<i64: 1, 640>}, {transform_indices = @transform_3, window_bounds = array<i64: 1, 640>}, {transform_indices = @transform_4, window_bounds = array<i64: 25, 640>}, {transform_indices = @transform_5, window_bounds = array<i64: 56, 640>}]} {
    %c0 = arith.constant 0 : index
    %c0_0 = arith.constant 0 : index
    %0 = vector.load %arg1[%c0, %c0_0] : memref<112x256xf32, #tpu.memory_space<vmem>>, vector<112x256xf32>
    %c0_1 = arith.constant 0 : index
    %c0_2 = arith.constant 0 : index
    %1 = vector.load %arg2[%c0_1, %c0_2] : memref<256x640xf32, #tpu.memory_space<vmem>>, vector<256x640xf32>
    %cst = arith.constant dense<0.000000e+00> : vector<112x640xf32>
    %2 = tpu.matmul %0, %1, %cst {dimension_numbers = #tpu.dot_dimension_numbers<[1], [0], [0], [1], [0, 0, 1, 1], [], []>} : vector<112x256xf32>, vector<256x640xf32>, vector<112x640xf32> -> vector<112x640xf32>
    %c0_3 = arith.constant 0 : index
    %c0_4 = arith.constant 0 : index
    %3 = vector.load %arg7[%c0_3, %c0_4] : memref<112x640xf32, #tpu.memory_space<vmem>>, vector<112x640xf32>
    tpu.vector_store %arg7[%c0_3, %c0_4], %2 {strides = array<i32>} : memref<112x640xf32, #tpu.memory_space<vmem>>, vector<112x640xf32>,
    %cst_5 = arith.constant 0.000000e+00 : f32
    %4 = vector.broadcast %cst_5 : f32 to vector<1x640xf32>
    %cst_6 = arith.constant 0.000000e+00 : f32
    %5 = vector.broadcast %cst_6 : f32 to vector<1x640xf32>
    %c0_7 = arith.constant 0 : index
    %c0_8 = arith.constant 0 : index
    %6 = vector.load %arg7[%c0_7, %c0_8] : memref<112x640xf32, #tpu.memory_space<vmem>>, vector<16x640xf32>
    %cst_9 = arith.constant dense<0.000000e+00> : vector<640xf32>
    %7 = vector.multi_reduction <add>, %6, %cst_9 [0] : vector<16x640xf32> to vector<640xf32>
    %8 = vector.shape_cast %7 : vector<640xf32> to vector<1x640xf32>
    %9 = arith.addf %4, %8 : vector<1x640xf32>
    %10 = arith.mulf %6, %6 : vector<16x640xf32>
    %cst_10 = arith.constant dense<0.000000e+00> : vector<640xf32>
    %11 = vector.multi_reduction <add>, %10, %cst_10 [0] : vector<16x640xf32> to vector<640xf32>
    %12 = vector.shape_cast %11 : vector<640xf32> to vector<1x640xf32>
    %13 = arith.addf %5, %12 : vector<1x640xf32>
    %c16 = arith.constant 16 : index
    %c0_11 = arith.constant 0 : index
    %14 = vector.load %arg7[%c16, %c0_11] : memref<112x640xf32, #tpu.memory_space<vmem>>, vector<16x640xf32>
    %cst_12 = arith.constant dense<0.000000e+00> : vector<640xf32>
    %15 = vector.multi_reduction <add>, %14, %cst_12 [0] : vector<16x640xf32> to vector<640xf32>
    %16 = vector.shape_cast %15 : vector<640xf32> to vector<1x640xf32>
    %17 = arith.addf %9, %16 : vector<1x640xf32>
    %18 = arith.mulf %14, %14 : vector<16x640xf32>
    %cst_13 = arith.constant dense<0.000000e+00> : vector<640xf32>
    %19 = vector.multi_reduction <add>, %18, %cst_13 [0] : vector<16x640xf32> to vector<640xf32>
    %20 = vector.shape_cast %19 : vector<640xf32> to vector<1x640xf32>
    %21 = arith.addf %13, %20 : vector<1x640xf32>
    %c32 = arith.constant 32 : index
    %c0_14 = arith.constant 0 : index
    %22 = vector.load %arg7[%c32, %c0_14] : memref<112x640xf32, #tpu.memory_space<vmem>>, vector<16x640xf32>
    %cst_15 = arith.constant dense<0.000000e+00> : vector<640xf32>
    %23 = vector.multi_reduction <add>, %22, %cst_15 [0] : vector<16x640xf32> to vector<640xf32>
    %24 = vector.shape_cast %23 : vector<640xf32> to vector<1x640xf32>
    %25 = arith.addf %17, %24 : vector<1x640xf32>
    %26 = arith.mulf %22, %22 : vector<16x640xf32>
    %cst_16 = arith.constant dense<0.000000e+00> : vector<640xf32>
    %27 = vector.multi_reduction <add>, %26, %cst_16 [0] : vector<16x640xf32> to vector<640xf32>
    %28 = vector.shape_cast %27 : vector<640xf32> to vector<1x640xf32>
    %29 = arith.addf %21, %28 : vector<1x640xf32>
    %c48 = arith.constant 48 : index
    %c0_17 = arith.constant 0 : index
    %30 = vector.load %arg7[%c48, %c0_17] : memref<112x640xf32, #tpu.memory_space<vmem>>, vector<16x640xf32>
    %cst_18 = arith.constant dense<0.000000e+00> : vector<640xf32>
    %31 = vector.multi_reduction <add>, %30, %cst_18 [0] : vector<16x640xf32> to vector<640xf32>
    %32 = vector.shape_cast %31 : vector<640xf32> to vector<1x640xf32>
    %33 = arith.addf %25, %32 : vector<1x640xf32>
    %34 = arith.mulf %30, %30 : vector<16x640xf32>
    %cst_19 = arith.constant dense<0.000000e+00> : vector<640xf32>
    %35 = vector.multi_reduction <add>, %34, %cst_19 [0] : vector<16x640xf32> to vector<640xf32>
    %36 = vector.shape_cast %35 : vector<640xf32> to vector<1x640xf32>
    %37 = arith.addf %29, %36 : vector<1x640xf32>
    %c64 = arith.constant 64 : index
    %c0_20 = arith.constant 0 : index
    %38 = vector.load %arg7[%c64, %c0_20] : memref<112x640xf32, #tpu.memory_space<vmem>>, vector<16x640xf32>
    %cst_21 = arith.constant dense<0.000000e+00> : vector<640xf32>
    %39 = vector.multi_reduction <add>, %38, %cst_21 [0] : vector<16x640xf32> to vector<640xf32>
    %40 = vector.shape_cast %39 : vector<640xf32> to vector<1x640xf32>
    %41 = arith.addf %33, %40 : vector<1x640xf32>
    %42 = arith.mulf %38, %38 : vector<16x640xf32>
    %cst_22 = arith.constant dense<0.000000e+00> : vector<640xf32>
    %43 = vector.multi_reduction <add>, %42, %cst_22 [0] : vector<16x640xf32> to vector<640xf32>
    %44 = vector.shape_cast %43 : vector<640xf32> to vector<1x640xf32>
    %45 = arith.addf %37, %44 : vector<1x640xf32>
    %c80 = arith.constant 80 : index
    %c0_23 = arith.constant 0 : index
    %46 = vector.load %arg7[%c80, %c0_23] : memref<112x640xf32, #tpu.memory_space<vmem>>, vector<16x640xf32>
    %cst_24 = arith.constant dense<0.000000e+00> : vector<640xf32>
    %47 = vector.multi_reduction <add>, %46, %cst_24 [0] : vector<16x640xf32> to vector<640xf32>
    %48 = vector.shape_cast %47 : vector<640xf32> to vector<1x640xf32>
    %49 = arith.addf %41, %48 : vector<1x640xf32>
    %50 = arith.mulf %46, %46 : vector<16x640xf32>
    %cst_25 = arith.constant dense<0.000000e+00> : vector<640xf32>
    %51 = vector.multi_reduction <add>, %50, %cst_25 [0] : vector<16x640xf32> to vector<640xf32>
    %52 = vector.shape_cast %51 : vector<640xf32> to vector<1x640xf32>
    %53 = arith.addf %45, %52 : vector<1x640xf32>
    %c96 = arith.constant 96 : index
    %c0_26 = arith.constant 0 : index
    %54 = vector.load %arg7[%c96, %c0_26] : memref<112x640xf32, #tpu.memory_space<vmem>>, vector<16x640xf32>
    %cst_27 = arith.constant dense<0.000000e+00> : vector<640xf32>
    %55 = vector.multi_reduction <add>, %54, %cst_27 [0] : vector<16x640xf32> to vector<640xf32>
    %56 = vector.shape_cast %55 : vector<640xf32> to vector<1x640xf32>
    %57 = arith.addf %49, %56 : vector<1x640xf32>
    %58 = arith.mulf %54, %54 : vector<16x640xf32>
    %cst_28 = arith.constant dense<0.000000e+00> : vector<640xf32>
    %59 = vector.multi_reduction <add>, %58, %cst_28 [0] : vector<16x640xf32> to vector<640xf32>
    %60 = vector.shape_cast %59 : vector<640xf32> to vector<1x640xf32>
    %61 = arith.addf %53, %60 : vector<1x640xf32>
    %cst_29 = arith.constant 0.0204081628 : f32
    %62 = vector.broadcast %cst_29 : f32 to vector<1x640xf32>
    %63 = arith.mulf %57, %62 : vector<1x640xf32>
    %cst_30 = arith.constant 0.0204081628 : f32
    %64 = vector.broadcast %cst_30 : f32 to vector<1x640xf32>
    %65 = arith.mulf %61, %64 : vector<1x640xf32>
    %66 = arith.mulf %63, %63 : vector<1x640xf32>
    %67 = arith.subf %65, %66 : vector<1x640xf32>
    %cst_31 = arith.constant 0.000000e+00 : f32
    %68 = vector.broadcast %cst_31 : f32 to vector<1x640xf32>
    %69 = arith.maximumf %67, %68 : vector<1x640xf32>
    %cst_32 = arith.constant 1.000000e-03 : f32
    %70 = vector.broadcast %cst_32 : f32 to vector<1x640xf32>
    %71 = arith.addf %69, %70 : vector<1x640xf32>
    %72 = math.rsqrt %71 : vector<1x640xf32>
    %c0_33 = arith.constant 0 : index
    %c0_34 = arith.constant 0 : index
    %73 = vector.load %arg3[%c0_33, %c0_34] : memref<1x640xf32, #tpu.memory_space<vmem>>, vector<1x640xf32>
    %74 = arith.mulf %72, %73 : vector<1x640xf32>
    %c0_35 = arith.constant 0 : index
    %c0_36 = arith.constant 0 : index
    %75 = vector.load %arg4[%c0_35, %c0_36] : memref<1x640xf32, #tpu.memory_space<vmem>>, vector<1x640xf32>
    %76 = arith.mulf %63, %74 : vector<1x640xf32>
    %77 = arith.subf %75, %76 : vector<1x640xf32>
    %78 = tpu.iota {dimensions = array<i32: 0>} : vector<16x640xi32>
    %c7_i32 = arith.constant 7 : i32
    %79 = vector.broadcast %c7_i32 : i32 to vector<16x640xi32>
    %80 = arith.cmpi slt, %78, %79 : vector<16x640xi32>
    %c0_37 = arith.constant 0 : index
    %c0_38 = arith.constant 0 : index
    %81 = vector.load %arg7[%c0_37, %c0_38] : memref<112x640xf32, #tpu.memory_space<vmem>>, vector<16x640xf32>
    %82 = vector.broadcast %74 : vector<1x640xf32> to vector<16x640xf32>
    %83 = arith.mulf %81, %82 : vector<16x640xf32>
    %84 = vector.broadcast %77 : vector<1x640xf32> to vector<16x640xf32>
    %85 = arith.addf %83, %84 : vector<16x640xf32>
    %cst_39 = arith.constant 0.000000e+00 : f32
    %86 = vector.broadcast %cst_39 : f32 to vector<16x640xf32>
    %87 = arith.maximumf %85, %86 : vector<16x640xf32>
    %cst_40 = arith.constant 0.000000e+00 : f32
    %88 = vector.broadcast %cst_40 : f32 to vector<16x640xf32>
    %89 = arith.select %80, %87, %88 : vector<16x640xi1>, vector<16x640xf32>
    %c2_i32 = arith.constant 2 : i32
    %90 = tpu.dynamic_rotate %89 by %c2_i32 dim 0 : vector<16x640xf32>, i32 -> vector<16x640xf32>
    %91 = vector.extract_strided_slice %90 {offsets = [0, 0], sizes = [8, 640], strides = [1, 1]} : vector<16x640xf32> to vector<8x640xf32>
    %c0_41 = arith.constant 0 : index
    %c0_42 = arith.constant 0 : index
    %92 = vector.load %arg8[%c0_41, %c0_42] : memref<280x640xf32, #tpu.memory_space<vmem>>, vector<8x640xf32>
    tpu.vector_store %arg8[%c0_41, %c0_42], %91 {strides = array<i32>} : memref<280x640xf32, #tpu.memory_space<vmem>>, vector<8x640xf32>,
    %c1_i32 = arith.constant 1 : i32
    %93 = tpu.dynamic_rotate %89 by %c1_i32 dim 0 : vector<16x640xf32>, i32 -> vector<16x640xf32>
    %94 = vector.extract_strided_slice %93 {offsets = [0, 0], sizes = [8, 640], strides = [1, 1]} : vector<16x640xf32> to vector<8x640xf32>
    %c56 = arith.constant 56 : index
    %c0_43 = arith.constant 0 : index
    %95 = vector.load %arg8[%c56, %c0_43] : memref<280x640xf32, #tpu.memory_space<vmem>>, vector<8x640xf32>
    tpu.vector_store %arg8[%c56, %c0_43], %94 {strides = array<i32>} : memref<280x640xf32, #tpu.memory_space<vmem>>, vector<8x640xf32>,
    %96 = vector.extract_strided_slice %89 {offsets = [0, 0], sizes = [8, 640], strides = [1, 1]} : vector<16x640xf32> to vector<8x640xf32>
    %c112 = arith.constant 112 : index
    %c0_44 = arith.constant 0 : index
    %97 = vector.load %arg8[%c112, %c0_44] : memref<280x640xf32, #tpu.memory_space<vmem>>, vector<8x640xf32>
    tpu.vector_store %arg8[%c112, %c0_44], %96 {strides = array<i32>} : memref<280x640xf32, #tpu.memory_space<vmem>>, vector<8x640xf32>,
    %c15_i32 = arith.constant 15 : i32
    %98 = tpu.dynamic_rotate %89 by %c15_i32 dim 0 : vector<16x640xf32>, i32 -> vector<16x640xf32>
    %99 = vector.extract_strided_slice %98 {offsets = [0, 0], sizes = [8, 640], strides = [1, 1]} : vector<16x640xf32> to vector<8x640xf32>
    %c168 = arith.constant 168 : index
    %c0_45 = arith.constant 0 : index
    %100 = vector.load %arg8[%c168, %c0_45] : memref<280x640xf32, #tpu.memory_space<vmem>>, vector<8x640xf32>
    tpu.vector_store %arg8[%c168, %c0_45], %99 {strides = array<i32>} : memref<280x640xf32, #tpu.memory_space<vmem>>, vector<8x640xf32>,
    %c14_i32 = arith.constant 14 : i32
    %101 = tpu.dynamic_rotate %89 by %c14_i32 dim 0 : vector<16x640xf32>, i32 -> vector<16x640xf32>
    %102 = vector.extract_strided_slice %101 {offsets = [0, 0], sizes = [8, 640], strides = [1, 1]} : vector<16x640xf32> to vector<8x640xf32>
    %c224 = arith.constant 224 : index
    %c0_46 = arith.constant 0 : index
    %103 = vector.load %arg8[%c224, %c0_46] : memref<280x640xf32, #tpu.memory_space<vmem>>, vector<8x640xf32>
    tpu.vector_store %arg8[%c224, %c0_46], %102 {strides = array<i32>} : memref<280x640xf32, #tpu.memory_space<vmem>>, vector<8x640xf32>,
    %c16_47 = arith.constant 16 : index
    %c0_48 = arith.constant 0 : index
    %104 = vector.load %arg7[%c16_47, %c0_48] : memref<112x640xf32, #tpu.memory_space<vmem>>, vector<16x640xf32>
    %105 = vector.broadcast %74 : vector<1x640xf32> to vector<16x640xf32>
    %106 = arith.mulf %104, %105 : vector<16x640xf32>
    %107 = vector.broadcast %77 : vector<1x640xf32> to vector<16x640xf32>
    %108 = arith.addf %106, %107 : vector<16x640xf32>
    %cst_49 = arith.constant 0.000000e+00 : f32
    %109 = vector.broadcast %cst_49 : f32 to vector<16x640xf32>
    %110 = arith.maximumf %108, %109 : vector<16x640xf32>
    %cst_50 = arith.constant 0.000000e+00 : f32
    %111 = vector.broadcast %cst_50 : f32 to vector<16x640xf32>
    %112 = arith.select %80, %110, %111 : vector<16x640xi1>, vector<16x640xf32>
    %c2_i32_51 = arith.constant 2 : i32
    %113 = tpu.dynamic_rotate %112 by %c2_i32_51 dim 0 : vector<16x640xf32>, i32 -> vector<16x640xf32>
    %114 = vector.extract_strided_slice %113 {offsets = [0, 0], sizes = [8, 640], strides = [1, 1]} : vector<16x640xf32> to vector<8x640xf32>
    %c8 = arith.constant 8 : index
    %c0_52 = arith.constant 0 : index
    %115 = vector.load %arg8[%c8, %c0_52] : memref<280x640xf32, #tpu.memory_space<vmem>>, vector<8x640xf32>
    tpu.vector_store %arg8[%c8, %c0_52], %114 {strides = array<i32>} : memref<280x640xf32, #tpu.memory_space<vmem>>, vector<8x640xf32>,
    %c1_i32_53 = arith.constant 1 : i32
    %116 = tpu.dynamic_rotate %112 by %c1_i32_53 dim 0 : vector<16x640xf32>, i32 -> vector<16x640xf32>
    %117 = vector.extract_strided_slice %116 {offsets = [0, 0], sizes = [8, 640], strides = [1, 1]} : vector<16x640xf32> to vector<8x640xf32>
    %c64_54 = arith.constant 64 : index
    %c0_55 = arith.constant 0 : index
    %118 = vector.load %arg8[%c64_54, %c0_55] : memref<280x640xf32, #tpu.memory_space<vmem>>, vector<8x640xf32>
    tpu.vector_store %arg8[%c64_54, %c0_55], %117 {strides = array<i32>} : memref<280x640xf32, #tpu.memory_space<vmem>>, vector<8x640xf32>,
    %119 = vector.extract_strided_slice %112 {offsets = [0, 0], sizes = [8, 640], strides = [1, 1]} : vector<16x640xf32> to vector<8x640xf32>
    %c120 = arith.constant 120 : index
    %c0_56 = arith.constant 0 : index
    %120 = vector.load %arg8[%c120, %c0_56] : memref<280x640xf32, #tpu.memory_space<vmem>>, vector<8x640xf32>
    tpu.vector_store %arg8[%c120, %c0_56], %119 {strides = array<i32>} : memref<280x640xf32, #tpu.memory_space<vmem>>, vector<8x640xf32>,
    %c15_i32_57 = arith.constant 15 : i32
    %121 = tpu.dynamic_rotate %112 by %c15_i32_57 dim 0 : vector<16x640xf32>, i32 -> vector<16x640xf32>
    %122 = vector.extract_strided_slice %121 {offsets = [0, 0], sizes = [8, 640], strides = [1, 1]} : vector<16x640xf32> to vector<8x640xf32>
    %c176 = arith.constant 176 : index
    %c0_58 = arith.constant 0 : index
    %123 = vector.load %arg8[%c176, %c0_58] : memref<280x640xf32, #tpu.memory_space<vmem>>, vector<8x640xf32>
    tpu.vector_store %arg8[%c176, %c0_58], %122 {strides = array<i32>} : memref<280x640xf32, #tpu.memory_space<vmem>>, vector<8x640xf32>,
    %c14_i32_59 = arith.constant 14 : i32
    %124 = tpu.dynamic_rotate %112 by %c14_i32_59 dim 0 : vector<16x640xf32>, i32 -> vector<16x640xf32>
    %125 = vector.extract_strided_slice %124 {offsets = [0, 0], sizes = [8, 640], strides = [1, 1]} : vector<16x640xf32> to vector<8x640xf32>
    %c232 = arith.constant 232 : index
    %c0_60 = arith.constant 0 : index
    %126 = vector.load %arg8[%c232, %c0_60] : memref<280x640xf32, #tpu.memory_space<vmem>>, vector<8x640xf32>
    tpu.vector_store %arg8[%c232, %c0_60], %125 {strides = array<i32>} : memref<280x640xf32, #tpu.memory_space<vmem>>, vector<8x640xf32>,
    %c32_61 = arith.constant 32 : index
    %c0_62 = arith.constant 0 : index
    %127 = vector.load %arg7[%c32_61, %c0_62] : memref<112x640xf32, #tpu.memory_space<vmem>>, vector<16x640xf32>
    %128 = vector.broadcast %74 : vector<1x640xf32> to vector<16x640xf32>
    %129 = arith.mulf %127, %128 : vector<16x640xf32>
    %130 = vector.broadcast %77 : vector<1x640xf32> to vector<16x640xf32>
    %131 = arith.addf %129, %130 : vector<16x640xf32>
    %cst_63 = arith.constant 0.000000e+00 : f32
    %132 = vector.broadcast %cst_63 : f32 to vector<16x640xf32>
    %133 = arith.maximumf %131, %132 : vector<16x640xf32>
    %cst_64 = arith.constant 0.000000e+00 : f32
    %134 = vector.broadcast %cst_64 : f32 to vector<16x640xf32>
    %135 = arith.select %80, %133, %134 : vector<16x640xi1>, vector<16x640xf32>
    %c2_i32_65 = arith.constant 2 : i32
    %136 = tpu.dynamic_rotate %135 by %c2_i32_65 dim 0 : vector<16x640xf32>, i32 -> vector<16x640xf32>
    %137 = vector.extract_strided_slice %136 {offsets = [0, 0], sizes = [8, 640], strides = [1, 1]} : vector<16x640xf32> to vector<8x640xf32>
    %c16_66 = arith.constant 16 : index
    %c0_67 = arith.constant 0 : index
    %138 = vector.load %arg8[%c16_66, %c0_67] : memref<280x640xf32, #tpu.memory_space<vmem>>, vector<8x640xf32>
    tpu.vector_store %arg8[%c16_66, %c0_67], %137 {strides = array<i32>} : memref<280x640xf32, #tpu.memory_space<vmem>>, vector<8x640xf32>,
    %c1_i32_68 = arith.constant 1 : i32
    %139 = tpu.dynamic_rotate %135 by %c1_i32_68 dim 0 : vector<16x640xf32>, i32 -> vector<16x640xf32>
    %140 = vector.extract_strided_slice %139 {offsets = [0, 0], sizes = [8, 640], strides = [1, 1]} : vector<16x640xf32> to vector<8x640xf32>
    %c72 = arith.constant 72 : index
    %c0_69 = arith.constant 0 : index
    %141 = vector.load %arg8[%c72, %c0_69] : memref<280x640xf32, #tpu.memory_space<vmem>>, vector<8x640xf32>
    tpu.vector_store %arg8[%c72, %c0_69], %140 {strides = array<i32>} : memref<280x640xf32, #tpu.memory_space<vmem>>, vector<8x640xf32>,
    %142 = vector.extract_strided_slice %135 {offsets = [0, 0], sizes = [8, 640], strides = [1, 1]} : vector<16x640xf32> to vector<8x640xf32>
    %c128 = arith.constant 128 : index
    %c0_70 = arith.constant 0 : index
    %143 = vector.load %arg8[%c128, %c0_70] : memref<280x640xf32, #tpu.memory_space<vmem>>, vector<8x640xf32>
    tpu.vector_store %arg8[%c128, %c0_70], %142 {strides = array<i32>} : memref<280x640xf32, #tpu.memory_space<vmem>>, vector<8x640xf32>,
    %c15_i32_71 = arith.constant 15 : i32
    %144 = tpu.dynamic_rotate %135 by %c15_i32_71 dim 0 : vector<16x640xf32>, i32 -> vector<16x640xf32>
    %145 = vector.extract_strided_slice %144 {offsets = [0, 0], sizes = [8, 640], strides = [1, 1]} : vector<16x640xf32> to vector<8x640xf32>
    %c184 = arith.constant 184 : index
    %c0_72 = arith.constant 0 : index
    %146 = vector.load %arg8[%c184, %c0_72] : memref<280x640xf32, #tpu.memory_space<vmem>>, vector<8x640xf32>
    tpu.vector_store %arg8[%c184, %c0_72], %145 {strides = array<i32>} : memref<280x640xf32, #tpu.memory_space<vmem>>, vector<8x640xf32>,
    %c14_i32_73 = arith.constant 14 : i32
    %147 = tpu.dynamic_rotate %135 by %c14_i32_73 dim 0 : vector<16x640xf32>, i32 -> vector<16x640xf32>
    %148 = vector.extract_strided_slice %147 {offsets = [0, 0], sizes = [8, 640], strides = [1, 1]} : vector<16x640xf32> to vector<8x640xf32>
    %c240 = arith.constant 240 : index
    %c0_74 = arith.constant 0 : index
    %149 = vector.load %arg8[%c240, %c0_74] : memref<280x640xf32, #tpu.memory_space<vmem>>, vector<8x640xf32>
    tpu.vector_store %arg8[%c240, %c0_74], %148 {strides = array<i32>} : memref<280x640xf32, #tpu.memory_space<vmem>>, vector<8x640xf32>,
    %c48_75 = arith.constant 48 : index
    %c0_76 = arith.constant 0 : index
    %150 = vector.load %arg7[%c48_75, %c0_76] : memref<112x640xf32, #tpu.memory_space<vmem>>, vector<16x640xf32>
    %151 = vector.broadcast %74 : vector<1x640xf32> to vector<16x640xf32>
    %152 = arith.mulf %150, %151 : vector<16x640xf32>
    %153 = vector.broadcast %77 : vector<1x640xf32> to vector<16x640xf32>
    %154 = arith.addf %152, %153 : vector<16x640xf32>
    %cst_77 = arith.constant 0.000000e+00 : f32
    %155 = vector.broadcast %cst_77 : f32 to vector<16x640xf32>
    %156 = arith.maximumf %154, %155 : vector<16x640xf32>
    %cst_78 = arith.constant 0.000000e+00 : f32
    %157 = vector.broadcast %cst_78 : f32 to vector<16x640xf32>
    %158 = arith.select %80, %156, %157 : vector<16x640xi1>, vector<16x640xf32>
    %c2_i32_79 = arith.constant 2 : i32
    %159 = tpu.dynamic_rotate %158 by %c2_i32_79 dim 0 : vector<16x640xf32>, i32 -> vector<16x640xf32>
    %160 = vector.extract_strided_slice %159 {offsets = [0, 0], sizes = [8, 640], strides = [1, 1]} : vector<16x640xf32> to vector<8x640xf32>
    %c24 = arith.constant 24 : index
    %c0_80 = arith.constant 0 : index
    %161 = vector.load %arg8[%c24, %c0_80] : memref<280x640xf32, #tpu.memory_space<vmem>>, vector<8x640xf32>
    tpu.vector_store %arg8[%c24, %c0_80], %160 {strides = array<i32>} : memref<280x640xf32, #tpu.memory_space<vmem>>, vector<8x640xf32>,
    %c1_i32_81 = arith.constant 1 : i32
    %162 = tpu.dynamic_rotate %158 by %c1_i32_81 dim 0 : vector<16x640xf32>, i32 -> vector<16x640xf32>
    %163 = vector.extract_strided_slice %162 {offsets = [0, 0], sizes = [8, 640], strides = [1, 1]} : vector<16x640xf32> to vector<8x640xf32>
    %c80_82 = arith.constant 80 : index
    %c0_83 = arith.constant 0 : index
    %164 = vector.load %arg8[%c80_82, %c0_83] : memref<280x640xf32, #tpu.memory_space<vmem>>, vector<8x640xf32>
    tpu.vector_store %arg8[%c80_82, %c0_83], %163 {strides = array<i32>} : memref<280x640xf32, #tpu.memory_space<vmem>>, vector<8x640xf32>,
    %165 = vector.extract_strided_slice %158 {offsets = [0, 0], sizes = [8, 640], strides = [1, 1]} : vector<16x640xf32> to vector<8x640xf32>
    %c136 = arith.constant 136 : index
    %c0_84 = arith.constant 0 : index
    %166 = vector.load %arg8[%c136, %c0_84] : memref<280x640xf32, #tpu.memory_space<vmem>>, vector<8x640xf32>
    tpu.vector_store %arg8[%c136, %c0_84], %165 {strides = array<i32>} : memref<280x640xf32, #tpu.memory_space<vmem>>, vector<8x640xf32>,
    %c15_i32_85 = arith.constant 15 : i32
    %167 = tpu.dynamic_rotate %158 by %c15_i32_85 dim 0 : vector<16x640xf32>, i32 -> vector<16x640xf32>
    %168 = vector.extract_strided_slice %167 {offsets = [0, 0], sizes = [8, 640], strides = [1, 1]} : vector<16x640xf32> to vector<8x640xf32>
    %c192 = arith.constant 192 : index
    %c0_86 = arith.constant 0 : index
    %169 = vector.load %arg8[%c192, %c0_86] : memref<280x640xf32, #tpu.memory_space<vmem>>, vector<8x640xf32>
    tpu.vector_store %arg8[%c192, %c0_86], %168 {strides = array<i32>} : memref<280x640xf32, #tpu.memory_space<vmem>>, vector<8x640xf32>,
    %c14_i32_87 = arith.constant 14 : i32
    %170 = tpu.dynamic_rotate %158 by %c14_i32_87 dim 0 : vector<16x640xf32>, i32 -> vector<16x640xf32>
    %171 = vector.extract_strided_slice %170 {offsets = [0, 0], sizes = [8, 640], strides = [1, 1]} : vector<16x640xf32> to vector<8x640xf32>
    %c248 = arith.constant 248 : index
    %c0_88 = arith.constant 0 : index
    %172 = vector.load %arg8[%c248, %c0_88] : memref<280x640xf32, #tpu.memory_space<vmem>>, vector<8x640xf32>
    tpu.vector_store %arg8[%c248, %c0_88], %171 {strides = array<i32>} : memref<280x640xf32, #tpu.memory_space<vmem>>, vector<8x640xf32>,
    %c64_89 = arith.constant 64 : index
    %c0_90 = arith.constant 0 : index
    %173 = vector.load %arg7[%c64_89, %c0_90] : memref<112x640xf32, #tpu.memory_space<vmem>>, vector<16x640xf32>
    %174 = vector.broadcast %74 : vector<1x640xf32> to vector<16x640xf32>
    %175 = arith.mulf %173, %174 : vector<16x640xf32>
    %176 = vector.broadcast %77 : vector<1x640xf32> to vector<16x640xf32>
    %177 = arith.addf %175, %176 : vector<16x640xf32>
    %cst_91 = arith.constant 0.000000e+00 : f32
    %178 = vector.broadcast %cst_91 : f32 to vector<16x640xf32>
    %179 = arith.maximumf %177, %178 : vector<16x640xf32>
    %cst_92 = arith.constant 0.000000e+00 : f32
    %180 = vector.broadcast %cst_92 : f32 to vector<16x640xf32>
    %181 = arith.select %80, %179, %180 : vector<16x640xi1>, vector<16x640xf32>
    %c2_i32_93 = arith.constant 2 : i32
    %182 = tpu.dynamic_rotate %181 by %c2_i32_93 dim 0 : vector<16x640xf32>, i32 -> vector<16x640xf32>
    %183 = vector.extract_strided_slice %182 {offsets = [0, 0], sizes = [8, 640], strides = [1, 1]} : vector<16x640xf32> to vector<8x640xf32>
    %c32_94 = arith.constant 32 : index
    %c0_95 = arith.constant 0 : index
    %184 = vector.load %arg8[%c32_94, %c0_95] : memref<280x640xf32, #tpu.memory_space<vmem>>, vector<8x640xf32>
    tpu.vector_store %arg8[%c32_94, %c0_95], %183 {strides = array<i32>} : memref<280x640xf32, #tpu.memory_space<vmem>>, vector<8x640xf32>,
    %c1_i32_96 = arith.constant 1 : i32
    %185 = tpu.dynamic_rotate %181 by %c1_i32_96 dim 0 : vector<16x640xf32>, i32 -> vector<16x640xf32>
    %186 = vector.extract_strided_slice %185 {offsets = [0, 0], sizes = [8, 640], strides = [1, 1]} : vector<16x640xf32> to vector<8x640xf32>
    %c88 = arith.constant 88 : index
    %c0_97 = arith.constant 0 : index
    %187 = vector.load %arg8[%c88, %c0_97] : memref<280x640xf32, #tpu.memory_space<vmem>>, vector<8x640xf32>
    tpu.vector_store %arg8[%c88, %c0_97], %186 {strides = array<i32>} : memref<280x640xf32, #tpu.memory_space<vmem>>, vector<8x640xf32>,
    %188 = vector.extract_strided_slice %181 {offsets = [0, 0], sizes = [8, 640], strides = [1, 1]} : vector<16x640xf32> to vector<8x640xf32>
    %c144 = arith.constant 144 : index
    %c0_98 = arith.constant 0 : index
    %189 = vector.load %arg8[%c144, %c0_98] : memref<280x640xf32, #tpu.memory_space<vmem>>, vector<8x640xf32>
    tpu.vector_store %arg8[%c144, %c0_98], %188 {strides = array<i32>} : memref<280x640xf32, #tpu.memory_space<vmem>>, vector<8x640xf32>,
    %c15_i32_99 = arith.constant 15 : i32
    %190 = tpu.dynamic_rotate %181 by %c15_i32_99 dim 0 : vector<16x640xf32>, i32 -> vector<16x640xf32>
    %191 = vector.extract_strided_slice %190 {offsets = [0, 0], sizes = [8, 640], strides = [1, 1]} : vector<16x640xf32> to vector<8x640xf32>
    %c200 = arith.constant 200 : index
    %c0_100 = arith.constant 0 : index
    %192 = vector.load %arg8[%c200, %c0_100] : memref<280x640xf32, #tpu.memory_space<vmem>>, vector<8x640xf32>
    tpu.vector_store %arg8[%c200, %c0_100], %191 {strides = array<i32>} : memref<280x640xf32, #tpu.memory_space<vmem>>, vector<8x640xf32>,
    %c14_i32_101 = arith.constant 14 : i32
    %193 = tpu.dynamic_rotate %181 by %c14_i32_101 dim 0 : vector<16x640xf32>, i32 -> vector<16x640xf32>
    %194 = vector.extract_strided_slice %193 {offsets = [0, 0], sizes = [8, 640], strides = [1, 1]} : vector<16x640xf32> to vector<8x640xf32>
    %c256 = arith.constant 256 : index
    %c0_102 = arith.constant 0 : index
    %195 = vector.load %arg8[%c256, %c0_102] : memref<280x640xf32, #tpu.memory_space<vmem>>, vector<8x640xf32>
    tpu.vector_store %arg8[%c256, %c0_102], %194 {strides = array<i32>} : memref<280x640xf32, #tpu.memory_space<vmem>>, vector<8x640xf32>,
    %c80_103 = arith.constant 80 : index
    %c0_104 = arith.constant 0 : index
    %196 = vector.load %arg7[%c80_103, %c0_104] : memref<112x640xf32, #tpu.memory_space<vmem>>, vector<16x640xf32>
    %197 = vector.broadcast %74 : vector<1x640xf32> to vector<16x640xf32>
    %198 = arith.mulf %196, %197 : vector<16x640xf32>
    %199 = vector.broadcast %77 : vector<1x640xf32> to vector<16x640xf32>
    %200 = arith.addf %198, %199 : vector<16x640xf32>
    %cst_105 = arith.constant 0.000000e+00 : f32
    %201 = vector.broadcast %cst_105 : f32 to vector<16x640xf32>
    %202 = arith.maximumf %200, %201 : vector<16x640xf32>
    %cst_106 = arith.constant 0.000000e+00 : f32
    %203 = vector.broadcast %cst_106 : f32 to vector<16x640xf32>
    %204 = arith.select %80, %202, %203 : vector<16x640xi1>, vector<16x640xf32>
    %c2_i32_107 = arith.constant 2 : i32
    %205 = tpu.dynamic_rotate %204 by %c2_i32_107 dim 0 : vector<16x640xf32>, i32 -> vector<16x640xf32>
    %206 = vector.extract_strided_slice %205 {offsets = [0, 0], sizes = [8, 640], strides = [1, 1]} : vector<16x640xf32> to vector<8x640xf32>
    %c40 = arith.constant 40 : index
    %c0_108 = arith.constant 0 : index
    %207 = vector.load %arg8[%c40, %c0_108] : memref<280x640xf32, #tpu.memory_space<vmem>>, vector<8x640xf32>
    tpu.vector_store %arg8[%c40, %c0_108], %206 {strides = array<i32>} : memref<280x640xf32, #tpu.memory_space<vmem>>, vector<8x640xf32>,
    %c1_i32_109 = arith.constant 1 : i32
    %208 = tpu.dynamic_rotate %204 by %c1_i32_109 dim 0 : vector<16x640xf32>, i32 -> vector<16x640xf32>
    %209 = vector.extract_strided_slice %208 {offsets = [0, 0], sizes = [8, 640], strides = [1, 1]} : vector<16x640xf32> to vector<8x640xf32>
    %c96_110 = arith.constant 96 : index
    %c0_111 = arith.constant 0 : index
    %210 = vector.load %arg8[%c96_110, %c0_111] : memref<280x640xf32, #tpu.memory_space<vmem>>, vector<8x640xf32>
    tpu.vector_store %arg8[%c96_110, %c0_111], %209 {strides = array<i32>} : memref<280x640xf32, #tpu.memory_space<vmem>>, vector<8x640xf32>,
    %211 = vector.extract_strided_slice %204 {offsets = [0, 0], sizes = [8, 640], strides = [1, 1]} : vector<16x640xf32> to vector<8x640xf32>
    %c152 = arith.constant 152 : index
    %c0_112 = arith.constant 0 : index
    %212 = vector.load %arg8[%c152, %c0_112] : memref<280x640xf32, #tpu.memory_space<vmem>>, vector<8x640xf32>
    tpu.vector_store %arg8[%c152, %c0_112], %211 {strides = array<i32>} : memref<280x640xf32, #tpu.memory_space<vmem>>, vector<8x640xf32>,
    %c15_i32_113 = arith.constant 15 : i32
    %213 = tpu.dynamic_rotate %204 by %c15_i32_113 dim 0 : vector<16x640xf32>, i32 -> vector<16x640xf32>
    %214 = vector.extract_strided_slice %213 {offsets = [0, 0], sizes = [8, 640], strides = [1, 1]} : vector<16x640xf32> to vector<8x640xf32>
    %c208 = arith.constant 208 : index
    %c0_114 = arith.constant 0 : index
    %215 = vector.load %arg8[%c208, %c0_114] : memref<280x640xf32, #tpu.memory_space<vmem>>, vector<8x640xf32>
    tpu.vector_store %arg8[%c208, %c0_114], %214 {strides = array<i32>} : memref<280x640xf32, #tpu.memory_space<vmem>>, vector<8x640xf32>,
    %c14_i32_115 = arith.constant 14 : i32
    %216 = tpu.dynamic_rotate %204 by %c14_i32_115 dim 0 : vector<16x640xf32>, i32 -> vector<16x640xf32>
    %217 = vector.extract_strided_slice %216 {offsets = [0, 0], sizes = [8, 640], strides = [1, 1]} : vector<16x640xf32> to vector<8x640xf32>
    %c264 = arith.constant 264 : index
    %c0_116 = arith.constant 0 : index
    %218 = vector.load %arg8[%c264, %c0_116] : memref<280x640xf32, #tpu.memory_space<vmem>>, vector<8x640xf32>
    tpu.vector_store %arg8[%c264, %c0_116], %217 {strides = array<i32>} : memref<280x640xf32, #tpu.memory_space<vmem>>, vector<8x640xf32>,
    %c96_117 = arith.constant 96 : index
    %c0_118 = arith.constant 0 : index
    %219 = vector.load %arg7[%c96_117, %c0_118] : memref<112x640xf32, #tpu.memory_space<vmem>>, vector<16x640xf32>
    %220 = vector.broadcast %74 : vector<1x640xf32> to vector<16x640xf32>
    %221 = arith.mulf %219, %220 : vector<16x640xf32>
    %222 = vector.broadcast %77 : vector<1x640xf32> to vector<16x640xf32>
    %223 = arith.addf %221, %222 : vector<16x640xf32>
    %cst_119 = arith.constant 0.000000e+00 : f32
    %224 = vector.broadcast %cst_119 : f32 to vector<16x640xf32>
    %225 = arith.maximumf %223, %224 : vector<16x640xf32>
    %cst_120 = arith.constant 0.000000e+00 : f32
    %226 = vector.broadcast %cst_120 : f32 to vector<16x640xf32>
    %227 = arith.select %80, %225, %226 : vector<16x640xi1>, vector<16x640xf32>
    %c2_i32_121 = arith.constant 2 : i32
    %228 = tpu.dynamic_rotate %227 by %c2_i32_121 dim 0 : vector<16x640xf32>, i32 -> vector<16x640xf32>
    %229 = vector.extract_strided_slice %228 {offsets = [0, 0], sizes = [8, 640], strides = [1, 1]} : vector<16x640xf32> to vector<8x640xf32>
    %c48_122 = arith.constant 48 : index
    %c0_123 = arith.constant 0 : index
    %230 = vector.load %arg8[%c48_122, %c0_123] : memref<280x640xf32, #tpu.memory_space<vmem>>, vector<8x640xf32>
    tpu.vector_store %arg8[%c48_122, %c0_123], %229 {strides = array<i32>} : memref<280x640xf32, #tpu.memory_space<vmem>>, vector<8x640xf32>,
    %c1_i32_124 = arith.constant 1 : i32
    %231 = tpu.dynamic_rotate %227 by %c1_i32_124 dim 0 : vector<16x640xf32>, i32 -> vector<16x640xf32>
    %232 = vector.extract_strided_slice %231 {offsets = [0, 0], sizes = [8, 640], strides = [1, 1]} : vector<16x640xf32> to vector<8x640xf32>
    %c104 = arith.constant 104 : index
    %c0_125 = arith.constant 0 : index
    %233 = vector.load %arg8[%c104, %c0_125] : memref<280x640xf32, #tpu.memory_space<vmem>>, vector<8x640xf32>
    tpu.vector_store %arg8[%c104, %c0_125], %232 {strides = array<i32>} : memref<280x640xf32, #tpu.memory_space<vmem>>, vector<8x640xf32>,
    %234 = vector.extract_strided_slice %227 {offsets = [0, 0], sizes = [8, 640], strides = [1, 1]} : vector<16x640xf32> to vector<8x640xf32>
    %c160 = arith.constant 160 : index
    %c0_126 = arith.constant 0 : index
    %235 = vector.load %arg8[%c160, %c0_126] : memref<280x640xf32, #tpu.memory_space<vmem>>, vector<8x640xf32>
    tpu.vector_store %arg8[%c160, %c0_126], %234 {strides = array<i32>} : memref<280x640xf32, #tpu.memory_space<vmem>>, vector<8x640xf32>,
    %c15_i32_127 = arith.constant 15 : i32
    %236 = tpu.dynamic_rotate %227 by %c15_i32_127 dim 0 : vector<16x640xf32>, i32 -> vector<16x640xf32>
    %237 = vector.extract_strided_slice %236 {offsets = [0, 0], sizes = [8, 640], strides = [1, 1]} : vector<16x640xf32> to vector<8x640xf32>
    %c216 = arith.constant 216 : index
    %c0_128 = arith.constant 0 : index
    %238 = vector.load %arg8[%c216, %c0_128] : memref<280x640xf32, #tpu.memory_space<vmem>>, vector<8x640xf32>
    tpu.vector_store %arg8[%c216, %c0_128], %237 {strides = array<i32>} : memref<280x640xf32, #tpu.memory_space<vmem>>, vector<8x640xf32>,
    %c14_i32_129 = arith.constant 14 : i32
    %239 = tpu.dynamic_rotate %227 by %c14_i32_129 dim 0 : vector<16x640xf32>, i32 -> vector<16x640xf32>
    %240 = vector.extract_strided_slice %239 {offsets = [0, 0], sizes = [8, 640], strides = [1, 1]} : vector<16x640xf32> to vector<8x640xf32>
    %c272 = arith.constant 272 : index
    %c0_130 = arith.constant 0 : index
    %241 = vector.load %arg8[%c272, %c0_130] : memref<280x640xf32, #tpu.memory_space<vmem>>, vector<8x640xf32>
    tpu.vector_store %arg8[%c272, %c0_130], %240 {strides = array<i32>} : memref<280x640xf32, #tpu.memory_space<vmem>>, vector<8x640xf32>,
    %cst_131 = arith.constant 0.000000e+00 : f32
    %242 = vector.broadcast %cst_131 : f32 to vector<8x640xf32>
    %c0_132 = arith.constant 0 : index
    %c0_133 = arith.constant 0 : index
    %243 = vector.load %arg8[%c0_132, %c0_133] : memref<280x640xf32, #tpu.memory_space<vmem>>, vector<8x640xf32>
    %c10 = arith.constant 10 : index
    %c0_134 = arith.constant 0 : index
    %244 = vector.load %arg5[%c10, %c0_134] : memref<25x640xf32, #tpu.memory_space<vmem>>, vector<1x640xf32>
    %245 = vector.broadcast %244 : vector<1x640xf32> to vector<8x640xf32>
    %246 = arith.mulf %243, %245 : vector<8x640xf32>
    %247 = arith.addf %242, %246 : vector<8x640xf32>
    %c56_135 = arith.constant 56 : index
    %c0_136 = arith.constant 0 : index
    %248 = vector.load %arg8[%c56_135, %c0_136] : memref<280x640xf32, #tpu.memory_space<vmem>>, vector<8x640xf32>
    %c11 = arith.constant 11 : index
    %c0_137 = arith.constant 0 : index
    %249 = vector.load %arg5[%c11, %c0_137] : memref<25x640xf32, #tpu.memory_space<vmem>>, vector<1x640xf32>
    %250 = vector.broadcast %249 : vector<1x640xf32> to vector<8x640xf32>
    %251 = arith.mulf %248, %250 : vector<8x640xf32>
    %252 = arith.addf %247, %251 : vector<8x640xf32>
    %c112_138 = arith.constant 112 : index
    %c0_139 = arith.constant 0 : index
    %253 = vector.load %arg8[%c112_138, %c0_139] : memref<280x640xf32, #tpu.memory_space<vmem>>, vector<8x640xf32>
    %c12 = arith.constant 12 : index
    %c0_140 = arith.constant 0 : index
    %254 = vector.load %arg5[%c12, %c0_140] : memref<25x640xf32, #tpu.memory_space<vmem>>, vector<1x640xf32>
    %255 = vector.broadcast %254 : vector<1x640xf32> to vector<8x640xf32>
    %256 = arith.mulf %253, %255 : vector<8x640xf32>
    %257 = arith.addf %252, %256 : vector<8x640xf32>
    %c168_141 = arith.constant 168 : index
    %c0_142 = arith.constant 0 : index
    %258 = vector.load %arg8[%c168_141, %c0_142] : memref<280x640xf32, #tpu.memory_space<vmem>>, vector<8x640xf32>
    %c13 = arith.constant 13 : index
    %c0_143 = arith.constant 0 : index
    %259 = vector.load %arg5[%c13, %c0_143] : memref<25x640xf32, #tpu.memory_space<vmem>>, vector<1x640xf32>
    %260 = vector.broadcast %259 : vector<1x640xf32> to vector<8x640xf32>
    %261 = arith.mulf %258, %260 : vector<8x640xf32>
    %262 = arith.addf %257, %261 : vector<8x640xf32>
    %c224_144 = arith.constant 224 : index
    %c0_145 = arith.constant 0 : index
    %263 = vector.load %arg8[%c224_144, %c0_145] : memref<280x640xf32, #tpu.memory_space<vmem>>, vector<8x640xf32>
    %c14 = arith.constant 14 : index
    %c0_146 = arith.constant 0 : index
    %264 = vector.load %arg5[%c14, %c0_146] : memref<25x640xf32, #tpu.memory_space<vmem>>, vector<1x640xf32>
    %265 = vector.broadcast %264 : vector<1x640xf32> to vector<8x640xf32>
    %266 = arith.mulf %263, %265 : vector<8x640xf32>
    %267 = arith.addf %262, %266 : vector<8x640xf32>
    %c8_147 = arith.constant 8 : index
    %c0_148 = arith.constant 0 : index
    %268 = vector.load %arg8[%c8_147, %c0_148] : memref<280x640xf32, #tpu.memory_space<vmem>>, vector<8x640xf32>
    %c15 = arith.constant 15 : index
    %c0_149 = arith.constant 0 : index
    %269 = vector.load %arg5[%c15, %c0_149] : memref<25x640xf32, #tpu.memory_space<vmem>>, vector<1x640xf32>
    %270 = vector.broadcast %269 : vector<1x640xf32> to vector<8x640xf32>
    %271 = arith.mulf %268, %270 : vector<8x640xf32>
    %272 = arith.addf %267, %271 : vector<8x640xf32>
    %c64_150 = arith.constant 64 : index
    %c0_151 = arith.constant 0 : index
    %273 = vector.load %arg8[%c64_150, %c0_151] : memref<280x640xf32, #tpu.memory_space<vmem>>, vector<8x640xf32>
    %c16_152 = arith.constant 16 : index
    %c0_153 = arith.constant 0 : index
    %274 = vector.load %arg5[%c16_152, %c0_153] : memref<25x640xf32, #tpu.memory_space<vmem>>, vector<1x640xf32>
    %275 = vector.broadcast %274 : vector<1x640xf32> to vector<8x640xf32>
    %276 = arith.mulf %273, %275 : vector<8x640xf32>
    %277 = arith.addf %272, %276 : vector<8x640xf32>
    %c120_154 = arith.constant 120 : index
    %c0_155 = arith.constant 0 : index
    %278 = vector.load %arg8[%c120_154, %c0_155] : memref<280x640xf32, #tpu.memory_space<vmem>>, vector<8x640xf32>
    %c17 = arith.constant 17 : index
    %c0_156 = arith.constant 0 : index
    %279 = vector.load %arg5[%c17, %c0_156] : memref<25x640xf32, #tpu.memory_space<vmem>>, vector<1x640xf32>
    %280 = vector.broadcast %279 : vector<1x640xf32> to vector<8x640xf32>
    %281 = arith.mulf %278, %280 : vector<8x640xf32>
    %282 = arith.addf %277, %281 : vector<8x640xf32>
    %c176_157 = arith.constant 176 : index
    %c0_158 = arith.constant 0 : index
    %283 = vector.load %arg8[%c176_157, %c0_158] : memref<280x640xf32, #tpu.memory_space<vmem>>, vector<8x640xf32>
    %c18 = arith.constant 18 : index
    %c0_159 = arith.constant 0 : index
    %284 = vector.load %arg5[%c18, %c0_159] : memref<25x640xf32, #tpu.memory_space<vmem>>, vector<1x640xf32>
    %285 = vector.broadcast %284 : vector<1x640xf32> to vector<8x640xf32>
    %286 = arith.mulf %283, %285 : vector<8x640xf32>
    %287 = arith.addf %282, %286 : vector<8x640xf32>
    %c232_160 = arith.constant 232 : index
    %c0_161 = arith.constant 0 : index
    %288 = vector.load %arg8[%c232_160, %c0_161] : memref<280x640xf32, #tpu.memory_space<vmem>>, vector<8x640xf32>
    %c19 = arith.constant 19 : index
    %c0_162 = arith.constant 0 : index
    %289 = vector.load %arg5[%c19, %c0_162] : memref<25x640xf32, #tpu.memory_space<vmem>>, vector<1x640xf32>
    %290 = vector.broadcast %289 : vector<1x640xf32> to vector<8x640xf32>
    %291 = arith.mulf %288, %290 : vector<8x640xf32>
    %292 = arith.addf %287, %291 : vector<8x640xf32>
    %c16_163 = arith.constant 16 : index
    %c0_164 = arith.constant 0 : index
    %293 = vector.load %arg8[%c16_163, %c0_164] : memref<280x640xf32, #tpu.memory_space<vmem>>, vector<8x640xf32>
    %c20 = arith.constant 20 : index
    %c0_165 = arith.constant 0 : index
    %294 = vector.load %arg5[%c20, %c0_165] : memref<25x640xf32, #tpu.memory_space<vmem>>, vector<1x640xf32>
    %295 = vector.broadcast %294 : vector<1x640xf32> to vector<8x640xf32>
    %296 = arith.mulf %293, %295 : vector<8x640xf32>
    %297 = arith.addf %292, %296 : vector<8x640xf32>
    %c72_166 = arith.constant 72 : index
    %c0_167 = arith.constant 0 : index
    %298 = vector.load %arg8[%c72_166, %c0_167] : memref<280x640xf32, #tpu.memory_space<vmem>>, vector<8x640xf32>
    %c21 = arith.constant 21 : index
    %c0_168 = arith.constant 0 : index
    %299 = vector.load %arg5[%c21, %c0_168] : memref<25x640xf32, #tpu.memory_space<vmem>>, vector<1x640xf32>
    %300 = vector.broadcast %299 : vector<1x640xf32> to vector<8x640xf32>
    %301 = arith.mulf %298, %300 : vector<8x640xf32>
    %302 = arith.addf %297, %301 : vector<8x640xf32>
    %c128_169 = arith.constant 128 : index
    %c0_170 = arith.constant 0 : index
    %303 = vector.load %arg8[%c128_169, %c0_170] : memref<280x640xf32, #tpu.memory_space<vmem>>, vector<8x640xf32>
    %c22 = arith.constant 22 : index
    %c0_171 = arith.constant 0 : index
    %304 = vector.load %arg5[%c22, %c0_171] : memref<25x640xf32, #tpu.memory_space<vmem>>, vector<1x640xf32>
    %305 = vector.broadcast %304 : vector<1x640xf32> to vector<8x640xf32>
    %306 = arith.mulf %303, %305 : vector<8x640xf32>
    %307 = arith.addf %302, %306 : vector<8x640xf32>
    %c184_172 = arith.constant 184 : index
    %c0_173 = arith.constant 0 : index
    %308 = vector.load %arg8[%c184_172, %c0_173] : memref<280x640xf32, #tpu.memory_space<vmem>>, vector<8x640xf32>
    %c23 = arith.constant 23 : index
    %c0_174 = arith.constant 0 : index
    %309 = vector.load %arg5[%c23, %c0_174] : memref<25x640xf32, #tpu.memory_space<vmem>>, vector<1x640xf32>
    %310 = vector.broadcast %309 : vector<1x640xf32> to vector<8x640xf32>
    %311 = arith.mulf %308, %310 : vector<8x640xf32>
    %312 = arith.addf %307, %311 : vector<8x640xf32>
    %c240_175 = arith.constant 240 : index
    %c0_176 = arith.constant 0 : index
    %313 = vector.load %arg8[%c240_175, %c0_176] : memref<280x640xf32, #tpu.memory_space<vmem>>, vector<8x640xf32>
    %c24_177 = arith.constant 24 : index
    %c0_178 = arith.constant 0 : index
    %314 = vector.load %arg5[%c24_177, %c0_178] : memref<25x640xf32, #tpu.memory_space<vmem>>, vector<1x640xf32>
    %315 = vector.broadcast %314 : vector<1x640xf32> to vector<8x640xf32>
    %316 = arith.mulf %313, %315 : vector<8x640xf32>
    %317 = arith.addf %312, %316 : vector<8x640xf32>
    %c0_179 = arith.constant 0 : index
    %c0_180 = arith.constant 0 : index
    %318 = vector.load %arg6[%c0_179, %c0_180] : memref<56x640xf32, #tpu.memory_space<vmem>>, vector<8x640xf32>
    tpu.vector_store %arg6[%c0_179, %c0_180], %317 {strides = array<i32>} : memref<56x640xf32, #tpu.memory_space<vmem>>, vector<8x640xf32>,
    %cst_181 = arith.constant 0.000000e+00 : f32
    %319 = vector.broadcast %cst_181 : f32 to vector<8x640xf32>
    %c0_182 = arith.constant 0 : index
    %c0_183 = arith.constant 0 : index
    %320 = vector.load %arg8[%c0_182, %c0_183] : memref<280x640xf32, #tpu.memory_space<vmem>>, vector<8x640xf32>
    %c5 = arith.constant 5 : index
    %c0_184 = arith.constant 0 : index
    %321 = vector.load %arg5[%c5, %c0_184] : memref<25x640xf32, #tpu.memory_space<vmem>>, vector<1x640xf32>
    %322 = vector.broadcast %321 : vector<1x640xf32> to vector<8x640xf32>
    %323 = arith.mulf %320, %322 : vector<8x640xf32>
    %324 = arith.addf %319, %323 : vector<8x640xf32>
    %c56_185 = arith.constant 56 : index
    %c0_186 = arith.constant 0 : index
    %325 = vector.load %arg8[%c56_185, %c0_186] : memref<280x640xf32, #tpu.memory_space<vmem>>, vector<8x640xf32>
    %c6 = arith.constant 6 : index
    %c0_187 = arith.constant 0 : index
    %326 = vector.load %arg5[%c6, %c0_187] : memref<25x640xf32, #tpu.memory_space<vmem>>, vector<1x640xf32>
    %327 = vector.broadcast %326 : vector<1x640xf32> to vector<8x640xf32>
    %328 = arith.mulf %325, %327 : vector<8x640xf32>
    %329 = arith.addf %324, %328 : vector<8x640xf32>
    %c112_188 = arith.constant 112 : index
    %c0_189 = arith.constant 0 : index
    %330 = vector.load %arg8[%c112_188, %c0_189] : memref<280x640xf32, #tpu.memory_space<vmem>>, vector<8x640xf32>
    %c7 = arith.constant 7 : index
    %c0_190 = arith.constant 0 : index
    %331 = vector.load %arg5[%c7, %c0_190] : memref<25x640xf32, #tpu.memory_space<vmem>>, vector<1x640xf32>
    %332 = vector.broadcast %331 : vector<1x640xf32> to vector<8x640xf32>
    %333 = arith.mulf %330, %332 : vector<8x640xf32>
    %334 = arith.addf %329, %333 : vector<8x640xf32>
    %c168_191 = arith.constant 168 : index
    %c0_192 = arith.constant 0 : index
    %335 = vector.load %arg8[%c168_191, %c0_192] : memref<280x640xf32, #tpu.memory_space<vmem>>, vector<8x640xf32>
    %c8_193 = arith.constant 8 : index
    %c0_194 = arith.constant 0 : index
    %336 = vector.load %arg5[%c8_193, %c0_194] : memref<25x640xf32, #tpu.memory_space<vmem>>, vector<1x640xf32>
    %337 = vector.broadcast %336 : vector<1x640xf32> to vector<8x640xf32>
    %338 = arith.mulf %335, %337 : vector<8x640xf32>
    %339 = arith.addf %334, %338 : vector<8x640xf32>
    %c224_195 = arith.constant 224 : index
    %c0_196 = arith.constant 0 : index
    %340 = vector.load %arg8[%c224_195, %c0_196] : memref<280x640xf32, #tpu.memory_space<vmem>>, vector<8x640xf32>
    %c9 = arith.constant 9 : index
    %c0_197 = arith.constant 0 : index
    %341 = vector.load %arg5[%c9, %c0_197] : memref<25x640xf32, #tpu.memory_space<vmem>>, vector<1x640xf32>
    %342 = vector.broadcast %341 : vector<1x640xf32> to vector<8x640xf32>
    %343 = arith.mulf %340, %342 : vector<8x640xf32>
    %344 = arith.addf %339, %343 : vector<8x640xf32>
    %c8_198 = arith.constant 8 : index
    %c0_199 = arith.constant 0 : index
    %345 = vector.load %arg8[%c8_198, %c0_199] : memref<280x640xf32, #tpu.memory_space<vmem>>, vector<8x640xf32>
    %c10_200 = arith.constant 10 : index
    %c0_201 = arith.constant 0 : index
    %346 = vector.load %arg5[%c10_200, %c0_201] : memref<25x640xf32, #tpu.memory_space<vmem>>, vector<1x640xf32>
    %347 = vector.broadcast %346 : vector<1x640xf32> to vector<8x640xf32>
    %348 = arith.mulf %345, %347 : vector<8x640xf32>
    %349 = arith.addf %344, %348 : vector<8x640xf32>
    %c64_202 = arith.constant 64 : index
    %c0_203 = arith.constant 0 : index
    %350 = vector.load %arg8[%c64_202, %c0_203] : memref<280x640xf32, #tpu.memory_space<vmem>>, vector<8x640xf32>
    %c11_204 = arith.constant 11 : index
    %c0_205 = arith.constant 0 : index
    %351 = vector.load %arg5[%c11_204, %c0_205] : memref<25x640xf32, #tpu.memory_space<vmem>>, vector<1x640xf32>
    %352 = vector.broadcast %351 : vector<1x640xf32> to vector<8x640xf32>
    %353 = arith.mulf %350, %352 : vector<8x640xf32>
    %354 = arith.addf %349, %353 : vector<8x640xf32>
    %c120_206 = arith.constant 120 : index
    %c0_207 = arith.constant 0 : index
    %355 = vector.load %arg8[%c120_206, %c0_207] : memref<280x640xf32, #tpu.memory_space<vmem>>, vector<8x640xf32>
    %c12_208 = arith.constant 12 : index
    %c0_209 = arith.constant 0 : index
    %356 = vector.load %arg5[%c12_208, %c0_209] : memref<25x640xf32, #tpu.memory_space<vmem>>, vector<1x640xf32>
    %357 = vector.broadcast %356 : vector<1x640xf32> to vector<8x640xf32>
    %358 = arith.mulf %355, %357 : vector<8x640xf32>
    %359 = arith.addf %354, %358 : vector<8x640xf32>
    %c176_210 = arith.constant 176 : index
    %c0_211 = arith.constant 0 : index
    %360 = vector.load %arg8[%c176_210, %c0_211] : memref<280x640xf32, #tpu.memory_space<vmem>>, vector<8x640xf32>
    %c13_212 = arith.constant 13 : index
    %c0_213 = arith.constant 0 : index
    %361 = vector.load %arg5[%c13_212, %c0_213] : memref<25x640xf32, #tpu.memory_space<vmem>>, vector<1x640xf32>
    %362 = vector.broadcast %361 : vector<1x640xf32> to vector<8x640xf32>
    %363 = arith.mulf %360, %362 : vector<8x640xf32>
    %364 = arith.addf %359, %363 : vector<8x640xf32>
    %c232_214 = arith.constant 232 : index
    %c0_215 = arith.constant 0 : index
    %365 = vector.load %arg8[%c232_214, %c0_215] : memref<280x640xf32, #tpu.memory_space<vmem>>, vector<8x640xf32>
    %c14_216 = arith.constant 14 : index
    %c0_217 = arith.constant 0 : index
    %366 = vector.load %arg5[%c14_216, %c0_217] : memref<25x640xf32, #tpu.memory_space<vmem>>, vector<1x640xf32>
    %367 = vector.broadcast %366 : vector<1x640xf32> to vector<8x640xf32>
    %368 = arith.mulf %365, %367 : vector<8x640xf32>
    %369 = arith.addf %364, %368 : vector<8x640xf32>
    %c16_218 = arith.constant 16 : index
    %c0_219 = arith.constant 0 : index
    %370 = vector.load %arg8[%c16_218, %c0_219] : memref<280x640xf32, #tpu.memory_space<vmem>>, vector<8x640xf32>
    %c15_220 = arith.constant 15 : index
    %c0_221 = arith.constant 0 : index
    %371 = vector.load %arg5[%c15_220, %c0_221] : memref<25x640xf32, #tpu.memory_space<vmem>>, vector<1x640xf32>
    %372 = vector.broadcast %371 : vector<1x640xf32> to vector<8x640xf32>
    %373 = arith.mulf %370, %372 : vector<8x640xf32>
    %374 = arith.addf %369, %373 : vector<8x640xf32>
    %c72_222 = arith.constant 72 : index
    %c0_223 = arith.constant 0 : index
    %375 = vector.load %arg8[%c72_222, %c0_223] : memref<280x640xf32, #tpu.memory_space<vmem>>, vector<8x640xf32>
    %c16_224 = arith.constant 16 : index
    %c0_225 = arith.constant 0 : index
    %376 = vector.load %arg5[%c16_224, %c0_225] : memref<25x640xf32, #tpu.memory_space<vmem>>, vector<1x640xf32>
    %377 = vector.broadcast %376 : vector<1x640xf32> to vector<8x640xf32>
    %378 = arith.mulf %375, %377 : vector<8x640xf32>
    %379 = arith.addf %374, %378 : vector<8x640xf32>
    %c128_226 = arith.constant 128 : index
    %c0_227 = arith.constant 0 : index
    %380 = vector.load %arg8[%c128_226, %c0_227] : memref<280x640xf32, #tpu.memory_space<vmem>>, vector<8x640xf32>
    %c17_228 = arith.constant 17 : index
    %c0_229 = arith.constant 0 : index
    %381 = vector.load %arg5[%c17_228, %c0_229] : memref<25x640xf32, #tpu.memory_space<vmem>>, vector<1x640xf32>
    %382 = vector.broadcast %381 : vector<1x640xf32> to vector<8x640xf32>
    %383 = arith.mulf %380, %382 : vector<8x640xf32>
    %384 = arith.addf %379, %383 : vector<8x640xf32>
    %c184_230 = arith.constant 184 : index
    %c0_231 = arith.constant 0 : index
    %385 = vector.load %arg8[%c184_230, %c0_231] : memref<280x640xf32, #tpu.memory_space<vmem>>, vector<8x640xf32>
    %c18_232 = arith.constant 18 : index
    %c0_233 = arith.constant 0 : index
    %386 = vector.load %arg5[%c18_232, %c0_233] : memref<25x640xf32, #tpu.memory_space<vmem>>, vector<1x640xf32>
    %387 = vector.broadcast %386 : vector<1x640xf32> to vector<8x640xf32>
    %388 = arith.mulf %385, %387 : vector<8x640xf32>
    %389 = arith.addf %384, %388 : vector<8x640xf32>
    %c240_234 = arith.constant 240 : index
    %c0_235 = arith.constant 0 : index
    %390 = vector.load %arg8[%c240_234, %c0_235] : memref<280x640xf32, #tpu.memory_space<vmem>>, vector<8x640xf32>
    %c19_236 = arith.constant 19 : index
    %c0_237 = arith.constant 0 : index
    %391 = vector.load %arg5[%c19_236, %c0_237] : memref<25x640xf32, #tpu.memory_space<vmem>>, vector<1x640xf32>
    %392 = vector.broadcast %391 : vector<1x640xf32> to vector<8x640xf32>
    %393 = arith.mulf %390, %392 : vector<8x640xf32>
    %394 = arith.addf %389, %393 : vector<8x640xf32>
    %c24_238 = arith.constant 24 : index
    %c0_239 = arith.constant 0 : index
    %395 = vector.load %arg8[%c24_238, %c0_239] : memref<280x640xf32, #tpu.memory_space<vmem>>, vector<8x640xf32>
    %c20_240 = arith.constant 20 : index
    %c0_241 = arith.constant 0 : index
    %396 = vector.load %arg5[%c20_240, %c0_241] : memref<25x640xf32, #tpu.memory_space<vmem>>, vector<1x640xf32>
    %397 = vector.broadcast %396 : vector<1x640xf32> to vector<8x640xf32>
    %398 = arith.mulf %395, %397 : vector<8x640xf32>
    %399 = arith.addf %394, %398 : vector<8x640xf32>
    %c80_242 = arith.constant 80 : index
    %c0_243 = arith.constant 0 : index
    %400 = vector.load %arg8[%c80_242, %c0_243] : memref<280x640xf32, #tpu.memory_space<vmem>>, vector<8x640xf32>
    %c21_244 = arith.constant 21 : index
    %c0_245 = arith.constant 0 : index
    %401 = vector.load %arg5[%c21_244, %c0_245] : memref<25x640xf32, #tpu.memory_space<vmem>>, vector<1x640xf32>
    %402 = vector.broadcast %401 : vector<1x640xf32> to vector<8x640xf32>
    %403 = arith.mulf %400, %402 : vector<8x640xf32>
    %404 = arith.addf %399, %403 : vector<8x640xf32>
    %c136_246 = arith.constant 136 : index
    %c0_247 = arith.constant 0 : index
    %405 = vector.load %arg8[%c136_246, %c0_247] : memref<280x640xf32, #tpu.memory_space<vmem>>, vector<8x640xf32>
    %c22_248 = arith.constant 22 : index
    %c0_249 = arith.constant 0 : index
    %406 = vector.load %arg5[%c22_248, %c0_249] : memref<25x640xf32, #tpu.memory_space<vmem>>, vector<1x640xf32>
    %407 = vector.broadcast %406 : vector<1x640xf32> to vector<8x640xf32>
    %408 = arith.mulf %405, %407 : vector<8x640xf32>
    %409 = arith.addf %404, %408 : vector<8x640xf32>
    %c192_250 = arith.constant 192 : index
    %c0_251 = arith.constant 0 : index
    %410 = vector.load %arg8[%c192_250, %c0_251] : memref<280x640xf32, #tpu.memory_space<vmem>>, vector<8x640xf32>
    %c23_252 = arith.constant 23 : index
    %c0_253 = arith.constant 0 : index
    %411 = vector.load %arg5[%c23_252, %c0_253] : memref<25x640xf32, #tpu.memory_space<vmem>>, vector<1x640xf32>
    %412 = vector.broadcast %411 : vector<1x640xf32> to vector<8x640xf32>
    %413 = arith.mulf %410, %412 : vector<8x640xf32>
    %414 = arith.addf %409, %413 : vector<8x640xf32>
    %c248_254 = arith.constant 248 : index
    %c0_255 = arith.constant 0 : index
    %415 = vector.load %arg8[%c248_254, %c0_255] : memref<280x640xf32, #tpu.memory_space<vmem>>, vector<8x640xf32>
    %c24_256 = arith.constant 24 : index
    %c0_257 = arith.constant 0 : index
    %416 = vector.load %arg5[%c24_256, %c0_257] : memref<25x640xf32, #tpu.memory_space<vmem>>, vector<1x640xf32>
    %417 = vector.broadcast %416 : vector<1x640xf32> to vector<8x640xf32>
    %418 = arith.mulf %415, %417 : vector<8x640xf32>
    %419 = arith.addf %414, %418 : vector<8x640xf32>
    %c8_258 = arith.constant 8 : index
    %c0_259 = arith.constant 0 : index
    %420 = vector.load %arg6[%c8_258, %c0_259] : memref<56x640xf32, #tpu.memory_space<vmem>>, vector<8x640xf32>
    tpu.vector_store %arg6[%c8_258, %c0_259], %419 {strides = array<i32>} : memref<56x640xf32, #tpu.memory_space<vmem>>, vector<8x640xf32>,
    %cst_260 = arith.constant 0.000000e+00 : f32
    %421 = vector.broadcast %cst_260 : f32 to vector<8x640xf32>
    %c0_261 = arith.constant 0 : index
    %c0_262 = arith.constant 0 : index
    %422 = vector.load %arg8[%c0_261, %c0_262] : memref<280x640xf32, #tpu.memory_space<vmem>>, vector<8x640xf32>
    %c0_263 = arith.constant 0 : index
    %c0_264 = arith.constant 0 : index
    %423 = vector.load %arg5[%c0_263, %c0_264] : memref<25x640xf32, #tpu.memory_space<vmem>>, vector<1x640xf32>
    %424 = vector.broadcast %423 : vector<1x640xf32> to vector<8x640xf32>
    %425 = arith.mulf %422, %424 : vector<8x640xf32>
    %426 = arith.addf %421, %425 : vector<8x640xf32>
    %c56_265 = arith.constant 56 : index
    %c0_266 = arith.constant 0 : index
    %427 = vector.load %arg8[%c56_265, %c0_266] : memref<280x640xf32, #tpu.memory_space<vmem>>, vector<8x640xf32>
    %c1 = arith.constant 1 : index
    %c0_267 = arith.constant 0 : index
    %428 = vector.load %arg5[%c1, %c0_267] : memref<25x640xf32, #tpu.memory_space<vmem>>, vector<1x640xf32>
    %429 = vector.broadcast %428 : vector<1x640xf32> to vector<8x640xf32>
    %430 = arith.mulf %427, %429 : vector<8x640xf32>
    %431 = arith.addf %426, %430 : vector<8x640xf32>
    %c112_268 = arith.constant 112 : index
    %c0_269 = arith.constant 0 : index
    %432 = vector.load %arg8[%c112_268, %c0_269] : memref<280x640xf32, #tpu.memory_space<vmem>>, vector<8x640xf32>
    %c2 = arith.constant 2 : index
    %c0_270 = arith.constant 0 : index
    %433 = vector.load %arg5[%c2, %c0_270] : memref<25x640xf32, #tpu.memory_space<vmem>>, vector<1x640xf32>
    %434 = vector.broadcast %433 : vector<1x640xf32> to vector<8x640xf32>
    %435 = arith.mulf %432, %434 : vector<8x640xf32>
    %436 = arith.addf %431, %435 : vector<8x640xf32>
    %c168_271 = arith.constant 168 : index
    %c0_272 = arith.constant 0 : index
    %437 = vector.load %arg8[%c168_271, %c0_272] : memref<280x640xf32, #tpu.memory_space<vmem>>, vector<8x640xf32>
    %c3 = arith.constant 3 : index
    %c0_273 = arith.constant 0 : index
    %438 = vector.load %arg5[%c3, %c0_273] : memref<25x640xf32, #tpu.memory_space<vmem>>, vector<1x640xf32>
    %439 = vector.broadcast %438 : vector<1x640xf32> to vector<8x640xf32>
    %440 = arith.mulf %437, %439 : vector<8x640xf32>
    %441 = arith.addf %436, %440 : vector<8x640xf32>
    %c224_274 = arith.constant 224 : index
    %c0_275 = arith.constant 0 : index
    %442 = vector.load %arg8[%c224_274, %c0_275] : memref<280x640xf32, #tpu.memory_space<vmem>>, vector<8x640xf32>
    %c4 = arith.constant 4 : index
    %c0_276 = arith.constant 0 : index
    %443 = vector.load %arg5[%c4, %c0_276] : memref<25x640xf32, #tpu.memory_space<vmem>>, vector<1x640xf32>
    %444 = vector.broadcast %443 : vector<1x640xf32> to vector<8x640xf32>
    %445 = arith.mulf %442, %444 : vector<8x640xf32>
    %446 = arith.addf %441, %445 : vector<8x640xf32>
    %c8_277 = arith.constant 8 : index
    %c0_278 = arith.constant 0 : index
    %447 = vector.load %arg8[%c8_277, %c0_278] : memref<280x640xf32, #tpu.memory_space<vmem>>, vector<8x640xf32>
    %c5_279 = arith.constant 5 : index
    %c0_280 = arith.constant 0 : index
    %448 = vector.load %arg5[%c5_279, %c0_280] : memref<25x640xf32, #tpu.memory_space<vmem>>, vector<1x640xf32>
    %449 = vector.broadcast %448 : vector<1x640xf32> to vector<8x640xf32>
    %450 = arith.mulf %447, %449 : vector<8x640xf32>
    %451 = arith.addf %446, %450 : vector<8x640xf32>
    %c64_281 = arith.constant 64 : index
    %c0_282 = arith.constant 0 : index
    %452 = vector.load %arg8[%c64_281, %c0_282] : memref<280x640xf32, #tpu.memory_space<vmem>>, vector<8x640xf32>
    %c6_283 = arith.constant 6 : index
    %c0_284 = arith.constant 0 : index
    %453 = vector.load %arg5[%c6_283, %c0_284] : memref<25x640xf32, #tpu.memory_space<vmem>>, vector<1x640xf32>
    %454 = vector.broadcast %453 : vector<1x640xf32> to vector<8x640xf32>
    %455 = arith.mulf %452, %454 : vector<8x640xf32>
    %456 = arith.addf %451, %455 : vector<8x640xf32>
    %c120_285 = arith.constant 120 : index
    %c0_286 = arith.constant 0 : index
    %457 = vector.load %arg8[%c120_285, %c0_286] : memref<280x640xf32, #tpu.memory_space<vmem>>, vector<8x640xf32>
    %c7_287 = arith.constant 7 : index
    %c0_288 = arith.constant 0 : index
    %458 = vector.load %arg5[%c7_287, %c0_288] : memref<25x640xf32, #tpu.memory_space<vmem>>, vector<1x640xf32>
    %459 = vector.broadcast %458 : vector<1x640xf32> to vector<8x640xf32>
    %460 = arith.mulf %457, %459 : vector<8x640xf32>
    %461 = arith.addf %456, %460 : vector<8x640xf32>
    %c176_289 = arith.constant 176 : index
    %c0_290 = arith.constant 0 : index
    %462 = vector.load %arg8[%c176_289, %c0_290] : memref<280x640xf32, #tpu.memory_space<vmem>>, vector<8x640xf32>
    %c8_291 = arith.constant 8 : index
    %c0_292 = arith.constant 0 : index
    %463 = vector.load %arg5[%c8_291, %c0_292] : memref<25x640xf32, #tpu.memory_space<vmem>>, vector<1x640xf32>
    %464 = vector.broadcast %463 : vector<1x640xf32> to vector<8x640xf32>
    %465 = arith.mulf %462, %464 : vector<8x640xf32>
    %466 = arith.addf %461, %465 : vector<8x640xf32>
    %c232_293 = arith.constant 232 : index
    %c0_294 = arith.constant 0 : index
    %467 = vector.load %arg8[%c232_293, %c0_294] : memref<280x640xf32, #tpu.memory_space<vmem>>, vector<8x640xf32>
    %c9_295 = arith.constant 9 : index
    %c0_296 = arith.constant 0 : index
    %468 = vector.load %arg5[%c9_295, %c0_296] : memref<25x640xf32, #tpu.memory_space<vmem>>, vector<1x640xf32>
    %469 = vector.broadcast %468 : vector<1x640xf32> to vector<8x640xf32>
    %470 = arith.mulf %467, %469 : vector<8x640xf32>
    %471 = arith.addf %466, %470 : vector<8x640xf32>
    %c16_297 = arith.constant 16 : index
    %c0_298 = arith.constant 0 : index
    %472 = vector.load %arg8[%c16_297, %c0_298] : memref<280x640xf32, #tpu.memory_space<vmem>>, vector<8x640xf32>
    %c10_299 = arith.constant 10 : index
    %c0_300 = arith.constant 0 : index
    %473 = vector.load %arg5[%c10_299, %c0_300] : memref<25x640xf32, #tpu.memory_space<vmem>>, vector<1x640xf32>
    %474 = vector.broadcast %473 : vector<1x640xf32> to vector<8x640xf32>
    %475 = arith.mulf %472, %474 : vector<8x640xf32>
    %476 = arith.addf %471, %475 : vector<8x640xf32>
    %c72_301 = arith.constant 72 : index
    %c0_302 = arith.constant 0 : index
    %477 = vector.load %arg8[%c72_301, %c0_302] : memref<280x640xf32, #tpu.memory_space<vmem>>, vector<8x640xf32>
    %c11_303 = arith.constant 11 : index
    %c0_304 = arith.constant 0 : index
    %478 = vector.load %arg5[%c11_303, %c0_304] : memref<25x640xf32, #tpu.memory_space<vmem>>, vector<1x640xf32>
    %479 = vector.broadcast %478 : vector<1x640xf32> to vector<8x640xf32>
    %480 = arith.mulf %477, %479 : vector<8x640xf32>
    %481 = arith.addf %476, %480 : vector<8x640xf32>
    %c128_305 = arith.constant 128 : index
    %c0_306 = arith.constant 0 : index
    %482 = vector.load %arg8[%c128_305, %c0_306] : memref<280x640xf32, #tpu.memory_space<vmem>>, vector<8x640xf32>
    %c12_307 = arith.constant 12 : index
    %c0_308 = arith.constant 0 : index
    %483 = vector.load %arg5[%c12_307, %c0_308] : memref<25x640xf32, #tpu.memory_space<vmem>>, vector<1x640xf32>
    %484 = vector.broadcast %483 : vector<1x640xf32> to vector<8x640xf32>
    %485 = arith.mulf %482, %484 : vector<8x640xf32>
    %486 = arith.addf %481, %485 : vector<8x640xf32>
    %c184_309 = arith.constant 184 : index
    %c0_310 = arith.constant 0 : index
    %487 = vector.load %arg8[%c184_309, %c0_310] : memref<280x640xf32, #tpu.memory_space<vmem>>, vector<8x640xf32>
    %c13_311 = arith.constant 13 : index
    %c0_312 = arith.constant 0 : index
    %488 = vector.load %arg5[%c13_311, %c0_312] : memref<25x640xf32, #tpu.memory_space<vmem>>, vector<1x640xf32>
    %489 = vector.broadcast %488 : vector<1x640xf32> to vector<8x640xf32>
    %490 = arith.mulf %487, %489 : vector<8x640xf32>
    %491 = arith.addf %486, %490 : vector<8x640xf32>
    %c240_313 = arith.constant 240 : index
    %c0_314 = arith.constant 0 : index
    %492 = vector.load %arg8[%c240_313, %c0_314] : memref<280x640xf32, #tpu.memory_space<vmem>>, vector<8x640xf32>
    %c14_315 = arith.constant 14 : index
    %c0_316 = arith.constant 0 : index
    %493 = vector.load %arg5[%c14_315, %c0_316] : memref<25x640xf32, #tpu.memory_space<vmem>>, vector<1x640xf32>
    %494 = vector.broadcast %493 : vector<1x640xf32> to vector<8x640xf32>
    %495 = arith.mulf %492, %494 : vector<8x640xf32>
    %496 = arith.addf %491, %495 : vector<8x640xf32>
    %c24_317 = arith.constant 24 : index
    %c0_318 = arith.constant 0 : index
    %497 = vector.load %arg8[%c24_317, %c0_318] : memref<280x640xf32, #tpu.memory_space<vmem>>, vector<8x640xf32>
    %c15_319 = arith.constant 15 : index
    %c0_320 = arith.constant 0 : index
    %498 = vector.load %arg5[%c15_319, %c0_320] : memref<25x640xf32, #tpu.memory_space<vmem>>, vector<1x640xf32>
    %499 = vector.broadcast %498 : vector<1x640xf32> to vector<8x640xf32>
    %500 = arith.mulf %497, %499 : vector<8x640xf32>
    %501 = arith.addf %496, %500 : vector<8x640xf32>
    %c80_321 = arith.constant 80 : index
    %c0_322 = arith.constant 0 : index
    %502 = vector.load %arg8[%c80_321, %c0_322] : memref<280x640xf32, #tpu.memory_space<vmem>>, vector<8x640xf32>
    %c16_323 = arith.constant 16 : index
    %c0_324 = arith.constant 0 : index
    %503 = vector.load %arg5[%c16_323, %c0_324] : memref<25x640xf32, #tpu.memory_space<vmem>>, vector<1x640xf32>
    %504 = vector.broadcast %503 : vector<1x640xf32> to vector<8x640xf32>
    %505 = arith.mulf %502, %504 : vector<8x640xf32>
    %506 = arith.addf %501, %505 : vector<8x640xf32>
    %c136_325 = arith.constant 136 : index
    %c0_326 = arith.constant 0 : index
    %507 = vector.load %arg8[%c136_325, %c0_326] : memref<280x640xf32, #tpu.memory_space<vmem>>, vector<8x640xf32>
    %c17_327 = arith.constant 17 : index
    %c0_328 = arith.constant 0 : index
    %508 = vector.load %arg5[%c17_327, %c0_328] : memref<25x640xf32, #tpu.memory_space<vmem>>, vector<1x640xf32>
    %509 = vector.broadcast %508 : vector<1x640xf32> to vector<8x640xf32>
    %510 = arith.mulf %507, %509 : vector<8x640xf32>
    %511 = arith.addf %506, %510 : vector<8x640xf32>
    %c192_329 = arith.constant 192 : index
    %c0_330 = arith.constant 0 : index
    %512 = vector.load %arg8[%c192_329, %c0_330] : memref<280x640xf32, #tpu.memory_space<vmem>>, vector<8x640xf32>
    %c18_331 = arith.constant 18 : index
    %c0_332 = arith.constant 0 : index
    %513 = vector.load %arg5[%c18_331, %c0_332] : memref<25x640xf32, #tpu.memory_space<vmem>>, vector<1x640xf32>
    %514 = vector.broadcast %513 : vector<1x640xf32> to vector<8x640xf32>
    %515 = arith.mulf %512, %514 : vector<8x640xf32>
    %516 = arith.addf %511, %515 : vector<8x640xf32>
    %c248_333 = arith.constant 248 : index
    %c0_334 = arith.constant 0 : index
    %517 = vector.load %arg8[%c248_333, %c0_334] : memref<280x640xf32, #tpu.memory_space<vmem>>, vector<8x640xf32>
    %c19_335 = arith.constant 19 : index
    %c0_336 = arith.constant 0 : index
    %518 = vector.load %arg5[%c19_335, %c0_336] : memref<25x640xf32, #tpu.memory_space<vmem>>, vector<1x640xf32>
    %519 = vector.broadcast %518 : vector<1x640xf32> to vector<8x640xf32>
    %520 = arith.mulf %517, %519 : vector<8x640xf32>
    %521 = arith.addf %516, %520 : vector<8x640xf32>
    %c32_337 = arith.constant 32 : index
    %c0_338 = arith.constant 0 : index
    %522 = vector.load %arg8[%c32_337, %c0_338] : memref<280x640xf32, #tpu.memory_space<vmem>>, vector<8x640xf32>
    %c20_339 = arith.constant 20 : index
    %c0_340 = arith.constant 0 : index
    %523 = vector.load %arg5[%c20_339, %c0_340] : memref<25x640xf32, #tpu.memory_space<vmem>>, vector<1x640xf32>
    %524 = vector.broadcast %523 : vector<1x640xf32> to vector<8x640xf32>
    %525 = arith.mulf %522, %524 : vector<8x640xf32>
    %526 = arith.addf %521, %525 : vector<8x640xf32>
    %c88_341 = arith.constant 88 : index
    %c0_342 = arith.constant 0 : index
    %527 = vector.load %arg8[%c88_341, %c0_342] : memref<280x640xf32, #tpu.memory_space<vmem>>, vector<8x640xf32>
    %c21_343 = arith.constant 21 : index
    %c0_344 = arith.constant 0 : index
    %528 = vector.load %arg5[%c21_343, %c0_344] : memref<25x640xf32, #tpu.memory_space<vmem>>, vector<1x640xf32>
    %529 = vector.broadcast %528 : vector<1x640xf32> to vector<8x640xf32>
    %530 = arith.mulf %527, %529 : vector<8x640xf32>
    %531 = arith.addf %526, %530 : vector<8x640xf32>
    %c144_345 = arith.constant 144 : index
    %c0_346 = arith.constant 0 : index
    %532 = vector.load %arg8[%c144_345, %c0_346] : memref<280x640xf32, #tpu.memory_space<vmem>>, vector<8x640xf32>
    %c22_347 = arith.constant 22 : index
    %c0_348 = arith.constant 0 : index
    %533 = vector.load %arg5[%c22_347, %c0_348] : memref<25x640xf32, #tpu.memory_space<vmem>>, vector<1x640xf32>
    %534 = vector.broadcast %533 : vector<1x640xf32> to vector<8x640xf32>
    %535 = arith.mulf %532, %534 : vector<8x640xf32>
    %536 = arith.addf %531, %535 : vector<8x640xf32>
    %c200_349 = arith.constant 200 : index
    %c0_350 = arith.constant 0 : index
    %537 = vector.load %arg8[%c200_349, %c0_350] : memref<280x640xf32, #tpu.memory_space<vmem>>, vector<8x640xf32>
    %c23_351 = arith.constant 23 : index
    %c0_352 = arith.constant 0 : index
    %538 = vector.load %arg5[%c23_351, %c0_352] : memref<25x640xf32, #tpu.memory_space<vmem>>, vector<1x640xf32>
    %539 = vector.broadcast %538 : vector<1x640xf32> to vector<8x640xf32>
    %540 = arith.mulf %537, %539 : vector<8x640xf32>
    %541 = arith.addf %536, %540 : vector<8x640xf32>
    %c256_353 = arith.constant 256 : index
    %c0_354 = arith.constant 0 : index
    %542 = vector.load %arg8[%c256_353, %c0_354] : memref<280x640xf32, #tpu.memory_space<vmem>>, vector<8x640xf32>
    %c24_355 = arith.constant 24 : index
    %c0_356 = arith.constant 0 : index
    %543 = vector.load %arg5[%c24_355, %c0_356] : memref<25x640xf32, #tpu.memory_space<vmem>>, vector<1x640xf32>
    %544 = vector.broadcast %543 : vector<1x640xf32> to vector<8x640xf32>
    %545 = arith.mulf %542, %544 : vector<8x640xf32>
    %546 = arith.addf %541, %545 : vector<8x640xf32>
    %c16_357 = arith.constant 16 : index
    %c0_358 = arith.constant 0 : index
    %547 = vector.load %arg6[%c16_357, %c0_358] : memref<56x640xf32, #tpu.memory_space<vmem>>, vector<8x640xf32>
    tpu.vector_store %arg6[%c16_357, %c0_358], %546 {strides = array<i32>} : memref<56x640xf32, #tpu.memory_space<vmem>>, vector<8x640xf32>,
    %cst_359 = arith.constant 0.000000e+00 : f32
    %548 = vector.broadcast %cst_359 : f32 to vector<8x640xf32>
    %c8_360 = arith.constant 8 : index
    %c0_361 = arith.constant 0 : index
    %549 = vector.load %arg8[%c8_360, %c0_361] : memref<280x640xf32, #tpu.memory_space<vmem>>, vector<8x640xf32>
    %c0_362 = arith.constant 0 : index
    %c0_363 = arith.constant 0 : index
    %550 = vector.load %arg5[%c0_362, %c0_363] : memref<25x640xf32, #tpu.memory_space<vmem>>, vector<1x640xf32>
    %551 = vector.broadcast %550 : vector<1x640xf32> to vector<8x640xf32>
    %552 = arith.mulf %549, %551 : vector<8x640xf32>
    %553 = arith.addf %548, %552 : vector<8x640xf32>
    %c64_364 = arith.constant 64 : index
    %c0_365 = arith.constant 0 : index
    %554 = vector.load %arg8[%c64_364, %c0_365] : memref<280x640xf32, #tpu.memory_space<vmem>>, vector<8x640xf32>
    %c1_366 = arith.constant 1 : index
    %c0_367 = arith.constant 0 : index
    %555 = vector.load %arg5[%c1_366, %c0_367] : memref<25x640xf32, #tpu.memory_space<vmem>>, vector<1x640xf32>
    %556 = vector.broadcast %555 : vector<1x640xf32> to vector<8x640xf32>
    %557 = arith.mulf %554, %556 : vector<8x640xf32>
    %558 = arith.addf %553, %557 : vector<8x640xf32>
    %c120_368 = arith.constant 120 : index
    %c0_369 = arith.constant 0 : index
    %559 = vector.load %arg8[%c120_368, %c0_369] : memref<280x640xf32, #tpu.memory_space<vmem>>, vector<8x640xf32>
    %c2_370 = arith.constant 2 : index
    %c0_371 = arith.constant 0 : index
    %560 = vector.load %arg5[%c2_370, %c0_371] : memref<25x640xf32, #tpu.memory_space<vmem>>, vector<1x640xf32>
    %561 = vector.broadcast %560 : vector<1x640xf32> to vector<8x640xf32>
    %562 = arith.mulf %559, %561 : vector<8x640xf32>
    %563 = arith.addf %558, %562 : vector<8x640xf32>
    %c176_372 = arith.constant 176 : index
    %c0_373 = arith.constant 0 : index
    %564 = vector.load %arg8[%c176_372, %c0_373] : memref<280x640xf32, #tpu.memory_space<vmem>>, vector<8x640xf32>
    %c3_374 = arith.constant 3 : index
    %c0_375 = arith.constant 0 : index
    %565 = vector.load %arg5[%c3_374, %c0_375] : memref<25x640xf32, #tpu.memory_space<vmem>>, vector<1x640xf32>
    %566 = vector.broadcast %565 : vector<1x640xf32> to vector<8x640xf32>
    %567 = arith.mulf %564, %566 : vector<8x640xf32>
    %568 = arith.addf %563, %567 : vector<8x640xf32>
    %c232_376 = arith.constant 232 : index
    %c0_377 = arith.constant 0 : index
    %569 = vector.load %arg8[%c232_376, %c0_377] : memref<280x640xf32, #tpu.memory_space<vmem>>, vector<8x640xf32>
    %c4_378 = arith.constant 4 : index
    %c0_379 = arith.constant 0 : index
    %570 = vector.load %arg5[%c4_378, %c0_379] : memref<25x640xf32, #tpu.memory_space<vmem>>, vector<1x640xf32>
    %571 = vector.broadcast %570 : vector<1x640xf32> to vector<8x640xf32>
    %572 = arith.mulf %569, %571 : vector<8x640xf32>
    %573 = arith.addf %568, %572 : vector<8x640xf32>
    %c16_380 = arith.constant 16 : index
    %c0_381 = arith.constant 0 : index
    %574 = vector.load %arg8[%c16_380, %c0_381] : memref<280x640xf32, #tpu.memory_space<vmem>>, vector<8x640xf32>
    %c5_382 = arith.constant 5 : index
    %c0_383 = arith.constant 0 : index
    %575 = vector.load %arg5[%c5_382, %c0_383] : memref<25x640xf32, #tpu.memory_space<vmem>>, vector<1x640xf32>
    %576 = vector.broadcast %575 : vector<1x640xf32> to vector<8x640xf32>
    %577 = arith.mulf %574, %576 : vector<8x640xf32>
    %578 = arith.addf %573, %577 : vector<8x640xf32>
    %c72_384 = arith.constant 72 : index
    %c0_385 = arith.constant 0 : index
    %579 = vector.load %arg8[%c72_384, %c0_385] : memref<280x640xf32, #tpu.memory_space<vmem>>, vector<8x640xf32>
    %c6_386 = arith.constant 6 : index
    %c0_387 = arith.constant 0 : index
    %580 = vector.load %arg5[%c6_386, %c0_387] : memref<25x640xf32, #tpu.memory_space<vmem>>, vector<1x640xf32>
    %581 = vector.broadcast %580 : vector<1x640xf32> to vector<8x640xf32>
    %582 = arith.mulf %579, %581 : vector<8x640xf32>
    %583 = arith.addf %578, %582 : vector<8x640xf32>
    %c128_388 = arith.constant 128 : index
    %c0_389 = arith.constant 0 : index
    %584 = vector.load %arg8[%c128_388, %c0_389] : memref<280x640xf32, #tpu.memory_space<vmem>>, vector<8x640xf32>
    %c7_390 = arith.constant 7 : index
    %c0_391 = arith.constant 0 : index
    %585 = vector.load %arg5[%c7_390, %c0_391] : memref<25x640xf32, #tpu.memory_space<vmem>>, vector<1x640xf32>
    %586 = vector.broadcast %585 : vector<1x640xf32> to vector<8x640xf32>
    %587 = arith.mulf %584, %586 : vector<8x640xf32>
    %588 = arith.addf %583, %587 : vector<8x640xf32>
    %c184_392 = arith.constant 184 : index
    %c0_393 = arith.constant 0 : index
    %589 = vector.load %arg8[%c184_392, %c0_393] : memref<280x640xf32, #tpu.memory_space<vmem>>, vector<8x640xf32>
    %c8_394 = arith.constant 8 : index
    %c0_395 = arith.constant 0 : index
    %590 = vector.load %arg5[%c8_394, %c0_395] : memref<25x640xf32, #tpu.memory_space<vmem>>, vector<1x640xf32>
    %591 = vector.broadcast %590 : vector<1x640xf32> to vector<8x640xf32>
    %592 = arith.mulf %589, %591 : vector<8x640xf32>
    %593 = arith.addf %588, %592 : vector<8x640xf32>
    %c240_396 = arith.constant 240 : index
    %c0_397 = arith.constant 0 : index
    %594 = vector.load %arg8[%c240_396, %c0_397] : memref<280x640xf32, #tpu.memory_space<vmem>>, vector<8x640xf32>
    %c9_398 = arith.constant 9 : index
    %c0_399 = arith.constant 0 : index
    %595 = vector.load %arg5[%c9_398, %c0_399] : memref<25x640xf32, #tpu.memory_space<vmem>>, vector<1x640xf32>
    %596 = vector.broadcast %595 : vector<1x640xf32> to vector<8x640xf32>
    %597 = arith.mulf %594, %596 : vector<8x640xf32>
    %598 = arith.addf %593, %597 : vector<8x640xf32>
    %c24_400 = arith.constant 24 : index
    %c0_401 = arith.constant 0 : index
    %599 = vector.load %arg8[%c24_400, %c0_401] : memref<280x640xf32, #tpu.memory_space<vmem>>, vector<8x640xf32>
    %c10_402 = arith.constant 10 : index
    %c0_403 = arith.constant 0 : index
    %600 = vector.load %arg5[%c10_402, %c0_403] : memref<25x640xf32, #tpu.memory_space<vmem>>, vector<1x640xf32>
    %601 = vector.broadcast %600 : vector<1x640xf32> to vector<8x640xf32>
    %602 = arith.mulf %599, %601 : vector<8x640xf32>
    %603 = arith.addf %598, %602 : vector<8x640xf32>
    %c80_404 = arith.constant 80 : index
    %c0_405 = arith.constant 0 : index
    %604 = vector.load %arg8[%c80_404, %c0_405] : memref<280x640xf32, #tpu.memory_space<vmem>>, vector<8x640xf32>
    %c11_406 = arith.constant 11 : index
    %c0_407 = arith.constant 0 : index
    %605 = vector.load %arg5[%c11_406, %c0_407] : memref<25x640xf32, #tpu.memory_space<vmem>>, vector<1x640xf32>
    %606 = vector.broadcast %605 : vector<1x640xf32> to vector<8x640xf32>
    %607 = arith.mulf %604, %606 : vector<8x640xf32>
    %608 = arith.addf %603, %607 : vector<8x640xf32>
    %c136_408 = arith.constant 136 : index
    %c0_409 = arith.constant 0 : index
    %609 = vector.load %arg8[%c136_408, %c0_409] : memref<280x640xf32, #tpu.memory_space<vmem>>, vector<8x640xf32>
    %c12_410 = arith.constant 12 : index
    %c0_411 = arith.constant 0 : index
    %610 = vector.load %arg5[%c12_410, %c0_411] : memref<25x640xf32, #tpu.memory_space<vmem>>, vector<1x640xf32>
    %611 = vector.broadcast %610 : vector<1x640xf32> to vector<8x640xf32>
    %612 = arith.mulf %609, %611 : vector<8x640xf32>
    %613 = arith.addf %608, %612 : vector<8x640xf32>
    %c192_412 = arith.constant 192 : index
    %c0_413 = arith.constant 0 : index
    %614 = vector.load %arg8[%c192_412, %c0_413] : memref<280x640xf32, #tpu.memory_space<vmem>>, vector<8x640xf32>
    %c13_414 = arith.constant 13 : index
    %c0_415 = arith.constant 0 : index
    %615 = vector.load %arg5[%c13_414, %c0_415] : memref<25x640xf32, #tpu.memory_space<vmem>>, vector<1x640xf32>
    %616 = vector.broadcast %615 : vector<1x640xf32> to vector<8x640xf32>
    %617 = arith.mulf %614, %616 : vector<8x640xf32>
    %618 = arith.addf %613, %617 : vector<8x640xf32>
    %c248_416 = arith.constant 248 : index
    %c0_417 = arith.constant 0 : index
    %619 = vector.load %arg8[%c248_416, %c0_417] : memref<280x640xf32, #tpu.memory_space<vmem>>, vector<8x640xf32>
    %c14_418 = arith.constant 14 : index
    %c0_419 = arith.constant 0 : index
    %620 = vector.load %arg5[%c14_418, %c0_419] : memref<25x640xf32, #tpu.memory_space<vmem>>, vector<1x640xf32>
    %621 = vector.broadcast %620 : vector<1x640xf32> to vector<8x640xf32>
    %622 = arith.mulf %619, %621 : vector<8x640xf32>
    %623 = arith.addf %618, %622 : vector<8x640xf32>
    %c32_420 = arith.constant 32 : index
    %c0_421 = arith.constant 0 : index
    %624 = vector.load %arg8[%c32_420, %c0_421] : memref<280x640xf32, #tpu.memory_space<vmem>>, vector<8x640xf32>
    %c15_422 = arith.constant 15 : index
    %c0_423 = arith.constant 0 : index
    %625 = vector.load %arg5[%c15_422, %c0_423] : memref<25x640xf32, #tpu.memory_space<vmem>>, vector<1x640xf32>
    %626 = vector.broadcast %625 : vector<1x640xf32> to vector<8x640xf32>
    %627 = arith.mulf %624, %626 : vector<8x640xf32>
    %628 = arith.addf %623, %627 : vector<8x640xf32>
    %c88_424 = arith.constant 88 : index
    %c0_425 = arith.constant 0 : index
    %629 = vector.load %arg8[%c88_424, %c0_425] : memref<280x640xf32, #tpu.memory_space<vmem>>, vector<8x640xf32>
    %c16_426 = arith.constant 16 : index
    %c0_427 = arith.constant 0 : index
    %630 = vector.load %arg5[%c16_426, %c0_427] : memref<25x640xf32, #tpu.memory_space<vmem>>, vector<1x640xf32>
    %631 = vector.broadcast %630 : vector<1x640xf32> to vector<8x640xf32>
    %632 = arith.mulf %629, %631 : vector<8x640xf32>
    %633 = arith.addf %628, %632 : vector<8x640xf32>
    %c144_428 = arith.constant 144 : index
    %c0_429 = arith.constant 0 : index
    %634 = vector.load %arg8[%c144_428, %c0_429] : memref<280x640xf32, #tpu.memory_space<vmem>>, vector<8x640xf32>
    %c17_430 = arith.constant 17 : index
    %c0_431 = arith.constant 0 : index
    %635 = vector.load %arg5[%c17_430, %c0_431] : memref<25x640xf32, #tpu.memory_space<vmem>>, vector<1x640xf32>
    %636 = vector.broadcast %635 : vector<1x640xf32> to vector<8x640xf32>
    %637 = arith.mulf %634, %636 : vector<8x640xf32>
    %638 = arith.addf %633, %637 : vector<8x640xf32>
    %c200_432 = arith.constant 200 : index
    %c0_433 = arith.constant 0 : index
    %639 = vector.load %arg8[%c200_432, %c0_433] : memref<280x640xf32, #tpu.memory_space<vmem>>, vector<8x640xf32>
    %c18_434 = arith.constant 18 : index
    %c0_435 = arith.constant 0 : index
    %640 = vector.load %arg5[%c18_434, %c0_435] : memref<25x640xf32, #tpu.memory_space<vmem>>, vector<1x640xf32>
    %641 = vector.broadcast %640 : vector<1x640xf32> to vector<8x640xf32>
    %642 = arith.mulf %639, %641 : vector<8x640xf32>
    %643 = arith.addf %638, %642 : vector<8x640xf32>
    %c256_436 = arith.constant 256 : index
    %c0_437 = arith.constant 0 : index
    %644 = vector.load %arg8[%c256_436, %c0_437] : memref<280x640xf32, #tpu.memory_space<vmem>>, vector<8x640xf32>
    %c19_438 = arith.constant 19 : index
    %c0_439 = arith.constant 0 : index
    %645 = vector.load %arg5[%c19_438, %c0_439] : memref<25x640xf32, #tpu.memory_space<vmem>>, vector<1x640xf32>
    %646 = vector.broadcast %645 : vector<1x640xf32> to vector<8x640xf32>
    %647 = arith.mulf %644, %646 : vector<8x640xf32>
    %648 = arith.addf %643, %647 : vector<8x640xf32>
    %c40_440 = arith.constant 40 : index
    %c0_441 = arith.constant 0 : index
    %649 = vector.load %arg8[%c40_440, %c0_441] : memref<280x640xf32, #tpu.memory_space<vmem>>, vector<8x640xf32>
    %c20_442 = arith.constant 20 : index
    %c0_443 = arith.constant 0 : index
    %650 = vector.load %arg5[%c20_442, %c0_443] : memref<25x640xf32, #tpu.memory_space<vmem>>, vector<1x640xf32>
    %651 = vector.broadcast %650 : vector<1x640xf32> to vector<8x640xf32>
    %652 = arith.mulf %649, %651 : vector<8x640xf32>
    %653 = arith.addf %648, %652 : vector<8x640xf32>
    %c96_444 = arith.constant 96 : index
    %c0_445 = arith.constant 0 : index
    %654 = vector.load %arg8[%c96_444, %c0_445] : memref<280x640xf32, #tpu.memory_space<vmem>>, vector<8x640xf32>
    %c21_446 = arith.constant 21 : index
    %c0_447 = arith.constant 0 : index
    %655 = vector.load %arg5[%c21_446, %c0_447] : memref<25x640xf32, #tpu.memory_space<vmem>>, vector<1x640xf32>
    %656 = vector.broadcast %655 : vector<1x640xf32> to vector<8x640xf32>
    %657 = arith.mulf %654, %656 : vector<8x640xf32>
    %658 = arith.addf %653, %657 : vector<8x640xf32>
    %c152_448 = arith.constant 152 : index
    %c0_449 = arith.constant 0 : index
    %659 = vector.load %arg8[%c152_448, %c0_449] : memref<280x640xf32, #tpu.memory_space<vmem>>, vector<8x640xf32>
    %c22_450 = arith.constant 22 : index
    %c0_451 = arith.constant 0 : index
    %660 = vector.load %arg5[%c22_450, %c0_451] : memref<25x640xf32, #tpu.memory_space<vmem>>, vector<1x640xf32>
    %661 = vector.broadcast %660 : vector<1x640xf32> to vector<8x640xf32>
    %662 = arith.mulf %659, %661 : vector<8x640xf32>
    %663 = arith.addf %658, %662 : vector<8x640xf32>
    %c208_452 = arith.constant 208 : index
    %c0_453 = arith.constant 0 : index
    %664 = vector.load %arg8[%c208_452, %c0_453] : memref<280x640xf32, #tpu.memory_space<vmem>>, vector<8x640xf32>
    %c23_454 = arith.constant 23 : index
    %c0_455 = arith.constant 0 : index
    %665 = vector.load %arg5[%c23_454, %c0_455] : memref<25x640xf32, #tpu.memory_space<vmem>>, vector<1x640xf32>
    %666 = vector.broadcast %665 : vector<1x640xf32> to vector<8x640xf32>
    %667 = arith.mulf %664, %666 : vector<8x640xf32>
    %668 = arith.addf %663, %667 : vector<8x640xf32>
    %c264_456 = arith.constant 264 : index
    %c0_457 = arith.constant 0 : index
    %669 = vector.load %arg8[%c264_456, %c0_457] : memref<280x640xf32, #tpu.memory_space<vmem>>, vector<8x640xf32>
    %c24_458 = arith.constant 24 : index
    %c0_459 = arith.constant 0 : index
    %670 = vector.load %arg5[%c24_458, %c0_459] : memref<25x640xf32, #tpu.memory_space<vmem>>, vector<1x640xf32>
    %671 = vector.broadcast %670 : vector<1x640xf32> to vector<8x640xf32>
    %672 = arith.mulf %669, %671 : vector<8x640xf32>
    %673 = arith.addf %668, %672 : vector<8x640xf32>
    %c24_460 = arith.constant 24 : index
    %c0_461 = arith.constant 0 : index
    %674 = vector.load %arg6[%c24_460, %c0_461] : memref<56x640xf32, #tpu.memory_space<vmem>>, vector<8x640xf32>
    tpu.vector_store %arg6[%c24_460, %c0_461], %673 {strides = array<i32>} : memref<56x640xf32, #tpu.memory_space<vmem>>, vector<8x640xf32>,
    %cst_462 = arith.constant 0.000000e+00 : f32
    %675 = vector.broadcast %cst_462 : f32 to vector<8x640xf32>
    %c16_463 = arith.constant 16 : index
    %c0_464 = arith.constant 0 : index
    %676 = vector.load %arg8[%c16_463, %c0_464] : memref<280x640xf32, #tpu.memory_space<vmem>>, vector<8x640xf32>
    %c0_465 = arith.constant 0 : index
    %c0_466 = arith.constant 0 : index
    %677 = vector.load %arg5[%c0_465, %c0_466] : memref<25x640xf32, #tpu.memory_space<vmem>>, vector<1x640xf32>
    %678 = vector.broadcast %677 : vector<1x640xf32> to vector<8x640xf32>
    %679 = arith.mulf %676, %678 : vector<8x640xf32>
    %680 = arith.addf %675, %679 : vector<8x640xf32>
    %c72_467 = arith.constant 72 : index
    %c0_468 = arith.constant 0 : index
    %681 = vector.load %arg8[%c72_467, %c0_468] : memref<280x640xf32, #tpu.memory_space<vmem>>, vector<8x640xf32>
    %c1_469 = arith.constant 1 : index
    %c0_470 = arith.constant 0 : index
    %682 = vector.load %arg5[%c1_469, %c0_470] : memref<25x640xf32, #tpu.memory_space<vmem>>, vector<1x640xf32>
    %683 = vector.broadcast %682 : vector<1x640xf32> to vector<8x640xf32>
    %684 = arith.mulf %681, %683 : vector<8x640xf32>
    %685 = arith.addf %680, %684 : vector<8x640xf32>
    %c128_471 = arith.constant 128 : index
    %c0_472 = arith.constant 0 : index
    %686 = vector.load %arg8[%c128_471, %c0_472] : memref<280x640xf32, #tpu.memory_space<vmem>>, vector<8x640xf32>
    %c2_473 = arith.constant 2 : index
    %c0_474 = arith.constant 0 : index
    %687 = vector.load %arg5[%c2_473, %c0_474] : memref<25x640xf32, #tpu.memory_space<vmem>>, vector<1x640xf32>
    %688 = vector.broadcast %687 : vector<1x640xf32> to vector<8x640xf32>
    %689 = arith.mulf %686, %688 : vector<8x640xf32>
    %690 = arith.addf %685, %689 : vector<8x640xf32>
    %c184_475 = arith.constant 184 : index
    %c0_476 = arith.constant 0 : index
    %691 = vector.load %arg8[%c184_475, %c0_476] : memref<280x640xf32, #tpu.memory_space<vmem>>, vector<8x640xf32>
    %c3_477 = arith.constant 3 : index
    %c0_478 = arith.constant 0 : index
    %692 = vector.load %arg5[%c3_477, %c0_478] : memref<25x640xf32, #tpu.memory_space<vmem>>, vector<1x640xf32>
    %693 = vector.broadcast %692 : vector<1x640xf32> to vector<8x640xf32>
    %694 = arith.mulf %691, %693 : vector<8x640xf32>
    %695 = arith.addf %690, %694 : vector<8x640xf32>
    %c240_479 = arith.constant 240 : index
    %c0_480 = arith.constant 0 : index
    %696 = vector.load %arg8[%c240_479, %c0_480] : memref<280x640xf32, #tpu.memory_space<vmem>>, vector<8x640xf32>
    %c4_481 = arith.constant 4 : index
    %c0_482 = arith.constant 0 : index
    %697 = vector.load %arg5[%c4_481, %c0_482] : memref<25x640xf32, #tpu.memory_space<vmem>>, vector<1x640xf32>
    %698 = vector.broadcast %697 : vector<1x640xf32> to vector<8x640xf32>
    %699 = arith.mulf %696, %698 : vector<8x640xf32>
    %700 = arith.addf %695, %699 : vector<8x640xf32>
    %c24_483 = arith.constant 24 : index
    %c0_484 = arith.constant 0 : index
    %701 = vector.load %arg8[%c24_483, %c0_484] : memref<280x640xf32, #tpu.memory_space<vmem>>, vector<8x640xf32>
    %c5_485 = arith.constant 5 : index
    %c0_486 = arith.constant 0 : index
    %702 = vector.load %arg5[%c5_485, %c0_486] : memref<25x640xf32, #tpu.memory_space<vmem>>, vector<1x640xf32>
    %703 = vector.broadcast %702 : vector<1x640xf32> to vector<8x640xf32>
    %704 = arith.mulf %701, %703 : vector<8x640xf32>
    %705 = arith.addf %700, %704 : vector<8x640xf32>
    %c80_487 = arith.constant 80 : index
    %c0_488 = arith.constant 0 : index
    %706 = vector.load %arg8[%c80_487, %c0_488] : memref<280x640xf32, #tpu.memory_space<vmem>>, vector<8x640xf32>
    %c6_489 = arith.constant 6 : index
    %c0_490 = arith.constant 0 : index
    %707 = vector.load %arg5[%c6_489, %c0_490] : memref<25x640xf32, #tpu.memory_space<vmem>>, vector<1x640xf32>
    %708 = vector.broadcast %707 : vector<1x640xf32> to vector<8x640xf32>
    %709 = arith.mulf %706, %708 : vector<8x640xf32>
    %710 = arith.addf %705, %709 : vector<8x640xf32>
    %c136_491 = arith.constant 136 : index
    %c0_492 = arith.constant 0 : index
    %711 = vector.load %arg8[%c136_491, %c0_492] : memref<280x640xf32, #tpu.memory_space<vmem>>, vector<8x640xf32>
    %c7_493 = arith.constant 7 : index
    %c0_494 = arith.constant 0 : index
    %712 = vector.load %arg5[%c7_493, %c0_494] : memref<25x640xf32, #tpu.memory_space<vmem>>, vector<1x640xf32>
    %713 = vector.broadcast %712 : vector<1x640xf32> to vector<8x640xf32>
    %714 = arith.mulf %711, %713 : vector<8x640xf32>
    %715 = arith.addf %710, %714 : vector<8x640xf32>
    %c192_495 = arith.constant 192 : index
    %c0_496 = arith.constant 0 : index
    %716 = vector.load %arg8[%c192_495, %c0_496] : memref<280x640xf32, #tpu.memory_space<vmem>>, vector<8x640xf32>
    %c8_497 = arith.constant 8 : index
    %c0_498 = arith.constant 0 : index
    %717 = vector.load %arg5[%c8_497, %c0_498] : memref<25x640xf32, #tpu.memory_space<vmem>>, vector<1x640xf32>
    %718 = vector.broadcast %717 : vector<1x640xf32> to vector<8x640xf32>
    %719 = arith.mulf %716, %718 : vector<8x640xf32>
    %720 = arith.addf %715, %719 : vector<8x640xf32>
    %c248_499 = arith.constant 248 : index
    %c0_500 = arith.constant 0 : index
    %721 = vector.load %arg8[%c248_499, %c0_500] : memref<280x640xf32, #tpu.memory_space<vmem>>, vector<8x640xf32>
    %c9_501 = arith.constant 9 : index
    %c0_502 = arith.constant 0 : index
    %722 = vector.load %arg5[%c9_501, %c0_502] : memref<25x640xf32, #tpu.memory_space<vmem>>, vector<1x640xf32>
    %723 = vector.broadcast %722 : vector<1x640xf32> to vector<8x640xf32>
    %724 = arith.mulf %721, %723 : vector<8x640xf32>
    %725 = arith.addf %720, %724 : vector<8x640xf32>
    %c32_503 = arith.constant 32 : index
    %c0_504 = arith.constant 0 : index
    %726 = vector.load %arg8[%c32_503, %c0_504] : memref<280x640xf32, #tpu.memory_space<vmem>>, vector<8x640xf32>
    %c10_505 = arith.constant 10 : index
    %c0_506 = arith.constant 0 : index
    %727 = vector.load %arg5[%c10_505, %c0_506] : memref<25x640xf32, #tpu.memory_space<vmem>>, vector<1x640xf32>
    %728 = vector.broadcast %727 : vector<1x640xf32> to vector<8x640xf32>
    %729 = arith.mulf %726, %728 : vector<8x640xf32>
    %730 = arith.addf %725, %729 : vector<8x640xf32>
    %c88_507 = arith.constant 88 : index
    %c0_508 = arith.constant 0 : index
    %731 = vector.load %arg8[%c88_507, %c0_508] : memref<280x640xf32, #tpu.memory_space<vmem>>, vector<8x640xf32>
    %c11_509 = arith.constant 11 : index
    %c0_510 = arith.constant 0 : index
    %732 = vector.load %arg5[%c11_509, %c0_510] : memref<25x640xf32, #tpu.memory_space<vmem>>, vector<1x640xf32>
    %733 = vector.broadcast %732 : vector<1x640xf32> to vector<8x640xf32>
    %734 = arith.mulf %731, %733 : vector<8x640xf32>
    %735 = arith.addf %730, %734 : vector<8x640xf32>
    %c144_511 = arith.constant 144 : index
    %c0_512 = arith.constant 0 : index
    %736 = vector.load %arg8[%c144_511, %c0_512] : memref<280x640xf32, #tpu.memory_space<vmem>>, vector<8x640xf32>
    %c12_513 = arith.constant 12 : index
    %c0_514 = arith.constant 0 : index
    %737 = vector.load %arg5[%c12_513, %c0_514] : memref<25x640xf32, #tpu.memory_space<vmem>>, vector<1x640xf32>
    %738 = vector.broadcast %737 : vector<1x640xf32> to vector<8x640xf32>
    %739 = arith.mulf %736, %738 : vector<8x640xf32>
    %740 = arith.addf %735, %739 : vector<8x640xf32>
    %c200_515 = arith.constant 200 : index
    %c0_516 = arith.constant 0 : index
    %741 = vector.load %arg8[%c200_515, %c0_516] : memref<280x640xf32, #tpu.memory_space<vmem>>, vector<8x640xf32>
    %c13_517 = arith.constant 13 : index
    %c0_518 = arith.constant 0 : index
    %742 = vector.load %arg5[%c13_517, %c0_518] : memref<25x640xf32, #tpu.memory_space<vmem>>, vector<1x640xf32>
    %743 = vector.broadcast %742 : vector<1x640xf32> to vector<8x640xf32>
    %744 = arith.mulf %741, %743 : vector<8x640xf32>
    %745 = arith.addf %740, %744 : vector<8x640xf32>
    %c256_519 = arith.constant 256 : index
    %c0_520 = arith.constant 0 : index
    %746 = vector.load %arg8[%c256_519, %c0_520] : memref<280x640xf32, #tpu.memory_space<vmem>>, vector<8x640xf32>
    %c14_521 = arith.constant 14 : index
    %c0_522 = arith.constant 0 : index
    %747 = vector.load %arg5[%c14_521, %c0_522] : memref<25x640xf32, #tpu.memory_space<vmem>>, vector<1x640xf32>
    %748 = vector.broadcast %747 : vector<1x640xf32> to vector<8x640xf32>
    %749 = arith.mulf %746, %748 : vector<8x640xf32>
    %750 = arith.addf %745, %749 : vector<8x640xf32>
    %c40_523 = arith.constant 40 : index
    %c0_524 = arith.constant 0 : index
    %751 = vector.load %arg8[%c40_523, %c0_524] : memref<280x640xf32, #tpu.memory_space<vmem>>, vector<8x640xf32>
    %c15_525 = arith.constant 15 : index
    %c0_526 = arith.constant 0 : index
    %752 = vector.load %arg5[%c15_525, %c0_526] : memref<25x640xf32, #tpu.memory_space<vmem>>, vector<1x640xf32>
    %753 = vector.broadcast %752 : vector<1x640xf32> to vector<8x640xf32>
    %754 = arith.mulf %751, %753 : vector<8x640xf32>
    %755 = arith.addf %750, %754 : vector<8x640xf32>
    %c96_527 = arith.constant 96 : index
    %c0_528 = arith.constant 0 : index
    %756 = vector.load %arg8[%c96_527, %c0_528] : memref<280x640xf32, #tpu.memory_space<vmem>>, vector<8x640xf32>
    %c16_529 = arith.constant 16 : index
    %c0_530 = arith.constant 0 : index
    %757 = vector.load %arg5[%c16_529, %c0_530] : memref<25x640xf32, #tpu.memory_space<vmem>>, vector<1x640xf32>
    %758 = vector.broadcast %757 : vector<1x640xf32> to vector<8x640xf32>
    %759 = arith.mulf %756, %758 : vector<8x640xf32>
    %760 = arith.addf %755, %759 : vector<8x640xf32>
    %c152_531 = arith.constant 152 : index
    %c0_532 = arith.constant 0 : index
    %761 = vector.load %arg8[%c152_531, %c0_532] : memref<280x640xf32, #tpu.memory_space<vmem>>, vector<8x640xf32>
    %c17_533 = arith.constant 17 : index
    %c0_534 = arith.constant 0 : index
    %762 = vector.load %arg5[%c17_533, %c0_534] : memref<25x640xf32, #tpu.memory_space<vmem>>, vector<1x640xf32>
    %763 = vector.broadcast %762 : vector<1x640xf32> to vector<8x640xf32>
    %764 = arith.mulf %761, %763 : vector<8x640xf32>
    %765 = arith.addf %760, %764 : vector<8x640xf32>
    %c208_535 = arith.constant 208 : index
    %c0_536 = arith.constant 0 : index
    %766 = vector.load %arg8[%c208_535, %c0_536] : memref<280x640xf32, #tpu.memory_space<vmem>>, vector<8x640xf32>
    %c18_537 = arith.constant 18 : index
    %c0_538 = arith.constant 0 : index
    %767 = vector.load %arg5[%c18_537, %c0_538] : memref<25x640xf32, #tpu.memory_space<vmem>>, vector<1x640xf32>
    %768 = vector.broadcast %767 : vector<1x640xf32> to vector<8x640xf32>
    %769 = arith.mulf %766, %768 : vector<8x640xf32>
    %770 = arith.addf %765, %769 : vector<8x640xf32>
    %c264_539 = arith.constant 264 : index
    %c0_540 = arith.constant 0 : index
    %771 = vector.load %arg8[%c264_539, %c0_540] : memref<280x640xf32, #tpu.memory_space<vmem>>, vector<8x640xf32>
    %c19_541 = arith.constant 19 : index
    %c0_542 = arith.constant 0 : index
    %772 = vector.load %arg5[%c19_541, %c0_542] : memref<25x640xf32, #tpu.memory_space<vmem>>, vector<1x640xf32>
    %773 = vector.broadcast %772 : vector<1x640xf32> to vector<8x640xf32>
    %774 = arith.mulf %771, %773 : vector<8x640xf32>
    %775 = arith.addf %770, %774 : vector<8x640xf32>
    %c48_543 = arith.constant 48 : index
    %c0_544 = arith.constant 0 : index
    %776 = vector.load %arg8[%c48_543, %c0_544] : memref<280x640xf32, #tpu.memory_space<vmem>>, vector<8x640xf32>
    %c20_545 = arith.constant 20 : index
    %c0_546 = arith.constant 0 : index
    %777 = vector.load %arg5[%c20_545, %c0_546] : memref<25x640xf32, #tpu.memory_space<vmem>>, vector<1x640xf32>
    %778 = vector.broadcast %777 : vector<1x640xf32> to vector<8x640xf32>
    %779 = arith.mulf %776, %778 : vector<8x640xf32>
    %780 = arith.addf %775, %779 : vector<8x640xf32>
    %c104_547 = arith.constant 104 : index
    %c0_548 = arith.constant 0 : index
    %781 = vector.load %arg8[%c104_547, %c0_548] : memref<280x640xf32, #tpu.memory_space<vmem>>, vector<8x640xf32>
    %c21_549 = arith.constant 21 : index
    %c0_550 = arith.constant 0 : index
    %782 = vector.load %arg5[%c21_549, %c0_550] : memref<25x640xf32, #tpu.memory_space<vmem>>, vector<1x640xf32>
    %783 = vector.broadcast %782 : vector<1x640xf32> to vector<8x640xf32>
    %784 = arith.mulf %781, %783 : vector<8x640xf32>
    %785 = arith.addf %780, %784 : vector<8x640xf32>
    %c160_551 = arith.constant 160 : index
    %c0_552 = arith.constant 0 : index
    %786 = vector.load %arg8[%c160_551, %c0_552] : memref<280x640xf32, #tpu.memory_space<vmem>>, vector<8x640xf32>
    %c22_553 = arith.constant 22 : index
    %c0_554 = arith.constant 0 : index
    %787 = vector.load %arg5[%c22_553, %c0_554] : memref<25x640xf32, #tpu.memory_space<vmem>>, vector<1x640xf32>
    %788 = vector.broadcast %787 : vector<1x640xf32> to vector<8x640xf32>
    %789 = arith.mulf %786, %788 : vector<8x640xf32>
    %790 = arith.addf %785, %789 : vector<8x640xf32>
    %c216_555 = arith.constant 216 : index
    %c0_556 = arith.constant 0 : index
    %791 = vector.load %arg8[%c216_555, %c0_556] : memref<280x640xf32, #tpu.memory_space<vmem>>, vector<8x640xf32>
    %c23_557 = arith.constant 23 : index
    %c0_558 = arith.constant 0 : index
    %792 = vector.load %arg5[%c23_557, %c0_558] : memref<25x640xf32, #tpu.memory_space<vmem>>, vector<1x640xf32>
    %793 = vector.broadcast %792 : vector<1x640xf32> to vector<8x640xf32>
    %794 = arith.mulf %791, %793 : vector<8x640xf32>
    %795 = arith.addf %790, %794 : vector<8x640xf32>
    %c272_559 = arith.constant 272 : index
    %c0_560 = arith.constant 0 : index
    %796 = vector.load %arg8[%c272_559, %c0_560] : memref<280x640xf32, #tpu.memory_space<vmem>>, vector<8x640xf32>
    %c24_561 = arith.constant 24 : index
    %c0_562 = arith.constant 0 : index
    %797 = vector.load %arg5[%c24_561, %c0_562] : memref<25x640xf32, #tpu.memory_space<vmem>>, vector<1x640xf32>
    %798 = vector.broadcast %797 : vector<1x640xf32> to vector<8x640xf32>
    %799 = arith.mulf %796, %798 : vector<8x640xf32>
    %800 = arith.addf %795, %799 : vector<8x640xf32>
    %c32_563 = arith.constant 32 : index
    %c0_564 = arith.constant 0 : index
    %801 = vector.load %arg6[%c32_563, %c0_564] : memref<56x640xf32, #tpu.memory_space<vmem>>, vector<8x640xf32>
    tpu.vector_store %arg6[%c32_563, %c0_564], %800 {strides = array<i32>} : memref<56x640xf32, #tpu.memory_space<vmem>>, vector<8x640xf32>,
    %cst_565 = arith.constant 0.000000e+00 : f32
    %802 = vector.broadcast %cst_565 : f32 to vector<8x640xf32>
    %c24_566 = arith.constant 24 : index
    %c0_567 = arith.constant 0 : index
    %803 = vector.load %arg8[%c24_566, %c0_567] : memref<280x640xf32, #tpu.memory_space<vmem>>, vector<8x640xf32>
    %c0_568 = arith.constant 0 : index
    %c0_569 = arith.constant 0 : index
    %804 = vector.load %arg5[%c0_568, %c0_569] : memref<25x640xf32, #tpu.memory_space<vmem>>, vector<1x640xf32>
    %805 = vector.broadcast %804 : vector<1x640xf32> to vector<8x640xf32>
    %806 = arith.mulf %803, %805 : vector<8x640xf32>
    %807 = arith.addf %802, %806 : vector<8x640xf32>
    %c80_570 = arith.constant 80 : index
    %c0_571 = arith.constant 0 : index
    %808 = vector.load %arg8[%c80_570, %c0_571] : memref<280x640xf32, #tpu.memory_space<vmem>>, vector<8x640xf32>
    %c1_572 = arith.constant 1 : index
    %c0_573 = arith.constant 0 : index
    %809 = vector.load %arg5[%c1_572, %c0_573] : memref<25x640xf32, #tpu.memory_space<vmem>>, vector<1x640xf32>
    %810 = vector.broadcast %809 : vector<1x640xf32> to vector<8x640xf32>
    %811 = arith.mulf %808, %810 : vector<8x640xf32>
    %812 = arith.addf %807, %811 : vector<8x640xf32>
    %c136_574 = arith.constant 136 : index
    %c0_575 = arith.constant 0 : index
    %813 = vector.load %arg8[%c136_574, %c0_575] : memref<280x640xf32, #tpu.memory_space<vmem>>, vector<8x640xf32>
    %c2_576 = arith.constant 2 : index
    %c0_577 = arith.constant 0 : index
    %814 = vector.load %arg5[%c2_576, %c0_577] : memref<25x640xf32, #tpu.memory_space<vmem>>, vector<1x640xf32>
    %815 = vector.broadcast %814 : vector<1x640xf32> to vector<8x640xf32>
    %816 = arith.mulf %813, %815 : vector<8x640xf32>
    %817 = arith.addf %812, %816 : vector<8x640xf32>
    %c192_578 = arith.constant 192 : index
    %c0_579 = arith.constant 0 : index
    %818 = vector.load %arg8[%c192_578, %c0_579] : memref<280x640xf32, #tpu.memory_space<vmem>>, vector<8x640xf32>
    %c3_580 = arith.constant 3 : index
    %c0_581 = arith.constant 0 : index
    %819 = vector.load %arg5[%c3_580, %c0_581] : memref<25x640xf32, #tpu.memory_space<vmem>>, vector<1x640xf32>
    %820 = vector.broadcast %819 : vector<1x640xf32> to vector<8x640xf32>
    %821 = arith.mulf %818, %820 : vector<8x640xf32>
    %822 = arith.addf %817, %821 : vector<8x640xf32>
    %c248_582 = arith.constant 248 : index
    %c0_583 = arith.constant 0 : index
    %823 = vector.load %arg8[%c248_582, %c0_583] : memref<280x640xf32, #tpu.memory_space<vmem>>, vector<8x640xf32>
    %c4_584 = arith.constant 4 : index
    %c0_585 = arith.constant 0 : index
    %824 = vector.load %arg5[%c4_584, %c0_585] : memref<25x640xf32, #tpu.memory_space<vmem>>, vector<1x640xf32>
    %825 = vector.broadcast %824 : vector<1x640xf32> to vector<8x640xf32>
    %826 = arith.mulf %823, %825 : vector<8x640xf32>
    %827 = arith.addf %822, %826 : vector<8x640xf32>
    %c32_586 = arith.constant 32 : index
    %c0_587 = arith.constant 0 : index
    %828 = vector.load %arg8[%c32_586, %c0_587] : memref<280x640xf32, #tpu.memory_space<vmem>>, vector<8x640xf32>
    %c5_588 = arith.constant 5 : index
    %c0_589 = arith.constant 0 : index
    %829 = vector.load %arg5[%c5_588, %c0_589] : memref<25x640xf32, #tpu.memory_space<vmem>>, vector<1x640xf32>
    %830 = vector.broadcast %829 : vector<1x640xf32> to vector<8x640xf32>
    %831 = arith.mulf %828, %830 : vector<8x640xf32>
    %832 = arith.addf %827, %831 : vector<8x640xf32>
    %c88_590 = arith.constant 88 : index
    %c0_591 = arith.constant 0 : index
    %833 = vector.load %arg8[%c88_590, %c0_591] : memref<280x640xf32, #tpu.memory_space<vmem>>, vector<8x640xf32>
    %c6_592 = arith.constant 6 : index
    %c0_593 = arith.constant 0 : index
    %834 = vector.load %arg5[%c6_592, %c0_593] : memref<25x640xf32, #tpu.memory_space<vmem>>, vector<1x640xf32>
    %835 = vector.broadcast %834 : vector<1x640xf32> to vector<8x640xf32>
    %836 = arith.mulf %833, %835 : vector<8x640xf32>
    %837 = arith.addf %832, %836 : vector<8x640xf32>
    %c144_594 = arith.constant 144 : index
    %c0_595 = arith.constant 0 : index
    %838 = vector.load %arg8[%c144_594, %c0_595] : memref<280x640xf32, #tpu.memory_space<vmem>>, vector<8x640xf32>
    %c7_596 = arith.constant 7 : index
    %c0_597 = arith.constant 0 : index
    %839 = vector.load %arg5[%c7_596, %c0_597] : memref<25x640xf32, #tpu.memory_space<vmem>>, vector<1x640xf32>
    %840 = vector.broadcast %839 : vector<1x640xf32> to vector<8x640xf32>
    %841 = arith.mulf %838, %840 : vector<8x640xf32>
    %842 = arith.addf %837, %841 : vector<8x640xf32>
    %c200_598 = arith.constant 200 : index
    %c0_599 = arith.constant 0 : index
    %843 = vector.load %arg8[%c200_598, %c0_599] : memref<280x640xf32, #tpu.memory_space<vmem>>, vector<8x640xf32>
    %c8_600 = arith.constant 8 : index
    %c0_601 = arith.constant 0 : index
    %844 = vector.load %arg5[%c8_600, %c0_601] : memref<25x640xf32, #tpu.memory_space<vmem>>, vector<1x640xf32>
    %845 = vector.broadcast %844 : vector<1x640xf32> to vector<8x640xf32>
    %846 = arith.mulf %843, %845 : vector<8x640xf32>
    %847 = arith.addf %842, %846 : vector<8x640xf32>
    %c256_602 = arith.constant 256 : index
    %c0_603 = arith.constant 0 : index
    %848 = vector.load %arg8[%c256_602, %c0_603] : memref<280x640xf32, #tpu.memory_space<vmem>>, vector<8x640xf32>
    %c9_604 = arith.constant 9 : index
    %c0_605 = arith.constant 0 : index
    %849 = vector.load %arg5[%c9_604, %c0_605] : memref<25x640xf32, #tpu.memory_space<vmem>>, vector<1x640xf32>
    %850 = vector.broadcast %849 : vector<1x640xf32> to vector<8x640xf32>
    %851 = arith.mulf %848, %850 : vector<8x640xf32>
    %852 = arith.addf %847, %851 : vector<8x640xf32>
    %c40_606 = arith.constant 40 : index
    %c0_607 = arith.constant 0 : index
    %853 = vector.load %arg8[%c40_606, %c0_607] : memref<280x640xf32, #tpu.memory_space<vmem>>, vector<8x640xf32>
    %c10_608 = arith.constant 10 : index
    %c0_609 = arith.constant 0 : index
    %854 = vector.load %arg5[%c10_608, %c0_609] : memref<25x640xf32, #tpu.memory_space<vmem>>, vector<1x640xf32>
    %855 = vector.broadcast %854 : vector<1x640xf32> to vector<8x640xf32>
    %856 = arith.mulf %853, %855 : vector<8x640xf32>
    %857 = arith.addf %852, %856 : vector<8x640xf32>
    %c96_610 = arith.constant 96 : index
    %c0_611 = arith.constant 0 : index
    %858 = vector.load %arg8[%c96_610, %c0_611] : memref<280x640xf32, #tpu.memory_space<vmem>>, vector<8x640xf32>
    %c11_612 = arith.constant 11 : index
    %c0_613 = arith.constant 0 : index
    %859 = vector.load %arg5[%c11_612, %c0_613] : memref<25x640xf32, #tpu.memory_space<vmem>>, vector<1x640xf32>
    %860 = vector.broadcast %859 : vector<1x640xf32> to vector<8x640xf32>
    %861 = arith.mulf %858, %860 : vector<8x640xf32>
    %862 = arith.addf %857, %861 : vector<8x640xf32>
    %c152_614 = arith.constant 152 : index
    %c0_615 = arith.constant 0 : index
    %863 = vector.load %arg8[%c152_614, %c0_615] : memref<280x640xf32, #tpu.memory_space<vmem>>, vector<8x640xf32>
    %c12_616 = arith.constant 12 : index
    %c0_617 = arith.constant 0 : index
    %864 = vector.load %arg5[%c12_616, %c0_617] : memref<25x640xf32, #tpu.memory_space<vmem>>, vector<1x640xf32>
    %865 = vector.broadcast %864 : vector<1x640xf32> to vector<8x640xf32>
    %866 = arith.mulf %863, %865 : vector<8x640xf32>
    %867 = arith.addf %862, %866 : vector<8x640xf32>
    %c208_618 = arith.constant 208 : index
    %c0_619 = arith.constant 0 : index
    %868 = vector.load %arg8[%c208_618, %c0_619] : memref<280x640xf32, #tpu.memory_space<vmem>>, vector<8x640xf32>
    %c13_620 = arith.constant 13 : index
    %c0_621 = arith.constant 0 : index
    %869 = vector.load %arg5[%c13_620, %c0_621] : memref<25x640xf32, #tpu.memory_space<vmem>>, vector<1x640xf32>
    %870 = vector.broadcast %869 : vector<1x640xf32> to vector<8x640xf32>
    %871 = arith.mulf %868, %870 : vector<8x640xf32>
    %872 = arith.addf %867, %871 : vector<8x640xf32>
    %c264_622 = arith.constant 264 : index
    %c0_623 = arith.constant 0 : index
    %873 = vector.load %arg8[%c264_622, %c0_623] : memref<280x640xf32, #tpu.memory_space<vmem>>, vector<8x640xf32>
    %c14_624 = arith.constant 14 : index
    %c0_625 = arith.constant 0 : index
    %874 = vector.load %arg5[%c14_624, %c0_625] : memref<25x640xf32, #tpu.memory_space<vmem>>, vector<1x640xf32>
    %875 = vector.broadcast %874 : vector<1x640xf32> to vector<8x640xf32>
    %876 = arith.mulf %873, %875 : vector<8x640xf32>
    %877 = arith.addf %872, %876 : vector<8x640xf32>
    %c48_626 = arith.constant 48 : index
    %c0_627 = arith.constant 0 : index
    %878 = vector.load %arg8[%c48_626, %c0_627] : memref<280x640xf32, #tpu.memory_space<vmem>>, vector<8x640xf32>
    %c15_628 = arith.constant 15 : index
    %c0_629 = arith.constant 0 : index
    %879 = vector.load %arg5[%c15_628, %c0_629] : memref<25x640xf32, #tpu.memory_space<vmem>>, vector<1x640xf32>
    %880 = vector.broadcast %879 : vector<1x640xf32> to vector<8x640xf32>
    %881 = arith.mulf %878, %880 : vector<8x640xf32>
    %882 = arith.addf %877, %881 : vector<8x640xf32>
    %c104_630 = arith.constant 104 : index
    %c0_631 = arith.constant 0 : index
    %883 = vector.load %arg8[%c104_630, %c0_631] : memref<280x640xf32, #tpu.memory_space<vmem>>, vector<8x640xf32>
    %c16_632 = arith.constant 16 : index
    %c0_633 = arith.constant 0 : index
    %884 = vector.load %arg5[%c16_632, %c0_633] : memref<25x640xf32, #tpu.memory_space<vmem>>, vector<1x640xf32>
    %885 = vector.broadcast %884 : vector<1x640xf32> to vector<8x640xf32>
    %886 = arith.mulf %883, %885 : vector<8x640xf32>
    %887 = arith.addf %882, %886 : vector<8x640xf32>
    %c160_634 = arith.constant 160 : index
    %c0_635 = arith.constant 0 : index
    %888 = vector.load %arg8[%c160_634, %c0_635] : memref<280x640xf32, #tpu.memory_space<vmem>>, vector<8x640xf32>
    %c17_636 = arith.constant 17 : index
    %c0_637 = arith.constant 0 : index
    %889 = vector.load %arg5[%c17_636, %c0_637] : memref<25x640xf32, #tpu.memory_space<vmem>>, vector<1x640xf32>
    %890 = vector.broadcast %889 : vector<1x640xf32> to vector<8x640xf32>
    %891 = arith.mulf %888, %890 : vector<8x640xf32>
    %892 = arith.addf %887, %891 : vector<8x640xf32>
    %c216_638 = arith.constant 216 : index
    %c0_639 = arith.constant 0 : index
    %893 = vector.load %arg8[%c216_638, %c0_639] : memref<280x640xf32, #tpu.memory_space<vmem>>, vector<8x640xf32>
    %c18_640 = arith.constant 18 : index
    %c0_641 = arith.constant 0 : index
    %894 = vector.load %arg5[%c18_640, %c0_641] : memref<25x640xf32, #tpu.memory_space<vmem>>, vector<1x640xf32>
    %895 = vector.broadcast %894 : vector<1x640xf32> to vector<8x640xf32>
    %896 = arith.mulf %893, %895 : vector<8x640xf32>
    %897 = arith.addf %892, %896 : vector<8x640xf32>
    %c272_642 = arith.constant 272 : index
    %c0_643 = arith.constant 0 : index
    %898 = vector.load %arg8[%c272_642, %c0_643] : memref<280x640xf32, #tpu.memory_space<vmem>>, vector<8x640xf32>
    %c19_644 = arith.constant 19 : index
    %c0_645 = arith.constant 0 : index
    %899 = vector.load %arg5[%c19_644, %c0_645] : memref<25x640xf32, #tpu.memory_space<vmem>>, vector<1x640xf32>
    %900 = vector.broadcast %899 : vector<1x640xf32> to vector<8x640xf32>
    %901 = arith.mulf %898, %900 : vector<8x640xf32>
    %902 = arith.addf %897, %901 : vector<8x640xf32>
    %c40_646 = arith.constant 40 : index
    %c0_647 = arith.constant 0 : index
    %903 = vector.load %arg6[%c40_646, %c0_647] : memref<56x640xf32, #tpu.memory_space<vmem>>, vector<8x640xf32>
    tpu.vector_store %arg6[%c40_646, %c0_647], %902 {strides = array<i32>} : memref<56x640xf32, #tpu.memory_space<vmem>>, vector<8x640xf32>,
    %cst_648 = arith.constant 0.000000e+00 : f32
    %904 = vector.broadcast %cst_648 : f32 to vector<8x640xf32>
    %c32_649 = arith.constant 32 : index
    %c0_650 = arith.constant 0 : index
    %905 = vector.load %arg8[%c32_649, %c0_650] : memref<280x640xf32, #tpu.memory_space<vmem>>, vector<8x640xf32>
    %c0_651 = arith.constant 0 : index
    %c0_652 = arith.constant 0 : index
    %906 = vector.load %arg5[%c0_651, %c0_652] : memref<25x640xf32, #tpu.memory_space<vmem>>, vector<1x640xf32>
    %907 = vector.broadcast %906 : vector<1x640xf32> to vector<8x640xf32>
    %908 = arith.mulf %905, %907 : vector<8x640xf32>
    %909 = arith.addf %904, %908 : vector<8x640xf32>
    %c88_653 = arith.constant 88 : index
    %c0_654 = arith.constant 0 : index
    %910 = vector.load %arg8[%c88_653, %c0_654] : memref<280x640xf32, #tpu.memory_space<vmem>>, vector<8x640xf32>
    %c1_655 = arith.constant 1 : index
    %c0_656 = arith.constant 0 : index
    %911 = vector.load %arg5[%c1_655, %c0_656] : memref<25x640xf32, #tpu.memory_space<vmem>>, vector<1x640xf32>
    %912 = vector.broadcast %911 : vector<1x640xf32> to vector<8x640xf32>
    %913 = arith.mulf %910, %912 : vector<8x640xf32>
    %914 = arith.addf %909, %913 : vector<8x640xf32>
    %c144_657 = arith.constant 144 : index
    %c0_658 = arith.constant 0 : index
    %915 = vector.load %arg8[%c144_657, %c0_658] : memref<280x640xf32, #tpu.memory_space<vmem>>, vector<8x640xf32>
    %c2_659 = arith.constant 2 : index
    %c0_660 = arith.constant 0 : index
    %916 = vector.load %arg5[%c2_659, %c0_660] : memref<25x640xf32, #tpu.memory_space<vmem>>, vector<1x640xf32>
    %917 = vector.broadcast %916 : vector<1x640xf32> to vector<8x640xf32>
    %918 = arith.mulf %915, %917 : vector<8x640xf32>
    %919 = arith.addf %914, %918 : vector<8x640xf32>
    %c200_661 = arith.constant 200 : index
    %c0_662 = arith.constant 0 : index
    %920 = vector.load %arg8[%c200_661, %c0_662] : memref<280x640xf32, #tpu.memory_space<vmem>>, vector<8x640xf32>
    %c3_663 = arith.constant 3 : index
    %c0_664 = arith.constant 0 : index
    %921 = vector.load %arg5[%c3_663, %c0_664] : memref<25x640xf32, #tpu.memory_space<vmem>>, vector<1x640xf32>
    %922 = vector.broadcast %921 : vector<1x640xf32> to vector<8x640xf32>
    %923 = arith.mulf %920, %922 : vector<8x640xf32>
    %924 = arith.addf %919, %923 : vector<8x640xf32>
    %c256_665 = arith.constant 256 : index
    %c0_666 = arith.constant 0 : index
    %925 = vector.load %arg8[%c256_665, %c0_666] : memref<280x640xf32, #tpu.memory_space<vmem>>, vector<8x640xf32>
    %c4_667 = arith.constant 4 : index
    %c0_668 = arith.constant 0 : index
    %926 = vector.load %arg5[%c4_667, %c0_668] : memref<25x640xf32, #tpu.memory_space<vmem>>, vector<1x640xf32>
    %927 = vector.broadcast %926 : vector<1x640xf32> to vector<8x640xf32>
    %928 = arith.mulf %925, %927 : vector<8x640xf32>
    %929 = arith.addf %924, %928 : vector<8x640xf32>
    %c40_669 = arith.constant 40 : index
    %c0_670 = arith.constant 0 : index
    %930 = vector.load %arg8[%c40_669, %c0_670] : memref<280x640xf32, #tpu.memory_space<vmem>>, vector<8x640xf32>
    %c5_671 = arith.constant 5 : index
    %c0_672 = arith.constant 0 : index
    %931 = vector.load %arg5[%c5_671, %c0_672] : memref<25x640xf32, #tpu.memory_space<vmem>>, vector<1x640xf32>
    %932 = vector.broadcast %931 : vector<1x640xf32> to vector<8x640xf32>
    %933 = arith.mulf %930, %932 : vector<8x640xf32>
    %934 = arith.addf %929, %933 : vector<8x640xf32>
    %c96_673 = arith.constant 96 : index
    %c0_674 = arith.constant 0 : index
    %935 = vector.load %arg8[%c96_673, %c0_674] : memref<280x640xf32, #tpu.memory_space<vmem>>, vector<8x640xf32>
    %c6_675 = arith.constant 6 : index
    %c0_676 = arith.constant 0 : index
    %936 = vector.load %arg5[%c6_675, %c0_676] : memref<25x640xf32, #tpu.memory_space<vmem>>, vector<1x640xf32>
    %937 = vector.broadcast %936 : vector<1x640xf32> to vector<8x640xf32>
    %938 = arith.mulf %935, %937 : vector<8x640xf32>
    %939 = arith.addf %934, %938 : vector<8x640xf32>
    %c152_677 = arith.constant 152 : index
    %c0_678 = arith.constant 0 : index
    %940 = vector.load %arg8[%c152_677, %c0_678] : memref<280x640xf32, #tpu.memory_space<vmem>>, vector<8x640xf32>
    %c7_679 = arith.constant 7 : index
    %c0_680 = arith.constant 0 : index
    %941 = vector.load %arg5[%c7_679, %c0_680] : memref<25x640xf32, #tpu.memory_space<vmem>>, vector<1x640xf32>
    %942 = vector.broadcast %941 : vector<1x640xf32> to vector<8x640xf32>
    %943 = arith.mulf %940, %942 : vector<8x640xf32>
    %944 = arith.addf %939, %943 : vector<8x640xf32>
    %c208_681 = arith.constant 208 : index
    %c0_682 = arith.constant 0 : index
    %945 = vector.load %arg8[%c208_681, %c0_682] : memref<280x640xf32, #tpu.memory_space<vmem>>, vector<8x640xf32>
    %c8_683 = arith.constant 8 : index
    %c0_684 = arith.constant 0 : index
    %946 = vector.load %arg5[%c8_683, %c0_684] : memref<25x640xf32, #tpu.memory_space<vmem>>, vector<1x640xf32>
    %947 = vector.broadcast %946 : vector<1x640xf32> to vector<8x640xf32>
    %948 = arith.mulf %945, %947 : vector<8x640xf32>
    %949 = arith.addf %944, %948 : vector<8x640xf32>
    %c264_685 = arith.constant 264 : index
    %c0_686 = arith.constant 0 : index
    %950 = vector.load %arg8[%c264_685, %c0_686] : memref<280x640xf32, #tpu.memory_space<vmem>>, vector<8x640xf32>
    %c9_687 = arith.constant 9 : index
    %c0_688 = arith.constant 0 : index
    %951 = vector.load %arg5[%c9_687, %c0_688] : memref<25x640xf32, #tpu.memory_space<vmem>>, vector<1x640xf32>
    %952 = vector.broadcast %951 : vector<1x640xf32> to vector<8x640xf32>
    %953 = arith.mulf %950, %952 : vector<8x640xf32>
    %954 = arith.addf %949, %953 : vector<8x640xf32>
    %c48_689 = arith.constant 48 : index
    %c0_690 = arith.constant 0 : index
    %955 = vector.load %arg8[%c48_689, %c0_690] : memref<280x640xf32, #tpu.memory_space<vmem>>, vector<8x640xf32>
    %c10_691 = arith.constant 10 : index
    %c0_692 = arith.constant 0 : index
    %956 = vector.load %arg5[%c10_691, %c0_692] : memref<25x640xf32, #tpu.memory_space<vmem>>, vector<1x640xf32>
    %957 = vector.broadcast %956 : vector<1x640xf32> to vector<8x640xf32>
    %958 = arith.mulf %955, %957 : vector<8x640xf32>
    %959 = arith.addf %954, %958 : vector<8x640xf32>
    %c104_693 = arith.constant 104 : index
    %c0_694 = arith.constant 0 : index
    %960 = vector.load %arg8[%c104_693, %c0_694] : memref<280x640xf32, #tpu.memory_space<vmem>>, vector<8x640xf32>
    %c11_695 = arith.constant 11 : index
    %c0_696 = arith.constant 0 : index
    %961 = vector.load %arg5[%c11_695, %c0_696] : memref<25x640xf32, #tpu.memory_space<vmem>>, vector<1x640xf32>
    %962 = vector.broadcast %961 : vector<1x640xf32> to vector<8x640xf32>
    %963 = arith.mulf %960, %962 : vector<8x640xf32>
    %964 = arith.addf %959, %963 : vector<8x640xf32>
    %c160_697 = arith.constant 160 : index
    %c0_698 = arith.constant 0 : index
    %965 = vector.load %arg8[%c160_697, %c0_698] : memref<280x640xf32, #tpu.memory_space<vmem>>, vector<8x640xf32>
    %c12_699 = arith.constant 12 : index
    %c0_700 = arith.constant 0 : index
    %966 = vector.load %arg5[%c12_699, %c0_700] : memref<25x640xf32, #tpu.memory_space<vmem>>, vector<1x640xf32>
    %967 = vector.broadcast %966 : vector<1x640xf32> to vector<8x640xf32>
    %968 = arith.mulf %965, %967 : vector<8x640xf32>
    %969 = arith.addf %964, %968 : vector<8x640xf32>
    %c216_701 = arith.constant 216 : index
    %c0_702 = arith.constant 0 : index
    %970 = vector.load %arg8[%c216_701, %c0_702] : memref<280x640xf32, #tpu.memory_space<vmem>>, vector<8x640xf32>
    %c13_703 = arith.constant 13 : index
    %c0_704 = arith.constant 0 : index
    %971 = vector.load %arg5[%c13_703, %c0_704] : memref<25x640xf32, #tpu.memory_space<vmem>>, vector<1x640xf32>
    %972 = vector.broadcast %971 : vector<1x640xf32> to vector<8x640xf32>
    %973 = arith.mulf %970, %972 : vector<8x640xf32>
    %974 = arith.addf %969, %973 : vector<8x640xf32>
    %c272_705 = arith.constant 272 : index
    %c0_706 = arith.constant 0 : index
    %975 = vector.load %arg8[%c272_705, %c0_706] : memref<280x640xf32, #tpu.memory_space<vmem>>, vector<8x640xf32>
    %c14_707 = arith.constant 14 : index
    %c0_708 = arith.constant 0 : index
    %976 = vector.load %arg5[%c14_707, %c0_708] : memref<25x640xf32, #tpu.memory_space<vmem>>, vector<1x640xf32>
    %977 = vector.broadcast %976 : vector<1x640xf32> to vector<8x640xf32>
    %978 = arith.mulf %975, %977 : vector<8x640xf32>
    %979 = arith.addf %974, %978 : vector<8x640xf32>
    %c48_709 = arith.constant 48 : index
    %c0_710 = arith.constant 0 : index
    %980 = vector.load %arg6[%c48_709, %c0_710] : memref<56x640xf32, #tpu.memory_space<vmem>>, vector<8x640xf32>
    tpu.vector_store %arg6[%c48_709, %c0_710], %979 {strides = array<i32>} : memref<56x640xf32, #tpu.memory_space<vmem>>, vector<8x640xf32>,
    return
  }
  func.func @transform_0(%arg0: i32) -> (i32, i32) {
    %c0_i32 = arith.constant 0 : i32
    %c0_i32_0 = arith.constant 0 : i32
    %c0_i32_1 = arith.constant 0 : i32
    return %c0_i32, %c0_i32_0 : i32, i32
  }
  func.func @transform_1(%arg0: i32) -> (i32, i32) {
    %c0_i32 = arith.constant 0 : i32
    %c0_i32_0 = arith.constant 0 : i32
    return %c0_i32, %arg0 : i32, i32
  }
  func.func @transform_2(%arg0: i32) -> (i32, i32) {
    %c0_i32 = arith.constant 0 : i32
    %c0_i32_0 = arith.constant 0 : i32
    return %c0_i32, %arg0 : i32, i32
  }
  func.func @transform_3(%arg0: i32) -> (i32, i32) {
    %c0_i32 = arith.constant 0 : i32
    %c0_i32_0 = arith.constant 0 : i32
    return %c0_i32, %arg0 : i32, i32
  }
  func.func @transform_4(%arg0: i32) -> (i32, i32) {
    %c0_i32 = arith.constant 0 : i32
    %c0_i32_0 = arith.constant 0 : i32
    return %c0_i32, %arg0 : i32, i32
  }
  func.func @transform_5(%arg0: i32) -> (i32, i32) {
    %c0_i32 = arith.constant 0 : i32
    %c0_i32_0 = arith.constant 0 : i32
    return %c0_i32, %arg0 : i32, i32
  }
}

</mosaic_0001>

<bundles_post_ra>
// kernel: forward.1
= control target key start
LH: loop header
LB: loop body
LE: loop exit
PB: predicated region body
PF: predicated region fallthrough
CT: control target
= control target key end

     0   :  { %s11367_s0 = inlined_call_operand.vmem [shape: f32[112,256], index: 0, kind: input, shape index: {}]   ;;  %s11368_s1 = inlined_call_operand.hbm [shape: f32[256,1280], index: 1, kind: input, shape index: {}]   ;;  %s11369_s2 = inlined_call_operand.hbm [shape: f32[1,1280], index: 2, kind: input, shape index: {}]   ;;  %s11370_s3 = inlined_call_operand.hbm [shape: f32[1,1280], index: 3, kind: input, shape index: {}]   ;;  %s11371_s4 = inlined_call_operand.hbm [shape: f32[25,1280], index: 4, kind: input, shape index: {}]   ;;  %s11372_s5 = inlined_call_operand.vmem [shape: f32[56,1280], index: 5, kind: output, shape index: {}]  }
   0x1   :  { %11642 = sst [smem:[#allocation175_spill]] %s11368_s1 }
   0x2   :  { %11643 = sst [smem:[#allocation176_spill]] %s11369_s2 }
   0x3   :  { %10 = vsyncpa [#allocation5], 0 }
   0x4   :  { %12 = vsyncpa [#allocation5 + $0x1], 0 }
   0x5   :  { %13 = vsyncpa [#allocation7], 0 }
   0x6   :  { %15 = vsyncpa [#allocation7 + $0x1], 0 }
   0x7   :  { %16 = vsyncpa [#allocation10], 0 }
   0x8   :  { %18 = vsyncpa [#allocation10 + $0x1], 0  ;;  %s8092_s18 = smov 0   ;;  %s8094_s19 = smov 0  }
   0x9   :  { %s8096_s20 = smov 0   ;;  %s8098_s21 = smov 0  }
   0xa LB: > { %s8111_s22 = sadd.s32 4294967295, %s8056_s21   ;;  %s8114_s23 = sadd.s32 1, %s8056_s21   ;;  %s8056_s21 = sphi %s8098_s21, %s12363_s21   ;;  %s8052_s20 = sphi %s8096_s20, %s12362_s20   ;;  %s8048_s19 = sphi %s8094_s19, %s12361_s19   ;;  %s8044_s18 = sphi %s8092_s18, %s12360_s18  }
   0xb   : > { %s49_s24 = ssub.s32 %s8056_s21, %s8114_s23  ;;  %s52_s25 = sadd.s32 1, %s8052_s20 }
   0xc   : > { %p50_p0 = scmp.eq.s32.totalorder %s49_s24, 0  ;;  %p59_p1 = scmp.ne.s32.totalorder %s8052_s20, %s8048_s19 }
   0xd   : > { %p60_p2 = scmp.eq.s32.totalorder %s8056_s21, 0  ;;  %p65_p3 = scmp.ne.s32.totalorder %s8048_s19, %s8044_s18 }
   0xe   : > { %s8124_s26 = scalar_select %p50_p0, %s8052_s20, %s52_s25  }
   0xf   : > { %p61_p4 = por %p60_p2, %p59_p1  ;;  %p66_p5 = scmp.eq.s32.totalorder %s8111_s22, 0 }
  0x10   : > { %11644 = sst [smem:[#allocation15_spill]] %s8124_s26  ;;  %p167_p6 = scmp.eq.s32.totalorder %s8111_s22, 1 }
  0x11   : > { %p8128_p7 = por %p66_p5, %p65_p3  ;;  %p7832_p8 = scmp.lt.s32.totalorder %s8056_s21, 2 }
  0x12   : > { %p8133_p9 = por %p167_p6, %p59_p1  ;;  %s8138_s29 = sand.u32 1, %s8052_s20  }
  0x13   : > { %p8140_p10 = pnand %p7832_p8, %p61_p4  ;;  %s218_s6 = sand.u32 1, %s8056_s21  }
  0x14   : > { %s11373_s7 = smul.u32 5, %s8138_s29  ;;  %p7484_p11 = scmp.ge.s32.totalorder %s8056_s21, 1 }
  0x15   : > { %s11374_s8 = smul.u32 5, %s8056_s21  ;;  %s11648_s2 = sld [smem:[#allocation176_spill]] }
  0x16   : > { %s222_s12 = scalar_lea.vmem [#allocation6], %s11373_s7  ;;  %p276_p12 = scmp.lt.s32.totalorder %s8056_s21, 3 }
  0x17   : > { %s230_s13 = sshll.u32 %s222_s12, 4  ;;  %s8156_s15 = scalar_lea.sflag [#allocation7], %s218_s6  ;;  %s231_s13 = int_to_ptr.vmem [resolvable:$true] %s230_s13 }
  0x18   : > { %p7898_p0 = pneg %p8140_p10 }
  0x1b   : > { %s226_s11 = scalar_lea.hbm %s11648_s2, %s11374_s8  ;;  %s7901_s25 = scalar_lea.hbm %s11648_s2, 10 }
  0x1c   : > { %s228_s14 = sshll.u32 %s226_s11, 4  ;;  %s229_s14 = int_to_ptr.hbm [resolvable:$true] %s228_s14 }
  0x1d   : > { %s7894_s16 = sshra.s32 %s229_s14, 4  ;;  %s7895_s16 = int_to_ptr.hbm [resolvable:$true] %s7894_s16 }
  0x1e   : > { %s7896_s17 = scalar_lea.hbm %s7895_s16, 5  ;;  %p7902_p3 = scmp.lt.s32.totalorder %s7895_s16, %s11648_s2 }
  0x1f   : > { %p7897_p13 = scmp.ne.s32.totalorder %s7895_s16, %s7896_s17  ;;  %p7903_p4 = scmp.lt.s32.totalorder %s7901_s25, %s7896_s17 }
  0x21   : > { %p7899_p1 = pnand %p7898_p0, %p7897_p13  ;;  %p7904_p5 = por %p7903_p4, %p7902_p3 }
  0x23   : > { %p7900_p2 = pneg %p7899_p1 }
  0x25   : > { %p7905_p6 = pnand %p7904_p5, %p7900_p2 }
  0x27   : > { %7908 = shalt.err (!%p7905_p6)
}
  0x28   : > { %7825 = dma.hbm_to_vmem [thread:$0]  (!%p8140_p10), %s229_s14, 80, %s231_s13, %s8156_s15  }
  0x29   : > { %p8176_p8 = pnand %p7484_p11, %p276_p12  ;;  %s7803_s11 = smul.u32 1280, %s8138_s29 }
  0x2a   : > { %s11375_s12 = smul.u32 40, %s8056_s21  ;;  %s11650_s1 = sld [smem:[#allocation175_spill]] }
  0x2b   : > { %s200_s24 = scalar_lea.vmem [#allocation4], %s7803_s11  ;;  %s197_s10 = scalar_lea.sflag [#allocation5], %s8138_s29 }
  0x2c   : > { %s208_s25 = sshll.u32 %s200_s24, 4  ;;  %s209_s25 = int_to_ptr.vmem [resolvable:$true] %s208_s25 }
  0x30   : > { %s205_s18 = scalar_lea.hbm %s11650_s1, %s11375_s12  ;;  %s7931_s2 = scalar_lea.hbm %s11650_s1, 2560 }
  0x31   : > { %s206_s9 = sshll.u32 %s205_s18, 4  ;;  %s207_s9 = int_to_ptr.hbm [resolvable:$true] %s206_s9 }
  0x32   : > { %s7924_s13 = sshra.s32 %s207_s9, 4  ;;  %s7925_s13 = int_to_ptr.hbm [resolvable:$true] %s7924_s13 }
  0x33   : > { %s7926_s14 = scalar_lea.hbm %s7925_s13, 1280  ;;  %p7932_p1 = scmp.lt.s32.totalorder %s7925_s13, %s11650_s1 }
  0x34   : > { %p7927_p11 = scmp.ne.s32.totalorder %s7925_s13, %s7926_s14  ;;  %p7933_p2 = scmp.lt.s32.totalorder %s7931_s2, %s7926_s14 }
  0x36   : > { %p7929_p12 = pnand %p7927_p11, %p7898_p0  ;;  %p7934_p3 = por %p7933_p2, %p7932_p1 }
  0x38   : > { %p7930_p13 = pneg %p7929_p12 }
  0x3a   : > { %p7935_p4 = pnand %p7934_p3, %p7930_p13 }
  0x3c   : > { %7938 = shalt.err (!%p7935_p4)
}
  0x3d   : > { %s8058_s11 = smov 1280   ;;  %s8059_s18 = smov 640  }
  0x3e   : > { %s8060_s24 = smov 40   ;;  %s11651_s7 = smul.u32 5, %s8056_s21 }
  0x3f   : > { %7822 = dma.hbm_to_vmem [thread:$0]  (!%p8140_p10), %s207_s9, 20480, %s209_s25, %s197_s10, %s8058_s11, %s8059_s18, %s8060_s24  }
  0x40   : > { %s245_s2 = scalar_lea.hbm %s11370_s3, %s11651_s7  ;;  %s11652_s13 = smul.u32 5, %s8138_s29 }
  0x41   : > { %s247_s12 = sshll.u32 %s245_s2, 4  ;;  %s7961_s10 = scalar_lea.hbm %s11370_s3, 10  ;;  %s248_s12 = int_to_ptr.hbm [resolvable:$true] %s247_s12 }
  0x42   : > { %s241_s14 = scalar_lea.vmem [#allocation8], %s11652_s13  ;;  %s7954_s1 = sshra.s32 %s248_s12, 4  ;;  %s7955_s1 = int_to_ptr.hbm [resolvable:$true] %s7954_s1 }
  0x43   : > { %s249_s17 = sshll.u32 %s241_s14, 4  ;;  %s7956_s26 = scalar_lea.hbm %s7955_s1, 5  ;;  %s250_s17 = int_to_ptr.vmem [resolvable:$true] %s249_s17 }
  0x44   : > { %p7957_p5 = scmp.ne.s32.totalorder %s7955_s1, %s7956_s26  ;;  %p7962_p12 = scmp.lt.s32.totalorder %s7955_s1, %s11370_s3 }
  0x45   : > { %p7963_p13 = scmp.lt.s32.totalorder %s7961_s10, %s7956_s26 }
  0x46   : > { %p7959_p6 = pnand %p7957_p5, %p7898_p0 }
  0x47   : > { %p7964_p1 = por %p7963_p13, %p7962_p12 }
  0x48   : > { %p7960_p11 = pneg %p7959_p6 }
  0x4a   : > { %p7965_p2 = pnand %p7964_p1, %p7960_p11 }
  0x4c   : > { %7968 = shalt.err (!%p7965_p2)
}
  0x4d   : > { %7828 = dma.hbm_to_vmem [thread:$0]  (!%p8140_p10), %s248_s12, 80, %s250_s17, %s8156_s15  }
  0x4e   : > { %s7806_s16 = smul.u32 160, %s8138_s29  ;;  %s257_s10 = scalar_lea.sflag [#allocation10], %s8138_s29 }
  0x4f   : > { %s11653_s2 = smul.u32 40, %s8056_s21  ;;  %s7991_s12 = scalar_lea.hbm %s11371_s4, 320 }
  0x50   : > { %s260_s1 = scalar_lea.vmem [#allocation9], %s7806_s16 }
  0x51   : > { %s265_s25 = scalar_lea.hbm %s11371_s4, %s11653_s2  ;;  %s268_s26 = sshll.u32 %s260_s1, 4  ;;  %s269_s26 = int_to_ptr.vmem [resolvable:$true] %s268_s26 }
  0x52   : > { %s266_s9 = sshll.u32 %s265_s25, 4  ;;  %s267_s9 = int_to_ptr.hbm [resolvable:$true] %s266_s9 }
  0x53   : > { %s7984_s8 = sshra.s32 %s267_s9, 4  ;;  %s7985_s8 = int_to_ptr.hbm [resolvable:$true] %s7984_s8 }
  0x54   : > { %s7986_s7 = scalar_lea.hbm %s7985_s8, 160  ;;  %p7992_p6 = scmp.lt.s32.totalorder %s7985_s8, %s11371_s4 }
  0x55   : > { %p7987_p3 = scmp.ne.s32.totalorder %s7985_s8, %s7986_s7  ;;  %p7993_p11 = scmp.lt.s32.totalorder %s7991_s12, %s7986_s7 }
  0x57   : > { %p7989_p4 = pnand %p7987_p3, %p7898_p0  ;;  %p7994_p12 = por %p7993_p11, %p7992_p6 }
  0x59   : > { %p7990_p5 = pneg %p7989_p4 }
  0x5b   : > { %p7995_p13 = pnand %p7994_p12, %p7990_p5 }
  0x5d   : > { %7998 = shalt.err (!%p7995_p13)
}
  0x5e   : > { %7831 = dma.hbm_to_vmem [thread:$0]  (!%p8140_p10), %s267_s9, 2560, %s269_s26, %s257_s10, %s8058_s11, %s8059_s18, %s8060_s24  }
  0x5f   : > { %280 = sbr.rel (%p8176_p8) target bundleno = 1373 (0x55d), region = 40 }
  0x64   : > { %s8245_s29 = sand.u32 1, %s8048_s19  }
  0x65   : > { %s7807_s16 = smul.u32 1280, %s8245_s29  ;;  %s283_s13 = scalar_lea.sflag [#allocation5], %s8245_s29 }
  0x67   : > { %s8249_s14 = scalar_lea.vmem [#allocation4], %s7807_s16 }
  0x68   : > { %8031 = dma.done.wait (%p8128_p7), %s283_s13, 20480  }
  0x69   : > { %8033 = vsyncadd (%p8128_p7), %s283_s13, 4294946816  ;;  %s292_s30 = sand.u32 1, %s8111_s22   ;;  %s7808_s6 = smul.u32 5, %s8245_s29 }
  0x6a   : > { %s293_s11 = scalar_lea.sflag [#allocation7], %s292_s30 }
  0x6b   : > { %s8257_s18 = scalar_lea.vmem [#allocation6], %s7808_s6 }
  0x6c   : > { %8035 = dma.done.wait (%p8128_p7), %s293_s11, 160  }
  0x6d   : > { %8037 = vsyncadd (%p8128_p7), %s293_s11, 4294967136  ;;  %s7809_s24 = smul.u32 160, %s8245_s29  ;;  %s8264_s25 = scalar_lea.vmem [#allocation8], %s7808_s6 }
  0x6e   : > { %s313_s9 = scalar_lea.sflag [#allocation10], %s8245_s29 }
  0x6f   : > { %s8267_s1 = scalar_lea.vmem [#allocation9], %s7809_s24 }
  0x70   : > { %8039 = dma.done.wait (%p8128_p7), %s313_s9, 2560  }
  0x71   : > { %8041 = vsyncadd (%p8128_p7), %s313_s9, 4294964736  ;;  %v466_v0 = vld [vmem:[%s8249_s14 + $0x258] sm:$0xff]  ;;  %v461_v2 = vld [vmem:[%s8249_s14 + $0x230] sm:$0xff]  ;;  %vm2023_vm9 = vcmask 1040384   ;;  %vm2025_vm10 = vcmask 1041408  }
  0x72   : > { %v546_v1 = vld [vmem:[%s8249_s14 + $0x4d8] sm:$0xff]  ;;  %551 = vmatpush.msra.mxu0 %v466_v0  ;;  %7771 = vmatpush.msra.mxu2 %v466_v0  ;;  %v541_v3 = vld [vmem:[%s8249_s14 + $0x4b0] sm:$0xff]  ;;  %v456_v4 = vld [vmem:[%s8249_s14 + $0x208] sm:$0xff] }
  0x73   : > { %610 = vmatpush.msra.mxu1 %v546_v1  ;;  %7787 = vmatpush.msra.mxu3 %v546_v1  ;;  %v536_v5 = vld [vmem:[%s8249_s14 + $0x488] sm:$0xff]  ;;  %v451_v6 = vld [vmem:[%s8249_s14 + $0x1e0] sm:$0xff]  ;;  %v446_v8 = vld [vmem:[%s8249_s14 + $0x1b8] sm:$0xff] }
  0x74   : > { %552 = vmatpush.msra.mxu0 %v461_v2  ;;  %7772 = vmatpush.msra.mxu2 %v461_v2  ;;  %v531_v7 = vld [vmem:[%s8249_s14 + $0x460] sm:$0xff]  ;;  %v526_v9 = vld [vmem:[%s8249_s14 + $0x438] sm:$0xff]  ;;  %v441_v10 = vld [vmem:[%s8249_s14 + $0x190] sm:$0xff] }
  0x75   : > { %611 = vmatpush.msra.mxu1 %v541_v3  ;;  %7788 = vmatpush.msra.mxu3 %v541_v3  ;;  %v521_v11 = vld [vmem:[%s8249_s14 + $0x410] sm:$0xff]  ;;  %v436_v12 = vld [vmem:[%s8249_s14 + $0x168] sm:$0xff]  ;;  %v431_v14 = vld [vmem:[%s8249_s14 + $0x140] sm:$0xff] }
  0x76   : > { %553 = vmatpush.msra.mxu0 %v456_v4  ;;  %7773 = vmatpush.msra.mxu2 %v456_v4  ;;  %v516_v13 = vld [vmem:[%s8249_s14 + $0x3e8] sm:$0xff]  ;;  %v511_v15 = vld [vmem:[%s8249_s14 + $0x3c0] sm:$0xff]  ;;  %v426_v16 = vld [vmem:[%s8249_s14 + $0x118] sm:$0xff] }
  0x77   : > { %612 = vmatpush.msra.mxu1 %v536_v5  ;;  %7789 = vmatpush.msra.mxu3 %v536_v5  ;;  %v506_v17 = vld [vmem:[%s8249_s14 + $0x398] sm:$0xff]  ;;  %v421_v18 = vld [vmem:[%s8249_s14 + $0xf0] sm:$0xff]  ;;  %v416_v20 = vld [vmem:[%s8249_s14 + $0xc8] sm:$0xff] }
  0x78   : > { %554 = vmatpush.msra.mxu0 %v451_v6  ;;  %7774 = vmatpush.msra.mxu2 %v451_v6  ;;  %v501_v19 = vld [vmem:[%s8249_s14 + $0x370] sm:$0xff]  ;;  %v496_v21 = vld [vmem:[%s8249_s14 + $0x348] sm:$0xff]  ;;  %v411_v22 = vld [vmem:[%s8249_s14 + $0xa0] sm:$0xff] }
  0x79   : > { %613 = vmatpush.msra.mxu1 %v531_v7  ;;  %7790 = vmatpush.msra.mxu3 %v531_v7  ;;  %v491_v23 = vld [vmem:[%s8249_s14 + $0x320] sm:$0xff]  ;;  %v406_v24 = vld [vmem:[%s8249_s14 + $0x78] sm:$0xff]  ;;  %v401_v26 = vld [vmem:[%s8249_s14 + $0x50] sm:$0xff] }
  0x7a   : > { %555 = vmatpush.msra.mxu0 %v446_v8  ;;  %7775 = vmatpush.msra.mxu2 %v446_v8  ;;  %v486_v25 = vld [vmem:[%s8249_s14 + $0x2f8] sm:$0xff]  ;;  %v481_v27 = vld [vmem:[%s8249_s14 + $0x2d0] sm:$0xff]  ;;  %v396_v28 = vld [vmem:[%s8249_s14 + $0x28] sm:$0xff] }
  0x7b   : > { %614 = vmatpush.msra.mxu1 %v526_v9  ;;  %7791 = vmatpush.msra.mxu3 %v526_v9  ;;  %v476_v29 = vld [vmem:[%s8249_s14 + $0x2a8] sm:$0xff]  ;;  %v391_v30 = vld [vmem:[%s8249_s14] sm:$0xff]  ;;  %v8313_v33 = vld [vmem:[%s11367_s0 + $0x70] sm:$0xff] }
  0x7c   : > { %556 = vmatpush.msra.mxu0 %v441_v10  ;;  %7776 = vmatpush.msra.mxu2 %v441_v10  ;;  %v471_v31 = vld [vmem:[%s8249_s14 + $0x280] sm:$0xff]  ;;  %v8318_v34 = vld [vmem:[%s11367_s0 + $0x8] sm:$0xff]  ;;  %v8323_v35 = vld [vmem:[%s11367_s0 + $0x78] sm:$0xff] }
  0x7d   : > { %615 = vmatpush.msra.mxu1 %v521_v11  ;;  %7792 = vmatpush.msra.mxu3 %v521_v11  ;;  %v8308_v32 = vld [vmem:[%s11367_s0] sm:$0xff]  ;;  %v468_v38 = vld [vmem:[%s8249_s14 + $0x268] sm:$0xff]  ;;  %v462_v40 = vld [vmem:[%s8249_s14 + $0x238] sm:$0xff] }
  0x7e   : > { %557 = vmatpush.msra.mxu0 %v436_v12  ;;  %7777 = vmatpush.msra.mxu2 %v436_v12  ;;  %v467_v36 = vld [vmem:[%s8249_s14 + $0x260] sm:$0xff]  ;;  %v548_v39 = vld [vmem:[%s8249_s14 + $0x4e8] sm:$0xff]  ;;  %v542_v41 = vld [vmem:[%s8249_s14 + $0x4b8] sm:$0xff] }
  0x7f   : > { %616 = vmatpush.msra.mxu1 %v516_v13  ;;  %7793 = vmatpush.msra.mxu3 %v516_v13  ;;  %v547_v37 = vld [vmem:[%s8249_s14 + $0x4e0] sm:$0xff]  ;;  %v457_v44 = vld [vmem:[%s8249_s14 + $0x210] sm:$0xff]  ;;  %v458_v46 = vld [vmem:[%s8249_s14 + $0x218] sm:$0xff] }
  0x80   : > { %558 = vmatpush.msra.mxu0 %v431_v14  ;;  %7778 = vmatpush.msra.mxu2 %v431_v14  ;;  %v463_v42 = vld [vmem:[%s8249_s14 + $0x240] sm:$0xff]  ;;  %v537_v45 = vld [vmem:[%s8249_s14 + $0x490] sm:$0xff]  ;;  %v538_v47 = vld [vmem:[%s8249_s14 + $0x498] sm:$0xff] }
  0x81   : > { %617 = vmatpush.msra.mxu1 %v511_v15  ;;  %7794 = vmatpush.msra.mxu3 %v511_v15  ;;  %v543_v43 = vld [vmem:[%s8249_s14 + $0x4c0] sm:$0xff]  ;;  %v8344_v48 = vld [vmem:[%s11367_s0 + $0x10] sm:$0xff]  ;;  %v8354_v50 = vld [vmem:[%s11367_s0 + $0x18] sm:$0xff] }
  0x82   : > { %559 = vmatpush.msra.mxu0 %v426_v16  ;;  %7779 = vmatpush.msra.mxu2 %v426_v16  ;;  %v8349_v49 = vld [vmem:[%s11367_s0 + $0x80] sm:$0xff]  ;;  %v8359_v51 = vld [vmem:[%s11367_s0 + $0x88] sm:$0xff]  ;;  %v453_v54 = vld [vmem:[%s8249_s14 + $0x1f0] sm:$0xff] }
  0x83   : > { %618 = vmatpush.msra.mxu1 %v506_v17  ;;  %7795 = vmatpush.msra.mxu3 %v506_v17  ;;  %v452_v52 = vld [vmem:[%s8249_s14 + $0x1e8] sm:$0xff]  ;;  %v533_v55 = vld [vmem:[%s8249_s14 + $0x470] sm:$0xff]  ;;  %v447_v56 = vld [vmem:[%s8249_s14 + $0x1c0] sm:$0xff] }
  0x84   : > { %560 = vmatpush.msra.mxu0 %v421_v18  ;;  %7780 = vmatpush.msra.mxu2 %v421_v18  ;;  %v532_v53 = vld [vmem:[%s8249_s14 + $0x468] sm:$0xff]  ;;  %v527_v57 = vld [vmem:[%s8249_s14 + $0x440] sm:$0xff]  ;;  %v442_v60 = vld [vmem:[%s8249_s14 + $0x198] sm:$0xff] }
  0x85   : > { %619 = vmatpush.msra.mxu1 %v501_v19  ;;  %7796 = vmatpush.msra.mxu3 %v501_v19  ;;  %v448_v58 = vld [vmem:[%s8249_s14 + $0x1c8] sm:$0xff]  ;;  %v522_v61 = vld [vmem:[%s8249_s14 + $0x418] sm:$0xff]  ;;  %v443_v62 = vld [vmem:[%s8249_s14 + $0x1a0] sm:$0xff] }
  0x86   : > { %561 = vmatpush.msra.mxu0 %v416_v20  ;;  %7781 = vmatpush.msra.mxu2 %v416_v20  ;;  %v528_v59 = vld [vmem:[%s8249_s14 + $0x448] sm:$0xff]  ;;  %v523_v63 = vld [vmem:[%s8249_s14 + $0x420] sm:$0xff]  ;;  %v8385_v1 = vld [vmem:[%s11367_s0 + $0x90] sm:$0xff] }
  0x87   : > { %620 = vmatpush.msra.mxu1 %v496_v21  ;;  %7797 = vmatpush.msra.mxu3 %v496_v21  ;;  %v8380_v0 = vld [vmem:[%s11367_s0 + $0x20] sm:$0xff]  ;;  %v8390_v2 = vld [vmem:[%s11367_s0 + $0x28] sm:$0xff]  ;;  %v8395_v3 = vld [vmem:[%s11367_s0 + $0x98] sm:$0xff] }
  0x88   : > { %562 = vmatpush.msra.mxu0 %v411_v22  ;;  %7782 = vmatpush.msra.mxu2 %v411_v22  ;;  %v437_v4 = vld [vmem:[%s8249_s14 + $0x170] sm:$0xff]  ;;  %v438_v6 = vld [vmem:[%s8249_s14 + $0x178] sm:$0xff]  ;;  %v432_v8 = vld [vmem:[%s8249_s14 + $0x148] sm:$0xff] }
  0x89   : > { %621 = vmatpush.msra.mxu1 %v491_v23  ;;  %7798 = vmatpush.msra.mxu3 %v491_v23  ;;  %v517_v5 = vld [vmem:[%s8249_s14 + $0x3f0] sm:$0xff]  ;;  %v518_v7 = vld [vmem:[%s8249_s14 + $0x3f8] sm:$0xff]  ;;  %v512_v9 = vld [vmem:[%s8249_s14 + $0x3c8] sm:$0xff] }
  0x8a   : > { %563 = vmatpush.msra.mxu0 %v406_v24  ;;  %7783 = vmatpush.msra.mxu2 %v406_v24  ;;  %v433_v10 = vld [vmem:[%s8249_s14 + $0x150] sm:$0xff]  ;;  %v427_v12 = vld [vmem:[%s8249_s14 + $0x120] sm:$0xff]  ;;  %v428_v14 = vld [vmem:[%s8249_s14 + $0x128] sm:$0xff] }
  0x8b   : > { %622 = vmatpush.msra.mxu1 %v486_v25  ;;  %7799 = vmatpush.msra.mxu3 %v486_v25  ;;  %v513_v11 = vld [vmem:[%s8249_s14 + $0x3d0] sm:$0xff]  ;;  %v507_v13 = vld [vmem:[%s8249_s14 + $0x3a0] sm:$0xff]  ;;  %v508_v15 = vld [vmem:[%s8249_s14 + $0x3a8] sm:$0xff] }
  0x8c   : > { %564 = vmatpush.msra.mxu0 %v401_v26  ;;  %7784 = vmatpush.msra.mxu2 %v401_v26  ;;  %v8416_v16 = vld [vmem:[%s11367_s0 + $0x30] sm:$0xff]  ;;  %v8421_v17 = vld [vmem:[%s11367_s0 + $0xa0] sm:$0xff]  ;;  %v8426_v18 = vld [vmem:[%s11367_s0 + $0x38] sm:$0xff] }
  0x8d   : > { %623 = vmatpush.msra.mxu1 %v481_v27  ;;  %7800 = vmatpush.msra.mxu3 %v481_v27  ;;  %v8431_v19 = vld [vmem:[%s11367_s0 + $0xa8] sm:$0xff]  ;;  %v422_v20 = vld [vmem:[%s8249_s14 + $0xf8] sm:$0xff]  ;;  %v423_v22 = vld [vmem:[%s8249_s14 + $0x100] sm:$0xff] }
  0x8e   : > { %565 = vmatpush.msra.mxu0 %v396_v28  ;;  %7785 = vmatpush.msra.mxu2 %v396_v28  ;;  %v502_v21 = vld [vmem:[%s8249_s14 + $0x378] sm:$0xff]  ;;  %v503_v23 = vld [vmem:[%s8249_s14 + $0x380] sm:$0xff]  ;;  %v417_v24 = vld [vmem:[%s8249_s14 + $0xd0] sm:$0xff] }
  0x8f   : > { %624 = vmatpush.msra.mxu1 %v476_v29  ;;  %7801 = vmatpush.msra.mxu3 %v476_v29  ;;  %v497_v25 = vld [vmem:[%s8249_s14 + $0x350] sm:$0xff]  ;;  %v418_v26 = vld [vmem:[%s8249_s14 + $0xd8] sm:$0xff]  ;;  %v412_v28 = vld [vmem:[%s8249_s14 + $0xa8] sm:$0xff] }
  0x90   : > { %566 = vmatpush.msra.mxu0 %v391_v30  ;;  %7786 = vmatpush.msra.mxu2 %v391_v30  ;;  %v498_v27 = vld [vmem:[%s8249_s14 + $0x358] sm:$0xff]  ;;  %v492_v29 = vld [vmem:[%s8249_s14 + $0x328] sm:$0xff]  ;;  %v413_v30 = vld [vmem:[%s8249_s14 + $0xb0] sm:$0xff] }
  0x91   : > { %625 = vmatpush.msra.mxu1 %v471_v31  ;;  %7802 = vmatpush.msra.mxu3 %v471_v31  ;;  %v493_v31 = vld [vmem:[%s8249_s14 + $0x330] sm:$0xff] }
  0x92   : > { %567 = vmatmul.f32.vlgmr.msra.gmra.mxu0 %v8308_v32  ;;  %588 = vmatmul.f32.vlgmr.msra.gmra.mxu2 %v8313_v33 }
  0x93   : > { %626 = vmatmul.f32.vlgmr.msra.gmra.mxu1 %v8318_v34  ;;  %647 = vmatmul.f32.vlgmr.msra.gmra.mxu3 %v8323_v35 }
  0x94   : > { %669 = vmatpush.msrb.mxu2 %v467_v36  ;;  %728 = vmatpush.msrb.mxu3 %v547_v37  ;;  %v8452_v36 = vld [vmem:[%s11367_s0 + $0x40] sm:$0xff]  ;;  %v8457_v37 = vld [vmem:[%s11367_s0 + $0xb0] sm:$0xff] }
  0x95   : > { %787 = vmatpush.msrb.mxu0 %v468_v38  ;;  %846 = vmatpush.msrb.mxu1 %v548_v39  ;;  %v8462_v38 = vld [vmem:[%s11367_s0 + $0x48] sm:$0xff]  ;;  %v8467_v39 = vld [vmem:[%s11367_s0 + $0xb8] sm:$0xff] }
  0x96   : > { %670 = vmatpush.msrb.mxu2 %v462_v40  ;;  %729 = vmatpush.msrb.mxu3 %v542_v41  ;;  %v407_v40 = vld [vmem:[%s8249_s14 + $0x80] sm:$0xff] }
  0x97   : > { %788 = vmatpush.msrb.mxu0 %v463_v42  ;;  %847 = vmatpush.msrb.mxu1 %v543_v43  ;;  %v487_v41 = vld [vmem:[%s8249_s14 + $0x300] sm:$0xff]  ;;  %v408_v42 = vld [vmem:[%s8249_s14 + $0x88] sm:$0xff] }
  0x98   : > { %671 = vmatpush.msrb.mxu2 %v457_v44  ;;  %730 = vmatpush.msrb.mxu3 %v537_v45  ;;  %v488_v43 = vld [vmem:[%s8249_s14 + $0x308] sm:$0xff]  ;;  %v402_v44 = vld [vmem:[%s8249_s14 + $0x58] sm:$0xff] }
  0x99   : > { %789 = vmatpush.msrb.mxu0 %v458_v46  ;;  %848 = vmatpush.msrb.mxu1 %v538_v47  ;;  %v482_v45 = vld [vmem:[%s8249_s14 + $0x2d8] sm:$0xff]  ;;  %v403_v46 = vld [vmem:[%s8249_s14 + $0x60] sm:$0xff] }
  0x9a   : > { %570 = vmatmul.f32.gmra.mxu0 %v8344_v48  ;;  %591 = vmatmul.f32.gmra.mxu2 %v8349_v49  ;;  %v483_v47 = vld [vmem:[%s8249_s14 + $0x2e0] sm:$0xff] }
  0x9b   : > { %629 = vmatmul.f32.gmra.mxu1 %v8354_v50  ;;  %650 = vmatmul.f32.gmra.mxu3 %v8359_v51 }
  0x9c   : > { %672 = vmatpush.msrb.mxu2 %v452_v52  ;;  %731 = vmatpush.msrb.mxu3 %v532_v53  ;;  %v397_v52 = vld [vmem:[%s8249_s14 + $0x30] sm:$0xff] }
  0x9d   : > { %790 = vmatpush.msrb.mxu0 %v453_v54  ;;  %849 = vmatpush.msrb.mxu1 %v533_v55  ;;  %v477_v53 = vld [vmem:[%s8249_s14 + $0x2b0] sm:$0xff]  ;;  %v398_v54 = vld [vmem:[%s8249_s14 + $0x38] sm:$0xff] }
  0x9e   : > { %673 = vmatpush.msrb.mxu2 %v447_v56  ;;  %732 = vmatpush.msrb.mxu3 %v527_v57  ;;  %v478_v55 = vld [vmem:[%s8249_s14 + $0x2b8] sm:$0xff]  ;;  %v8488_v56 = vld [vmem:[%s11367_s0 + $0x50] sm:$0xff]  ;;  %v8493_v57 = vld [vmem:[%s11367_s0 + $0xc0] sm:$0xff] }
  0x9f   : > { %791 = vmatpush.msrb.mxu0 %v448_v58  ;;  %850 = vmatpush.msrb.mxu1 %v528_v59  ;;  %v8498_v58 = vld [vmem:[%s11367_s0 + $0x58] sm:$0xff]  ;;  %v8503_v59 = vld [vmem:[%s11367_s0 + $0xc8] sm:$0xff] }
  0xa0   : > { %674 = vmatpush.msrb.mxu2 %v442_v60  ;;  %733 = vmatpush.msrb.mxu3 %v522_v61  ;;  %v392_v60 = vld [vmem:[%s8249_s14 + $0x8] sm:$0xff] }
  0xa1   : > { %792 = vmatpush.msrb.mxu0 %v443_v62  ;;  %851 = vmatpush.msrb.mxu1 %v523_v63  ;;  %v472_v61 = vld [vmem:[%s8249_s14 + $0x288] sm:$0xff]  ;;  %v393_v62 = vld [vmem:[%s8249_s14 + $0x10] sm:$0xff] }
  0xa2   : > { %573 = vmatmul.f32.gmra.mxu0 %v8380_v0  ;;  %594 = vmatmul.f32.gmra.mxu2 %v8385_v1  ;;  %v473_v63 = vld [vmem:[%s8249_s14 + $0x290] sm:$0xff] }
  0xa3   : > { %632 = vmatmul.f32.gmra.mxu1 %v8390_v2  ;;  %653 = vmatmul.f32.gmra.mxu3 %v8395_v3 }
  0xa4   : > { %675 = vmatpush.msrb.mxu2 %v437_v4  ;;  %734 = vmatpush.msrb.mxu3 %v517_v5  ;;  %v469_v4 = vld [vmem:[%s8249_s14 + $0x270] sm:$0xff] }
  0xa5   : > { %793 = vmatpush.msrb.mxu0 %v438_v6  ;;  %852 = vmatpush.msrb.mxu1 %v518_v7  ;;  %v549_v5 = vld [vmem:[%s8249_s14 + $0x4f0] sm:$0xff]  ;;  %v470_v6 = vld [vmem:[%s8249_s14 + $0x278] sm:$0xff] }
  0xa6   : > { %676 = vmatpush.msrb.mxu2 %v432_v8  ;;  %735 = vmatpush.msrb.mxu3 %v512_v9  ;;  %v550_v7 = vld [vmem:[%s8249_s14 + $0x4f8] sm:$0xff]  ;;  %v464_v8 = vld [vmem:[%s8249_s14 + $0x248] sm:$0xff] }
  0xa7   : > { %794 = vmatpush.msrb.mxu0 %v433_v10  ;;  %853 = vmatpush.msrb.mxu1 %v513_v11  ;;  %v544_v9 = vld [vmem:[%s8249_s14 + $0x4c8] sm:$0xff]  ;;  %v465_v10 = vld [vmem:[%s8249_s14 + $0x250] sm:$0xff] }
  0xa8   : > { %677 = vmatpush.msrb.mxu2 %v427_v12  ;;  %736 = vmatpush.msrb.mxu3 %v507_v13  ;;  %v545_v11 = vld [vmem:[%s8249_s14 + $0x4d0] sm:$0xff]  ;;  %v8524_v12 = vld [vmem:[%s11367_s0 + $0x60] sm:$0xff] }
  0xa9   : > { %795 = vmatpush.msrb.mxu0 %v428_v14  ;;  %854 = vmatpush.msrb.mxu1 %v508_v15  ;;  %v8529_v13 = vld [vmem:[%s11367_s0 + $0xd0] sm:$0xff]  ;;  %v8534_v14 = vld [vmem:[%s11367_s0 + $0x68] sm:$0xff]  ;;  %v8539_v15 = vld [vmem:[%s11367_s0 + $0xd8] sm:$0xff] }
  0xaa   : > { %576 = vmatmul.f32.gmra.mxu0 %v8416_v16  ;;  %597 = vmatmul.f32.gmra.mxu2 %v8421_v17 }
  0xab   : > { %635 = vmatmul.f32.gmra.mxu1 %v8426_v18  ;;  %656 = vmatmul.f32.gmra.mxu3 %v8431_v19 }
  0xac   : > { %678 = vmatpush.msrb.mxu2 %v422_v20  ;;  %737 = vmatpush.msrb.mxu3 %v502_v21  ;;  %v459_v20 = vld [vmem:[%s8249_s14 + $0x220] sm:$0xff] }
  0xad   : > { %796 = vmatpush.msrb.mxu0 %v423_v22  ;;  %855 = vmatpush.msrb.mxu1 %v503_v23  ;;  %v539_v21 = vld [vmem:[%s8249_s14 + $0x4a0] sm:$0xff]  ;;  %v460_v22 = vld [vmem:[%s8249_s14 + $0x228] sm:$0xff] }
  0xae   : > { %679 = vmatpush.msrb.mxu2 %v417_v24  ;;  %738 = vmatpush.msrb.mxu3 %v497_v25  ;;  %v540_v23 = vld [vmem:[%s8249_s14 + $0x4a8] sm:$0xff]  ;;  %v454_v24 = vld [vmem:[%s8249_s14 + $0x1f8] sm:$0xff] }
  0xaf   : > { %797 = vmatpush.msrb.mxu0 %v418_v26  ;;  %856 = vmatpush.msrb.mxu1 %v498_v27  ;;  %v534_v25 = vld [vmem:[%s8249_s14 + $0x478] sm:$0xff]  ;;  %v455_v26 = vld [vmem:[%s8249_s14 + $0x200] sm:$0xff] }
  0xb0   : > { %680 = vmatpush.msrb.mxu2 %v412_v28  ;;  %739 = vmatpush.msrb.mxu3 %v492_v29  ;;  %v535_v27 = vld [vmem:[%s8249_s14 + $0x480] sm:$0xff]  ;;  %v449_v28 = vld [vmem:[%s8249_s14 + $0x1d0] sm:$0xff] }
  0xb1   : > { %798 = vmatpush.msrb.mxu0 %v413_v30  ;;  %857 = vmatpush.msrb.mxu1 %v493_v31  ;;  %v529_v29 = vld [vmem:[%s8249_s14 + $0x450] sm:$0xff]  ;;  %v450_v30 = vld [vmem:[%s8249_s14 + $0x1d8] sm:$0xff] }
  0xb2   : > { %579 = vmatmul.f32.gmra.mxu0 %v8452_v36  ;;  %600 = vmatmul.f32.gmra.mxu2 %v8457_v37  ;;  %v530_v31 = vld [vmem:[%s8249_s14 + $0x458] sm:$0xff] }
  0xb3   : > { %638 = vmatmul.f32.gmra.mxu1 %v8462_v38  ;;  %659 = vmatmul.f32.gmra.mxu3 %v8467_v39 }
  0xb4   : > { %681 = vmatpush.msrb.mxu2 %v407_v40  ;;  %740 = vmatpush.msrb.mxu3 %v487_v41  ;;  %v444_v40 = vld [vmem:[%s8249_s14 + $0x1a8] sm:$0xff] }
  0xb5   : > { %799 = vmatpush.msrb.mxu0 %v408_v42  ;;  %858 = vmatpush.msrb.mxu1 %v488_v43  ;;  %v524_v41 = vld [vmem:[%s8249_s14 + $0x428] sm:$0xff]  ;;  %v445_v42 = vld [vmem:[%s8249_s14 + $0x1b0] sm:$0xff] }
  0xb6   : > { %682 = vmatpush.msrb.mxu2 %v402_v44  ;;  %741 = vmatpush.msrb.mxu3 %v482_v45  ;;  %v525_v43 = vld [vmem:[%s8249_s14 + $0x430] sm:$0xff]  ;;  %v439_v44 = vld [vmem:[%s8249_s14 + $0x180] sm:$0xff] }
  0xb7   : > { %800 = vmatpush.msrb.mxu0 %v403_v46  ;;  %859 = vmatpush.msrb.mxu1 %v483_v47  ;;  %v519_v45 = vld [vmem:[%s8249_s14 + $0x400] sm:$0xff]  ;;  %v440_v46 = vld [vmem:[%s8249_s14 + $0x188] sm:$0xff] }
  0xb8   : > { %683 = vmatpush.msrb.mxu2 %v397_v52  ;;  %742 = vmatpush.msrb.mxu3 %v477_v53  ;;  %v520_v47 = vld [vmem:[%s8249_s14 + $0x408] sm:$0xff]  ;;  %v434_v52 = vld [vmem:[%s8249_s14 + $0x158] sm:$0xff] }
  0xb9   : > { %801 = vmatpush.msrb.mxu0 %v398_v54  ;;  %860 = vmatpush.msrb.mxu1 %v478_v55  ;;  %v514_v53 = vld [vmem:[%s8249_s14 + $0x3d8] sm:$0xff]  ;;  %v435_v54 = vld [vmem:[%s8249_s14 + $0x160] sm:$0xff] }
  0xba   : > { %582 = vmatmul.f32.gmra.mxu0 %v8488_v56  ;;  %603 = vmatmul.f32.gmra.mxu2 %v8493_v57  ;;  %v515_v55 = vld [vmem:[%s8249_s14 + $0x3e0] sm:$0xff] }
  0xbb   : > { %641 = vmatmul.f32.gmra.mxu1 %v8498_v58  ;;  %662 = vmatmul.f32.gmra.mxu3 %v8503_v59 }
  0xbc   : > { %684 = vmatpush.msrb.mxu2 %v392_v60  ;;  %743 = vmatpush.msrb.mxu3 %v472_v61  ;;  %v429_v60 = vld [vmem:[%s8249_s14 + $0x130] sm:$0xff] }
  0xbd   : > { %802 = vmatpush.msrb.mxu0 %v393_v62  ;;  %861 = vmatpush.msrb.mxu1 %v473_v63  ;;  %v509_v61 = vld [vmem:[%s8249_s14 + $0x3b0] sm:$0xff]  ;;  %v430_v62 = vld [vmem:[%s8249_s14 + $0x138] sm:$0xff] }
  0xbe   : > { %905 = vmatpush.msra.mxu2 %v469_v4  ;;  %964 = vmatpush.msra.mxu3 %v549_v5  ;;  %v510_v63 = vld [vmem:[%s8249_s14 + $0x3b8] sm:$0xff]  ;;  %v424_v4 = vld [vmem:[%s8249_s14 + $0x108] sm:$0xff] }
  0xbf   : > { %1023 = vmatpush.msra.mxu0 %v470_v6  ;;  %1082 = vmatpush.msra.mxu1 %v550_v7  ;;  %v504_v5 = vld [vmem:[%s8249_s14 + $0x388] sm:$0xff]  ;;  %v425_v6 = vld [vmem:[%s8249_s14 + $0x110] sm:$0xff] }
  0xc0   : > { %906 = vmatpush.msra.mxu2 %v464_v8  ;;  %965 = vmatpush.msra.mxu3 %v544_v9  ;;  %v505_v7 = vld [vmem:[%s8249_s14 + $0x390] sm:$0xff]  ;;  %v419_v8 = vld [vmem:[%s8249_s14 + $0xe0] sm:$0xff] }
  0xc1   : > { %1024 = vmatpush.msra.mxu0 %v465_v10  ;;  %1083 = vmatpush.msra.mxu1 %v545_v11  ;;  %v499_v9 = vld [vmem:[%s8249_s14 + $0x360] sm:$0xff]  ;;  %v420_v10 = vld [vmem:[%s8249_s14 + $0xe8] sm:$0xff] }
  0xc2   : > { %585 = vmatmul.f32.gmra.mxu0 %v8524_v12  ;;  %606 = vmatmul.f32.gmra.mxu2 %v8529_v13  ;;  %v500_v11 = vld [vmem:[%s8249_s14 + $0x368] sm:$0xff] }
  0xc3   : > { %644 = vmatmul.f32.gmra.mxu1 %v8534_v14  ;;  %665 = vmatmul.f32.gmra.mxu3 %v8539_v15 }
  0xc4   : > { %907 = vmatpush.msra.mxu2 %v459_v20  ;;  %966 = vmatpush.msra.mxu3 %v539_v21  ;;  %v414_v20 = vld [vmem:[%s8249_s14 + $0xb8] sm:$0xff] }
  0xc5   : > { %1025 = vmatpush.msra.mxu0 %v460_v22  ;;  %1084 = vmatpush.msra.mxu1 %v540_v23  ;;  %v494_v21 = vld [vmem:[%s8249_s14 + $0x338] sm:$0xff]  ;;  %v415_v22 = vld [vmem:[%s8249_s14 + $0xc0] sm:$0xff] }
  0xc6   : > { %908 = vmatpush.msra.mxu2 %v454_v24  ;;  %967 = vmatpush.msra.mxu3 %v534_v25  ;;  %v495_v23 = vld [vmem:[%s8249_s14 + $0x340] sm:$0xff]  ;;  %v409_v24 = vld [vmem:[%s8249_s14 + $0x90] sm:$0xff] }
  0xc7   : > { %1026 = vmatpush.msra.mxu0 %v455_v26  ;;  %1085 = vmatpush.msra.mxu1 %v535_v27  ;;  %v489_v25 = vld [vmem:[%s8249_s14 + $0x310] sm:$0xff]  ;;  %v404_v27 = vld [vmem:[%s8249_s14 + $0x68] sm:$0xff] }
  0xc8   : > { %909 = vmatpush.msra.mxu2 %v449_v28  ;;  %968 = vmatpush.msra.mxu3 %v529_v29  ;;  %v484_v28 = vld [vmem:[%s8249_s14 + $0x2e8] sm:$0xff]  ;;  %v405_v29 = vld [vmem:[%s8249_s14 + $0x70] sm:$0xff] }
  0xc9   : > { %1027 = vmatpush.msra.mxu0 %v450_v30  ;;  %1086 = vmatpush.msra.mxu1 %v530_v31  ;;  %v485_v31 = vld [vmem:[%s8249_s14 + $0x2f0] sm:$0xff] }
  0xca   : > { %685 = vmatmul.f32.vlgmr.msrb.gmra.mxu2 %v8308_v32  ;;  %803 = vmatmul.f32.vlgmr.msrb.gmra.mxu0 %v8308_v32 }
  0xcb   : > { %744 = vmatmul.f32.vlgmr.msrb.gmra.mxu3 %v8318_v34  ;;  %862 = vmatmul.f32.vlgmr.msrb.gmra.mxu1 %v8318_v34 }
  0xcc   : > { %910 = vmatpush.msra.mxu2 %v444_v40  ;;  %969 = vmatpush.msra.mxu3 %v524_v41  ;;  %v399_v41 = vld [vmem:[%s8249_s14 + $0x40] sm:$0xff] }
  0xcd   : > { %1028 = vmatpush.msra.mxu0 %v445_v42  ;;  %1087 = vmatpush.msra.mxu1 %v525_v43  ;;  %v400_v43 = vld [vmem:[%s8249_s14 + $0x48] sm:$0xff] }
  0xce   : > { %911 = vmatpush.msra.mxu2 %v439_v44  ;;  %970 = vmatpush.msra.mxu3 %v519_v45  ;;  %v480_v44 = vld [vmem:[%s8249_s14 + $0x2c8] sm:$0xff]  ;;  %v394_v45 = vld [vmem:[%s8249_s14 + $0x18] sm:$0xff] }
  0xcf   : > { %1029 = vmatpush.msra.mxu0 %v440_v46  ;;  %1088 = vmatpush.msra.mxu1 %v520_v47  ;;  %v474_v46 = vld [vmem:[%s8249_s14 + $0x298] sm:$0xff]  ;;  %v395_v47 = vld [vmem:[%s8249_s14 + $0x20] sm:$0xff] }
  0xd0   : > { %912 = vmatpush.msra.mxu2 %v434_v52  ;;  %971 = vmatpush.msra.mxu3 %v514_v53  ;;  %v475_v52 = vld [vmem:[%s8249_s14 + $0x2a0] sm:$0xff] }
  0xd1   : > { %1030 = vmatpush.msra.mxu0 %v435_v54  ;;  %1089 = vmatpush.msra.mxu1 %v515_v55 }
  0xd2   : > { %688 = vmatmul.f32.gmra.mxu2 %v8344_v48  ;;  %806 = vmatmul.f32.gmra.mxu0 %v8344_v48 }
  0xd3   : > { %747 = vmatmul.f32.gmra.mxu3 %v8354_v50  ;;  %865 = vmatmul.f32.gmra.mxu1 %v8354_v50 }
  0xd4   : > { %913 = vmatpush.msra.mxu2 %v429_v60  ;;  %972 = vmatpush.msra.mxu3 %v509_v61 }
  0xd5   : > { %1031 = vmatpush.msra.mxu0 %v430_v62  ;;  %1090 = vmatpush.msra.mxu1 %v510_v63 }
  0xd6   : > { %914 = vmatpush.msra.mxu2 %v424_v4  ;;  %973 = vmatpush.msra.mxu3 %v504_v5 }
  0xd7   : > { %1032 = vmatpush.msra.mxu0 %v425_v6  ;;  %1091 = vmatpush.msra.mxu1 %v505_v7 }
  0xd8   : > { %915 = vmatpush.msra.mxu2 %v419_v8  ;;  %974 = vmatpush.msra.mxu3 %v499_v9 }
  0xd9   : > { %1033 = vmatpush.msra.mxu0 %v420_v10  ;;  %1092 = vmatpush.msra.mxu1 %v500_v11 }
  0xda   : > { %691 = vmatmul.f32.gmra.mxu2 %v8380_v0  ;;  %809 = vmatmul.f32.gmra.mxu0 %v8380_v0 }
  0xdb   : > { %750 = vmatmul.f32.gmra.mxu3 %v8390_v2  ;;  %868 = vmatmul.f32.gmra.mxu1 %v8390_v2 }
  0xdc   : > { %916 = vmatpush.msra.mxu2 %v414_v20  ;;  %975 = vmatpush.msra.mxu3 %v494_v21 }
  0xdd   : > { %1034 = vmatpush.msra.mxu0 %v415_v22  ;;  %1093 = vmatpush.msra.mxu1 %v495_v23 }
  0xde   : > { %917 = vmatpush.msra.mxu2 %v409_v24  ;;  %976 = vmatpush.msra.mxu3 %v489_v25 }
  0xe0   : > { %918 = vmatpush.msra.mxu2 %v404_v27  ;;  %977 = vmatpush.msra.mxu3 %v484_v28 }
  0xe2   : > { %694 = vmatmul.f32.gmra.mxu2 %v8416_v16  ;;  %812 = vmatmul.f32.gmra.mxu0 %v8416_v16 }
  0xe3   : > { %753 = vmatmul.f32.gmra.mxu3 %v8426_v18  ;;  %871 = vmatmul.f32.gmra.mxu1 %v8426_v18 }
  0xe4   : > { %919 = vmatpush.msra.mxu2 %v399_v41 }
  0xe6   : > { %920 = vmatpush.msra.mxu2 %v394_v45 }
  0xea   : > { %697 = vmatmul.f32.gmra.mxu2 %v8452_v36  ;;  %815 = vmatmul.f32.gmra.mxu0 %v8452_v36 }
  0xeb   : > { %756 = vmatmul.f32.gmra.mxu3 %v8462_v38  ;;  %874 = vmatmul.f32.gmra.mxu1 %v8462_v38 }
  0xf2   : > { %700 = vmatmul.f32.gmra.mxu2 %v8488_v56  ;;  %818 = vmatmul.f32.gmra.mxu0 %v8488_v56 }
  0xf3   : > { %759 = vmatmul.f32.gmra.mxu3 %v8498_v58  ;;  %877 = vmatmul.f32.gmra.mxu1 %v8498_v58 }
  0xfa   : > { %703 = vmatmul.f32.gmra.mxu2 %v8524_v12  ;;  %821 = vmatmul.f32.gmra.mxu0 %v8524_v12 }
  0xfb   : > { %762 = vmatmul.f32.gmra.mxu3 %v8534_v14  ;;  %880 = vmatmul.f32.gmra.mxu1 %v8534_v14 }
 0x102   : > { %706 = vmatmul.f32.gmra.mxu2 %v8313_v33  ;;  %824 = vmatmul.f32.gmra.mxu0 %v8313_v33  ;;  %v410_v33 = vld [vmem:[%s8249_s14 + $0x98] sm:$0xff] }
 0x103   : > { %765 = vmatmul.f32.gmra.mxu3 %v8323_v35  ;;  %883 = vmatmul.f32.gmra.mxu1 %v8323_v35  ;;  %v490_v35 = vld [vmem:[%s8249_s14 + $0x318] sm:$0xff] }
 0x104   : > { %1035 = vmatpush.msra.mxu0 %v410_v33  ;;  %1094 = vmatpush.msra.mxu1 %v490_v35 }
 0x106   : > { %1036 = vmatpush.msra.mxu0 %v405_v29  ;;  %1095 = vmatpush.msra.mxu1 %v485_v31 }
 0x108   : > { %1037 = vmatpush.msra.mxu0 %v400_v43  ;;  %1096 = vmatpush.msra.mxu1 %v480_v44 }
 0x10a   : > { %709 = vmatmul.f32.gmra.mxu2 %v8349_v49  ;;  %827 = vmatmul.f32.gmra.mxu0 %v8349_v49 }
 0x10b   : > { %768 = vmatmul.f32.gmra.mxu3 %v8359_v51  ;;  %886 = vmatmul.f32.gmra.mxu1 %v8359_v51 }
 0x10c   : > { %1038 = vmatpush.msra.mxu0 %v395_v47  ;;  %1097 = vmatpush.msra.mxu1 %v475_v52 }
 0x10f   : > { %v568_v49 = vpop.f32.mrf.mxu0 }
 0x110   : > { %v627_v26 = vpop.f32.mrf.mxu1 }
 0x111   : > { %v8653_v63 = vadd.f32 %v627_v26, %v568_v49 }
 0x112   : > { %712 = vmatmul.f32.gmra.mxu2 %v8385_v1  ;;  %830 = vmatmul.f32.gmra.mxu0 %v8385_v1 }
 0x113   : > { %771 = vmatmul.f32.gmra.mxu3 %v8395_v3  ;;  %889 = vmatmul.f32.gmra.mxu1 %v8395_v3  ;;  %v479_v3 = vld [vmem:[%s8249_s14 + $0x2c0] sm:$0xff] }
 0x114   : > { %978 = vmatpush.msra.mxu3 %v479_v3 }
 0x115   : > { %v589_v51 = vpop.f32.mrf.mxu2 }
 0x116   : > { %v648_v30 = vpop.f32.mrf.mxu3  ;;  %979 = vmatpush.msra.mxu3 %v474_v46 }
 0x117   : > { %v8633_v40 = vadd.f32 %v648_v30, %v589_v51  ;;  %v571_v1 = vpop.f32.mrf.mxu0 }
 0x118   : > { %v630_v42 = vpop.f32.mrf.mxu1 }
 0x11a   : > { %715 = vmatmul.f32.gmra.mxu2 %v8421_v17  ;;  %833 = vmatmul.f32.gmra.mxu0 %v8421_v17  ;;  %v631_v17 = vadd.f32 %v630_v42, %v571_v1 }
 0x11b   : > { %774 = vmatmul.f32.gmra.mxu3 %v8431_v19  ;;  %892 = vmatmul.f32.gmra.mxu1 %v8431_v19 }
 0x11c   : > { %v1266_v7 = vmul.f32 %v631_v17, %v631_v17  ;;  %v1221_v9 = vadd.f32 %v631_v17, %v8653_v63 }
 0x11d   : > { %v592_v53 = vpop.f32.mrf.mxu2 }
 0x11e   : > { %v651_v54 = vpop.f32.mrf.mxu3  ;;  %v1222_v22 = vrot.slane %v1221_v9, 4 }
 0x11f   : > { %v8647_v55 = vadd.f32 %v651_v54, %v592_v53  ;;  %v574_v60 = vpop.f32.mrf.mxu0 }
 0x120   : > { %v633_v61 = vpop.f32.mrf.mxu1 }
 0x121   : > { %v1661_v28 = vmul.f32 %v8647_v55, %v8647_v55 }
 0x122   : > { %718 = vmatmul.f32.gmra.mxu2 %v8457_v37  ;;  %836 = vmatmul.f32.gmra.mxu0 %v8457_v37  ;;  %v1261_v37 = vmul.f32 %v8653_v63, %v8653_v63 }
 0x123   : > { %777 = vmatmul.f32.gmra.mxu3 %v8467_v39  ;;  %895 = vmatmul.f32.gmra.mxu1 %v8467_v39  ;;  %v8660_v39 = vadd.f32 %v633_v61, %v574_v60 }
 0x124   : > { %v1271_v10 = vadd.f32 %v1266_v7, %v1261_v37 }
 0x125   : > { %v595_v19 = vpop.f32.mrf.mxu2  ;;  %v1361_v23 = vmul.f32 %v8660_v39, %v8660_v39 }
 0x126   : > { %v654_v62 = vpop.f32.mrf.mxu3  ;;  %v1272_v35 = vrot.slane %v1271_v10, 4 }
 0x127   : > { %v655_v4 = vadd.f32 %v654_v62, %v595_v19  ;;  %v577_v5 = vpop.f32.mrf.mxu0 }
 0x128   : > { %v636_v6 = vpop.f32.mrf.mxu1  ;;  %v1273_v27 = vadd.f32 %v1272_v35, %v1271_v10 }
 0x129   : > { %v637_v8 = vadd.f32 %v636_v6, %v577_v5  ;;  %v1666_v26 = vmul.f32 %v655_v4, %v655_v4  ;;  %v1621_v29 = vadd.f32 %v655_v4, %v8647_v55 }
 0x12a   : > { %721 = vmatmul.f32.gmra.mxu2 %v8493_v57  ;;  %839 = vmatmul.f32.gmra.mxu0 %v8493_v57  ;;  %v1274_v46 = vrot.slane %v1273_v27, 2 }
 0x12b   : > { %780 = vmatmul.f32.gmra.mxu3 %v8503_v59  ;;  %898 = vmatmul.f32.gmra.mxu1 %v8503_v59  ;;  %v1366_v11 = vmul.f32 %v637_v8, %v637_v8  ;;  %v1321_v57 = vadd.f32 %v637_v8, %v8660_v39  ;;  %v1223_v59 = vadd.f32 %v1222_v22, %v1221_v9  ;;  %v1622_v47 = vrot.slane %v1621_v29, 4 }
 0x12c   : > { %v1671_v3 = vadd.f32 %v1666_v26, %v1661_v28  ;;  %v1275_v7 = vadd.f32 %v1274_v46, %v1273_v27 }
 0x12d   : > { %v598_v20 = vpop.f32.mrf.mxu2  ;;  %v1371_v49 = vadd.f32 %v1366_v11, %v1361_v23  ;;  %v1322_v51 = vrot.slane %v1321_v57, 4  ;;  %v1224_v41 = vrot.slane %v1223_v59, 2  ;;  %v1623_v8 = vadd.f32 %v1622_v47, %v1621_v29 }
 0x12e   : > { %v657_v21 = vpop.f32.mrf.mxu3  ;;  %v1672_v17 = vrot.slane %v1671_v3, 4  ;;  %v1276_v26 = vrot.slane %v1275_v7, 1 }
 0x12f   : > { %v580_v24 = vpop.f32.mrf.mxu0  ;;  %v8667_v25 = vadd.f32 %v657_v21, %v598_v20  ;;  %v1372_v30 = vrot.slane %v1371_v49, 4  ;;  %v1323_v42 = vadd.f32 %v1322_v51, %v1321_v57  ;;  %v1225_v61 = vadd.f32 %v1224_v41, %v1223_v59 }
 0x130   : > { %v639_v33 = vpop.f32.mrf.mxu1  ;;  %v1673_v22 = vadd.f32 %v1672_v17, %v1671_v3  ;;  %v1566_v59 = vmul.f32 %v8633_v40, %v8633_v40  ;;  %v1624_v51 = vrot.slane %v1623_v8, 2  ;;  %v1277_v47 = vadd.f32 %v1276_v26, %v1275_v7 }
 0x131   : > { %v8676_v44 = vadd.f32 %v639_v33, %v580_v24  ;;  %v1761_v53 = vmul.f32 %v8667_v25, %v8667_v25  ;;  %v1324_v19 = vrot.slane %v1323_v42, 2  ;;  %v1226_v21 = vrot.slane %v1225_v61, 1 }
 0x132   : > { %724 = vmatmul.f32.gmra.mxu2 %v8529_v13  ;;  %842 = vmatmul.f32.gmra.mxu0 %v8529_v13  ;;  %v1674_v41 = vrot.slane %v1673_v22, 2 }
 0x133   : > { %783 = vmatmul.f32.gmra.mxu3 %v8539_v15  ;;  %901 = vmatmul.f32.gmra.mxu1 %v8539_v15  ;;  %v1373_v15 = vadd.f32 %v1372_v30, %v1371_v49  ;;  %v1461_v62 = vmul.f32 %v8676_v44, %v8676_v44  ;;  %v1325_v57 = vadd.f32 %v1324_v19, %v1323_v42 }
 0x134   : > { %v1675_v19 = vadd.f32 %v1674_v41, %v1673_v22 }
 0x135   : > { %v601_v31 = vpop.f32.mrf.mxu2  ;;  %v1374_v9 = vrot.slane %v1373_v15, 2 }
 0x136   : > { %v660_v1 = vpop.f32.mrf.mxu3 }
 0x137   : > { %v661_v13 = vadd.f32 %v660_v1, %v601_v31  ;;  %v583_v43 = vpop.f32.mrf.mxu0  ;;  %v1375_v28 = vadd.f32 %v1374_v9, %v1373_v15  ;;  %v1227_v1 = vadd.f32 %v1226_v21, %v1225_v61  ;;  %v1625_v15 = vadd.f32 %v1624_v51, %v1623_v8 }
 0x138   : > { %v642_v45 = vpop.f32.mrf.mxu1 }
 0x139   : > { %v1766_v52 = vmul.f32 %v661_v13, %v661_v13  ;;  %v1721_v54 = vadd.f32 %v661_v13, %v8667_v25  ;;  %v643_v60 = vadd.f32 %v642_v45, %v583_v43  ;;  %v1326_v13 = vrot.slane %v1325_v57, 1 }
 0x13a   : > { %921 = vmatmul.f32.vlgmr.msra.gmra.mxu2 %v8308_v32  ;;  %1039 = vmatmul.f32.vlgmr.msra.gmra.mxu0 %v8308_v32 }
 0x13b   : > { %980 = vmatmul.f32.vlgmr.msra.gmra.mxu3 %v8318_v34  ;;  %1098 = vmatmul.f32.vlgmr.msra.gmra.mxu1 %v8318_v34  ;;  %v1771_v4 = vadd.f32 %v1766_v52, %v1761_v53  ;;  %v1421_v5 = vadd.f32 %v643_v60, %v8676_v44  ;;  %v1466_v6 = vmul.f32 %v643_v60, %v643_v60  ;;  %v1722_v10 = vrot.slane %v1721_v54, 4 }
 0x13d   : > { %v604_v37 = vpop.f32.mrf.mxu2  ;;  %v1422_v32 = vrot.slane %v1421_v5, 4  ;;  %v1471_v11 = vadd.f32 %v1466_v6, %v1461_v62  ;;  %v1772_v24 = vrot.slane %v1771_v4, 4  ;;  %v1723_v29 = vadd.f32 %v1722_v10, %v1721_v54 }
 0x13e   : > { %v663_v20 = vpop.f32.mrf.mxu3  ;;  %v1376_v54 = vrot.slane %v1375_v28, 1 }
 0x13f   : > { %v8688_v23 = vadd.f32 %v663_v20, %v604_v37  ;;  %v586_v34 = vpop.f32.mrf.mxu0  ;;  %v1423_v33 = vadd.f32 %v1422_v32, %v1421_v5  ;;  %v1472_v35 = vrot.slane %v1471_v11, 4  ;;  %v1773_v43 = vadd.f32 %v1772_v24, %v1771_v4 }
 0x140   : > { %v645_v49 = vpop.f32.mrf.mxu1  ;;  %v1724_v60 = vrot.slane %v1723_v29, 2  ;;  %v1377_v21 = vadd.f32 %v1376_v54, %v1375_v28 }
 0x141   : > { %v8692_v27 = vadd.f32 %v645_v49, %v586_v34  ;;  %v1424_v30 = vrot.slane %v1423_v33, 2  ;;  %v1473_v31 = vadd.f32 %v1472_v35, %v1471_v11  ;;  %v1774_v4 = vrot.slane %v1773_v43, 2 }
 0x142   : > { %924 = vmatmul.f32.gmra.mxu2 %v8344_v48  ;;  %1042 = vmatmul.f32.gmra.mxu0 %v8344_v48  ;;  %v1861_v7 = vmul.f32 %v8688_v23, %v8688_v23  ;;  %v1725_v22 = vadd.f32 %v1724_v60, %v1723_v29  ;;  %v1626_v49 = vrot.slane %v1625_v15, 1 }
 0x143   : > { %v1521_v3 = vadd.f32 %v8633_v40, %v8692_v27  ;;  %v1561_v42 = vmul.f32 %v8692_v27, %v8692_v27  ;;  %983 = vmatmul.f32.gmra.mxu3 %v8354_v50  ;;  %1101 = vmatmul.f32.gmra.mxu1 %v8354_v50  ;;  %v1425_v45 = vadd.f32 %v1424_v30, %v1423_v33  ;;  %v1474_v46 = vrot.slane %v1473_v31, 2 }
 0x144   : > { %v1327_v50 = vadd.f32 %v1326_v13, %v1325_v57  ;;  %v1775_v26 = vadd.f32 %v1774_v4, %v1773_v43 }
 0x145   : > { %v1522_v52 = vrot.slane %v1521_v3, 4  ;;  %v1571_v48 = vadd.f32 %v1566_v59, %v1561_v42  ;;  %v607_v53 = vpop.f32.mrf.mxu2  ;;  %v1426_v61 = vrot.slane %v1425_v45, 1  ;;  %v1475_v40 = vadd.f32 %v1474_v46, %v1473_v31 }
 0x146   : > { %v666_v17 = vpop.f32.mrf.mxu3  ;;  %v1356_v59 = vadd.f32 %v1327_v50, %v1227_v1  ;;  %v1406_v42 = vadd.f32 %v1377_v21, %v1277_v47  ;;  %v1776_v60 = vrot.slane %v1775_v26, 1 }
 0x147   : > { %v1523_v62 = vadd.f32 %v1522_v52, %v1521_v3  ;;  %v1572_v5 = vrot.slane %v1571_v48, 4  ;;  %v667_v6 = vadd.f32 %v666_v17, %v607_v53  ;;  %v8702_v37 = vpop.f32.mrf.mxu0  ;;  %v1476_v9 = vrot.slane %v1475_v40, 1 }
 0x148   : > { %v8706_v8 = vpop.f32.mrf.mxu1  ;;  %v1427_v34 = vadd.f32 %v1426_v61, %v1425_v45  ;;  %v1676_v3 = vrot.slane %v1675_v19, 1 }
 0x149   : > { %v1524_v10 = vrot.slane %v1523_v62, 2  ;;  %v1573_v32 = vadd.f32 %v1572_v5, %v1571_v48  ;;  %v1821_v11 = vadd.f32 %v667_v6, %v8688_v23  ;;  %v1866_v20 = vmul.f32 %v667_v6, %v667_v6 }
 0x14a   : > { %927 = vmatmul.f32.gmra.mxu2 %v8380_v0  ;;  %1045 = vmatmul.f32.gmra.mxu0 %v8380_v0  ;;  %v1477_v51 = vadd.f32 %v1476_v9, %v1475_v40  ;;  %v1726_v0 = vrot.slane %v1725_v22, 1  ;;  %v1456_v13 = vadd.f32 %v1427_v34, %v1356_v59  ;;  %v1677_v6 = vadd.f32 %v1676_v3, %v1675_v19 }
 0x14b   : > { %v1525_v57 = vadd.f32 %v1524_v10, %v1523_v62  ;;  %v1574_v24 = vrot.slane %v1573_v32, 2  ;;  %v1822_v33 = vrot.slane %v1821_v11, 4  ;;  %v1871_v35 = vadd.f32 %v1866_v20, %v1861_v7  ;;  %986 = vmatmul.f32.gmra.mxu3 %v8390_v2  ;;  %1104 = vmatmul.f32.gmra.mxu1 %v8390_v2 }
 0x14c   : > { %v1627_v2 = vadd.f32 %v1626_v49, %v1625_v15  ;;  %v1506_v1 = vadd.f32 %v1477_v51, %v1406_v42  ;;  %v1727_v47 = vadd.f32 %v1726_v0, %v1725_v22  ;;  %v1777_v15 = vadd.f32 %v1776_v60, %v1775_v26 }
 0x14d   : > { %v1526_v30 = vrot.slane %v1525_v57, 1  ;;  %v1575_v28 = vadd.f32 %v1574_v24, %v1573_v32  ;;  %v1823_v29 = vadd.f32 %v1822_v33, %v1821_v11  ;;  %v1872_v31 = vrot.slane %v1871_v35, 4  ;;  %v686_v41 = vpop.f32.mrf.mxu2 }
 0x14e   : > { %v745_v45 = vpop.f32.mrf.mxu3 }
 0x14f   : > { %v1527_v46 = vadd.f32 %v1526_v30, %v1525_v57  ;;  %v1576_v52 = vrot.slane %v1575_v28, 1  ;;  %v1824_v48 = vrot.slane %v1823_v29, 2  ;;  %v1873_v53 = vadd.f32 %v1872_v31, %v1871_v35  ;;  %v807_v54 = vpop.f32.mrf.mxu0 }
 0x150   : > { %v8713_v43 = vadd.f32 %v745_v45, %v686_v41  ;;  %v866_v61 = vpop.f32.mrf.mxu1 }
 0x151   : > { %v1556_v40 = vadd.f32 %v1527_v46, %v1456_v13  ;;  %v1577_v17 = vadd.f32 %v1576_v52, %v1575_v28  ;;  %v1825_v62 = vadd.f32 %v1824_v48, %v1823_v29  ;;  %v1874_v5 = vrot.slane %v1873_v53, 2 }
 0x152   : > { %930 = vmatmul.f32.gmra.mxu2 %v8416_v16  ;;  %1048 = vmatmul.f32.gmra.mxu0 %v8416_v16  ;;  %v1262_v29 = vmul.f32 %v8713_v43, %v8713_v43  ;;  %v867_v48 = vadd.f32 %v866_v61, %v807_v54 }
 0x153   : > { %v1606_v50 = vadd.f32 %v1577_v17, %v1506_v1  ;;  %v1656_v4 = vadd.f32 %v1627_v2, %v1556_v40  ;;  %v1826_v9 = vrot.slane %v1825_v62, 1  ;;  %v1875_v7 = vadd.f32 %v1874_v5, %v1873_v53  ;;  %989 = vmatmul.f32.gmra.mxu3 %v8426_v18  ;;  %1107 = vmatmul.f32.gmra.mxu1 %v8426_v18 }
 0x154   : > { %v8741_v40 = vadd.f32 %v8706_v8, %v8702_v37  ;;  %v1268_v8 = vmul.f32 %v867_v48, %v867_v48 }
 0x155   : > { %v1706_v10 = vadd.f32 %v1677_v6, %v1606_v50  ;;  %v1756_v32 = vadd.f32 %v1727_v47, %v1656_v4  ;;  %v1827_v11 = vadd.f32 %v1826_v9, %v1825_v62  ;;  %v1876_v20 = vrot.slane %v1875_v7, 1  ;;  %v689_v21 = vpop.f32.mrf.mxu2  ;;  %v8753_v50 = vld [vmem:[%s8257_s18] sm:$0x1f] }
 0x156   : > { %v748_v19 = vpop.f32.mrf.mxu3  ;;  %v8756_v37 = vadd.f32 %v867_v48, %v8741_v40 }
 0x157   : > { %v1806_v22 = vadd.f32 %v1777_v15, %v1706_v10  ;;  %v1856_v34 = vadd.f32 %v1827_v11, %v1756_v32  ;;  %v1877_v57 = vadd.f32 %v1876_v20, %v1875_v7  ;;  %v749_v24 = vadd.f32 %v748_v19, %v689_v21  ;;  %v810_v16 = vpop.f32.mrf.mxu0 }
 0x158   : > { %v869_v33 = vpop.f32.mrf.mxu1  ;;  %v1263_v32 = vmul.f32 %v8741_v40, %v8741_v40  ;;  %v1993_v20 = vperm.slane %v8753_v50, 0 }
 0x159   : > { %v1906_v35 = vadd.f32 %v1877_v57, %v1806_v22  ;;  %v8719_v49 = vmul.f32 0.020408163, %v1856_v34  ;;  %v1228_v26 = vadd.f32 %v749_v24, %v8713_v43  ;;  %v1267_v51 = vmul.f32 %v749_v24, %v749_v24 }
 0x15a   : > { %933 = vmatmul.f32.gmra.mxu2 %v8452_v36  ;;  %1051 = vmatmul.f32.gmra.mxu0 %v8452_v36  ;;  %v8760_v9 = vadd.f32 %v869_v33, %v810_v16  ;;  %v1236_v57 = vrot.slane %v8756_v37, 4  ;;  %v1285_v24 = vadd.f32 %v1268_v8, %v1263_v32 }
 0x15b   : > { %v1916_v18 = vmul.f32 0.020408163, %v1906_v35  ;;  %v1921_v59 = vmul.f32 %v8719_v49, %v8719_v49  ;;  %992 = vmatmul.f32.gmra.mxu3 %v8462_v38  ;;  %1110 = vmatmul.f32.gmra.mxu1 %v8462_v38  ;;  %v1229_v3 = vrot.slane %v1228_v26, 4  ;;  %v1278_v0 = vadd.f32 %v1267_v51, %v1262_v29 }
 0x15d   : > { %v1926_v30 = vsub.f32 %v1916_v18, %v1921_v59  ;;  %v692_v28 = vpop.f32.mrf.mxu2  ;;  %v1230_v38 = vadd.f32 %v1229_v3, %v1228_v26  ;;  %v1279_v46 = vrot.slane %v1278_v0, 4 }
 0x15e   : > { %v751_v31 = vpop.f32.mrf.mxu3 }
 0x15f   : > { %v1931_v41 = vmax.f32 %v1926_v30, 0.0  ;;  %v8730_v36 = vadd.f32 %v751_v31, %v692_v28  ;;  %v813_v42 = vpop.f32.mrf.mxu0  ;;  %v1231_v2 = vrot.slane %v1230_v38, 2  ;;  %v1363_v28 = vmul.f32 %v8760_v9, %v8760_v9 }
 0x160   : > { %v872_v13 = vpop.f32.mrf.mxu1 }
 0x161   : > { %11654 = vst [vmem:[#allocation16_spill] sm:$0xff] %v8730_v36  ;;  %v8732_v45 = vadd.f32 0.001, %v1931_v41  ;;  %v1362_v17 = vmul.f32 %v8730_v36, %v8730_v36  ;;  %v1232_v4 = vadd.f32 %v1231_v2, %v1230_v38 }
 0x162   : > { %936 = vmatmul.f32.gmra.mxu2 %v8488_v56  ;;  %1054 = vmatmul.f32.gmra.mxu0 %v8488_v56  ;;  %v1280_v56 = vadd.f32 %v1279_v46, %v1278_v0  ;;  %v7879_v46 = vld [vmem:[%s11367_s0 + $0x70] sm:$0xff] }
 0x163   : > { %7869 = vrsqrt.f32 %v8732_v45  ;;  %995 = vmatmul.f32.gmra.mxu3 %v8498_v58  ;;  %1113 = vmatmul.f32.gmra.mxu1 %v8498_v58  ;;  %v873_v58 = vadd.f32 %v872_v13, %v813_v42  ;;  %vm1947_vm1 = vweird.f32 %v8732_v45  ;;  %v1286_v13 = vrot.slane %v1285_v24, 4 }
 0x164   : > { %v1281_v11 = vrot.slane %v1280_v56, 2 }
 0x165   : > { %v695_v52 = vpop.f32.mrf.mxu2  ;;  %v1335_v21 = vadd.f32 %v873_v58, %v8760_v9  ;;  %v1368_v16 = vmul.f32 %v873_v58, %v873_v58 }
 0x166   : > { %v754_v53 = vpop.f32.mrf.mxu3  ;;  %v1282_v30 = vadd.f32 %v1281_v11, %v1280_v56 }
 0x167   : > { %v755_v60 = vadd.f32 %v754_v53, %v695_v52  ;;  %v816_v1 = vpop.f32.mrf.mxu0  ;;  %v1336_v31 = vrot.slane %v1335_v21, 4  ;;  %v1385_v38 = vadd.f32 %v1368_v16, %v1363_v28  ;;  %v1287_v16 = vadd.f32 %v1286_v13, %v1285_v24 }
 0x168   : > { %v875_v62 = vpop.f32.mrf.mxu1 }
 0x169   : > { %v8745_v5 = vpop.eup %7869  ;;  %v1328_v6 = vadd.f32 %v755_v60, %v8730_v36  ;;  %v1367_v47 = vmul.f32 %v755_v60, %v755_v60  ;;  %v8748_v54 = vadd.f32 %v875_v62, %v816_v1  ;;  %v7880_v60 = vld [vmem:[%s11367_s0 + $0x78] sm:$0xff]  ;;  %v1283_v1 = vrot.slane %v1282_v30, 1 }
 0x16a   : > { %v1942_v61 = vmul.f32 %v8745_v5, %v8732_v45  ;;  %939 = vmatmul.f32.gmra.mxu2 %v8524_v12  ;;  %1057 = vmatmul.f32.gmra.mxu0 %v8524_v12  ;;  %vm1948_vm0 = vweird.f32 %v8745_v5  ;;  %v1337_v58 = vadd.f32 %v1336_v31, %v1335_v21  ;;  %v1386_v8 = vrot.slane %v1385_v38, 4 }
 0x16b   : > { %v1329_v7 = vrot.slane %v1328_v6, 4  ;;  %v1378_v15 = vadd.f32 %v1367_v47, %v1362_v17  ;;  %998 = vmatmul.f32.gmra.mxu3 %v8534_v14  ;;  %1116 = vmatmul.f32.gmra.mxu1 %v8534_v14  ;;  %v1233_v14 = vrot.slane %v1232_v4, 1  ;;  %vm1949_vm2 = vmor %vm1947_vm1, %vm1948_vm0  ;;  %v1463_v56 = vmul.f32 %v8748_v54, %v8748_v54 }
 0x16c   : > { %v1943_v10 = vmul.f32 %v8745_v5, %v1942_v61  ;;  %v1288_v28 = vrot.slane %v1287_v16, 2  ;;  %vm2027_vm1 = vcmask 1043459  }
 0x16d   : > { %v1330_v12 = vadd.f32 %v1329_v7, %v1328_v6  ;;  %v1379_v19 = vrot.slane %v1378_v15, 4  ;;  %v698_v22 = vpop.f32.mrf.mxu2  ;;  %v1234_v52 = vadd.f32 %v1233_v14, %v1232_v4 }
 0x16e   : > { %v1944_v34 = vmul.f32 0.5, %v1943_v10  ;;  %v757_v33 = vpop.f32.mrf.mxu3 }
 0x16f   : > { %v1331_v35 = vrot.slane %v1330_v12, 2  ;;  %v1380_v18 = vadd.f32 %v1379_v19, %v1378_v15  ;;  %v8770_v59 = vadd.f32 %v757_v33, %v698_v22  ;;  %v819_v26 = vpop.f32.mrf.mxu0  ;;  %v1284_v19 = vadd.f32 %v1283_v1, %v1282_v30 }
 0x170   : > { %v1945_v51 = vsub.f32 1.5, %v1944_v34  ;;  %v878_v29 = vpop.f32.mrf.mxu1  ;;  %v1338_v33 = vrot.slane %v1337_v58, 2 }
 0x171   : > { %11655 = vst [vmem:[#allocation17_spill] sm:$0xff] %v8770_v59  ;;  %v1332_v41 = vadd.f32 %v1331_v35, %v1330_v12  ;;  %v1381_v3 = vrot.slane %v1380_v18, 2  ;;  %v879_v42 = vadd.f32 %v878_v29, %v819_v26  ;;  %v1237_v12 = vadd.f32 %v1236_v57, %v8756_v37 }
 0x172   : > { %v1946_v0 = vmul.f32 %v8745_v5, %v1945_v51  ;;  %942 = vmatmul.f32.gmra.mxu2 %v7879_v46  ;;  %1060 = vmatmul.f32.gmra.mxu0 %v7879_v46  ;;  %v1387_v35 = vadd.f32 %v1386_v8, %v1385_v38 }
 0x173   : > { %v1333_v48 = vrot.slane %v1332_v41, 1  ;;  %v1382_v53 = vadd.f32 %v1381_v3, %v1380_v18  ;;  %v1468_v2 = vmul.f32 %v879_v42, %v879_v42  ;;  %1001 = vmatmul.f32.gmra.mxu3 %v7880_v60  ;;  %1119 = vmatmul.f32.gmra.mxu1 %v7880_v60  ;;  %v1435_v17 = vadd.f32 %v879_v42, %v8748_v54  ;;  %v7881_v18 = vld [vmem:[%s11367_s0 + $0x80] sm:$0xff] }
 0x174   : > { %v1950_v45 = vsel %vm1949_vm2, %v8745_v5, %v1946_v0  ;;  %v1238_v30 = vrot.slane %v1237_v12, 2  ;;  %v1339_v3 = vadd.f32 %v1338_v33, %v1337_v58  ;;  %v1388_v13 = vrot.slane %v1387_v35, 2  ;;  %v7883_v58 = vld [vmem:[%s11367_s0 + $0x90] sm:$0xff] }
 0x175   : > { %v2003_v62 = vmul.f32 %v1993_v20, %v1950_v45  ;;  %v1334_v6 = vadd.f32 %v1333_v48, %v1332_v41  ;;  %v1383_v47 = vrot.slane %v1382_v53, 1  ;;  %v701_v61 = vpop.f32.mrf.mxu2  ;;  %v1485_v4 = vadd.f32 %v1468_v2, %v1463_v56 }
 0x176   : > { %v760_v7 = vpop.f32.mrf.mxu3  ;;  %v1436_v20 = vrot.slane %v1435_v17, 4  ;;  %v1239_v60 = vadd.f32 %v1238_v30, %v1237_v12  ;;  %v1289_v45 = vadd.f32 %v1288_v28, %v1287_v16  ;;  %vm2029_vm2 = vcmask 1042432  }
 0x177   : > { %v8790_v15 = vmul.f32 %v2003_v62, %v8719_v49  ;;  %v8792_v10 = vperm.slane %v2003_v62, 0  ;;  %v8794_v5 = vadd.f32 %v1334_v6, %v1234_v52  ;;  %v1384_v32 = vadd.f32 %v1383_v47, %v1382_v53  ;;  %v822_v11 = vpop.f32.mrf.mxu0 }
 0x178   : > { %v761_v21 = vadd.f32 %v760_v7, %v701_v61  ;;  %v881_v22 = vpop.f32.mrf.mxu1  ;;  %v1486_v57 = vrot.slane %v1485_v4, 4  ;;  %v1437_v26 = vadd.f32 %v1436_v20, %v1435_v17  ;;  %v1340_v17 = vrot.slane %v1339_v3, 1 }
 0x179   : > { %v8799_v34 = vmul.f32 %v8792_v10, %v8653_v63  ;;  %v8803_v49 = vmul.f32 %v8792_v10, %v8692_v27  ;;  %v8807_v14 = vmul.f32 %v8792_v10, %v8688_v23  ;;  %v8809_v37 = vadd.f32 %v1384_v32, %v1284_v19  ;;  %v7882_v23 = vld [vmem:[%s11367_s0 + $0x88] sm:$0xff] }
 0x17a   : > { %945 = vmatmul.f32.gmra.mxu2 %v7881_v18  ;;  %v1462_v63 = vmul.f32 %v8770_v59, %v8770_v59  ;;  %v1428_v27 = vadd.f32 %v761_v21, %v8770_v59  ;;  %v1467_v24 = vmul.f32 %v761_v21, %v761_v21  ;;  %1063 = vmatmul.f32.gmra.mxu0 %v7881_v18  ;;  %v1438_v48 = vrot.slane %v1437_v26, 2 }
 0x17b   : > { %11656 = vst [vmem:[#allocation18_spill] sm:$0xff] %v8799_v34  ;;  %1004 = vmatmul.f32.gmra.mxu3 %v7882_v23  ;;  %v8820_v51 = vadd.f32 %v881_v22, %v822_v11  ;;  %1122 = vmatmul.f32.gmra.mxu1 %v7882_v23  ;;  %v1487_v42 = vadd.f32 %v1486_v57, %v1485_v4  ;;  %v7884_v4 = vld [vmem:[%s11367_s0 + $0x98] sm:$0xff]  ;;  %v1240_v19 = vrot.slane %v1239_v60, 1  ;;  %v1290_v20 = vrot.slane %v1289_v45, 1 }
 0x17c   : > { %11657 = vst [vmem:[#allocation19_spill] sm:$0xff] %v8803_v49  ;;  %v1429_v29 = vrot.slane %v1428_v27, 4  ;;  %v1478_v31 = vadd.f32 %v1467_v24, %v1462_v63  ;;  %v1389_v47 = vadd.f32 %v1388_v13, %v1387_v35  ;;  %v1439_v7 = vadd.f32 %v1438_v48, %v1437_v26 }
 0x17d   : > { %11658 = vst [vmem:[#allocation20_spill] sm:$0xff] %v8807_v14  ;;  %v704_v41 = vpop.f32.mrf.mxu2  ;;  %v1488_v62 = vrot.slane %v1487_v42, 2  ;;  %v1563_v32 = vmul.f32 %v8820_v51, %v8820_v51  ;;  %v1341_v33 = vadd.f32 %v1340_v17, %v1339_v3 }
 0x17e   : > { %v763_v0 = vpop.f32.mrf.mxu3  ;;  %v1430_v38 = vadd.f32 %v1429_v29, %v1428_v27  ;;  %v1479_v46 = vrot.slane %v1478_v31, 4  ;;  %v1390_v27 = vrot.slane %v1389_v47, 1  ;;  %v1440_v28 = vrot.slane %v1439_v7, 1 }
 0x17f   : > { %v825_v52 = vpop.f32.mrf.mxu0  ;;  %v8822_v53 = vadd.f32 %v763_v0, %v704_v41  ;;  %v1489_v35 = vadd.f32 %v1488_v62, %v1487_v42 }
 0x180   : > { %v884_v2 = vpop.f32.mrf.mxu1  ;;  %v1431_v1 = vrot.slane %v1430_v38, 2  ;;  %v1480_v56 = vadd.f32 %v1479_v46, %v1478_v31 }
 0x181   : > { %11659 = vst [vmem:[#allocation21_spill] sm:$0xff] %v8822_v53  ;;  %v885_v6 = vadd.f32 %v884_v2, %v825_v52  ;;  %v1562_v29 = vmul.f32 %v8822_v53, %v8822_v53  ;;  %v1490_v46 = vrot.slane %v1489_v35, 1 }
 0x182   : > { %948 = vmatmul.f32.gmra.mxu2 %v7883_v58  ;;  %v1432_v61 = vadd.f32 %v1431_v1, %v1430_v38  ;;  %v1481_v8 = vrot.slane %v1480_v56, 2  ;;  %1066 = vmatmul.f32.gmra.mxu0 %v7883_v58  ;;  %v7885_v1 = vld [vmem:[%s11367_s0 + $0xa0] sm:$0xff]  ;;  %v1391_v58 = vadd.f32 %v1390_v27, %v1389_v47 }
 0x183   : > { %1007 = vmatmul.f32.gmra.mxu3 %v7884_v4  ;;  %v1535_v11 = vadd.f32 %v885_v6, %v8820_v51  ;;  %v1568_v12 = vmul.f32 %v885_v6, %v885_v6  ;;  %1125 = vmatmul.f32.gmra.mxu1 %v7884_v4  ;;  %v7886_v6 = vld [vmem:[%s11367_s0 + $0xa8] sm:$0xff] }
 0x184   : > { %v1433_v21 = vrot.slane %v1432_v61, 1  ;;  %v1482_v22 = vadd.f32 %v1481_v8, %v1480_v56  ;;  %v1241_v56 = vadd.f32 %v1240_v19, %v1239_v60  ;;  %v1491_v19 = vadd.f32 %v1490_v46, %v1489_v35 }
 0x185   : > { %v707_v16 = vpop.f32.mrf.mxu2  ;;  %v1536_v57 = vrot.slane %v1535_v11, 4  ;;  %v1585_v18 = vadd.f32 %v1568_v12, %v1563_v32  ;;  %v1291_v32 = vadd.f32 %v1290_v20, %v1289_v45 }
 0x186   : > { %v766_v63 = vpop.f32.mrf.mxu3  ;;  %v1434_v24 = vadd.f32 %v1433_v21, %v1432_v61  ;;  %v1483_v23 = vrot.slane %v1482_v22, 1  ;;  %v1441_v61 = vadd.f32 %v1440_v28, %v1439_v7  ;;  %v1358_v60 = vadd.f32 %v1341_v33, %v1241_v56 }
 0x187   : > { %v767_v26 = vadd.f32 %v766_v63, %v707_v16  ;;  %v828_v30 = vpop.f32.mrf.mxu0  ;;  %v1537_v31 = vadd.f32 %v1536_v57, %v1535_v11  ;;  %v1586_v41 = vrot.slane %v1585_v18, 4 }
 0x188   : > { %v887_v0 = vpop.f32.mrf.mxu1  ;;  %v8836_v13 = vadd.f32 %v1434_v24, %v8794_v5  ;;  %v1484_v3 = vadd.f32 %v1483_v23, %v1482_v22  ;;  %v1408_v23 = vadd.f32 %v1391_v58, %v1291_v32  ;;  %v1458_v47 = vadd.f32 %v1441_v61, %v1358_v60 }
 0x189   : > { %v1528_v42 = vadd.f32 %v767_v26, %v8822_v53  ;;  %v1567_v38 = vmul.f32 %v767_v26, %v767_v26  ;;  %v1538_v52 = vrot.slane %v1537_v31, 2  ;;  %v1587_v48 = vadd.f32 %v1586_v41, %v1585_v18 }
 0x18a   : > { %v8839_v2 = vadd.f32 %v887_v0, %v828_v30  ;;  %951 = vmatmul.f32.gmra.mxu2 %v7885_v1  ;;  %v1507_v17 = vadd.f32 %v1484_v3, %v8809_v37  ;;  %1069 = vmatmul.f32.gmra.mxu0 %v7885_v1  ;;  %v1508_v28 = vadd.f32 %v1491_v19, %v1408_v23 }
 0x18b   : > { %v1529_v62 = vrot.slane %v1528_v42, 4  ;;  %v1578_v5 = vadd.f32 %v1567_v38, %v1562_v29  ;;  %1010 = vmatmul.f32.gmra.mxu3 %v7886_v6  ;;  %v1539_v8 = vadd.f32 %v1538_v52, %v1537_v31  ;;  %v1588_v4 = vrot.slane %v1587_v48, 2  ;;  %1128 = vmatmul.f32.gmra.mxu1 %v7886_v6  ;;  %v7887_v31 = vld [vmem:[%s11367_s0 + $0xb0] sm:$0xff]  ;;  %v7888_v38 = vld [vmem:[%s11367_s0 + $0xb8] sm:$0xff] }
 0x18c   : > { %v1663_v35 = vmul.f32 %v8839_v2, %v8839_v2 }
 0x18d   : > { %v1530_v11 = vadd.f32 %v1529_v62, %v1528_v42  ;;  %v1579_v12 = vrot.slane %v1578_v5, 4  ;;  %v710_v21 = vpop.f32.mrf.mxu2  ;;  %v1540_v37 = vrot.slane %v1539_v8, 1  ;;  %v1589_v22 = vadd.f32 %v1588_v4, %v1587_v48 }
 0x18e   : > { %v769_v16 = vpop.f32.mrf.mxu3 }
 0x18f   : > { %v1531_v57 = vrot.slane %v1530_v11, 2  ;;  %v1580_v18 = vadd.f32 %v1579_v12, %v1578_v5  ;;  %v8848_v63 = vadd.f32 %v769_v16, %v710_v21  ;;  %v831_v24 = vpop.f32.mrf.mxu0  ;;  %v1541_v7 = vadd.f32 %v1540_v37, %v1539_v8 }
 0x190   : > { %v1590_v27 = vrot.slane %v1589_v22, 1  ;;  %v890_v26 = vpop.f32.mrf.mxu1 }
 0x191   : > { %11660 = vst [vmem:[#allocation22_spill] sm:$0xff] %v8848_v63  ;;  %v1532_v30 = vadd.f32 %v1531_v57, %v1530_v11  ;;  %v1581_v45 = vrot.slane %v1580_v18, 2  ;;  %v891_v20 = vadd.f32 %v890_v26, %v831_v24  ;;  %v1558_v29 = vadd.f32 %v1541_v7, %v1458_v47 }
 0x192   : > { %v1591_v33 = vadd.f32 %v1590_v27, %v1589_v22  ;;  %954 = vmatmul.f32.gmra.mxu2 %v7887_v31  ;;  %1072 = vmatmul.f32.gmra.mxu0 %v7887_v31  ;;  %v1662_v37 = vmul.f32 %v8848_v63, %v8848_v63 }
 0x193   : > { %v1533_v41 = vrot.slane %v1532_v30, 1  ;;  %v1582_v0 = vadd.f32 %v1581_v45, %v1580_v18  ;;  %v1635_v3 = vadd.f32 %v891_v20, %v8839_v2  ;;  %v1668_v42 = vmul.f32 %v891_v20, %v891_v20  ;;  %1013 = vmatmul.f32.gmra.mxu3 %v7888_v38  ;;  %1131 = vmatmul.f32.gmra.mxu1 %v7888_v38 }
 0x194   : > { %v1608_v46 = vadd.f32 %v1591_v33, %v1508_v28 }
 0x195   : > { %v1534_v52 = vadd.f32 %v1533_v41, %v1532_v30  ;;  %v1583_v48 = vrot.slane %v1582_v0, 1  ;;  %v1636_v1 = vrot.slane %v1635_v3, 4  ;;  %v1685_v56 = vadd.f32 %v1668_v42, %v1663_v35  ;;  %v713_v62 = vpop.f32.mrf.mxu2 }
 0x196   : > { %v772_v5 = vpop.f32.mrf.mxu3 }
 0x197   : > { %v8860_v6 = vadd.f32 %v1534_v52, %v8836_v13  ;;  %v1584_v58 = vadd.f32 %v1583_v48, %v1582_v0  ;;  %v1637_v61 = vadd.f32 %v1636_v1, %v1635_v3  ;;  %v1686_v8 = vrot.slane %v1685_v56, 4  ;;  %v834_v4 = vpop.f32.mrf.mxu0  ;;  %v7889_v13 = vld [vmem:[%s11367_s0 + $0xc0] sm:$0xff] }
 0x198   : > { %v773_v32 = vadd.f32 %v772_v5, %v713_v62  ;;  %v893_v11 = vpop.f32.mrf.mxu1 }
 0x199   : > { %v8862_v12 = vadd.f32 %v1584_v58, %v1507_v17  ;;  %v1638_v21 = vrot.slane %v1637_v61, 2  ;;  %v1687_v60 = vadd.f32 %v1686_v8, %v1685_v56  ;;  %v8864_v19 = vadd.f32 %v893_v11, %v834_v4  ;;  %v7890_v17 = vld [vmem:[%s11367_s0 + $0xc8] sm:$0xff]  ;;  %v7891_v56 = vld [vmem:[%s11367_s0 + $0xd0] sm:$0xff] }
 0x19a   : > { %v1628_v22 = vadd.f32 %v773_v32, %v8848_v63  ;;  %v1667_v16 = vmul.f32 %v773_v32, %v773_v32  ;;  %957 = vmatmul.f32.gmra.mxu2 %v7889_v13  ;;  %1075 = vmatmul.f32.gmra.mxu0 %v7889_v13 }
 0x19b   : > { %v1639_v57 = vadd.f32 %v1638_v21, %v1637_v61  ;;  %v1688_v18 = vrot.slane %v1687_v60, 2  ;;  %1016 = vmatmul.f32.gmra.mxu3 %v7890_v17  ;;  %1134 = vmatmul.f32.gmra.mxu1 %v7890_v17  ;;  %v1763_v1 = vmul.f32 %v8864_v19, %v8864_v19 }
 0x19c   : > { %v1629_v24 = vrot.slane %v1628_v22, 4  ;;  %v1678_v23 = vadd.f32 %v1667_v16, %v1662_v37 }
 0x19d   : > { %v1640_v47 = vrot.slane %v1639_v57, 1  ;;  %v1689_v7 = vadd.f32 %v1688_v18, %v1687_v60  ;;  %v716_v27 = vpop.f32.mrf.mxu2 }
 0x19e   : > { %v1630_v26 = vadd.f32 %v1629_v24, %v1628_v22  ;;  %v1679_v30 = vrot.slane %v1678_v23, 4  ;;  %v775_v45 = vpop.f32.mrf.mxu3 }
 0x19f   : > { %v1641_v20 = vadd.f32 %v1640_v47, %v1639_v57  ;;  %v1690_v28 = vrot.slane %v1689_v7, 1  ;;  %v8875_v33 = vadd.f32 %v775_v45, %v716_v27  ;;  %v837_v35 = vpop.f32.mrf.mxu0 }
 0x1a0   : > { %v1631_v31 = vrot.slane %v1630_v26, 2  ;;  %v1680_v41 = vadd.f32 %v1679_v30, %v1678_v23  ;;  %v896_v0 = vpop.f32.mrf.mxu1 }
 0x1a1   : > { %11661 = vst [vmem:[#allocation23_spill] sm:$0xff] %v8875_v33  ;;  %v1658_v3 = vadd.f32 %v1641_v20, %v1558_v29  ;;  %v1691_v42 = vadd.f32 %v1690_v28, %v1689_v7  ;;  %v897_v38 = vadd.f32 %v896_v0, %v837_v35  ;;  %v7892_v29 = vld [vmem:[%s11367_s0 + $0xd8] sm:$0xff]  ;;  %v1762_v17 = vmul.f32 %v8875_v33, %v8875_v33 }
 0x1a2   : > { %v1632_v52 = vadd.f32 %v1631_v31, %v1630_v26  ;;  %v1681_v48 = vrot.slane %v1680_v41, 2  ;;  %960 = vmatmul.f32.gmra.mxu2 %v7891_v56  ;;  %1078 = vmatmul.f32.gmra.mxu0 %v7891_v56 }
 0x1a3   : > { %v1708_v62 = vadd.f32 %v1691_v42, %v1608_v46  ;;  %v1735_v5 = vadd.f32 %v897_v38, %v8864_v19  ;;  %v1768_v58 = vmul.f32 %v897_v38, %v897_v38  ;;  %1019 = vmatmul.f32.gmra.mxu3 %v7892_v29  ;;  %1137 = vmatmul.f32.gmra.mxu1 %v7892_v29 }
 0x1a4   : > { %v1633_v61 = vrot.slane %v1632_v52, 1  ;;  %v1682_v8 = vadd.f32 %v1681_v48, %v1680_v41 }
 0x1a5   : > { %v1736_v4 = vrot.slane %v1735_v5, 4  ;;  %v1785_v32 = vadd.f32 %v1768_v58, %v1763_v1  ;;  %v719_v11 = vpop.f32.mrf.mxu2 }
 0x1a6   : > { %v1634_v21 = vadd.f32 %v1633_v61, %v1632_v52  ;;  %v1683_v60 = vrot.slane %v1682_v8, 1  ;;  %v778_v37 = vpop.f32.mrf.mxu3 }
 0x1a7   : > { %v1737_v22 = vadd.f32 %v1736_v4, %v1735_v5  ;;  %v1786_v46 = vrot.slane %v1785_v32, 4  ;;  %v779_v16 = vadd.f32 %v778_v37, %v719_v11  ;;  %v840_v13 = vpop.f32.mrf.mxu0 }
 0x1a8   : > { %v1657_v57 = vadd.f32 %v1634_v21, %v8860_v6  ;;  %v1684_v18 = vadd.f32 %v1683_v60, %v1682_v8  ;;  %v899_v24 = vpop.f32.mrf.mxu1 }
 0x1a9   : > { %v1738_v23 = vrot.slane %v1737_v22, 2  ;;  %v1787_v47 = vadd.f32 %v1786_v46, %v1785_v32  ;;  %v1728_v7 = vadd.f32 %v779_v16, %v8875_v33  ;;  %v1767_v27 = vmul.f32 %v779_v16, %v779_v16 }
 0x1aa   : > { %v1707_v26 = vadd.f32 %v1684_v18, %v8862_v12  ;;  %v8891_v30 = vadd.f32 %v899_v24, %v840_v13 }
 0x1ab   : > { %v1739_v45 = vadd.f32 %v1738_v23, %v1737_v22  ;;  %v1788_v20 = vrot.slane %v1787_v47, 2  ;;  %v1729_v28 = vrot.slane %v1728_v7, 4  ;;  %v1778_v35 = vadd.f32 %v1767_v27, %v1762_v17 }
 0x1ac   : > { %v1863_v37 = vmul.f32 %v8891_v30, %v8891_v30 }
 0x1ad   : > { %v1740_v31 = vrot.slane %v1739_v45, 1  ;;  %v1789_v6 = vadd.f32 %v1788_v20, %v1787_v47  ;;  %v1730_v41 = vadd.f32 %v1729_v28, %v1728_v7  ;;  %v1779_v0 = vrot.slane %v1778_v35, 4  ;;  %v722_v42 = vpop.f32.mrf.mxu2 }
 0x1ae   : > { %v781_v38 = vpop.f32.mrf.mxu3 }
 0x1af   : > { %v1741_v52 = vadd.f32 %v1740_v31, %v1739_v45  ;;  %v1790_v48 = vrot.slane %v1789_v6, 1  ;;  %v1731_v1 = vrot.slane %v1730_v41, 2  ;;  %v1780_v56 = vadd.f32 %v1779_v0, %v1778_v35  ;;  %v843_v5 = vpop.f32.mrf.mxu0 }
 0x1b0   : > { %v8893_v58 = vadd.f32 %v781_v38, %v722_v42  ;;  %v902_v12 = vpop.f32.mrf.mxu1 }
 0x1b1   : > { %v1758_v29 = vadd.f32 %v1741_v52, %v1658_v3  ;;  %v1791_v61 = vadd.f32 %v1790_v48, %v1789_v6  ;;  %v1732_v8 = vadd.f32 %v1731_v1, %v1730_v41  ;;  %v1781_v4 = vrot.slane %v1780_v56, 2 }
 0x1b2   : > { %v903_v32 = vadd.f32 %v902_v12, %v843_v5 }
 0x1b3   : > { %v1808_v11 = vadd.f32 %v1791_v61, %v1708_v62  ;;  %v1733_v21 = vrot.slane %v1732_v8, 1  ;;  %v1782_v60 = vadd.f32 %v1781_v4, %v1780_v56  ;;  %v1862_v62 = vmul.f32 %v8893_v58, %v8893_v58 }
 0x1b4   : > { %v1835_v22 = vadd.f32 %v903_v32, %v8891_v30  ;;  %v1868_v46 = vmul.f32 %v903_v32, %v903_v32 }
 0x1b5   : > { %v1734_v16 = vadd.f32 %v1733_v21, %v1732_v8  ;;  %v1783_v13 = vrot.slane %v1782_v60, 1  ;;  %v725_v18 = vpop.f32.mrf.mxu2 }
 0x1b6   : > { %v1836_v17 = vrot.slane %v1835_v22, 4  ;;  %v1885_v24 = vadd.f32 %v1868_v46, %v1863_v37  ;;  %v784_v23 = vpop.f32.mrf.mxu3 }
 0x1b7   : > { %v1757_v3 = vadd.f32 %v1734_v16, %v1657_v57  ;;  %v1784_v47 = vadd.f32 %v1783_v13, %v1782_v60  ;;  %v785_v7 = vadd.f32 %v784_v23, %v725_v18  ;;  %v1040_v27 = vpop.f32.mrf.mxu0 }
 0x1b8   : > { %v1837_v45 = vadd.f32 %v1836_v17, %v1835_v22  ;;  %v1886_v20 = vrot.slane %v1885_v24, 4  ;;  %v1099_v28 = vpop.f32.mrf.mxu1 }
 0x1b9   : > { %v1807_v35 = vadd.f32 %v1784_v47, %v1707_v26  ;;  %v1828_v31 = vadd.f32 %v785_v7, %v8893_v58  ;;  %v1867_v6 = vmul.f32 %v785_v7, %v785_v7  ;;  %v8901_v41 = vadd.f32 %v1099_v28, %v1040_v27 }
 0x1ba   : > { %v1838_v0 = vrot.slane %v1837_v45, 2  ;;  %v1887_v42 = vadd.f32 %v1886_v20, %v1885_v24 }
 0x1bb   : > { %11662 = vst [vmem:[#allocation24_spill] sm:$0xff] %v8901_v41  ;;  %v1829_v38 = vrot.slane %v1828_v31, 4  ;;  %v1878_v52 = vadd.f32 %v1867_v6, %v1862_v62 }
 0x1bc   : > { %v1839_v57 = vadd.f32 %v1838_v0, %v1837_v45  ;;  %v1888_v48 = vrot.slane %v1887_v42, 2  ;;  %v1265_v45 = vmul.f32 %v8901_v41, %v8901_v41 }
 0x1bd   : > { %v1830_v1 = vadd.f32 %v1829_v38, %v1828_v31  ;;  %v1879_v56 = vrot.slane %v1878_v52, 4  ;;  %v922_v5 = vpop.f32.mrf.mxu2 }
 0x1be   : > { %v1840_v12 = vrot.slane %v1839_v57, 1  ;;  %v1889_v61 = vadd.f32 %v1888_v48, %v1887_v42  ;;  %v981_v8 = vpop.f32.mrf.mxu3 }
 0x1bf   : > { %v1831_v4 = vrot.slane %v1830_v1, 2  ;;  %v1880_v32 = vadd.f32 %v1879_v56, %v1878_v52  ;;  %v8903_v26 = vadd.f32 %v981_v8, %v922_v5  ;;  %v1043_v21 = vpop.f32.mrf.mxu0 }
 0x1c0   : > { %v1841_v60 = vadd.f32 %v1840_v12, %v1839_v57  ;;  %v1890_v37 = vrot.slane %v1889_v61, 1  ;;  %v1102_v22 = vpop.f32.mrf.mxu1 }
 0x1c1   : > { %11663 = vst [vmem:[#allocation25_spill] sm:$0xff] %v8903_v26  ;;  %v1832_v46 = vadd.f32 %v1831_v4, %v1830_v1  ;;  %v1881_v16 = vrot.slane %v1880_v32, 2  ;;  %v1103_v13 = vadd.f32 %v1102_v22, %v1043_v21 }
 0x1c2   : > { %v1858_v18 = vadd.f32 %v1841_v60, %v1758_v29  ;;  %v1891_v17 = vadd.f32 %v1890_v37, %v1889_v61 }
 0x1c3   : > { %v1833_v24 = vrot.slane %v1832_v46, 1  ;;  %v1882_v23 = vadd.f32 %v1881_v16, %v1880_v32  ;;  %v1249_v47 = vadd.f32 %v1103_v13, %v8901_v41  ;;  %v1270_v7 = vmul.f32 %v1103_v13, %v1103_v13 }
 0x1c4   : > { %v1908_v27 = vadd.f32 %v1891_v17, %v1808_v11  ;;  %v8906_v62 = vmul.f32 0.020408163, %v1858_v18 }
 0x1c5   : > { %v1834_v20 = vadd.f32 %v1833_v24, %v1832_v46  ;;  %v1883_v28 = vrot.slane %v1882_v23, 1  ;;  %v1250_v31 = vrot.slane %v1249_v47, 4  ;;  %v925_v6 = vpop.f32.mrf.mxu2  ;;  %v1299_v42 = vadd.f32 %v1270_v7, %v1265_v45 }
 0x1c6   : > { %v1918_v0 = vmul.f32 0.020408163, %v1908_v27  ;;  %v1923_v29 = vmul.f32 %v8906_v62, %v8906_v62  ;;  %v984_v38 = vpop.f32.mrf.mxu3 }
 0x1c7   : > { %v1857_v52 = vadd.f32 %v1834_v20, %v1757_v3  ;;  %v1884_v57 = vadd.f32 %v1883_v28, %v1882_v23  ;;  %v1251_v48 = vadd.f32 %v1250_v31, %v1249_v47  ;;  %v985_v1 = vadd.f32 %v984_v38, %v925_v6  ;;  %v1046_v11 = vpop.f32.mrf.mxu0 }
 0x1c8   : > { %v1928_v56 = vsub.f32 %v1918_v0, %v1923_v29  ;;  %v1105_v5 = vpop.f32.mrf.mxu1  ;;  %v1300_v37 = vrot.slane %v1299_v42, 4 }
 0x1c9   : > { %v1907_v12 = vadd.f32 %v1884_v57, %v1807_v35  ;;  %v8912_v61 = vmul.f32 0.020408163, %v1857_v52  ;;  %v8914_v4 = vadd.f32 %v1105_v5, %v1046_v11  ;;  %v1252_v60 = vrot.slane %v1251_v48, 2 }
 0x1ca   : > { %v1933_v8 = vmax.f32 %v1928_v56, 0.0  ;;  %v1242_v3 = vadd.f32 %v985_v1, %v8903_v26  ;;  %v1269_v46 = vmul.f32 %v985_v1, %v985_v1  ;;  %v1264_v35 = vmul.f32 %v8903_v26, %v8903_v26 }
 0x1cb   : > { %11664 = vst [vmem:[#allocation26_spill] sm:$0xff] %v8914_v4  ;;  %v1917_v32 = vmul.f32 0.020408163, %v1907_v12  ;;  %v1922_v21 = vmul.f32 %v8912_v61, %v8912_v61  ;;  %v1253_v24 = vadd.f32 %v1252_v60, %v1251_v48  ;;  %v1301_v23 = vadd.f32 %v1300_v37, %v1299_v42 }
 0x1cc   : > { %v8918_v22 = vadd.f32 0.001, %v1933_v8  ;;  %v1243_v27 = vrot.slane %v1242_v3, 4  ;;  %v1292_v45 = vadd.f32 %v1269_v46, %v1264_v35  ;;  %v1365_v42 = vmul.f32 %v8914_v4, %v8914_v4 }
 0x1cd   : > { %v1927_v16 = vsub.f32 %v1917_v32, %v1922_v21  ;;  %v928_v13 = vpop.f32.mrf.mxu2  ;;  %v1254_v6 = vrot.slane %v1253_v24, 1  ;;  %v1302_v0 = vrot.slane %v1301_v23, 2  ;;  %v1995_v5 = vperm.slane %v8753_v50, 2 }
 0x1ce   : > { %7871 = vrsqrt.f32 %v8918_v22  ;;  %v987_v18 = vpop.f32.mrf.mxu3  ;;  %v1244_v52 = vadd.f32 %v1243_v27, %v1242_v3  ;;  %v1293_v57 = vrot.slane %v1292_v45, 4  ;;  %vm1967_vm3 = vweird.f32 %v8918_v22 }
 0x1cf   : > { %v1932_v17 = vmax.f32 %v1927_v16, 0.0  ;;  %v8924_v47 = vadd.f32 %v987_v18, %v928_v13  ;;  %v1049_v7 = vpop.f32.mrf.mxu0  ;;  %v1303_v21 = vadd.f32 %v1302_v0, %v1301_v23  ;;  %v1255_v46 = vadd.f32 %v1254_v6, %v1253_v24 }
 0x1d0   : > { %v1108_v20 = vpop.f32.mrf.mxu1  ;;  %v1245_v16 = vrot.slane %v1244_v52, 2  ;;  %v1294_v13 = vadd.f32 %v1293_v57, %v1292_v45 }
 0x1d1   : > { %11665 = vst [vmem:[#allocation27_spill] sm:$0xff] %v8924_v47  ;;  %v8926_v28 = vadd.f32 0.001, %v1932_v17  ;;  %v1109_v31 = vadd.f32 %v1108_v20, %v1049_v7  ;;  %v1364_v27 = vmul.f32 %v8924_v47, %v8924_v47  ;;  %v1304_v57 = vrot.slane %v1303_v21, 1 }
 0x1d3   : > { %7873 = vrsqrt.f32 %v8926_v28  ;;  %v1349_v29 = vadd.f32 %v1109_v31, %v8914_v4  ;;  %v1370_v48 = vmul.f32 %v1109_v31, %v1109_v31  ;;  %vm1957_vm7 = vweird.f32 %v8926_v28 }
 0x1d4   : > { %v7872_v38 = vpop.eup %7871 }
 0x1d5   : > { %v1962_v1 = vmul.f32 %v7872_v38, %v8918_v22  ;;  %v1350_v11 = vrot.slane %v1349_v29, 4  ;;  %v931_v56 = vpop.f32.mrf.mxu2  ;;  %v1399_v12 = vadd.f32 %v1370_v48, %v1365_v42  ;;  %vm1968_vm4 = vweird.f32 %v7872_v38 }
 0x1d6   : > { %v990_v8 = vpop.f32.mrf.mxu3  ;;  %vm1969_vm5 = vmor %vm1967_vm3, %vm1968_vm4 }
 0x1d7   : > { %v1963_v32 = vmul.f32 %v7872_v38, %v1962_v1  ;;  %v1351_v60 = vadd.f32 %v1350_v11, %v1349_v29  ;;  %v991_v37 = vadd.f32 %v990_v8, %v931_v56  ;;  %v1052_v3 = vpop.f32.mrf.mxu0  ;;  %v1400_v35 = vrot.slane %v1399_v12, 4 }
 0x1d8   : > { %v1111_v18 = vpop.f32.mrf.mxu1  ;;  %v1246_v8 = vadd.f32 %v1245_v16, %v1244_v52 }
 0x1d9   : > { %v7874_v17 = vpop.eup %7873  ;;  %v1964_v7 = vmul.f32 0.5, %v1963_v32  ;;  %v1352_v20 = vrot.slane %v1351_v60, 2  ;;  %v1342_v31 = vadd.f32 %v991_v37, %v8924_v47  ;;  %v1401_v23 = vadd.f32 %v1400_v35, %v1399_v12 }
 0x1da   : > { %v1952_v42 = vmul.f32 %v7874_v17, %v8926_v28  ;;  %v1369_v0 = vmul.f32 %v991_v37, %v991_v37  ;;  %v8939_v6 = vadd.f32 %v1111_v18, %v1052_v3  ;;  %v1295_v37 = vrot.slane %v1294_v13, 2 }
 0x1db   : > { %v1965_v29 = vsub.f32 1.5, %v1964_v7  ;;  %v1353_v48 = vadd.f32 %v1352_v20, %v1351_v60  ;;  %v1343_v24 = vrot.slane %v1342_v31, 4  ;;  %v1402_v1 = vrot.slane %v1401_v23, 2 }
 0x1dc   : > { %11666 = vst [vmem:[#allocation28_spill] sm:$0xff] %v8939_v6  ;;  %v1953_v45 = vmul.f32 %v7874_v17, %v1952_v42  ;;  %v1392_v11 = vadd.f32 %v1369_v0, %v1364_v27  ;;  %vm1958_vm6 = vweird.f32 %v7874_v17 }
 0x1dd   : > { %v1966_v56 = vmul.f32 %v7872_v38, %v1965_v29  ;;  %v1354_v32 = vrot.slane %v1353_v48, 1  ;;  %v1344_v14 = vadd.f32 %v1343_v24, %v1342_v31  ;;  %v934_v49 = vpop.f32.mrf.mxu2  ;;  %v1403_v35 = vadd.f32 %v1402_v1, %v1401_v23  ;;  %vm1959_vm8 = vmor %vm1957_vm7, %vm1958_vm6 }
 0x1de   : > { %v1954_v12 = vmul.f32 0.5, %v1953_v45  ;;  %v1393_v60 = vrot.slane %v1392_v11, 4  ;;  %v993_v7 = vpop.f32.mrf.mxu3  ;;  %v1247_v24 = vrot.slane %v1246_v8, 1 }
 0x1df   : > { %v1970_v3 = vsel %vm1969_vm5, %v7872_v38, %v1966_v56  ;;  %v1355_v18 = vadd.f32 %v1354_v32, %v1353_v48  ;;  %v1345_v20 = vrot.slane %v1344_v14, 2  ;;  %v8944_v42 = vadd.f32 %v993_v7, %v934_v49  ;;  %v1055_v27 = vpop.f32.mrf.mxu0 }
 0x1e0   : > { %v2005_v0 = vmul.f32 %v1995_v5, %v1970_v3  ;;  %v1955_v52 = vsub.f32 1.5, %v1954_v12  ;;  %v1404_v16 = vrot.slane %v1403_v35, 1  ;;  %v1394_v31 = vadd.f32 %v1393_v60, %v1392_v11  ;;  %v1114_v29 = vpop.f32.mrf.mxu1 }
 0x1e1   : > { %11667 = vst [vmem:[#allocation29_spill] sm:$0xff] %v8944_v42  ;;  %v8946_v22 = vadd.f32 %v1355_v18, %v1255_v46  ;;  %v1346_v45 = vadd.f32 %v1345_v20, %v1344_v14  ;;  %v1994_v49 = vperm.slane %v8753_v50, 1  ;;  %v1296_v56 = vadd.f32 %v1295_v37, %v1294_v13 }
 0x1e2   : > { %v2011_v23 = vmul.f32 %v2005_v0, %v8906_v62  ;;  %v8949_v1 = vperm.slane %v2005_v0, 0  ;;  %v1956_v38 = vmul.f32 %v7874_v17, %v1955_v52  ;;  %v1405_v48 = vadd.f32 %v1404_v16, %v1403_v35 }
 0x1e3   : > { %v1347_v32 = vrot.slane %v1346_v45, 1  ;;  %v1395_v5 = vrot.slane %v1394_v31, 2  ;;  %v1305_v11 = vadd.f32 %v1304_v57, %v1303_v21  ;;  %v1248_v14 = vadd.f32 %v1247_v24, %v1246_v8 }
 0x1e4   : > { %v8955_v12 = vmul.f32 %v8949_v1, %v8891_v30  ;;  %v1960_v46 = vsel %vm1959_vm8, %v7874_v17, %v1956_v38  ;;  %v1297_v37 = vrot.slane %v1296_v56, 1  ;;  %v2020_v0 = vrot.slane %v2011_v23, 6 }
 0x1e5   : > { %v937_v62 = vpop.f32.mrf.mxu2  ;;  %v8958_v60 = vadd.f32 %v1405_v48, %v1305_v11  ;;  %v1348_v35 = vadd.f32 %v1347_v32, %v1346_v45  ;;  %v1396_v7 = vadd.f32 %v1395_v5, %v1394_v31  ;;  %v2004_v13 = vmul.f32 %v1994_v49, %v1960_v46 }
 0x1e6   : > { %11668 = vst [vmem:[#allocation30_spill] sm:$0xff] %v8955_v12  ;;  %v996_v50 = vpop.f32.mrf.mxu3  ;;  %v1298_v17 = vadd.f32 %v1297_v37, %v1296_v56  ;;  %v1115_v49 = vadd.f32 %v1114_v29, %v1055_v27  ;;  %v1464_v29 = vmul.f32 %v8944_v42, %v8944_v42 }
 0x1e7   : > { %v1058_v3 = vpop.f32.mrf.mxu0  ;;  %v8960_v18 = vadd.f32 %v1348_v35, %v1248_v14  ;;  %v1397_v28 = vrot.slane %v1396_v7, 1  ;;  %v2010_v30 = vmul.f32 %v2004_v13, %v8912_v61  ;;  %v8963_v57 = vperm.slane %v2004_v13, 0 }
 0x1e8   : > { %v1117_v21 = vpop.f32.mrf.mxu1  ;;  %v1449_v23 = vadd.f32 %v1115_v49, %v8939_v6  ;;  %v997_v14 = vadd.f32 %v996_v50, %v937_v62 }
 0x1e9   : > { %v1398_v8 = vadd.f32 %v1397_v28, %v1396_v7  ;;  %v2019_v20 = vrot.slane %v2010_v30, 7  ;;  %v8967_v52 = vmul.f32 %v8963_v57, %v8893_v58  ;;  %v1470_v58 = vmul.f32 %v1115_v49, %v1115_v49 }
 0x1ea   : > { %v1450_v46 = vrot.slane %v1449_v23, 4  ;;  %v1469_v37 = vmul.f32 %v997_v14, %v997_v14  ;;  %v8977_v30 = vadd.f32 %v1117_v21, %v1058_v3  ;;  %v1442_v62 = vadd.f32 %v997_v14, %v8944_v42 }
 0x1eb   : > { %11669 = vst [vmem:[#allocation31_spill] sm:$0xff] %v8967_v52  ;;  %v2024_v16 = vsel %vm2023_vm9, %v8790_v15, %v2019_v20  ;;  %v8970_v31 = vadd.f32 %v1398_v8, %v1298_v17  ;;  %v1465_v15 = vmul.f32 %v8939_v6, %v8939_v6 }
 0x1ec   : > { %v8972_v45 = vsel %vm2025_vm10, %v2024_v16, %v2020_v0  ;;  %11671 = vst [vmem:[#allocation33_spill] sm:$0xff] %v8977_v30  ;;  %v1451_v8 = vadd.f32 %v1450_v46, %v1449_v23  ;;  %v1492_v17 = vadd.f32 %v1469_v37, %v1464_v29  ;;  %v1443_v21 = vrot.slane %v1442_v62, 4 }
 0x1ed   : > { %v940_v24 = vpop.f32.mrf.mxu2  ;;  %11670 = vst [vmem:[#allocation32_spill] sm:$0xff] %v8972_v45  ;;  %v1499_v28 = vadd.f32 %v1470_v58, %v1465_v15 }
 0x1ee   : > { %v999_v61 = vpop.f32.mrf.mxu3  ;;  %v1452_v49 = vrot.slane %v1451_v8, 2  ;;  %v1493_v23 = vrot.slane %v1492_v17, 4  ;;  %v1444_v42 = vadd.f32 %v1443_v21, %v1442_v62 }
 0x1ef   : > { %v1061_v38 = vpop.f32.mrf.mxu0  ;;  %v1500_v16 = vrot.slane %v1499_v28, 4  ;;  %v8985_v58 = vadd.f32 %v999_v61, %v940_v24 }
 0x1f0   : > { %v1120_v48 = vpop.f32.mrf.mxu1  ;;  %v1453_v29 = vadd.f32 %v1452_v49, %v1451_v8  ;;  %v1494_v26 = vadd.f32 %v1493_v23, %v1492_v17 }
 0x1f1   : > { %v1121_v7 = vadd.f32 %v1120_v48, %v1061_v38  ;;  %v1565_v38 = vmul.f32 %v8977_v30, %v8977_v30  ;;  %11672 = vst [vmem:[#allocation34_spill] sm:$0xff] %v8985_v58  ;;  %v1501_v52 = vadd.f32 %v1500_v16, %v1499_v28  ;;  %v1445_v16 = vrot.slane %v1444_v42, 2 }
 0x1f3   : > { %v1570_v50 = vmul.f32 %v1121_v7, %v1121_v7  ;;  %v1549_v0 = vadd.f32 %v1121_v7, %v8977_v30  ;;  %v1502_v61 = vrot.slane %v1501_v52, 2 }
 0x1f5   : > { %v943_v32 = vpop.f32.mrf.mxu2  ;;  %v1599_v15 = vadd.f32 %v1570_v50, %v1565_v38  ;;  %v1550_v46 = vrot.slane %v1549_v0, 4  ;;  %v1454_v38 = vrot.slane %v1453_v29, 1  ;;  %v1503_v17 = vadd.f32 %v1502_v61, %v1501_v52 }
 0x1f6   : > { %v1002_v5 = vpop.f32.mrf.mxu3 }
 0x1f7   : > { %v1064_v11 = vpop.f32.mrf.mxu0  ;;  %v1003_v48 = vadd.f32 %v1002_v5, %v943_v32  ;;  %v1600_v47 = vrot.slane %v1599_v15, 4  ;;  %v1564_v32 = vmul.f32 %v8985_v58, %v8985_v58  ;;  %v1551_v5 = vadd.f32 %v1550_v46, %v1549_v0 }
 0x1f8   : > { %v1123_v56 = vpop.f32.mrf.mxu1  ;;  %v1504_v61 = vrot.slane %v1503_v17, 1 }
 0x1f9   : > { %v1542_v14 = vadd.f32 %v1003_v48, %v8985_v58  ;;  %v1569_v7 = vmul.f32 %v1003_v48, %v1003_v48  ;;  %v8990_v6 = vadd.f32 %v1123_v56, %v1064_v11  ;;  %v1601_v4 = vadd.f32 %v1600_v47, %v1599_v15 }
 0x1fa   : > { %v1495_v48 = vrot.slane %v1494_v26, 2  ;;  %v1552_v49 = vrot.slane %v1551_v5, 2 }
 0x1fb   : > { %v1543_v50 = vrot.slane %v1542_v14, 4  ;;  %v1592_v30 = vadd.f32 %v1569_v7, %v1564_v32  ;;  %11673 = vst [vmem:[#allocation35_spill] sm:$0xff] %v8990_v6  ;;  %v1665_v46 = vmul.f32 %v8990_v6, %v8990_v6  ;;  %v1446_v7 = vadd.f32 %v1445_v16, %v1444_v42 }
 0x1fc   : > { %v1602_v47 = vrot.slane %v1601_v4, 2  ;;  %v1496_v58 = vadd.f32 %v1495_v48, %v1494_v26 }
 0x1fd   : > { %v946_v35 = vpop.f32.mrf.mxu2  ;;  %v1544_v23 = vadd.f32 %v1543_v50, %v1542_v14  ;;  %v1447_v50 = vrot.slane %v1446_v7, 1 }
 0x1fe   : > { %v1005_v13 = vpop.f32.mrf.mxu3  ;;  %v1603_v26 = vadd.f32 %v1602_v47, %v1601_v4 }
 0x1ff   : > { %v1067_v27 = vpop.f32.mrf.mxu0  ;;  %v8996_v11 = vadd.f32 %v1005_v13, %v946_v35 }
 0x200   : > { %v1126_v20 = vpop.f32.mrf.mxu1 }
 0x201   : > { %v1127_v24 = vadd.f32 %v1126_v20, %v1067_v27  ;;  %v1455_v27 = vadd.f32 %v1454_v38, %v1453_v29  ;;  %v1593_v20 = vrot.slane %v1592_v30, 4  ;;  %11675 = vst [vmem:[#allocation37_spill] sm:$0xff] %v8996_v11  ;;  %v1664_v42 = vmul.f32 %v8996_v11, %v8996_v11 }
 0x203   : > { %v1670_v62 = vmul.f32 %v1127_v24, %v1127_v24  ;;  %v1649_v15 = vadd.f32 %v1127_v24, %v8990_v6  ;;  %v1594_v35 = vadd.f32 %v1593_v20, %v1592_v30 }
 0x205   : > { %v949_v3 = vpop.f32.mrf.mxu2  ;;  %v1699_v52 = vadd.f32 %v1670_v62, %v1665_v46  ;;  %v1497_v46 = vrot.slane %v1496_v58, 1 }
 0x206   : > { %v1008_v12 = vpop.f32.mrf.mxu3 }
 0x207   : > { %v1070_v37 = vpop.f32.mrf.mxu0  ;;  %v1009_v21 = vadd.f32 %v1008_v12, %v949_v3  ;;  %v1553_v12 = vadd.f32 %v1552_v49, %v1551_v5  ;;  %v1650_v5 = vrot.slane %v1649_v15, 4  ;;  %v1700_v48 = vrot.slane %v1699_v52, 4 }
 0x208   : > { %v1129_v34 = vpop.f32.mrf.mxu1 }
 0x209   : > { %v8992_v41 = vadd.f32 %v1129_v34, %v1070_v37  ;;  %v1669_v3 = vmul.f32 %v1009_v21, %v1009_v21  ;;  %v1545_v34 = vrot.slane %v1544_v23, 2  ;;  %v1642_v49 = vadd.f32 %v1009_v21, %v8996_v11 }
 0x20a   : > { %v1651_v6 = vadd.f32 %v1650_v5, %v1649_v15  ;;  %v1701_v21 = vadd.f32 %v1700_v48, %v1699_v52 }
 0x20b   : > { %11674 = vst [vmem:[#allocation36_spill] sm:$0xff] %v8992_v41  ;;  %v1765_v14 = vmul.f32 %v8992_v41, %v8992_v41  ;;  %v1692_v62 = vadd.f32 %v1669_v3, %v1664_v42  ;;  %v1643_v3 = vrot.slane %v1642_v49, 4 }
 0x20c   : > { %v1702_v52 = vrot.slane %v1701_v21, 2 }
 0x20d   : > { %v952_v28 = vpop.f32.mrf.mxu2  ;;  %v1693_v42 = vrot.slane %v1692_v62, 4  ;;  %v1644_v48 = vadd.f32 %v1643_v3, %v1642_v49 }
 0x20e   : > { %v1011_v8 = vpop.f32.mrf.mxu3 }
 0x20f   : > { %v1073_v0 = vpop.f32.mrf.mxu0  ;;  %v9004_v13 = vadd.f32 %v1011_v8, %v952_v28  ;;  %v1694_v36 = vadd.f32 %v1693_v42, %v1692_v62  ;;  %v1703_v62 = vadd.f32 %v1702_v52, %v1701_v21 }
 0x210   : > { %v1132_v56 = vpop.f32.mrf.mxu1 }
 0x211   : > { %v1133_v32 = vadd.f32 %v1132_v56, %v1073_v0  ;;  %11676 = vst [vmem:[#allocation38_spill] sm:$0xff] %v9004_v13  ;;  %v1554_v56 = vrot.slane %v1553_v12, 1  ;;  %v1764_v28 = vmul.f32 %v9004_v13, %v9004_v13  ;;  %v1704_v3 = vrot.slane %v1703_v62, 1 }
 0x213   : > { %v1749_v37 = vadd.f32 %v1133_v32, %v8992_v41  ;;  %v1770_v29 = vmul.f32 %v1133_v32, %v1133_v32  ;;  %v1546_v32 = vadd.f32 %v1545_v34, %v1544_v23  ;;  %v1595_v41 = vrot.slane %v1594_v35, 2 }
 0x214   : > { %v1460_v23 = vadd.f32 %v1455_v27, %v8946_v22  ;;  %v1448_v34 = vadd.f32 %v1447_v50, %v1446_v7  ;;  %v1555_v33 = vadd.f32 %v1554_v56, %v1553_v12  ;;  %v1695_v56 = vrot.slane %v1694_v36, 2 }
 0x215   : > { %v955_v24 = vpop.f32.mrf.mxu2  ;;  %v1799_v38 = vadd.f32 %v1770_v29, %v1765_v14  ;;  %v1750_v30 = vrot.slane %v1749_v37, 4  ;;  %v1505_v14 = vadd.f32 %v1504_v61, %v1503_v17  ;;  %v1604_v29 = vrot.slane %v1603_v26, 1 }
 0x216   : > { %v1014_v16 = vpop.f32.mrf.mxu3  ;;  %v1547_v63 = vrot.slane %v1546_v32, 1  ;;  %v1596_v53 = vadd.f32 %v1595_v41, %v1594_v35  ;;  %v1652_v61 = vrot.slane %v1651_v6, 2  ;;  %v1459_v22 = vadd.f32 %v1448_v34, %v8960_v18 }
 0x217   : > { %v1015_v0 = vadd.f32 %v1014_v16, %v955_v24  ;;  %v1076_v20 = vpop.f32.mrf.mxu0  ;;  %v1800_v45 = vrot.slane %v1799_v38, 4  ;;  %v1498_v16 = vadd.f32 %v1497_v46, %v1496_v58  ;;  %v1751_v11 = vadd.f32 %v1750_v30, %v1749_v37 }
 0x218   : > { %v1135_v47 = vpop.f32.mrf.mxu1  ;;  %v1605_v17 = vadd.f32 %v1604_v29, %v1603_v26  ;;  %v1560_v12 = vadd.f32 %v1555_v33, %v1460_v23  ;;  %v1548_v37 = vadd.f32 %v1547_v63, %v1546_v32  ;;  %v1653_v26 = vadd.f32 %v1652_v61, %v1651_v6 }
 0x219   : > { %v1742_v8 = vadd.f32 %v1015_v0, %v9004_v13  ;;  %v1769_v4 = vmul.f32 %v1015_v0, %v1015_v0  ;;  %v1510_v0 = vadd.f32 %v1505_v14, %v8958_v60  ;;  %v1801_v15 = vadd.f32 %v1800_v45, %v1799_v38 }
 0x21a   : > { %v9014_v58 = vadd.f32 %v1498_v16, %v8970_v31  ;;  %v1752_v27 = vrot.slane %v1751_v11, 2  ;;  %v9016_v7 = vadd.f32 %v1135_v47, %v1076_v20  ;;  %v1597_v60 = vrot.slane %v1596_v53, 1 }
 0x21b   : > { %v1792_v24 = vadd.f32 %v1769_v4, %v1764_v28  ;;  %v1743_v59 = vrot.slane %v1742_v8, 4  ;;  %v1610_v45 = vadd.f32 %v1605_v17, %v1510_v0  ;;  %v1802_v38 = vrot.slane %v1801_v15, 2 }
 0x21c   : > { %v1645_v46 = vrot.slane %v1644_v48, 2  ;;  %v1753_v30 = vadd.f32 %v1752_v27, %v1751_v11  ;;  %v1865_v31 = vmul.f32 %v9016_v7, %v9016_v7  ;;  %v1559_v33 = vadd.f32 %v1548_v37, %v1459_v22 }
 0x21d   : > { %v958_v13 = vpop.f32.mrf.mxu2  ;;  %v1793_v28 = vrot.slane %v1792_v24, 4  ;;  %v1744_v35 = vadd.f32 %v1743_v59, %v1742_v8  ;;  %v1598_v63 = vadd.f32 %v1597_v60, %v1596_v53  ;;  %v1654_v6 = vrot.slane %v1653_v26, 1 }
 0x21e   : > { %v1017_v5 = vpop.f32.mrf.mxu3  ;;  %v1803_v47 = vadd.f32 %v1802_v38, %v1801_v15  ;;  %v1646_v42 = vadd.f32 %v1645_v46, %v1644_v48  ;;  %v1696_v23 = vadd.f32 %v1695_v56, %v1694_v36  ;;  %v1754_v34 = vrot.slane %v1753_v30, 1 }
 0x21f   : > { %v1079_v41 = vpop.f32.mrf.mxu0  ;;  %v1794_v18 = vadd.f32 %v1793_v28, %v1792_v24  ;;  %v1745_v32 = vrot.slane %v1744_v35, 2  ;;  %v9021_v59 = vadd.f32 %v1017_v5, %v958_v13  ;;  %v1655_v5 = vadd.f32 %v1654_v6, %v1653_v26 }
 0x220   : > { %v1138_v50 = vpop.f32.mrf.mxu1  ;;  %v1804_v15 = vrot.slane %v1803_v47, 1  ;;  %v1647_v22 = vrot.slane %v1646_v42, 1  ;;  %v1705_v37 = vadd.f32 %v1704_v3, %v1703_v62  ;;  %v1755_v36 = vadd.f32 %v1754_v34, %v1753_v30 }
 0x221   : > { %v1139_v49 = vadd.f32 %v1138_v50, %v1079_v41  ;;  %v1795_v11 = vrot.slane %v1794_v18, 2  ;;  %v1746_v17 = vadd.f32 %v1745_v32, %v1744_v35  ;;  %v1864_v53 = vmul.f32 %v9021_v59, %v9021_v59 }
 0x222   : > { %v1697_v38 = vrot.slane %v1696_v23, 1  ;;  %v1660_v56 = vadd.f32 %v1655_v5, %v1560_v12  ;;  %v1648_v26 = vadd.f32 %v1647_v22, %v1646_v42 }
 0x223   : > { %v1849_v20 = vadd.f32 %v1139_v49, %v9016_v7  ;;  %v1870_v4 = vmul.f32 %v1139_v49, %v1139_v49  ;;  %v1796_v27 = vadd.f32 %v1795_v11, %v1794_v18  ;;  %v1747_v35 = vrot.slane %v1746_v17, 1 }
 0x224   : > { %v1760_v18 = vadd.f32 %v1755_v36, %v1660_v56  ;;  %v1698_v62 = vadd.f32 %v1697_v38, %v1696_v23 }
 0x225   : > { %v961_v8 = vpop.f32.mrf.mxu2  ;;  %v1850_v14 = vrot.slane %v1849_v20, 4  ;;  %v1899_v29 = vadd.f32 %v1870_v4, %v1865_v31  ;;  %v1805_v31 = vadd.f32 %v1804_v15, %v1803_v47  ;;  %v1797_v32 = vrot.slane %v1796_v27, 1 }
 0x226   : > { %v1020_v21 = vpop.f32.mrf.mxu3  ;;  %v1748_v30 = vadd.f32 %v1747_v35, %v1746_v17  ;;  %v1659_v47 = vadd.f32 %v1648_v26, %v1559_v33  ;;  %v7893_v26 = vld [vmem:[%s8257_s18] sm:$0x1f]  ;;  %s7810_s18 = smul.u32 280, %s8245_s29 }
 0x227   : > { %v1021_v24 = vadd.f32 %v1020_v21, %v961_v8  ;;  %v1851_v16 = vadd.f32 %v1850_v14, %v1849_v20  ;;  %v1900_v0 = vrot.slane %v1899_v29, 4  ;;  %v1710_v14 = vadd.f32 %v1705_v37, %v1610_v45  ;;  %s7770_s29 = smul.u32 (%p8133_p9), 40, %s8111_s22 }
 0x228   : > { %v1759_v45 = vadd.f32 %v1748_v30, %v1659_v47  ;;  %v9035_v47 = vmul.f32 %v8792_v10, %v8676_v44  ;;  %v9059_v44 = vmul.f32 %v8949_v1, %v8839_v2 }
 0x229   : > { %v1842_v13 = vadd.f32 %v1021_v24, %v9021_v59  ;;  %v1869_v61 = vmul.f32 %v1021_v24, %v1021_v24  ;;  %v1852_v52 = vrot.slane %v1851_v16, 2  ;;  %v1901_v28 = vadd.f32 %v1900_v0, %v1899_v29  ;;  %s11284_s24 = scalar_lea.vmem (%p8133_p9), %s11372_s5, %s7770_s29 }
 0x22a   : > { %v1609_v24 = vadd.f32 %v1598_v63, %v9014_v58  ;;  %v1810_v34 = vadd.f32 %v1805_v31, %v1710_v14  ;;  %v1798_v0 = vadd.f32 %v1797_v32, %v1796_v27  ;;  %v1997_v32 = vperm.slane %v7893_v26, 4 }
 0x22b   : > { %v1843_v48 = vrot.slane %v1842_v13, 4  ;;  %v1892_v41 = vadd.f32 %v1869_v61, %v1864_v53  ;;  %v1853_v60 = vadd.f32 %v1852_v52, %v1851_v16  ;;  %v1902_v50 = vrot.slane %v1901_v28, 2 }
 0x22c   : > { %v1709_v5 = vadd.f32 %v1698_v62, %v1609_v24 }
 0x22d   : > { %v1844_v49 = vadd.f32 %v1843_v48, %v1842_v13  ;;  %v1893_v46 = vrot.slane %v1892_v41, 4  ;;  %v1854_v20 = vrot.slane %v1853_v60, 1  ;;  %v1903_v4 = vadd.f32 %v1902_v50, %v1901_v28 }
 0x22e   : > { %v1809_v17 = vadd.f32 %v1798_v0, %v1709_v5  ;;  %v9039_v0 = vmul.f32 %v8792_v10, %v8647_v55  ;;  %v9055_v55 = vmul.f32 %v8949_v1, %v8820_v51 }
 0x22f   : > { %v1845_v8 = vrot.slane %v1844_v49, 2  ;;  %v1894_v6 = vadd.f32 %v1893_v46, %v1892_v41  ;;  %v1855_v29 = vadd.f32 %v1854_v20, %v1853_v60  ;;  %v1904_v21 = vrot.slane %v1903_v4, 1 }
 0x231   : > { %v1846_v3 = vadd.f32 %v1845_v8, %v1844_v49  ;;  %v1895_v11 = vrot.slane %v1894_v6, 2  ;;  %v1860_v16 = vadd.f32 %v1855_v29, %v1760_v18  ;;  %v1905_v12 = vadd.f32 %v1904_v21, %v1903_v4 }
 0x233   : > { %v1847_v53 = vrot.slane %v1846_v3, 1  ;;  %v1896_v42 = vadd.f32 %v1895_v11, %v1894_v6  ;;  %v1910_v13 = vadd.f32 %v1905_v12, %v1810_v34  ;;  %v1915_v61 = vmul.f32 0.020408163, %v1860_v16 }
 0x234   : > { %v1996_v11 = vperm.slane %v7893_v26, 3  ;;  %v2033_v34 = vlaneseq  ;;  %v2192_v12 = vmul.f32 %v8792_v10, %v8660_v39  ;;  %v9051_v39 = vmul.f32 %v8949_v1, %v8748_v54  ;;  %v11677_v54 = vld [vmem:[#allocation16_spill] sm:$0xff] }
 0x235   : > { %v1848_v15 = vadd.f32 %v1847_v53, %v1846_v3  ;;  %v1897_v52 = vrot.slane %v1896_v42, 1  ;;  %v1920_v28 = vmul.f32 0.020408163, %v1910_v13  ;;  %v1925_v23 = vmul.f32 %v1915_v61, %v1915_v61 }
 0x236   : > { %v2194_v13 = vmul.f32 %v8949_v1, %v8760_v9  ;;  %v2044_v9 = vmul.f32 %v8963_v57, %v8713_v43  ;;  %v2008_v43 = vld [vmem:[%s8264_s25] sm:$0x1f]  ;;  %s10314_s25 = scalar_lea.vmem [#allocation11], %s7810_s18 }
 0x237   : > { %v1859_v22 = vadd.f32 %v1848_v15, %v1759_v45  ;;  %v1898_v48 = vadd.f32 %v1897_v52, %v1896_v42  ;;  %v1930_v41 = vsub.f32 %v1920_v28, %v1925_v23  ;;  %v9043_v42 = vmul.f32 %v8792_v10, %v8667_v25  ;;  %v11678_v45 = vld [vmem:[#allocation17_spill] sm:$0xff]  ;;  %v11681_v23 = vld [vmem:[#allocation23_spill] sm:$0xff] }
 0x238   : > { %v9061_v10 = vshrl.u32 %v2033_v34, 7  ;;  %v9073_v2 = vmul.f32 %v8963_v57, %v11678_v45  ;;  %v11679_v15 = vld [vmem:[#allocation21_spill] sm:$0xff]  ;;  %v11692_v34 = vld [vmem:[#allocation34_spill] sm:$0xff] }
 0x239   : > { %v1909_v58 = vadd.f32 %v1898_v48, %v1809_v17  ;;  %v1914_v63 = vmul.f32 0.020408163, %v1859_v22  ;;  %v1935_v37 = vmax.f32 %v1930_v41, 0.0  ;;  %v9077_v52 = vmul.f32 %v8963_v57, %v11679_v15 }
 0x23a   : > { %v9088_v17 = vmul.f32 %v8963_v57, %v11681_v23  ;;  %vm2036_vm3 = vcmp.lt.s32.totalorder %v9061_v10, 7  ;;  %v8061_v48 = vmov 0.0   ;;  %vm2104_vm4 = vcmp.lt.s32.totalorder %v9061_v10, 2 }
 0x23b   : > { %v1919_v36 = vmul.f32 0.020408163, %v1909_v58  ;;  %v1924_v33 = vmul.f32 %v1914_v63, %v1914_v63  ;;  %v1940_v27 = vadd.f32 0.001, %v1935_v37  ;;  %v9091_v41 = vrot.slane %v8061_v48, 6  ;;  %v11682_v58 = vld [vmem:[#allocation32_spill] sm:$0xff] }
 0x23c   : > { %v9094_v37 = vrot.slane %v8061_v48, 7  ;;  %vm2125_vm5 = vcmp.lt.s32.totalorder %v9061_v10, 1  ;;  %vm2171_vm6 = vcmp.lt.s32.totalorder %v9061_v10, 6 }
 0x23d   : > { %v1929_v60 = vsub.f32 %v1919_v36, %v1924_v33  ;;  %7875 = vrsqrt.f32 %v1940_v27  ;;  %vm1987_vm12 = vweird.f32 %v1940_v27  ;;  %v9096_v36 = vrot.slane %v8061_v48, 1 }
 0x23e   : > { %v9098_v33 = vrot.slane %v8061_v48, 2 }
 0x23f   : > { %v1934_v50 = vmax.f32 %v1929_v60, 0.0 }
 0x241   : > { %v1939_v38 = vadd.f32 0.001, %v1934_v50  ;;  %v11684_v50 = vld [vmem:[#allocation26_spill] sm:$0xff] }
 0x243   : > { %7877 = vrsqrt.f32 %v1939_v38  ;;  %v7876_v35 = vpop.eup %7875  ;;  %vm1977_vm15 = vweird.f32 %v1939_v38 }
 0x244   : > { %v1982_v49 = vmul.f32 %v7876_v35, %v1940_v27  ;;  %vm1988_vm11 = vweird.f32 %v7876_v35  ;;  %v11683_v27 = vld [vmem:[#allocation24_spill] sm:$0xff] }
 0x245   : > { %vm1989_vm13 = vmor %vm1987_vm12, %vm1988_vm11 }
 0x246   : > { %v1983_v46 = vmul.f32 %v7876_v35, %v1982_v49 }
 0x248   : > { %v1984_v31 = vmul.f32 0.5, %v1983_v46  ;;  %v11686_v46 = vld [vmem:[#allocation33_spill] sm:$0xff] }
 0x249   : > { %v7878_v56 = vpop.eup %7877 }
 0x24a   : > { %v1972_v20 = vmul.f32 %v7878_v56, %v1939_v38  ;;  %v1985_v4 = vsub.f32 1.5, %v1984_v31  ;;  %vm1978_vm14 = vweird.f32 %v7878_v56  ;;  %v11687_v31 = vld [vmem:[#allocation35_spill] sm:$0xff] }
 0x24b   : > { %vm1979_vm0 = vmor %vm1977_vm15, %vm1978_vm14 }
 0x24c   : > { %v1973_v8 = vmul.f32 %v7878_v56, %v1972_v20  ;;  %v1986_v6 = vmul.f32 %v7876_v35, %v1985_v4  ;;  %v11688_v4 = vld [vmem:[#allocation36_spill] sm:$0xff] }
 0x24e   : > { %v1974_v14 = vmul.f32 0.5, %v1973_v8  ;;  %v1990_v18 = vsel %vm1989_vm13, %v7876_v35, %v1986_v6 }
 0x24f   : > { %v2007_v29 = vmul.f32 %v1997_v32, %v1990_v18  ;;  %v11689_v32 = vld [vmem:[#allocation25_spill] sm:$0xff] }
 0x250   : > { %v1975_v21 = vsub.f32 1.5, %v1974_v14 }
 0x251   : > { %v2013_v62 = vmul.f32 %v2007_v29, %v1915_v61  ;;  %v2042_v30 = vperm.slane %v2007_v29, 0  ;;  %v2193_v61 = vmul.f32 %v8963_v57, %v11677_v54 }
 0x252   : > { %v1976_v3 = vmul.f32 %v7878_v56, %v1975_v21 }
 0x253   : > { %v9029_v24 = vmul.f32 %v2042_v30, %v9016_v7  ;;  %v2045_v7 = vmul.f32 %v8949_v1, %v8741_v40  ;;  %v9065_v40 = vmul.f32 %v8949_v1, %v8864_v19  ;;  %v2022_v51 = vrot.slane %v2013_v62, 4  ;;  %v11680_v19 = vld [vmem:[#allocation22_spill] sm:$0xff]  ;;  %v11690_v62 = vld [vmem:[#allocation27_spill] sm:$0xff] }
 0x254   : > { %v1980_v16 = vsel %vm1979_vm0, %v7878_v56, %v1976_v3  ;;  %v9081_v1 = vmul.f32 %v8963_v57, %v11680_v19  ;;  %v2047_v60 = vmul.f32 %v2042_v30, %v11683_v27  ;;  %v2196_v38 = vmul.f32 %v2042_v30, %v11684_v50  ;;  %v11685_v57 = vld [vmem:[#allocation28_spill] sm:$0xff] }
 0x255   : > { %v2006_v53 = vmul.f32 %v1996_v11, %v1980_v16  ;;  %v9103_v35 = vmul.f32 %v2042_v30, %v11685_v57  ;;  %v9107_v56 = vmul.f32 %v2042_v30, %v11686_v46  ;;  %v9110_v20 = vmul.f32 %v2042_v30, %v11687_v31 }
 0x256   : > { %v9113_v26 = vmul.f32 %v2042_v30, %v11688_v4  ;;  %v11691_v30 = vld [vmem:[#allocation29_spill] sm:$0xff] }
 0x257   : > { %v2012_v25 = vmul.f32 %v2006_v53, %v1914_v63  ;;  %v9084_v28 = vperm.slane %v2006_v53, 0  ;;  %v11693_v53 = vld [vmem:[#allocation18_spill] sm:$0xff] }
 0x259   : > { %v2021_v5 = vrot.slane %v2012_v25, 5  ;;  %v2046_v8 = vmul.f32 %v9084_v28, %v11689_v32  ;;  %v2195_v3 = vmul.f32 %v9084_v28, %v11690_v62  ;;  %v9132_v11 = vmul.f32 %v9084_v28, %v11691_v30 }
 0x25a   : > { %v9136_v16 = vmul.f32 %v9084_v28, %v11692_v34 }
 0x25b   : > { %v2028_v22 = vsel %vm2027_vm1, %v2021_v5, %v2022_v51 }
 0x25c   : > { %v2030_v63 = vsel %vm2029_vm2, %v11682_v58, %v2028_v22 }
 0x25d   : > { %v2032_v49 = vsub.f32 %v2008_v43, %v2030_v63 }
 0x25f   : > { %v9117_v6 = vperm.slane %v2032_v49, 0  ;;  %v9119_v14 = vperm.slane %v2032_v49, 1  ;;  %v9121_v18 = vperm.slane %v2032_v49, 2  ;;  %v9123_v29 = vperm.slane %v2032_v49, 3 }
 0x260   : > { %v9126_v21 = vperm.slane %v2032_v49, 4 }
 0x261   : > { %v2064_v25 = vadd.f32 %v9117_v6, %v11693_v53  ;;  %v2065_v54 = vadd.f32 %v9119_v14, %v2044_v9  ;;  %v2066_v51 = vadd.f32 %v9121_v18, %v2045_v7  ;;  %v2067_v5 = vadd.f32 %v9123_v29, %v2046_v8 }
 0x262   : > { %v2068_v45 = vadd.f32 %v9126_v21, %v2047_v60  ;;  %v2202_v15 = vadd.f32 %v2192_v12, %v9117_v6  ;;  %v2203_v19 = vadd.f32 %v2193_v61, %v9119_v14  ;;  %v9147_v43 = vadd.f32 %v2194_v13, %v9121_v18 }
 0x263   : > { %v2074_v23 = vmax.f32 %v2064_v25, 0.0  ;;  %v2075_v22 = vmax.f32 %v2065_v54, 0.0  ;;  %v2076_v48 = vmax.f32 %v2066_v51, 0.0  ;;  %v2077_v58 = vmax.f32 %v2067_v5, 0.0 }
 0x264   : > { %v2078_v63 = vmax.f32 %v2068_v45, 0.0  ;;  %v2205_v7 = vadd.f32 %v2195_v3, %v9123_v29  ;;  %v2206_v9 = vadd.f32 %v2196_v38, %v9126_v21  ;;  %v2212_v27 = vmax.f32 %v2202_v15, 0.0 }
 0x265   : > { %v9154_v12 = vsel %vm2036_vm3, %v2074_v23, 0.0  ;;  %v9158_v13 = vsel %vm2036_vm3, %v2075_v22, 0.0  ;;  %v9162_v61 = vsel %vm2036_vm3, %v2076_v48, 0.0  ;;  %v9166_v60 = vsel %vm2036_vm3, %v2077_v58, 0.0 }
 0x266   : > { %v9170_v50 = vsel %vm2036_vm3, %v2078_v63, 0.0  ;;  %v2094_v38 = vrot.slane %v9154_v12, 6  ;;  %v2095_v57 = vrot.slane %v9158_v13, 6  ;;  %v2096_v49 = vrot.slane %v9162_v61, 6 }
 0x267   : > { %v2097_v46 = vrot.slane %v9166_v60, 6  ;;  %v2098_v31 = vrot.slane %v9170_v50, 6  ;;  %v2115_v4 = vrot.slane %v9154_v12, 7  ;;  %v2116_v32 = vrot.slane %v9158_v13, 7 }
 0x268   : > { %v9182_v8 = vsel %vm2104_vm4, %v9091_v41, %v2094_v38  ;;  %v9187_v62 = vsel %vm2104_vm4, %v9091_v41, %v2095_v57  ;;  %v9192_v3 = vsel %vm2104_vm4, %v9091_v41, %v2096_v49  ;;  %v2117_v30 = vrot.slane %v9162_v61, 7 }
 0x269   : > { %v9198_v34 = vsel %vm2104_vm4, %v9091_v41, %v2097_v46  ;;  %v9203_v53 = vsel %vm2104_vm4, %v9091_v41, %v2098_v31  ;;  %v2118_v25 = vrot.slane %v9166_v60, 7  ;;  %v2119_v54 = vrot.slane %v9170_v50, 7 }
 0x26a   : > { %v9210_v51 = vsel %vm2125_vm5, %v9094_v37, %v2115_v4  ;;  %v9215_v5 = vsel %vm2125_vm5, %v9094_v37, %v2116_v32  ;;  %v9220_v45 = vsel %vm2125_vm5, %v9094_v37, %v2117_v30  ;;  %v2141_v15 = vrot.slane %v9154_v12, 1 }
 0x26b   : > { %v9226_v23 = vsel %vm2125_vm5, %v9094_v37, %v2118_v25  ;;  %v9231_v22 = vsel %vm2125_vm5, %v9094_v37, %v2119_v54  ;;  %v2142_v48 = vrot.slane %v9158_v13, 1  ;;  %v2143_v58 = vrot.slane %v9162_v61, 1 }
 0x26c   : > { %11694 = vst [vmem:[#allocation16_spill] sm:$0xff] %v9226_v23  ;;  %v2144_v63 = vrot.slane %v9166_v60, 1  ;;  %v2145_v38 = vrot.slane %v9170_v50, 1  ;;  %v9240_v57 = vsel %vm2036_vm3, %v2141_v15, %v9096_v36  ;;  %v2161_v49 = vrot.slane %v9154_v12, 2 }
 0x26d   : > { %v9246_v46 = vsel %vm2036_vm3, %v2142_v48, %v9096_v36  ;;  %v9251_v31 = vsel %vm2036_vm3, %v2143_v58, %v9096_v36  ;;  %v2162_v4 = vrot.slane %v9158_v13, 2  ;;  %v2163_v32 = vrot.slane %v9162_v61, 2 }
 0x26e   : > { %11695 = vst [vmem:[#allocation17_spill] sm:$0xff] %v9251_v31  ;;  %v9258_v30 = vsel %vm2036_vm3, %v2144_v63, %v9096_v36  ;;  %v9263_v25 = vsel %vm2036_vm3, %v2145_v38, %v9096_v36  ;;  %v2164_v54 = vrot.slane %v9166_v60, 2  ;;  %v2165_v15 = vrot.slane %v9170_v50, 2 }
 0x26f   : > { %11696 = vst [vmem:[#allocation21_spill] sm:$0xff] %v9258_v30  ;;  %v9270_v48 = vsel %vm2171_vm6, %v2161_v49, %v9098_v33  ;;  %v9275_v58 = vsel %vm2171_vm6, %v2162_v4, %v9098_v33  ;;  %v9280_v63 = vsel %vm2171_vm6, %v2163_v32, %v9098_v33  ;;  %v2213_v38 = vmax.f32 %v2203_v19, 0.0 }
 0x270   : > { %11697 = vst [vmem:[#allocation22_spill] sm:$0xff] %v9263_v25  ;;  %v9285_v25 = vsel %vm2171_vm6, %v2164_v54, %v9098_v33  ;;  %v9290_v49 = vsel %vm2171_vm6, %v2165_v15, %v9098_v33  ;;  %v2215_v4 = vmax.f32 %v2205_v7, 0.0  ;;  %v9295_v30 = vsel %vm2036_vm3, %v2212_v27, 0.0 }
 0x271   : > { %11698 = vst [vmem:[#allocation23_spill] sm:$0xff] %v9270_v48  ;;  %v2214_v48 = vmax.f32 %v9147_v43, 0.0  ;;  %v9299_v19 = vsel %vm2036_vm3, %v2213_v38, 0.0  ;;  %v2337_v32 = vadd.f32 %v9035_v47, %v9117_v6  ;;  %v2232_v7 = vrot.slane %v9295_v30, 6 }
 0x272   : > { %11699 = vst [vmem:[#allocation32_spill] sm:$0xff] %v9275_v58  ;;  %v2216_v58 = vmax.f32 %v2206_v9, 0.0  ;;  %v9309_v43 = vsel %vm2036_vm3, %v2215_v4, 0.0  ;;  %v2233_v9 = vrot.slane %v9299_v19, 6  ;;  %v2252_v38 = vrot.slane %v9295_v30, 7 }
 0x273   : > { %11700 = vst [vmem:[#allocation24_spill] sm:$0xff] %v9280_v63  ;;  %v9305_v54 = vsel %vm2036_vm3, %v2214_v48, 0.0  ;;  %v2235_v47 = vrot.slane %v9309_v43, 6  ;;  %v9324_v4 = vsel %vm2104_vm4, %v9091_v41, %v2232_v7 }
 0x274   : > { %11701 = vst [vmem:[#allocation26_spill] sm:$0xff] %v9285_v25  ;;  %v9315_v27 = vsel %vm2036_vm3, %v2216_v58, 0.0  ;;  %v2234_v15 = vrot.slane %v9305_v54, 6  ;;  %v2253_v58 = vrot.slane %v9299_v19, 7  ;;  %v2254_v7 = vrot.slane %v9305_v54, 7 }
 0x275   : > { %11702 = vst [vmem:[#allocation28_spill] sm:$0xff] %v9290_v49  ;;  %v2236_v48 = vrot.slane %v9315_v27, 6  ;;  %v9329_v49 = vsel %vm2104_vm4, %v9091_v41, %v2233_v9  ;;  %v9340_v63 = vsel %vm2104_vm4, %v9091_v41, %v2235_v47 }
 0x276   : > { %11703 = vst [vmem:[#allocation33_spill] sm:$0xff] %v9295_v30  ;;  %v9335_v25 = vsel %vm2104_vm4, %v9091_v41, %v2234_v15  ;;  %v9353_v15 = vsel %vm2125_vm5, %v9094_v37, %v2252_v38  ;;  %v9358_v47 = vsel %vm2125_vm5, %v9094_v37, %v2253_v58  ;;  %v2278_v38 = vrot.slane %v9299_v19, 1 }
 0x277   : > { %11704 = vst [vmem:[#allocation35_spill] sm:$0xff] %v9299_v19  ;;  %v9347_v9 = vsel %vm2104_vm4, %v9091_v41, %v2236_v48  ;;  %v2279_v58 = vrot.slane %v9305_v54, 1 }
 0x278   : > { %11705 = vst [vmem:[#allocation36_spill] sm:$0xff] %v9305_v54 }
 0x279   : > { %11706 = vst [vmem:[#allocation25_spill] sm:$0xff] %v9309_v43 }
 0x27a   : > { %11707 = vst [vmem:[#allocation27_spill] sm:$0xff] %v9315_v27 }
 0x27b   : > { %11708 = vst [vmem:[#allocation29_spill] sm:$0xff] %v9324_v4  ;;  %v2255_v4 = vrot.slane %v9309_v43, 7 }
 0x27c   : > { %11709 = vst [vmem:[#allocation34_spill] sm:$0xff] %v9329_v49  ;;  %v2256_v49 = vrot.slane %v9315_v27, 7 }
 0x27d   : > { %11710 = vst [vmem:[#allocation18_spill] sm:$0xff] %v9335_v25  ;;  %v9368_v48 = vsel %vm2125_vm5, %v9094_v37, %v2255_v4 }
 0x27e   : > { %11711 = vst [vmem:[#allocation39_spill] sm:$0xff] %v9340_v63  ;;  %v9363_v63 = vsel %vm2125_vm5, %v9094_v37, %v2254_v7  ;;  %v2281_v7 = vrot.slane %v9315_v27, 1 }
 0x27f   : > { %11712 = vst [vmem:[#allocation40_spill] sm:$0xff] %v9347_v9  ;;  %v2277_v9 = vrot.slane %v9295_v30, 1 }
 0x280   : > { %11713 = vst [vmem:[#allocation41_spill] sm:$0xff] %v9353_v15  ;;  %v9375_v15 = vsel %vm2125_vm5, %v9094_v37, %v2256_v49  ;;  %v2298_v49 = vrot.slane %v9299_v19, 2 }
 0x281   : > { %11714 = vst [vmem:[#allocation42_spill] sm:$0xff] %v9358_v47  ;;  %v2280_v47 = vrot.slane %v9309_v43, 1  ;;  %v9383_v4 = vsel %vm2036_vm3, %v2277_v9, %v9096_v36  ;;  %v9405_v9 = vsel %vm2036_vm3, %v2281_v7, %v9096_v36 }
 0x282   : > { %11715 = vst [vmem:[#allocation43_spill] sm:$0xff] %v9363_v63  ;;  %v2297_v63 = vrot.slane %v9295_v30, 2 }
 0x283   : > { %11716 = vst [vmem:[#allocation44_spill] sm:$0xff] %v9368_v48  ;;  %v9388_v48 = vsel %vm2036_vm3, %v2278_v38, %v9096_v36  ;;  %v9400_v25 = vsel %vm2036_vm3, %v2280_v47, %v9096_v36  ;;  %v2299_v38 = vrot.slane %v9305_v54, 2  ;;  %v9418_v47 = vsel %vm2171_vm6, %v2298_v49, %v9098_v33 }
 0x284   : > { %11717 = vst [vmem:[#allocation45_spill] sm:$0xff] %v9375_v15  ;;  %v9395_v15 = vsel %vm2036_vm3, %v2279_v58, %v9096_v36  ;;  %v9413_v58 = vsel %vm2171_vm6, %v2297_v63, %v9098_v33  ;;  %v2340_v63 = vadd.f32 %v9132_v11, %v9123_v29 }
 0x285   : > { %11718 = vst [vmem:[#allocation46_spill] sm:$0xff] %v9383_v4  ;;  %v2301_v4 = vrot.slane %v9315_v27, 2  ;;  %v9423_v7 = vsel %vm2171_vm6, %v2299_v38, %v9098_v33  ;;  %v2341_v38 = vadd.f32 %v9103_v35, %v9126_v21 }
 0x286   : > { %11719 = vst [vmem:[#allocation47_spill] sm:$0xff] %v9388_v48  ;;  %v2300_v48 = vrot.slane %v9309_v43, 2 }
 0x287   : > { %11720 = vst [vmem:[#allocation48_spill] sm:$0xff] %v9395_v15  ;;  %v9439_v49 = vsel %vm2171_vm6, %v2301_v4, %v9098_v33  ;;  %v11728_v15 = vld [vmem:[#allocation19_spill] sm:$0xff]  ;;  %v2351_v27 = vmax.f32 %v2341_v38, 0.0  ;;  %v2474_v4 = vadd.f32 %v9055_v55, %v9121_v18 }
 0x288   : > { %11721 = vst [vmem:[#allocation49_spill] sm:$0xff] %v9400_v25  ;;  %v2339_v25 = vadd.f32 %v9051_v39, %v9121_v18  ;;  %v2350_v39 = vmax.f32 %v2340_v63, 0.0  ;;  %v2472_v11 = vadd.f32 %v11728_v15, %v9117_v6 }
 0x289   : > { %11722 = vst [vmem:[#allocation50_spill] sm:$0xff] %v9405_v9  ;;  %v2338_v9 = vadd.f32 %v9073_v2, %v9119_v14  ;;  %v2347_v2 = vmax.f32 %v2337_v32, 0.0 }
 0x28a   : > { %11723 = vst [vmem:[#allocation51_spill] sm:$0xff] %v9413_v58  ;;  %v9434_v58 = vsel %vm2171_vm6, %v2300_v48, %v9098_v33  ;;  %v9463_v32 = vsel %vm2036_vm3, %v2350_v39, 0.0 }
 0x28b   : > { %11724 = vst [vmem:[#allocation52_spill] sm:$0xff] %v9418_v47  ;;  %v2349_v47 = vmax.f32 %v2339_v25, 0.0  ;;  %v9447_v48 = vsel %vm2036_vm3, %v2347_v2, 0.0 }
 0x28c   : > { %11725 = vst [vmem:[#allocation53_spill] sm:$0xff] %v9423_v7  ;;  %v2348_v7 = vmax.f32 %v2338_v9, 0.0  ;;  %v2367_v15 = vrot.slane %v9447_v48, 6  ;;  %v2387_v38 = vrot.slane %v9447_v48, 7 }
 0x28d   : > { %11726 = vst [vmem:[#allocation54_spill] sm:$0xff] %v9434_v58  ;;  %v2473_v58 = vadd.f32 %v9077_v52, %v9119_v14  ;;  %v9459_v25 = vsel %vm2036_vm3, %v2349_v47, 0.0  ;;  %v9468_v52 = vsel %vm2036_vm3, %v2351_v27, 0.0 }
 0x28e   : > { %11727 = vst [vmem:[#allocation55_spill] sm:$0xff] %v9439_v49  ;;  %v9455_v35 = vsel %vm2036_vm3, %v2348_v7, 0.0  ;;  %v2369_v9 = vrot.slane %v9459_v25, 6  ;;  %v2370_v7 = vrot.slane %v9463_v32, 6  ;;  %v2371_v63 = vrot.slane %v9468_v52, 6 }
 0x28f   : > { %11729 = vst [vmem:[#allocation19_spill] sm:$0xff] %v9447_v48  ;;  %v2368_v55 = vrot.slane %v9455_v35, 6  ;;  %v9477_v47 = vsel %vm2104_vm4, %v9091_v41, %v2367_v15  ;;  %v2388_v2 = vrot.slane %v9455_v35, 7  ;;  %v2389_v15 = vrot.slane %v9459_v25, 7 }
 0x290   : > { %11730 = vst [vmem:[#allocation56_spill] sm:$0xff] %v9455_v35  ;;  %v9489_v39 = vsel %vm2104_vm4, %v9091_v41, %v2369_v9  ;;  %v9494_v49 = vsel %vm2104_vm4, %v9091_v41, %v2370_v7  ;;  %v9507_v9 = vsel %vm2125_vm5, %v9094_v37, %v2387_v38 }
 0x291   : > { %11731 = vst [vmem:[#allocation57_spill] sm:$0xff] %v9459_v25  ;;  %v9484_v27 = vsel %vm2104_vm4, %v9091_v41, %v2368_v55  ;;  %v2390_v55 = vrot.slane %v9463_v32, 7  ;;  %v9512_v7 = vsel %vm2125_vm5, %v9094_v37, %v2388_v2  ;;  %v2414_v2 = vrot.slane %v9459_v25, 1 }
 0x292   : > { %11732 = vst [vmem:[#allocation58_spill] sm:$0xff] %v9463_v32 }
 0x293   : > { %11733 = vst [vmem:[#allocation59_spill] sm:$0xff] %v9468_v52 }
 0x294   : > { %11734 = vst [vmem:[#allocation60_spill] sm:$0xff] %v9477_v47  ;;  %v9500_v47 = vsel %vm2104_vm4, %v9091_v41, %v2371_v63  ;;  %v2412_v63 = vrot.slane %v9447_v48, 1 }
 0x295   : > { %11735 = vst [vmem:[#allocation61_spill] sm:$0xff] %v9484_v27  ;;  %v2391_v27 = vrot.slane %v9468_v52, 7 }
 0x296   : > { %11736 = vst [vmem:[#allocation62_spill] sm:$0xff] %v9489_v39  ;;  %v9524_v39 = vsel %vm2125_vm5, %v9094_v37, %v2390_v55 }
 0x297   : > { %11737 = vst [vmem:[#allocation63_spill] sm:$0xff] %v9494_v49  ;;  %v9517_v49 = vsel %vm2125_vm5, %v9094_v37, %v2389_v15  ;;  %v9529_v38 = vsel %vm2125_vm5, %v9094_v37, %v2391_v27  ;;  %v2416_v15 = vrot.slane %v9468_v52, 1  ;;  %v9548_v27 = vsel %vm2036_vm3, %v2414_v2, %v9096_v36 }
 0x298   : > { %11738 = vst [vmem:[#allocation64_spill] sm:$0xff] %v9500_v47  ;;  %v2413_v47 = vrot.slane %v9455_v35, 1 }
 0x299   : > { %11739 = vst [vmem:[#allocation65_spill] sm:$0xff] %v9507_v9 }
 0x29a   : > { %11740 = vst [vmem:[#allocation66_spill] sm:$0xff] %v9512_v7  ;;  %v2415_v7 = vrot.slane %v9463_v32, 1  ;;  %v9542_v55 = vsel %vm2036_vm3, %v2413_v47, %v9096_v36  ;;  %v9560_v47 = vsel %vm2036_vm3, %v2416_v15, %v9096_v36  ;;  %v2475_v15 = vadd.f32 %v9136_v16, %v9123_v29 }
 0x29b   : > { %11741 = vst [vmem:[#allocation67_spill] sm:$0xff] %v9517_v49  ;;  %v9537_v49 = vsel %vm2036_vm3, %v2412_v63, %v9096_v36  ;;  %v2433_v63 = vrot.slane %v9455_v35, 2 }
 0x29c   : > { %11742 = vst [vmem:[#allocation68_spill] sm:$0xff] %v9524_v39  ;;  %v2432_v39 = vrot.slane %v9447_v48, 2  ;;  %v2436_v48 = vrot.slane %v9468_v52, 2  ;;  %v11754_v52 = vld [vmem:[#allocation37_spill] sm:$0xff] }
 0x29d   : > { %11743 = vst [vmem:[#allocation69_spill] sm:$0xff] %v9529_v38  ;;  %v9553_v38 = vsel %vm2036_vm3, %v2415_v7, %v9096_v36  ;;  %v9572_v7 = vsel %vm2171_vm6, %v2433_v63, %v9098_v33  ;;  %v2600_v16 = vmul.f32 %v9084_v28, %v11754_v52 }
 0x29e   : > { %11744 = vst [vmem:[#allocation70_spill] sm:$0xff] %v9537_v49  ;;  %v2434_v49 = vrot.slane %v9459_v25, 2  ;;  %v9567_v2 = vsel %vm2171_vm6, %v2432_v39, %v9098_v33  ;;  %v9591_v63 = vsel %vm2171_vm6, %v2436_v48, %v9098_v33  ;;  %v2607_v48 = vadd.f32 %v9039_v0, %v9117_v6 }
 0x29f   : > { %11745 = vst [vmem:[#allocation71_spill] sm:$0xff] %v9542_v55  ;;  %v2435_v55 = vrot.slane %v9463_v32, 2 }
 0x2a0   : > { %11746 = vst [vmem:[#allocation72_spill] sm:$0xff] %v9548_v27 }
 0x2a1   : > { %11747 = vst [vmem:[#allocation73_spill] sm:$0xff] %v9553_v38  ;;  %v9577_v38 = vsel %vm2171_vm6, %v2434_v49, %v9098_v33  ;;  %v9586_v39 = vsel %vm2171_vm6, %v2435_v55, %v9098_v33  ;;  %v2484_v49 = vmax.f32 %v2474_v4, 0.0 }
 0x2a2   : > { %11748 = vst [vmem:[#allocation74_spill] sm:$0xff] %v9560_v47  ;;  %v2476_v47 = vadd.f32 %v9107_v56, %v9126_v21 }
 0x2a3   : > { %11749 = vst [vmem:[#allocation75_spill] sm:$0xff] %v9567_v2  ;;  %v2483_v2 = vmax.f32 %v2473_v58, 0.0  ;;  %v2608_v58 = vadd.f32 %v9081_v1, %v9119_v14 }
 0x2a4   : > { %11750 = vst [vmem:[#allocation76_spill] sm:$0xff] %v9572_v7  ;;  %v2482_v7 = vmax.f32 %v2472_v11, 0.0  ;;  %v2486_v27 = vmax.f32 %v2476_v47, 0.0  ;;  %v9609_v11 = vsel %vm2036_vm3, %v2484_v49, 0.0 }
 0x2a5   : > { %11751 = vst [vmem:[#allocation77_spill] sm:$0xff] %v9577_v38  ;;  %v2485_v38 = vmax.f32 %v2475_v15, 0.0  ;;  %v9601_v55 = vsel %vm2036_vm3, %v2483_v2, 0.0  ;;  %v2504_v0 = vrot.slane %v9609_v11, 6  ;;  %v2524_v49 = vrot.slane %v9609_v11, 7 }
 0x2a6   : > { %11752 = vst [vmem:[#allocation78_spill] sm:$0xff] %v9586_v39  ;;  %v9597_v56 = vsel %vm2036_vm3, %v2482_v7, 0.0  ;;  %v9617_v52 = vsel %vm2036_vm3, %v2486_v27, 0.0  ;;  %v2503_v2 = vrot.slane %v9601_v55, 6  ;;  %v2523_v27 = vrot.slane %v9601_v55, 7 }
 0x2a7   : > { %11753 = vst [vmem:[#allocation79_spill] sm:$0xff] %v9591_v63  ;;  %v9613_v4 = vsel %vm2036_vm3, %v2485_v38, 0.0  ;;  %v2502_v47 = vrot.slane %v9597_v56, 6  ;;  %v2506_v7 = vrot.slane %v9617_v52, 6  ;;  %v2522_v38 = vrot.slane %v9597_v56, 7 }
 0x2a8   : > { %11755 = vst [vmem:[#allocation37_spill] sm:$0xff] %v9597_v56  ;;  %v2505_v1 = vrot.slane %v9613_v4, 6  ;;  %v9635_v63 = vsel %vm2104_vm4, %v9091_v41, %v2503_v2  ;;  %v9640_v39 = vsel %vm2104_vm4, %v9091_v41, %v2504_v0  ;;  %v2525_v32 = vrot.slane %v9613_v4, 7 }
 0x2a9   : > { %11756 = vst [vmem:[#allocation80_spill] sm:$0xff] %v9601_v55  ;;  %v9627_v15 = vsel %vm2104_vm4, %v9091_v41, %v2502_v47  ;;  %v2526_v2 = vrot.slane %v9617_v52, 7  ;;  %v9662_v0 = vsel %vm2125_vm5, %v9094_v37, %v2523_v27 }
 0x2aa   : > { %11757 = vst [vmem:[#allocation81_spill] sm:$0xff] %v9609_v11  ;;  %v9645_v47 = vsel %vm2104_vm4, %v9091_v41, %v2505_v1  ;;  %v9667_v1 = vsel %vm2125_vm5, %v9094_v37, %v2524_v49  ;;  %v2551_v49 = vrot.slane %v9617_v52, 1 }
 0x2ab   : > { %11758 = vst [vmem:[#allocation82_spill] sm:$0xff] %v9613_v4  ;;  %v9680_v27 = vsel %vm2125_vm5, %v9094_v37, %v2526_v2  ;;  %v2567_v2 = vrot.slane %v9597_v56, 2 }
 0x2ac   : > { %11759 = vst [vmem:[#allocation83_spill] sm:$0xff] %v9617_v52 }
 0x2ad   : > { %11760 = vst [vmem:[#allocation84_spill] sm:$0xff] %v9627_v15  ;;  %v9650_v15 = vsel %vm2104_vm4, %v9091_v41, %v2506_v7  ;;  %v2547_v7 = vrot.slane %v9597_v56, 1 }
 0x2ae   : > { %11761 = vst [vmem:[#allocation85_spill] sm:$0xff] %v9635_v63  ;;  %v9657_v63 = vsel %vm2125_vm5, %v9094_v37, %v2522_v38  ;;  %v9675_v38 = vsel %vm2125_vm5, %v9094_v37, %v2525_v32 }
 0x2af   : > { %11762 = vst [vmem:[#allocation86_spill] sm:$0xff] %v9640_v39 }
 0x2b0   : > { %11763 = vst [vmem:[#allocation87_spill] sm:$0xff] %v9645_v47  ;;  %v2549_v47 = vrot.slane %v9609_v11, 1 }
 0x2b1   : > { %11764 = vst [vmem:[#allocation88_spill] sm:$0xff] %v9650_v15  ;;  %v2548_v15 = vrot.slane %v9601_v55, 1 }
 0x2b2   : > { %11765 = vst [vmem:[#allocation89_spill] sm:$0xff] %v9657_v63  ;;  %v9697_v32 = vsel %vm2036_vm3, %v2549_v47, %v9096_v36  ;;  %v2571_v47 = vrot.slane %v9617_v52, 2  ;;  %v2611_v52 = vadd.f32 %v9110_v20, %v9126_v21 }
 0x2b3   : > { %11766 = vst [vmem:[#allocation90_spill] sm:$0xff] %v9662_v0  ;;  %v2550_v0 = vrot.slane %v9613_v4, 1  ;;  %v9692_v63 = vsel %vm2036_vm3, %v2548_v15, %v9096_v36  ;;  %v2568_v15 = vrot.slane %v9601_v55, 2  ;;  %v11865_v55 = vld [vmem:[#allocation28_spill] sm:$0xff] }
 0x2b4   : > { %11767 = vst [vmem:[#allocation91_spill] sm:$0xff] %v9667_v1  ;;  %v9687_v1 = vsel %vm2036_vm3, %v2547_v7, %v9096_v36  ;;  %v9708_v7 = vsel %vm2036_vm3, %v2551_v49, %v9096_v36 }
 0x2b5   : > { %11768 = vst [vmem:[#allocation92_spill] sm:$0xff] %v9675_v38  ;;  %v9724_v49 = vsel %vm2171_vm6, %v2568_v15, %v9098_v33  ;;  %v2617_v15 = vmax.f32 %v2607_v48, 0.0  ;;  %v2743_v48 = vadd.f32 %v9088_v17, %v9119_v14  ;;  %v11866_v38 = vld [vmem:[#allocation29_spill] sm:$0xff] }
 0x2b6   : > { %11769 = vst [vmem:[#allocation93_spill] sm:$0xff] %v9680_v27  ;;  %v9703_v27 = vsel %vm2036_vm3, %v2550_v0, %v9096_v36  ;;  %v2609_v0 = vadd.f32 %v9059_v44, %v9121_v18  ;;  %v9742_v44 = vsel %vm2171_vm6, %v2571_v47, %v9098_v33  ;;  %v2742_v47 = vadd.f32 %v9043_v42, %v9117_v6 }
 0x2b7   : > { %11770 = vst [vmem:[#allocation94_spill] sm:$0xff] %v9687_v1  ;;  %v2570_v1 = vrot.slane %v9613_v4, 2  ;;  %v11780_v4 = vld [vmem:[#allocation38_spill] sm:$0xff]  ;;  %v9748_v20 = vsel %vm2036_vm3, %v2617_v15, 0.0 }
 0x2b8   : > { %11771 = vst [vmem:[#allocation95_spill] sm:$0xff] %v9692_v63  ;;  %v2569_v63 = vrot.slane %v9609_v11, 2  ;;  %v2657_v15 = vrot.slane %v9748_v20, 7 }
 0x2b9   : > { %11772 = vst [vmem:[#allocation96_spill] sm:$0xff] %v9697_v32  ;;  %v9717_v32 = vsel %vm2171_vm6, %v2567_v2, %v9098_v33  ;;  %v9737_v2 = vsel %vm2171_vm6, %v2570_v1, %v9098_v33 }
 0x2ba   : > { %11773 = vst [vmem:[#allocation97_spill] sm:$0xff] %v9703_v27  ;;  %v2610_v27 = vadd.f32 %v2600_v16, %v9123_v29  ;;  %v2735_v16 = vmul.f32 %v9084_v28, %v11780_v4 }
 0x2bb   : > { %11774 = vst [vmem:[#allocation98_spill] sm:$0xff] %v9708_v7  ;;  %v9729_v7 = vsel %vm2171_vm6, %v2569_v63, %v9098_v33 }
 0x2bc   : > { %11775 = vst [vmem:[#allocation99_spill] sm:$0xff] %v9717_v32  ;;  %v2619_v32 = vmax.f32 %v2609_v0, 0.0  ;;  %v2620_v63 = vmax.f32 %v2610_v27, 0.0  ;;  %v2637_v27 = vrot.slane %v9748_v20, 6 }
 0x2bd   : > { %11776 = vst [vmem:[#allocation100_spill] sm:$0xff] %v9724_v49  ;;  %v2618_v49 = vmax.f32 %v2608_v58, 0.0 }
 0x2be   : > { %11777 = vst [vmem:[#allocation101_spill] sm:$0xff] %v9729_v7  ;;  %v2621_v7 = vmax.f32 %v2611_v52, 0.0  ;;  %v9760_v58 = vsel %vm2036_vm3, %v2619_v32, 0.0  ;;  %v9764_v4 = vsel %vm2036_vm3, %v2620_v63, 0.0  ;;  %v9778_v32 = vsel %vm2104_vm4, %v9091_v41, %v2637_v27 }
 0x2bf   : > { %11778 = vst [vmem:[#allocation102_spill] sm:$0xff] %v9737_v2  ;;  %v9752_v1 = vsel %vm2036_vm3, %v2618_v49, 0.0  ;;  %v2639_v42 = vrot.slane %v9760_v58, 6  ;;  %v2640_v17 = vrot.slane %v9764_v4, 6  ;;  %v2659_v63 = vrot.slane %v9760_v58, 7 }
 0x2c0   : > { %11779 = vst [vmem:[#allocation103_spill] sm:$0xff] %v9742_v44  ;;  %v9768_v52 = vsel %vm2036_vm3, %v2621_v7, 0.0  ;;  %v2638_v0 = vrot.slane %v9752_v1, 6  ;;  %v2658_v7 = vrot.slane %v9752_v1, 7  ;;  %v2660_v11 = vrot.slane %v9764_v4, 7 }
 0x2c1   : > { %11781 = vst [vmem:[#allocation38_spill] sm:$0xff] %v9748_v20  ;;  %v2641_v49 = vrot.slane %v9768_v52, 6  ;;  %v9791_v2 = vsel %vm2104_vm4, %v9091_v41, %v2639_v42  ;;  %v9796_v27 = vsel %vm2104_vm4, %v9091_v41, %v2640_v17  ;;  %v9818_v17 = vsel %vm2125_vm5, %v9094_v37, %v2659_v63 }
 0x2c2   : > { %11782 = vst [vmem:[#allocation104_spill] sm:$0xff] %v9752_v1  ;;  %v9786_v44 = vsel %vm2104_vm4, %v9091_v41, %v2638_v0  ;;  %v2661_v0 = vrot.slane %v9768_v52, 7  ;;  %v9813_v42 = vsel %vm2125_vm5, %v9094_v37, %v2658_v7  ;;  %v2686_v63 = vrot.slane %v9768_v52, 1 }
 0x2c3   : > { %11783 = vst [vmem:[#allocation105_spill] sm:$0xff] %v9760_v58 }
 0x2c4   : > { %11784 = vst [vmem:[#allocation106_spill] sm:$0xff] %v9764_v4  ;;  %v9831_v7 = vsel %vm2125_vm5, %v9094_v37, %v2661_v0  ;;  %v2702_v0 = vrot.slane %v9748_v20, 2 }
 0x2c5   : > { %11785 = vst [vmem:[#allocation107_spill] sm:$0xff] %v9768_v52 }
 0x2c6   : > { %11786 = vst [vmem:[#allocation108_spill] sm:$0xff] %v9778_v32  ;;  %v9801_v32 = vsel %vm2104_vm4, %v9091_v41, %v2641_v49  ;;  %v2682_v49 = vrot.slane %v9748_v20, 1 }
 0x2c7   : > { %11787 = vst [vmem:[#allocation109_spill] sm:$0xff] %v9786_v44  ;;  %v9808_v44 = vsel %vm2125_vm5, %v9094_v37, %v2657_v15  ;;  %v9826_v15 = vsel %vm2125_vm5, %v9094_v37, %v2660_v11 }
 0x2c8   : > { %11788 = vst [vmem:[#allocation110_spill] sm:$0xff] %v9791_v2 }
 0x2c9   : > { %11789 = vst [vmem:[#allocation111_spill] sm:$0xff] %v9796_v27  ;;  %v2684_v27 = vrot.slane %v9760_v58, 1 }
 0x2ca   : > { %11790 = vst [vmem:[#allocation112_spill] sm:$0xff] %v9801_v32  ;;  %v2683_v32 = vrot.slane %v9752_v1, 1 }
 0x2cb   : > { %11791 = vst [vmem:[#allocation113_spill] sm:$0xff] %v9808_v44  ;;  %v9848_v11 = vsel %vm2036_vm3, %v2684_v27, %v9096_v36  ;;  %v2706_v27 = vrot.slane %v9768_v52, 2  ;;  %v2746_v52 = vadd.f32 %v9113_v26, %v9126_v21 }
 0x2cc   : > { %11792 = vst [vmem:[#allocation114_spill] sm:$0xff] %v9813_v42  ;;  %v2685_v42 = vrot.slane %v9764_v4, 1  ;;  %v9843_v44 = vsel %vm2036_vm3, %v2683_v32, %v9096_v36  ;;  %v2703_v32 = vrot.slane %v9752_v1, 2 }
 0x2cd   : > { %11793 = vst [vmem:[#allocation115_spill] sm:$0xff] %v9818_v17  ;;  %v9838_v17 = vsel %vm2036_vm3, %v2682_v49, %v9096_v36  ;;  %v9859_v49 = vsel %vm2036_vm3, %v2686_v63, %v9096_v36 }
 0x2ce   : > { %11794 = vst [vmem:[#allocation116_spill] sm:$0xff] %v9826_v15  ;;  %v9875_v63 = vsel %vm2171_vm6, %v2703_v32, %v9098_v33  ;;  %v2752_v32 = vmax.f32 %v2742_v47, 0.0  ;;  %v11809_v47 = vld [vmem:[#allocation31_spill] sm:$0xff] }
 0x2cf   : > { %11795 = vst [vmem:[#allocation117_spill] sm:$0xff] %v9831_v7  ;;  %v9854_v7 = vsel %vm2036_vm3, %v2685_v42, %v9096_v36  ;;  %v2744_v42 = vadd.f32 %v9065_v40, %v9121_v18  ;;  %v9893_v40 = vsel %vm2171_vm6, %v2706_v27, %v9098_v33 }
 0x2d0   : > { %11796 = vst [vmem:[#allocation118_spill] sm:$0xff] %v9838_v17  ;;  %v2705_v17 = vrot.slane %v9764_v4, 2  ;;  %v9899_v26 = vsel %vm2036_vm3, %v2752_v32, 0.0  ;;  %v7488_v4 = vld [vmem:[%s8267_s1 + $0x2b] ss:$8 sm:$0x10] }
 0x2d1   : > { %11797 = vst [vmem:[#allocation119_spill] sm:$0xff] %v9843_v44  ;;  %v2704_v44 = vrot.slane %v9760_v58, 2 }
 0x2d2   : > { %11798 = vst [vmem:[#allocation120_spill] sm:$0xff] %v9848_v11  ;;  %v9868_v11 = vsel %vm2171_vm6, %v2702_v0, %v9098_v33  ;;  %v9888_v0 = vsel %vm2171_vm6, %v2705_v17, %v9098_v33 }
 0x2d3   : > { %11799 = vst [vmem:[#allocation121_spill] sm:$0xff] %v9854_v7  ;;  %v2745_v7 = vadd.f32 %v2735_v16, %v9123_v29  ;;  %v2870_v16 = vmul.f32 %v9084_v28, %v9021_v59 }
 0x2d4   : > { %11800 = vst [vmem:[#allocation122_spill] sm:$0xff] %v9859_v49  ;;  %v9880_v49 = vsel %vm2171_vm6, %v2704_v44, %v9098_v33 }
 0x2d5   : > { %11801 = vst [vmem:[#allocation123_spill] sm:$0xff] %v9868_v11  ;;  %v2754_v11 = vmax.f32 %v2744_v42, 0.0  ;;  %v2755_v44 = vmax.f32 %v2745_v7, 0.0  ;;  %v2772_v7 = vrot.slane %v9899_v26, 6 }
 0x2d6   : > { %11802 = vst [vmem:[#allocation124_spill] sm:$0xff] %v9875_v63  ;;  %v2753_v63 = vmax.f32 %v2743_v48, 0.0  ;;  %v2878_v48 = vadd.f32 %v11809_v47, %v9119_v14 }
 0x2d7   : > { %11803 = vst [vmem:[#allocation125_spill] sm:$0xff] %v9880_v49  ;;  %v2756_v49 = vmax.f32 %v2746_v52, 0.0  ;;  %v9911_v52 = vsel %vm2036_vm3, %v2754_v11, 0.0  ;;  %v9915_v59 = vsel %vm2036_vm3, %v2755_v44, 0.0  ;;  %v9929_v11 = vsel %vm2104_vm4, %v9091_v41, %v2772_v7 }
 0x2d8   : > { %11804 = vst [vmem:[#allocation126_spill] sm:$0xff] %v9888_v0  ;;  %v9903_v17 = vsel %vm2036_vm3, %v2753_v63, 0.0  ;;  %v11808_v0 = vld [vmem:[#allocation20_spill] sm:$0xff]  ;;  %v2775_v14 = vrot.slane %v9915_v59, 6  ;;  %v2794_v32 = vrot.slane %v9911_v52, 7 }
 0x2d9   : > { %11805 = vst [vmem:[#allocation127_spill] sm:$0xff] %v9893_v40  ;;  %v2877_v27 = vadd.f32 %v11808_v0, %v9117_v6  ;;  %v9919_v28 = vsel %vm2036_vm3, %v2756_v49, 0.0  ;;  %v2773_v42 = vrot.slane %v9903_v17, 6  ;;  %v2774_v6 = vrot.slane %v9911_v52, 6 }
 0x2da   : > { %11806 = vst [vmem:[#allocation128_spill] sm:$0xff] %v9899_v26  ;;  %v2776_v63 = vrot.slane %v9919_v28, 6  ;;  %v2792_v0 = vrot.slane %v9899_v26, 7  ;;  %v2793_v49 = vrot.slane %v9903_v17, 7  ;;  %v9947_v7 = vsel %vm2104_vm4, %v9091_v41, %v2775_v14 }
 0x2db   : > { %11807 = vst [vmem:[#allocation129_spill] sm:$0xff] %v9903_v17  ;;  %v9937_v44 = vsel %vm2104_vm4, %v9091_v41, %v2773_v42  ;;  %v9942_v47 = vsel %vm2104_vm4, %v9091_v41, %v2774_v6  ;;  %v2795_v40 = vrot.slane %v9915_v59, 7  ;;  %v2796_v42 = vrot.slane %v9919_v28, 7 }
 0x2dc   : > { %11810 = vst [vmem:[#allocation20_spill] sm:$0xff] %v9911_v52  ;;  %v9959_v6 = vsel %vm2125_vm5, %v9094_v37, %v2792_v0  ;;  %v9964_v14 = vsel %vm2125_vm5, %v9094_v37, %v2793_v49 }
 0x2dd   : > { %11811 = vst [vmem:[#allocation31_spill] sm:$0xff] %v9915_v59  ;;  %v9977_v0 = vsel %vm2125_vm5, %v9094_v37, %v2795_v40  ;;  %v9982_v49 = vsel %vm2125_vm5, %v9094_v37, %v2796_v42 }
 0x2de   : > { %11812 = vst [vmem:[#allocation130_spill] sm:$0xff] %v9919_v28 }
 0x2df   : > { %11813 = vst [vmem:[#allocation131_spill] sm:$0xff] %v9929_v11  ;;  %v9952_v11 = vsel %vm2104_vm4, %v9091_v41, %v2776_v63  ;;  %v9969_v63 = vsel %vm2125_vm5, %v9094_v37, %v2794_v32  ;;  %v2820_v32 = vrot.slane %v9915_v59, 1 }
 0x2e0   : > { %11814 = vst [vmem:[#allocation132_spill] sm:$0xff] %v9937_v44 }
 0x2e1   : > { %11815 = vst [vmem:[#allocation133_spill] sm:$0xff] %v9942_v47  ;;  %v2819_v47 = vrot.slane %v9911_v52, 1 }
 0x2e2   : > { %11816 = vst [vmem:[#allocation134_spill] sm:$0xff] %v9947_v7  ;;  %v2818_v7 = vrot.slane %v9903_v17, 1 }
 0x2e3   : > { %11817 = vst [vmem:[#allocation135_spill] sm:$0xff] %v9952_v11  ;;  %v2817_v11 = vrot.slane %v9899_v26, 1  ;;  %v9999_v42 = vsel %vm2036_vm3, %v2819_v47, %v9096_v36  ;;  %v2839_v47 = vrot.slane %v9911_v52, 2 }
 0x2e4   : > { %11818 = vst [vmem:[#allocation136_spill] sm:$0xff] %v9959_v6  ;;  %v9994_v40 = vsel %vm2036_vm3, %v2818_v7, %v9096_v36  ;;  %v7486_v6 = vld [vmem:[%s8267_s1 + $0x2a] ss:$8 sm:$0x10] }
 0x2e5   : > { %11819 = vst [vmem:[#allocation137_spill] sm:$0xff] %v9964_v14  ;;  %v9989_v14 = vsel %vm2036_vm3, %v2817_v11, %v9096_v36  ;;  %v10007_v11 = vsel %vm2036_vm3, %v2820_v32, %v9096_v36  ;;  %v11829_v32 = vld [vmem:[#allocation30_spill] sm:$0xff] }
 0x2e6   : > { %11820 = vst [vmem:[#allocation138_spill] sm:$0xff] %v9969_v63  ;;  %v2821_v63 = vrot.slane %v9919_v28, 1 }
 0x2e7   : > { %11821 = vst [vmem:[#allocation139_spill] sm:$0xff] %v9977_v0  ;;  %v7485_v0 = vld [vmem:[%s8267_s1 + $0x2a] ss:$8 sm:$0xf] }
 0x2e8   : > { %11822 = vst [vmem:[#allocation140_spill] sm:$0xff] %v9982_v49  ;;  %v2837_v49 = vrot.slane %v9899_v26, 2  ;;  %v10012_v7 = vsel %vm2036_vm3, %v2821_v63, %v9096_v36  ;;  %v2841_v26 = vrot.slane %v9919_v28, 2  ;;  %v2880_v28 = vadd.f32 %v2870_v16, %v9123_v29 }
 0x2e9   : > { %11823 = vst [vmem:[#allocation141_spill] sm:$0xff] %v9989_v14  ;;  %v2840_v14 = vrot.slane %v9915_v59, 2  ;;  %v7490_v59 = vld [vmem:[%s8267_s1 + $0x2c] ss:$8 sm:$0x10]  ;;  %v3000_v16 = vor.u32 %v7486_v6, %v7485_v0 }
 0x2ea   : > { %11824 = vst [vmem:[#allocation142_spill] sm:$0xff] %v9994_v40  ;;  %v2838_v40 = vrot.slane %v9903_v17, 2  ;;  %v10022_v44 = vsel %vm2171_vm6, %v2837_v49, %v9098_v33  ;;  %v2881_v49 = vadd.f32 %v9029_v24, %v9126_v21 }
 0x2eb   : > { %11825 = vst [vmem:[#allocation143_spill] sm:$0xff] %v9999_v42  ;;  %v7487_v42 = vld [vmem:[%s8267_s1 + $0x2b] ss:$8 sm:$0xf] }
 0x2ec   : > { %11826 = vst [vmem:[#allocation144_spill] sm:$0xff] %v10007_v11  ;;  %v2879_v11 = vadd.f32 %v11829_v32, %v9121_v18  ;;  %v10030_v63 = vsel %vm2171_vm6, %v2838_v40, %v9098_v33  ;;  %v10045_v18 = vsel %vm2171_vm6, %v2840_v14, %v9098_v33  ;;  %v10050_v40 = vsel %vm2171_vm6, %v2841_v26, %v9098_v33 }
 0x2ed   : > { %11827 = vst [vmem:[#allocation145_spill] sm:$0xff] %v10012_v7  ;;  %v10035_v7 = vsel %vm2171_vm6, %v2839_v47, %v9098_v33  ;;  %v2887_v32 = vmax.f32 %v2877_v27, 0.0  ;;  %v2888_v47 = vmax.f32 %v2878_v48, 0.0  ;;  %v2891_v29 = vmax.f32 %v2881_v49, 0.0 }
 0x2ee   : > { %11828 = vst [vmem:[#allocation146_spill] sm:$0xff] %v10022_v44  ;;  %v7489_v44 = vld [vmem:[%s8267_s1 + $0x2c] ss:$8 sm:$0xf]  ;;  %v10060_v14 = vor.u32 %v7488_v4, %v7487_v42 }
 0x2ef   : > { %11830 = vst [vmem:[#allocation30_spill] sm:$0xff] %v10030_v63  ;;  %v2890_v63 = vmax.f32 %v2880_v28, 0.0  ;;  %v10054_v24 = vsel %vm2036_vm3, %v2887_v32, 0.0  ;;  %v10058_v21 = vsel %vm2036_vm3, %v2888_v47, 0.0  ;;  %v10074_v48 = vsel %vm2036_vm3, %v2891_v29, 0.0 }
 0x2f0   : > { %11831 = vst [vmem:[#allocation147_spill] sm:$0xff] %v10035_v7  ;;  %v2889_v7 = vmax.f32 %v2879_v11, 0.0  ;;  %v2907_v28 = vrot.slane %v10054_v24, 6  ;;  %v2908_v6 = vrot.slane %v10058_v21, 6  ;;  %v2927_v42 = vrot.slane %v10054_v24, 7 }
 0x2f1   : > { %11832 = vst [vmem:[#allocation148_spill] sm:$0xff] %v10045_v18  ;;  %v10062_v18 = vor.u32 %v7490_v59, %v7489_v44  ;;  %v10070_v27 = vsel %vm2036_vm3, %v2890_v63, 0.0  ;;  %v2911_v44 = vrot.slane %v10074_v48, 6  ;;  %v2928_v11 = vrot.slane %v10058_v21, 7 }
 0x2f2   : > { %11833 = vst [vmem:[#allocation149_spill] sm:$0xff] %v10050_v40  ;;  %v10066_v26 = vsel %vm2036_vm3, %v2889_v7, 0.0  ;;  %v2910_v59 = vrot.slane %v10070_v27, 6  ;;  %v10084_v0 = vsel %vm2104_vm4, %v9091_v41, %v2907_v28  ;;  %v10092_v63 = vsel %vm2104_vm4, %v9091_v41, %v2908_v6  ;;  %v7496_v40 = vld [vmem:[%s8267_s1 + $0x2f] ss:$8 sm:$0x10] }
 0x2f3   : > { %11834 = vst [vmem:[#allocation150_spill] sm:$0xff] %v10054_v24  ;;  %v2909_v4 = vrot.slane %v10066_v26, 6  ;;  %v2929_v7 = vrot.slane %v10066_v26, 7  ;;  %v10107_v47 = vsel %vm2104_vm4, %v9091_v41, %v2911_v44  ;;  %v2930_v29 = vrot.slane %v10070_v27, 7 }
 0x2f4   : > { %11835 = vst [vmem:[#allocation151_spill] sm:$0xff] %v10058_v21  ;;  %v10102_v32 = vsel %vm2104_vm4, %v9091_v41, %v2910_v59  ;;  %v2931_v28 = vrot.slane %v10074_v48, 7  ;;  %v10114_v6 = vsel %vm2125_vm5, %v9094_v37, %v2927_v42  ;;  %v2953_v44 = vrot.slane %v10058_v21, 1 }
 0x2f5   : > { %11836 = vst [vmem:[#allocation152_spill] sm:$0xff] %v10066_v26  ;;  %v10097_v49 = vsel %vm2104_vm4, %v9091_v41, %v2909_v4  ;;  %v10119_v4 = vsel %vm2125_vm5, %v9094_v37, %v2928_v11  ;;  %v10124_v59 = vsel %vm2125_vm5, %v9094_v37, %v2929_v7  ;;  %v2952_v41 = vrot.slane %v10054_v24, 1 }
 0x2f6   : > { %11837 = vst [vmem:[#allocation153_spill] sm:$0xff] %v10070_v27  ;;  %v10132_v42 = vsel %vm2125_vm5, %v9094_v37, %v2930_v29  ;;  %v10137_v11 = vsel %vm2125_vm5, %v9094_v37, %v2931_v28  ;;  %v2956_v7 = vrot.slane %v10074_v48, 1  ;;  %v2972_v37 = vrot.slane %v10054_v24, 2  ;;  %v7493_v24 = vld [vmem:[%s8267_s1 + $0x2e] ss:$8 sm:$0xf] }
 0x2f7   : > { %11838 = vst [vmem:[#allocation154_spill] sm:$0xff] %v10074_v48 }
 0x2f8   : > { %11839 = vst [vmem:[#allocation155_spill] sm:$0xff] %v10084_v0 }
 0x2f9   : > { %11840 = vst [vmem:[#allocation156_spill] sm:$0xff] %v10092_v63 }
 0x2fa   : > { %11841 = vst [vmem:[#allocation157_spill] sm:$0xff] %v10097_v49  ;;  %v7495_v49 = vld [vmem:[%s8267_s1 + $0x2f] ss:$8 sm:$0xf] }
 0x2fb   : > { %11842 = vst [vmem:[#allocation158_spill] sm:$0xff] %v10102_v32  ;;  %v3065_v32 = vperm.slane %v10062_v18, 3 }
 0x2fc   : > { %11843 = vst [vmem:[#allocation159_spill] sm:$0xff] %v10107_v47  ;;  %v2954_v47 = vrot.slane %v10066_v26, 1 }
 0x2fd   : > { %11844 = vst [vmem:[#allocation160_spill] sm:$0xff] %v10114_v6  ;;  %v10149_v6 = vsel %vm2036_vm3, %v2953_v44, %v9096_v36  ;;  %v2973_v44 = vrot.slane %v10058_v21, 2  ;;  %v3064_v21 = vperm.slane %v10062_v18, 2 }
 0x2fe   : > { %11845 = vst [vmem:[#allocation161_spill] sm:$0xff] %v10119_v4  ;;  %v2955_v4 = vrot.slane %v10070_v27, 1  ;;  %v10154_v29 = vsel %vm2036_vm3, %v2954_v47, %v9096_v36  ;;  %v2976_v47 = vrot.slane %v10074_v48, 2 }
 0x2ff   : > { %11846 = vst [vmem:[#allocation162_spill] sm:$0xff] %v10124_v59  ;;  %v10144_v59 = vsel %vm2036_vm3, %v2952_v41, %v9096_v36  ;;  %v10165_v41 = vsel %vm2036_vm3, %v2956_v7, %v9096_v36  ;;  %v3003_v7 = vperm.slane %v3000_v16, 1  ;;  %v3074_v1 = vmul.f32 %v3064_v21, %v9162_v61 }
 0x300   : > { %11847 = vst [vmem:[#allocation163_spill] sm:$0xff] %v10132_v42  ;;  %v10160_v28 = vsel %vm2036_vm3, %v2955_v4, %v9096_v36  ;;  %v3002_v4 = vperm.slane %v3000_v16, 0 }
 0x301   : > { %11848 = vst [vmem:[#allocation164_spill] sm:$0xff] %v10137_v11  ;;  %v7494_v11 = vld [vmem:[%s8267_s1 + $0x2e] ss:$8 sm:$0x10] }
 0x302   : > { %11849 = vst [vmem:[#allocation165_spill] sm:$0xff] %v10144_v59  ;;  %v2975_v59 = vrot.slane %v10070_v27, 2  ;;  %v3032_v27 = vperm.slane %v10060_v14, 0 }
 0x303   : > { %11850 = vst [vmem:[#allocation166_spill] sm:$0xff] %v10149_v6  ;;  %v2974_v6 = vrot.slane %v10066_v26, 2  ;;  %v3063_v26 = vperm.slane %v10062_v18, 1 }
 0x304   : > { %11851 = vst [vmem:[#allocation167_spill] sm:$0xff] %v10154_v29  ;;  %v10174_v29 = vsel %vm2171_vm6, %v2972_v37, %v9098_v33  ;;  %v10189_v48 = vsel %vm2171_vm6, %v2975_v59, %v9098_v33  ;;  %v10194_v37 = vsel %vm2171_vm6, %v2976_v47, %v9098_v33  ;;  %v3034_v47 = vperm.slane %v10060_v14, 2 }
 0x305   : > { %11852 = vst [vmem:[#allocation168_spill] sm:$0xff] %v10160_v28  ;;  %v10179_v28 = vsel %vm2171_vm6, %v2973_v44, %v9098_v33  ;;  %v10184_v36 = vsel %vm2171_vm6, %v2974_v6, %v9098_v33  ;;  %v3005_v44 = vperm.slane %v3000_v16, 3  ;;  %v3013_v6 = vmul.f32 %v3003_v7, %v9187_v62 }
 0x306   : > { %11853 = vst [vmem:[#allocation169_spill] sm:$0xff] %v10165_v41  ;;  %v3004_v41 = vperm.slane %v3000_v16, 2  ;;  %v3033_v33 = vperm.slane %v10060_v14, 1  ;;  %v3042_v7 = vmul.f32 %v3032_v27, %v9210_v51  ;;  %v3073_v58 = vmul.f32 %v3063_v26, %v9158_v13 }
 0x307   : > { %11854 = vst [vmem:[#allocation170_spill] sm:$0xff] %v10174_v29  ;;  %v3012_v29 = vmul.f32 %v3002_v4, %v9182_v8  ;;  %v3015_v59 = vmul.f32 %v3005_v44, %v9198_v34  ;;  %v3036_v4 = vperm.slane %v10060_v14, 4 }
 0x308   : > { %11855 = vst [vmem:[#allocation171_spill] sm:$0xff] %v10179_v28  ;;  %v3006_v28 = vperm.slane %v3000_v16, 4  ;;  %v3035_v16 = vperm.slane %v10060_v14, 3  ;;  %v3043_v44 = vmul.f32 %v3033_v33, %v9215_v5  ;;  %v3066_v33 = vperm.slane %v10062_v18, 4 }
 0x309   : > { %11856 = vst [vmem:[#allocation172_spill] sm:$0xff] %v10184_v36  ;;  %v3014_v36 = vmul.f32 %v3004_v41, %v9192_v3  ;;  %v3062_v41 = vperm.slane %v10062_v18, 0  ;;  %v3046_v14 = vmul.f32 %v3036_v4, %v9231_v22  ;;  %v3047_v27 = vadd.f32 %v3042_v7, %v3012_v29 }
 0x30a   : > { %11857 = vst [vmem:[#allocation173_spill] sm:$0xff] %v10189_v48  ;;  %v3016_v10 = vmul.f32 %v3006_v28, %v9203_v53  ;;  %v7492_v48 = vld [vmem:[%s8267_s1 + $0x2d] ss:$8 sm:$0x10]  ;;  %v3044_v28 = vmul.f32 %v3034_v47, %v9220_v45  ;;  %v3045_v42 = vmul.f32 %v3035_v16, %v9226_v23  ;;  %v3048_v63 = vadd.f32 %v3043_v44, %v3013_v6 }
 0x30b   : > { %11858 = vst [vmem:[#allocation174_spill] sm:$0xff] %v10194_v37  ;;  %v7491_v37 = vld [vmem:[%s8267_s1 + $0x2d] ss:$8 sm:$0xf]  ;;  %v3072_v47 = vmul.f32 %v3062_v41, %v9154_v12  ;;  %v3075_v16 = vmul.f32 %v3065_v32, %v9166_v60  ;;  %v3076_v29 = vmul.f32 %v3066_v33, %v9170_v50  ;;  %v3150_v44 = vor.u32 %v7496_v40, %v7495_v49 }
 0x30c   : > { %v3049_v0 = vadd.f32 %v3044_v28, %v3014_v36  ;;  %v3050_v52 = vadd.f32 %v3045_v42, %v3015_v59  ;;  %v3051_v17 = vadd.f32 %v3046_v14, %v3016_v10  ;;  %v3090_v7 = vor.u32 %v7492_v48, %v7491_v37  ;;  %v11859_v40 = vld [vmem:[#allocation21_spill] sm:$0xff] }
 0x30d   : > { %v3077_v4 = vadd.f32 %v3072_v47, %v3047_v27  ;;  %v3078_v20 = vadd.f32 %v3073_v58, %v3048_v63  ;;  %v3120_v36 = vor.u32 %v7494_v11, %v7493_v24  ;;  %v11861_v11 = vld [vmem:[#allocation23_spill] sm:$0xff]  ;;  %v11862_v47 = vld [vmem:[#allocation32_spill] sm:$0xff]  ;;  %v3156_v56 = vperm.slane %v3150_v44, 4 }
 0x30e   : > { %v3079_v6 = vadd.f32 %v3074_v1, %v3049_v0  ;;  %v3080_v18 = vadd.f32 %v3075_v16, %v3050_v52  ;;  %v3081_v28 = vadd.f32 %v3076_v29, %v3051_v17  ;;  %v3092_v41 = vperm.slane %v3090_v7, 0  ;;  %v11860_v17 = vld [vmem:[#allocation22_spill] sm:$0xff] }
 0x30f   : > { %v3093_v15 = vperm.slane %v3090_v7, 1  ;;  %v3094_v42 = vperm.slane %v3090_v7, 2  ;;  %v3095_v59 = vperm.slane %v3090_v7, 3  ;;  %v3096_v10 = vperm.slane %v3090_v7, 4 }
 0x310   : > { %v3122_v26 = vperm.slane %v3120_v36, 0  ;;  %v3102_v21 = vmul.f32 %v3092_v41, %v9240_v57  ;;  %v3123_v14 = vperm.slane %v3120_v36, 1  ;;  %v3124_v58 = vperm.slane %v3120_v36, 2  ;;  %v7497_v29 = vld [vmem:[%s8267_s1 + $0x50] ss:$8 sm:$0xf] }
 0x311   : > { %v3103_v32 = vmul.f32 %v3093_v15, %v9246_v46  ;;  %v3104_v1 = vmul.f32 %v3094_v42, %v9251_v31  ;;  %v3105_v52 = vmul.f32 %v3095_v59, %v11859_v40  ;;  %v3106_v24 = vmul.f32 %v3096_v10, %v11860_v17  ;;  %v7498_v7 = vld [vmem:[%s8267_s1 + $0x50] ss:$8 sm:$0x10]  ;;  %v7499_v41 = vld [vmem:[%s8267_s1 + $0x51] ss:$8 sm:$0xf] }
 0x312   : > { %v3125_v48 = vperm.slane %v3120_v36, 3  ;;  %v3107_v0 = vadd.f32 %v3102_v21, %v3077_v4  ;;  %v3126_v49 = vperm.slane %v3120_v36, 4  ;;  %v3132_v37 = vmul.f32 %v3122_v26, %v11861_v11  ;;  %v11863_v42 = vld [vmem:[#allocation24_spill] sm:$0xff]  ;;  %v11864_v10 = vld [vmem:[#allocation26_spill] sm:$0xff] }
 0x313   : > { %v3108_v63 = vadd.f32 %v3103_v32, %v3078_v20  ;;  %v3109_v27 = vadd.f32 %v3104_v1, %v3079_v6  ;;  %v3110_v15 = vadd.f32 %v3105_v52, %v3080_v18  ;;  %v3111_v33 = vadd.f32 %v3106_v24, %v3081_v28  ;;  %v7500_v20 = vld [vmem:[%s8267_s1 + $0x51] ss:$8 sm:$0x10]  ;;  %v7501_v36 = vld [vmem:[%s8267_s1 + $0x52] ss:$8 sm:$0xf] }
 0x314   : > { %v3133_v16 = vmul.f32 %v3123_v14, %v11862_v47  ;;  %v3134_v59 = vmul.f32 %v3124_v58, %v11863_v42  ;;  %v3135_v2 = vmul.f32 %v3125_v48, %v11864_v10  ;;  %v3136_v4 = vmul.f32 %v3126_v49, %v11865_v55  ;;  %v7502_v1 = vld [vmem:[%s8267_s1 + $0x52] ss:$8 sm:$0x10]  ;;  %v11867_v58 = vld [vmem:[#allocation34_spill] sm:$0xff]  ;;  %v11869_v49 = vld [vmem:[#allocation39_spill] sm:$0xff] }
 0x315   : > { %v3137_v21 = vadd.f32 %v3132_v37, %v3107_v0  ;;  %v3152_v26 = vperm.slane %v3150_v44, 0  ;;  %v3153_v6 = vperm.slane %v3150_v44, 1  ;;  %v3154_v18 = vperm.slane %v3150_v44, 2  ;;  %v11868_v48 = vld [vmem:[#allocation18_spill] sm:$0xff] }
 0x316   : > { %v3138_v32 = vadd.f32 %v3133_v16, %v3108_v63  ;;  %v3139_v28 = vadd.f32 %v3134_v59, %v3109_v27  ;;  %v3140_v52 = vadd.f32 %v3135_v2, %v3110_v15  ;;  %v3141_v14 = vadd.f32 %v3136_v4, %v3111_v33  ;;  %v11870_v16 = vld [vmem:[#allocation40_spill] sm:$0xff] }
 0x317   : > { %v3155_v24 = vperm.slane %v3150_v44, 3  ;;  %v3162_v39 = vmul.f32 %v3152_v26, %v11866_v38  ;;  %v3163_v42 = vmul.f32 %v3153_v6, %v11867_v58  ;;  %v3164_v10 = vmul.f32 %v3154_v18, %v11868_v48  ;;  %v11871_v58 = vld [vmem:[#allocation41_spill] sm:$0xff]  ;;  %v11872_v48 = vld [vmem:[#allocation42_spill] sm:$0xff] }
 0x318   : > { %v3180_v37 = vor.u32 %v7498_v7, %v7497_v29  ;;  %v3210_v55 = vor.u32 %v7500_v20, %v7499_v41  ;;  %v3240_v63 = vor.u32 %v7502_v1, %v7501_v36  ;;  %v3166_v47 = vmul.f32 %v3156_v56, %v11870_v16  ;;  %v11873_v7 = vld [vmem:[#allocation43_spill] sm:$0xff]  ;;  %v11874_v56 = vld [vmem:[#allocation44_spill] sm:$0xff] }
 0x319   : > { %v3165_v0 = vmul.f32 %v3155_v24, %v11869_v49  ;;  %v3167_v11 = vadd.f32 %v3162_v39, %v3137_v21  ;;  %v3168_v17 = vadd.f32 %v3163_v42, %v3138_v32  ;;  %v3169_v27 = vadd.f32 %v3164_v10, %v3139_v28  ;;  %v11875_v10 = vld [vmem:[#allocation45_spill] sm:$0xff] }
 0x31a   : > { %v3182_v15 = vperm.slane %v3180_v37, 0  ;;  %v3183_v33 = vperm.slane %v3180_v37, 1  ;;  %v3184_v44 = vperm.slane %v3180_v37, 2  ;;  %v3171_v59 = vadd.f32 %v3166_v47, %v3141_v14 }
 0x31b   : > { %v3170_v2 = vadd.f32 %v3165_v0, %v3140_v52  ;;  %v3185_v4 = vperm.slane %v3180_v37, 3  ;;  %v3186_v26 = vperm.slane %v3180_v37, 4  ;;  %v3212_v6 = vperm.slane %v3210_v55, 0  ;;  %v7503_v37 = vld [vmem:[%s8267_s1 + $0x53] ss:$8 sm:$0xf] }
 0x31c   : > { %v3192_v18 = vmul.f32 %v3182_v15, %v11871_v58  ;;  %v3193_v29 = vmul.f32 %v3183_v33, %v11872_v48  ;;  %v3194_v41 = vmul.f32 %v3184_v44, %v11873_v7  ;;  %v3213_v39 = vperm.slane %v3210_v55, 1  ;;  %v7504_v15 = vld [vmem:[%s8267_s1 + $0x53] ss:$8 sm:$0x10] }
 0x31d   : > { %v3195_v42 = vmul.f32 %v3185_v4, %v11874_v56  ;;  %v3196_v21 = vmul.f32 %v3186_v26, %v11875_v10  ;;  %v3214_v20 = vperm.slane %v3210_v55, 2  ;;  %v3215_v47 = vperm.slane %v3210_v55, 3  ;;  %v7505_v33 = vld [vmem:[%s8267_s1 + $0x54] ss:$8 sm:$0xf] }
 0x31e   : > { %v3197_v36 = vadd.f32 %v3192_v18, %v3167_v11  ;;  %v3198_v32 = vadd.f32 %v3193_v29, %v3168_v17  ;;  %v3199_v1 = vadd.f32 %v3194_v41, %v3169_v27  ;;  %v3216_v28 = vperm.slane %v3210_v55, 4  ;;  %v7506_v44 = vld [vmem:[%s8267_s1 + $0x54] ss:$8 sm:$0x10]  ;;  %v11876_v11 = vld [vmem:[#allocation27_spill] sm:$0xff] }
 0x31f   : > { %v3200_v52 = vadd.f32 %v3195_v42, %v3170_v2  ;;  %v3201_v14 = vadd.f32 %v3196_v21, %v3171_v59  ;;  %v3222_v24 = vmul.f32 %v3212_v6, %v9295_v30  ;;  %v3223_v0 = vmul.f32 %v3213_v39, %v9299_v19  ;;  %v7507_v27 = vld [vmem:[%s8267_s1 + $0x55] ss:$8 sm:$0xf] }
 0x320   : > { %v3224_v4 = vmul.f32 %v3214_v20, %v9305_v54  ;;  %v3225_v26 = vmul.f32 %v3215_v47, %v9309_v43  ;;  %v3226_v18 = vmul.f32 %v3216_v28, %v11876_v11  ;;  %v3242_v17 = vperm.slane %v3240_v63, 0  ;;  %v7508_v41 = vld [vmem:[%s8267_s1 + $0x55] ss:$8 sm:$0x10]  ;;  %v11877_v30 = vld [vmem:[#allocation46_spill] sm:$0xff]  ;;  %v11878_v56 = vld [vmem:[#allocation47_spill] sm:$0xff] }
 0x321   : > { %v3227_v55 = vadd.f32 %v3222_v24, %v3197_v36  ;;  %v3228_v2 = vadd.f32 %v3223_v0, %v3198_v32  ;;  %v3243_v59 = vperm.slane %v3240_v63, 1  ;;  %v3244_v29 = vperm.slane %v3240_v63, 2  ;;  %v11879_v54 = vld [vmem:[#allocation48_spill] sm:$0xff]  ;;  %v11880_v43 = vld [vmem:[#allocation49_spill] sm:$0xff]  ;;  %v11881_v32 = vld [vmem:[#allocation50_spill] sm:$0xff] }
 0x322   : > { %v3229_v6 = vadd.f32 %v3224_v4, %v3199_v1  ;;  %v3230_v42 = vadd.f32 %v3225_v26, %v3200_v52  ;;  %v3231_v39 = vadd.f32 %v3226_v18, %v3201_v14  ;;  %v3245_v21 = vperm.slane %v3240_v63, 3 }
 0x323   : > { %v3246_v19 = vperm.slane %v3240_v63, 4  ;;  %v3252_v10 = vmul.f32 %v3242_v17, %v11877_v30  ;;  %v3253_v20 = vmul.f32 %v3243_v59, %v11878_v56  ;;  %v3254_v47 = vmul.f32 %v3244_v29, %v11879_v54  ;;  %v11882_v56 = vld [vmem:[#allocation51_spill] sm:$0xff]  ;;  %v11883_v54 = vld [vmem:[#allocation52_spill] sm:$0xff] }
 0x324   : > { %v3255_v28 = vmul.f32 %v3245_v21, %v11880_v43  ;;  %v3270_v11 = vor.u32 %v7504_v15, %v7503_v37  ;;  %v3300_v7 = vor.u32 %v7506_v44, %v7505_v33  ;;  %v3330_v36 = vor.u32 %v7508_v41, %v7507_v27  ;;  %v11884_v15 = vld [vmem:[#allocation53_spill] sm:$0xff]  ;;  %v11886_v27 = vld [vmem:[#allocation55_spill] sm:$0xff] }
 0x325   : > { %v3256_v24 = vmul.f32 %v3246_v19, %v11881_v32  ;;  %v3257_v0 = vadd.f32 %v3252_v10, %v3227_v55  ;;  %v3258_v48 = vadd.f32 %v3253_v20, %v3228_v2  ;;  %v3259_v1 = vadd.f32 %v3254_v47, %v3229_v6  ;;  %v11885_v10 = vld [vmem:[#allocation54_spill] sm:$0xff]  ;;  %v11887_v47 = vld [vmem:[#allocation60_spill] sm:$0xff] }
 0x326   : > { %v3260_v52 = vadd.f32 %v3255_v28, %v3230_v42  ;;  %v3272_v14 = vperm.slane %v3270_v11, 0  ;;  %v3273_v4 = vperm.slane %v3270_v11, 1  ;;  %v3274_v63 = vperm.slane %v3270_v11, 2 }
 0x327   : > { %v3261_v26 = vadd.f32 %v3256_v24, %v3231_v39  ;;  %v3275_v18 = vperm.slane %v3270_v11, 3  ;;  %v3276_v17 = vperm.slane %v3270_v11, 4  ;;  %v3302_v59 = vperm.slane %v3300_v7, 0  ;;  %v11888_v24 = vld [vmem:[#allocation61_spill] sm:$0xff] }
 0x328   : > { %v3282_v29 = vmul.f32 %v3272_v14, %v11882_v56  ;;  %v3283_v37 = vmul.f32 %v3273_v4, %v11883_v54  ;;  %v3284_v33 = vmul.f32 %v3274_v63, %v11884_v15  ;;  %v3303_v19 = vperm.slane %v3300_v7, 1  ;;  %v7509_v4 = vld [vmem:[%s8267_s1 + $0x56] ss:$8 sm:$0xf] }
 0x329   : > { %v3285_v44 = vmul.f32 %v3275_v18, %v11885_v10  ;;  %v3286_v55 = vmul.f32 %v3276_v17, %v11886_v27  ;;  %v3304_v2 = vperm.slane %v3300_v7, 2  ;;  %v3305_v41 = vperm.slane %v3300_v7, 3  ;;  %v7510_v63 = vld [vmem:[%s8267_s1 + $0x56] ss:$8 sm:$0x10]  ;;  %v11889_v10 = vld [vmem:[#allocation62_spill] sm:$0xff] }
 0x32a   : > { %v3287_v6 = vadd.f32 %v3282_v29, %v3257_v0  ;;  %v3288_v11 = vadd.f32 %v3283_v37, %v3258_v48  ;;  %v3289_v42 = vadd.f32 %v3284_v33, %v3259_v1  ;;  %v3306_v39 = vperm.slane %v3300_v7, 4  ;;  %v7511_v15 = vld [vmem:[%s8267_s1 + $0x57] ss:$8 sm:$0xf] }
 0x32b   : > { %v3290_v21 = vadd.f32 %v3285_v44, %v3260_v52  ;;  %v3291_v20 = vadd.f32 %v3286_v55, %v3261_v26  ;;  %v3312_v28 = vmul.f32 %v3302_v59, %v11887_v47  ;;  %v3313_v14 = vmul.f32 %v3303_v19, %v11888_v24  ;;  %v7512_v18 = vld [vmem:[%s8267_s1 + $0x57] ss:$8 sm:$0x10]  ;;  %v11890_v27 = vld [vmem:[#allocation63_spill] sm:$0xff]  ;;  %v11892_v56 = vld [vmem:[#allocation66_spill] sm:$0xff] }
 0x32c   : > { %v3314_v17 = vmul.f32 %v3304_v2, %v11889_v10  ;;  %v3315_v54 = vmul.f32 %v3305_v41, %v11890_v27  ;;  %v11891_v0 = vld [vmem:[#allocation64_spill] sm:$0xff]  ;;  %v3332_v48 = vperm.slane %v3330_v36, 0  ;;  %v3333_v26 = vperm.slane %v3330_v36, 1  ;;  %v7514_v33 = vld [vmem:[%s8267_s1 + $0x78] ss:$8 sm:$0x10] }
 0x32d   : > { %v3316_v29 = vmul.f32 %v3306_v39, %v11891_v0  ;;  %v7513_v1 = vld [vmem:[%s8267_s1 + $0x78] ss:$8 sm:$0xf]  ;;  %v3317_v7 = vadd.f32 %v3312_v28, %v3287_v6  ;;  %v3318_v52 = vadd.f32 %v3313_v14, %v3288_v11  ;;  %v3334_v37 = vperm.slane %v3330_v36, 2 }
 0x32e   : > { %v3319_v59 = vadd.f32 %v3314_v17, %v3289_v42  ;;  %v3320_v44 = vadd.f32 %v3315_v54, %v3290_v21  ;;  %v3335_v55 = vperm.slane %v3330_v36, 3  ;;  %v3336_v24 = vperm.slane %v3330_v36, 4  ;;  %v11893_v10 = vld [vmem:[#allocation67_spill] sm:$0xff]  ;;  %v11894_v27 = vld [vmem:[#allocation68_spill] sm:$0xff]  ;;  %v11895_v11 = vld [vmem:[#allocation69_spill] sm:$0xff] }
 0x32f   : > { %v3321_v19 = vadd.f32 %v3316_v29, %v3291_v20  ;;  %v3342_v47 = vmul.f32 %v3332_v48, %v9507_v9  ;;  %v3343_v2 = vmul.f32 %v3333_v26, %v11892_v56  ;;  %v3344_v41 = vmul.f32 %v3334_v37, %v11893_v10  ;;  %v11896_v56 = vld [vmem:[#allocation19_spill] sm:$0xff] }
 0x330   : > { %v3345_v39 = vmul.f32 %v3335_v55, %v11894_v27  ;;  %v3360_v0 = vor.u32 %v7510_v63, %v7509_v4  ;;  %v3390_v32 = vor.u32 %v7512_v18, %v7511_v15  ;;  %v3420_v6 = vor.u32 %v7514_v33, %v7513_v1  ;;  %v11898_v18 = vld [vmem:[#allocation59_spill] sm:$0xff] }
 0x331   : > { %v3346_v28 = vmul.f32 %v3336_v24, %v11895_v11  ;;  %v3347_v14 = vadd.f32 %v3342_v47, %v3317_v7  ;;  %v3348_v43 = vadd.f32 %v3343_v2, %v3318_v52  ;;  %v3349_v42 = vadd.f32 %v3344_v41, %v3319_v59  ;;  %v11897_v24 = vld [vmem:[#allocation58_spill] sm:$0xff] }
 0x332   : > { %v3350_v54 = vadd.f32 %v3345_v39, %v3320_v44  ;;  %v3362_v21 = vperm.slane %v3360_v0, 0  ;;  %v3363_v20 = vperm.slane %v3360_v0, 1  ;;  %v3364_v36 = vperm.slane %v3360_v0, 2  ;;  %v11899_v2 = vld [vmem:[#allocation70_spill] sm:$0xff]  ;;  %v11900_v39 = vld [vmem:[#allocation71_spill] sm:$0xff] }
 0x333   : > { %v3351_v17 = vadd.f32 %v3346_v28, %v3321_v19  ;;  %v3365_v29 = vperm.slane %v3360_v0, 3  ;;  %v3366_v48 = vperm.slane %v3360_v0, 4  ;;  %v3392_v26 = vperm.slane %v3390_v32, 0 }
 0x334   : > { %v3372_v37 = vmul.f32 %v3362_v21, %v11896_v56  ;;  %v3373_v4 = vmul.f32 %v3363_v20, %v9455_v35  ;;  %v3374_v15 = vmul.f32 %v3364_v36, %v9459_v25  ;;  %v3393_v47 = vperm.slane %v3390_v32, 1  ;;  %v7515_v21 = vld [vmem:[%s8267_s1 + $0x5] ss:$8 sm:$0xf] }
 0x335   : > { %v3375_v63 = vmul.f32 %v3365_v29, %v11897_v24  ;;  %v3376_v1 = vmul.f32 %v3366_v48, %v11898_v18  ;;  %v3394_v7 = vperm.slane %v3390_v32, 2  ;;  %v3395_v52 = vperm.slane %v3390_v32, 3  ;;  %v7516_v20 = vld [vmem:[%s8267_s1 + $0x5] ss:$8 sm:$0x10]  ;;  %v11901_v48 = vld [vmem:[#allocation72_spill] sm:$0xff] }
 0x336   : > { %v3377_v0 = vadd.f32 %v3372_v37, %v3347_v14  ;;  %v3378_v33 = vadd.f32 %v3373_v4, %v3348_v43  ;;  %v3379_v59 = vadd.f32 %v3374_v15, %v3349_v42  ;;  %v3396_v44 = vperm.slane %v3390_v32, 4  ;;  %v7517_v36 = vld [vmem:[%s8267_s1 + $0x6] ss:$8 sm:$0xf] }
 0x337   : > { %v3380_v19 = vadd.f32 %v3375_v63, %v3350_v54  ;;  %v3381_v55 = vadd.f32 %v3376_v1, %v3351_v17  ;;  %v3402_v41 = vmul.f32 %v3392_v26, %v11899_v2  ;;  %v3403_v28 = vmul.f32 %v3393_v47, %v11900_v39  ;;  %v7518_v29 = vld [vmem:[%s8267_s1 + $0x6] ss:$8 sm:$0x10]  ;;  %v11902_v24 = vld [vmem:[#allocation73_spill] sm:$0xff]  ;;  %v11904_v25 = vld [vmem:[#allocation75_spill] sm:$0xff] }
 0x338   : > { %v3404_v18 = vmul.f32 %v3394_v7, %v11901_v48  ;;  %v3405_v14 = vmul.f32 %v3395_v52, %v11902_v24  ;;  %v11903_v43 = vld [vmem:[#allocation74_spill] sm:$0xff]  ;;  %v3422_v42 = vperm.slane %v3420_v6, 0  ;;  %v3423_v4 = vperm.slane %v3420_v6, 1  ;;  %v11905_v56 = vld [vmem:[#allocation76_spill] sm:$0xff]  ;;  %v11906_v52 = vld [vmem:[#allocation77_spill] sm:$0xff] }
 0x339   : > { %v3406_v37 = vmul.f32 %v3396_v44, %v11903_v43  ;;  %v7519_v32 = vld [vmem:[%s8267_s1 + $0x7] ss:$8 sm:$0xf]  ;;  %v3407_v54 = vadd.f32 %v3402_v41, %v3377_v0  ;;  %v3408_v17 = vadd.f32 %v3403_v28, %v3378_v33  ;;  %v3424_v26 = vperm.slane %v3420_v6, 2 }
 0x33a   : > { %v7520_v15 = vld [vmem:[%s8267_s1 + $0x7] ss:$8 sm:$0x10]  ;;  %v3409_v63 = vadd.f32 %v3404_v18, %v3379_v59  ;;  %v3410_v47 = vadd.f32 %v3405_v14, %v3380_v19  ;;  %v3425_v39 = vperm.slane %v3420_v6, 3  ;;  %v3426_v2 = vperm.slane %v3420_v6, 4  ;;  %v11908_v41 = vld [vmem:[#allocation79_spill] sm:$0xff] }
 0x33b   : > { %v3411_v1 = vadd.f32 %v3406_v37, %v3381_v55  ;;  %v3432_v35 = vmul.f32 %v3422_v42, %v11904_v25  ;;  %v3433_v7 = vmul.f32 %v3423_v4, %v11905_v56  ;;  %v3434_v24 = vmul.f32 %v3424_v26, %v11906_v52  ;;  %v11907_v44 = vld [vmem:[#allocation78_spill] sm:$0xff]  ;;  %v7522_v26 = vld [vmem:[%s8267_s1 + $0x28] ss:$8 sm:$0x10] }
 0x33c   : > { %v3435_v43 = vmul.f32 %v3425_v39, %v11907_v44  ;;  %v3455_v48 = vor.u32 %v7516_v20, %v7515_v21  ;;  %v3485_v0 = vor.u32 %v7518_v29, %v7517_v36  ;;  %v3515_v33 = vor.u32 %v7520_v15, %v7519_v32  ;;  %v7521_v4 = vld [vmem:[%s8267_s1 + $0x28] ss:$8 sm:$0xf]  ;;  %v7523_v15 = vld [vmem:[%s8267_s1 + $0x29] ss:$8 sm:$0xf] }
 0x33d   : > { %v3436_v28 = vmul.f32 %v3426_v2, %v11908_v41  ;;  %v3437_v11 = vadd.f32 %v3432_v35, %v3407_v54  ;;  %v3438_v18 = vadd.f32 %v3433_v7, %v3408_v17  ;;  %v3439_v59 = vadd.f32 %v3434_v24, %v3409_v63 }
 0x33e   : > { %v3440_v19 = vadd.f32 %v3435_v43, %v3410_v47  ;;  %v3457_v55 = vperm.slane %v3455_v48, 0  ;;  %v3458_v6 = vperm.slane %v3455_v48, 1  ;;  %v3459_v14 = vperm.slane %v3455_v48, 2 }
 0x33f   : > { %v3441_v37 = vadd.f32 %v3436_v28, %v3411_v1  ;;  %3442 = vst [vmem:[%s10314_s25] sm:$0xff] %v3437_v11  ;;  %v3460_v39 = vperm.slane %v3455_v48, 3  ;;  %v3461_v21 = vperm.slane %v3455_v48, 4  ;;  %v3487_v20 = vperm.slane %v3485_v0, 0  ;;  %v7524_v28 = vld [vmem:[%s8267_s1 + $0x29] ss:$8 sm:$0x10] }
 0x340   : > { %3443 = vst [vmem:[%s10314_s25 + $0x8] sm:$0xff] %v3438_v18  ;;  %v3467_v35 = vmul.f32 %v3457_v55, %v9182_v8  ;;  %v3468_v24 = vmul.f32 %v3458_v6, %v9187_v62  ;;  %v3469_v2 = vmul.f32 %v3459_v14, %v9192_v3  ;;  %v3488_v36 = vperm.slane %v3485_v0, 1  ;;  %v7525_v55 = vld [vmem:[%s8267_s1 + $0x2a] ss:$8 sm:$0xf] }
 0x341   : > { %3444 = vst [vmem:[%s10314_s25 + $0x10] sm:$0xff] %v3439_v59  ;;  %v3470_v29 = vmul.f32 %v3460_v39, %v9198_v34  ;;  %v3471_v11 = vmul.f32 %v3461_v21, %v9203_v53  ;;  %v3489_v48 = vperm.slane %v3485_v0, 2  ;;  %v3490_v43 = vperm.slane %v3485_v0, 3 }
 0x342   : > { %3445 = vst [vmem:[%s10314_s25 + $0x18] sm:$0xff] %v3440_v19  ;;  %v3491_v42 = vperm.slane %v3485_v0, 4  ;;  %v3497_v32 = vmul.f32 %v3487_v20, %v9210_v51  ;;  %v3498_v54 = vmul.f32 %v3488_v36, %v9215_v5  ;;  %v3517_v17 = vperm.slane %v3515_v33, 0  ;;  %v7526_v20 = vld [vmem:[%s8267_s1 + $0x2a] ss:$8 sm:$0x10] }
 0x343   : > { %3446 = vst [vmem:[%s10314_s25 + $0x20] sm:$0xff] %v3441_v37  ;;  %v3499_v63 = vmul.f32 %v3489_v48, %v9220_v45  ;;  %v3500_v47 = vmul.f32 %v3490_v43, %v9226_v23  ;;  %v3518_v1 = vperm.slane %v3515_v33, 1  ;;  %v3519_v7 = vperm.slane %v3515_v33, 2 }
 0x344   : > { %v3501_v0 = vmul.f32 %v3491_v42, %v9231_v22  ;;  %v3502_v18 = vadd.f32 %v3497_v32, %v3467_v35  ;;  %v3503_v59 = vadd.f32 %v3498_v54, %v3468_v24  ;;  %v3520_v19 = vperm.slane %v3515_v33, 3 }
 0x345   : > { %v3504_v6 = vadd.f32 %v3499_v63, %v3469_v2  ;;  %v3505_v14 = vadd.f32 %v3500_v47, %v3470_v29  ;;  %v3521_v39 = vperm.slane %v3515_v33, 4  ;;  %v3527_v21 = vmul.f32 %v3517_v17, %v9154_v12 }
 0x346   : > { %v3506_v37 = vadd.f32 %v3501_v0, %v3471_v11  ;;  %v3528_v36 = vmul.f32 %v3518_v1, %v9158_v13  ;;  %v3529_v48 = vmul.f32 %v3519_v7, %v9162_v61  ;;  %v3530_v43 = vmul.f32 %v3520_v19, %v9166_v60 }
 0x347   : > { %v3531_v23 = vmul.f32 %v3521_v39, %v9170_v50  ;;  %v3532_v42 = vadd.f32 %v3527_v21, %v3502_v18  ;;  %v3545_v35 = vor.u32 %v7522_v26, %v7521_v4  ;;  %v3575_v24 = vor.u32 %v7524_v28, %v7523_v15  ;;  %v11909_v15 = vld [vmem:[#allocation22_spill] sm:$0xff]  ;;  %v11910_v21 = vld [vmem:[#allocation23_spill] sm:$0xff] }
 0x348   : > { %v3533_v32 = vadd.f32 %v3528_v36, %v3503_v59  ;;  %v3534_v54 = vadd.f32 %v3529_v48, %v3504_v6  ;;  %v3535_v2 = vadd.f32 %v3530_v43, %v3505_v14  ;;  %v3604_v29 = vor.u32 %v7526_v20, %v7525_v55  ;;  %v7528_v36 = vld [vmem:[%s8267_s1 + $0x2b] ss:$8 sm:$0x10] }
 0x349   : > { %v3536_v33 = vadd.f32 %v3531_v23, %v3506_v37  ;;  %v3547_v63 = vperm.slane %v3545_v35, 0  ;;  %v3548_v17 = vperm.slane %v3545_v35, 1  ;;  %v3549_v47 = vperm.slane %v3545_v35, 2  ;;  %v7527_v37 = vld [vmem:[%s8267_s1 + $0x2b] ss:$8 sm:$0xf] }
 0x34a   : > { %v3550_v11 = vperm.slane %v3545_v35, 3  ;;  %v3551_v1 = vperm.slane %v3545_v35, 4  ;;  %v3577_v7 = vperm.slane %v3575_v24, 0  ;;  %v3578_v0 = vperm.slane %v3575_v24, 1  ;;  %v11911_v35 = vld [vmem:[#allocation32_spill] sm:$0xff] }
 0x34b   : > { %v3557_v19 = vmul.f32 %v3547_v63, %v9240_v57  ;;  %v3558_v18 = vmul.f32 %v3548_v17, %v9246_v46  ;;  %v3559_v4 = vmul.f32 %v3549_v47, %v9251_v31  ;;  %v3579_v26 = vperm.slane %v3575_v24, 2  ;;  %v11912_v17 = vld [vmem:[#allocation24_spill] sm:$0xff]  ;;  %v7532_v31 = vld [vmem:[%s8267_s1 + $0x2d] ss:$8 sm:$0x10] }
 0x34c   : > { %v3560_v23 = vmul.f32 %v3550_v11, %v11859_v40  ;;  %v3561_v28 = vmul.f32 %v3551_v1, %v11909_v15  ;;  %v3580_v59 = vperm.slane %v3575_v24, 3  ;;  %v3581_v55 = vperm.slane %v3575_v24, 4  ;;  %v7529_v11 = vld [vmem:[%s8267_s1 + $0x2c] ss:$8 sm:$0xf] }
 0x34d   : > { %v3562_v6 = vadd.f32 %v3557_v19, %v3532_v42  ;;  %v3563_v14 = vadd.f32 %v3558_v18, %v3533_v32  ;;  %v3564_v39 = vadd.f32 %v3559_v4, %v3534_v54  ;;  %v3587_v20 = vmul.f32 %v3577_v7, %v11910_v21  ;;  %v7530_v40 = vld [vmem:[%s8267_s1 + $0x2c] ss:$8 sm:$0x10]  ;;  %v11913_v1 = vld [vmem:[#allocation26_spill] sm:$0xff]  ;;  %v11914_v24 = vld [vmem:[#allocation28_spill] sm:$0xff] }
 0x34e   : > { %v3565_v48 = vadd.f32 %v3560_v23, %v3535_v2  ;;  %v3566_v43 = vadd.f32 %v3561_v28, %v3536_v33  ;;  %v3588_v63 = vmul.f32 %v3578_v0, %v11911_v35  ;;  %v3589_v47 = vmul.f32 %v3579_v26, %v11912_v17  ;;  %v7531_v54 = vld [vmem:[%s8267_s1 + $0x2d] ss:$8 sm:$0xf] }
 0x34f   : > { %v3590_v15 = vmul.f32 %v3580_v59, %v11913_v1  ;;  %v3591_v42 = vmul.f32 %v3581_v55, %v11914_v24  ;;  %v3592_v19 = vadd.f32 %v3587_v20, %v3562_v6  ;;  %v3606_v32 = vperm.slane %v3604_v29, 0  ;;  %v11915_v28 = vld [vmem:[#allocation34_spill] sm:$0xff] }
 0x350   : > { %v3593_v18 = vadd.f32 %v3588_v63, %v3563_v14  ;;  %v3594_v7 = vadd.f32 %v3589_v47, %v3564_v39  ;;  %v3607_v4 = vperm.slane %v3604_v29, 1  ;;  %v3608_v21 = vperm.slane %v3604_v29, 2  ;;  %v11916_v35 = vld [vmem:[#allocation18_spill] sm:$0xff] }
 0x351   : > { %v3595_v2 = vadd.f32 %v3590_v15, %v3565_v48  ;;  %v3596_v33 = vadd.f32 %v3591_v42, %v3566_v43  ;;  %v3609_v23 = vperm.slane %v3604_v29, 3  ;;  %v3610_v0 = vperm.slane %v3604_v29, 4 }
 0x352   : > { %v3616_v26 = vmul.f32 %v3606_v32, %v11866_v38  ;;  %v3617_v17 = vmul.f32 %v3607_v4, %v11915_v28  ;;  %v3618_v59 = vmul.f32 %v3608_v21, %v11916_v35  ;;  %v3633_v1 = vor.u32 %v7528_v36, %v7527_v37  ;;  %v11917_v36 = vld [vmem:[#allocation42_spill] sm:$0xff] }
 0x353   : > { %v3619_v55 = vmul.f32 %v3609_v23, %v11869_v49  ;;  %v3620_v6 = vmul.f32 %v3610_v0, %v11870_v16  ;;  %v3662_v14 = vor.u32 %v7530_v40, %v7529_v11  ;;  %v3691_v39 = vor.u32 %v7532_v31, %v7531_v54  ;;  %v11918_v0 = vld [vmem:[#allocation43_spill] sm:$0xff]  ;;  %v11919_v11 = vld [vmem:[#allocation44_spill] sm:$0xff]  ;;  %v11920_v54 = vld [vmem:[#allocation45_spill] sm:$0xff] }
 0x354   : > { %v3621_v20 = vadd.f32 %v3616_v26, %v3592_v19  ;;  %v3622_v63 = vadd.f32 %v3617_v17, %v3593_v18  ;;  %v3623_v47 = vadd.f32 %v3618_v59, %v3594_v7  ;;  %v3635_v15 = vperm.slane %v3633_v1, 0  ;;  %v11921_v59 = vld [vmem:[#allocation33_spill] sm:$0xff]  ;;  %v7538_v49 = vld [vmem:[%s8267_s1 + $0x50] ss:$8 sm:$0x10] }
 0x355   : > { %v3624_v48 = vadd.f32 %v3619_v55, %v3595_v2  ;;  %v3625_v43 = vadd.f32 %v3620_v6, %v3596_v33  ;;  %v3636_v29 = vperm.slane %v3633_v1, 1  ;;  %v3637_v42 = vperm.slane %v3633_v1, 2  ;;  %v7533_v6 = vld [vmem:[%s8267_s1 + $0x2e] ss:$8 sm:$0xf] }
 0x356   : > { %v3638_v32 = vperm.slane %v3633_v1, 3  ;;  %v3639_v4 = vperm.slane %v3633_v1, 4  ;;  %v3645_v21 = vmul.f32 %v3635_v15, %v11871_v58  ;;  %v3664_v37 = vperm.slane %v3662_v14, 0  ;;  %v7534_v15 = vld [vmem:[%s8267_s1 + $0x2e] ss:$8 sm:$0x10] }
 0x357   : > { %v3646_v23 = vmul.f32 %v3636_v29, %v11917_v36  ;;  %v3647_v40 = vmul.f32 %v3637_v42, %v11918_v0  ;;  %v3665_v31 = vperm.slane %v3662_v14, 1  ;;  %v3666_v17 = vperm.slane %v3662_v14, 2  ;;  %v11922_v0 = vld [vmem:[#allocation35_spill] sm:$0xff]  ;;  %v11923_v58 = vld [vmem:[#allocation36_spill] sm:$0xff] }
 0x358   : > { %v3648_v19 = vmul.f32 %v3638_v32, %v11919_v11  ;;  %v3649_v18 = vmul.f32 %v3639_v4, %v11920_v54  ;;  %v3650_v7 = vadd.f32 %v3645_v21, %v3621_v20  ;;  %v3667_v2 = vperm.slane %v3662_v14, 3  ;;  %v7535_v32 = vld [vmem:[%s8267_s1 + $0x2f] ss:$8 sm:$0xf] }
 0x359   : > { %v3651_v33 = vadd.f32 %v3646_v23, %v3622_v63  ;;  %v3652_v1 = vadd.f32 %v3647_v40, %v3623_v47  ;;  %v3668_v26 = vperm.slane %v3662_v14, 4  ;;  %v3674_v55 = vmul.f32 %v3664_v37, %v11921_v59  ;;  %v7536_v11 = vld [vmem:[%s8267_s1 + $0x2f] ss:$8 sm:$0x10]  ;;  %v11924_v4 = vld [vmem:[#allocation25_spill] sm:$0xff] }
 0x35a   : > { %v3653_v29 = vadd.f32 %v3648_v19, %v3624_v48  ;;  %v3654_v42 = vadd.f32 %v3649_v18, %v3625_v43  ;;  %v3675_v36 = vmul.f32 %v3665_v31, %v11922_v0  ;;  %v3676_v16 = vmul.f32 %v3666_v17, %v11923_v58  ;;  %v11925_v21 = vld [vmem:[#allocation27_spill] sm:$0xff]  ;;  %v11927_v0 = vld [vmem:[#allocation48_spill] sm:$0xff] }
 0x35b   : > { %v3677_v20 = vmul.f32 %v3667_v2, %v11924_v4  ;;  %v3678_v63 = vmul.f32 %v3668_v26, %v11925_v21  ;;  %v3679_v23 = vadd.f32 %v3674_v55, %v3650_v7  ;;  %v3693_v47 = vperm.slane %v3691_v39, 0  ;;  %v7537_v14 = vld [vmem:[%s8267_s1 + $0x50] ss:$8 sm:$0xf] }
 0x35c   : > { %v3680_v40 = vadd.f32 %v3675_v36, %v3651_v33  ;;  %v3681_v37 = vadd.f32 %v3676_v16, %v3652_v1  ;;  %v3694_v59 = vperm.slane %v3691_v39, 1  ;;  %v3695_v54 = vperm.slane %v3691_v39, 2  ;;  %v11926_v18 = vld [vmem:[#allocation47_spill] sm:$0xff]  ;;  %v11928_v26 = vld [vmem:[#allocation49_spill] sm:$0xff]  ;;  %v11929_v55 = vld [vmem:[#allocation50_spill] sm:$0xff] }
 0x35d   : > { %v3682_v48 = vadd.f32 %v3677_v20, %v3653_v29  ;;  %v3683_v43 = vadd.f32 %v3678_v63, %v3654_v42  ;;  %v3696_v19 = vperm.slane %v3691_v39, 3  ;;  %v3697_v31 = vperm.slane %v3691_v39, 4 }
 0x35e   : > { %v3703_v17 = vmul.f32 %v3693_v47, %v11877_v30  ;;  %v3704_v58 = vmul.f32 %v3694_v59, %v11926_v18  ;;  %v3705_v2 = vmul.f32 %v3695_v54, %v11927_v0  ;;  %v3720_v4 = vor.u32 %v7534_v15, %v7533_v6  ;;  %v11930_v18 = vld [vmem:[#allocation51_spill] sm:$0xff]  ;;  %v11931_v15 = vld [vmem:[#allocation52_spill] sm:$0xff] }
 0x35f   : > { %v3706_v7 = vmul.f32 %v3696_v19, %v11928_v26  ;;  %v3707_v21 = vmul.f32 %v3697_v31, %v11929_v55  ;;  %v3749_v36 = vor.u32 %v7536_v11, %v7535_v32  ;;  %v3778_v16 = vor.u32 %v7538_v49, %v7537_v14  ;;  %v11932_v31 = vld [vmem:[#allocation53_spill] sm:$0xff]  ;;  %v11933_v32 = vld [vmem:[#allocation54_spill] sm:$0xff]  ;;  %v7544_v26 = vld [vmem:[%s8267_s1 + $0x53] ss:$8 sm:$0x10] }
 0x360   : > { %v3708_v33 = vadd.f32 %v3703_v17, %v3679_v23  ;;  %v3709_v1 = vadd.f32 %v3704_v58, %v3680_v40  ;;  %v3710_v35 = vadd.f32 %v3705_v2, %v3681_v37  ;;  %v3722_v29 = vperm.slane %v3720_v4, 0  ;;  %v11935_v17 = vld [vmem:[#allocation60_spill] sm:$0xff] }
 0x361   : > { %v3711_v42 = vadd.f32 %v3706_v7, %v3682_v48  ;;  %v3712_v20 = vadd.f32 %v3707_v21, %v3683_v43  ;;  %v3723_v39 = vperm.slane %v3720_v4, 1  ;;  %v3724_v63 = vperm.slane %v3720_v4, 2  ;;  %v11934_v21 = vld [vmem:[#allocation55_spill] sm:$0xff] }
 0x362   : > { %v3725_v47 = vperm.slane %v3720_v4, 3  ;;  %v3726_v59 = vperm.slane %v3720_v4, 4  ;;  %v3732_v54 = vmul.f32 %v3722_v29, %v11930_v18  ;;  %v3751_v6 = vperm.slane %v3749_v36, 0  ;;  %v7539_v7 = vld [vmem:[%s8267_s1 + $0x51] ss:$8 sm:$0xf] }
 0x363   : > { %v3733_v19 = vmul.f32 %v3723_v39, %v11931_v15  ;;  %v3734_v11 = vmul.f32 %v3724_v63, %v11932_v31  ;;  %v3752_v49 = vperm.slane %v3749_v36, 1  ;;  %v3753_v58 = vperm.slane %v3749_v36, 2  ;;  %v7540_v29 = vld [vmem:[%s8267_s1 + $0x51] ss:$8 sm:$0x10]  ;;  %v11936_v31 = vld [vmem:[#allocation61_spill] sm:$0xff] }
 0x364   : > { %v3735_v23 = vmul.f32 %v3725_v47, %v11933_v32  ;;  %v3736_v14 = vmul.f32 %v3726_v59, %v11934_v21  ;;  %v3737_v40 = vadd.f32 %v3732_v54, %v3708_v33  ;;  %v3754_v37 = vperm.slane %v3749_v36, 3  ;;  %v11937_v18 = vld [vmem:[#allocation62_spill] sm:$0xff]  ;;  %v7542_v32 = vld [vmem:[%s8267_s1 + $0x52] ss:$8 sm:$0x10]  ;;  %v11938_v59 = vld [vmem:[#allocation63_spill] sm:$0xff] }
 0x365   : > { %v3738_v48 = vadd.f32 %v3733_v19, %v3709_v1  ;;  %v3739_v4 = vadd.f32 %v3734_v11, %v3710_v35  ;;  %v3755_v43 = vperm.slane %v3749_v36, 4  ;;  %v3761_v2 = vmul.f32 %v3751_v6, %v11935_v17  ;;  %v7541_v47 = vld [vmem:[%s8267_s1 + $0x52] ss:$8 sm:$0xf] }
 0x366   : > { %v3740_v39 = vadd.f32 %v3735_v23, %v3711_v42  ;;  %v3741_v63 = vadd.f32 %v3736_v14, %v3712_v20  ;;  %v3762_v15 = vmul.f32 %v3752_v49, %v11936_v31  ;;  %v3763_v55 = vmul.f32 %v3753_v58, %v11937_v18  ;;  %v11939_v54 = vld [vmem:[#allocation64_spill] sm:$0xff]  ;;  %v11940_v14 = vld [vmem:[#allocation66_spill] sm:$0xff] }
 0x367   : > { %v3764_v33 = vmul.f32 %v3754_v37, %v11938_v59  ;;  %v3765_v1 = vmul.f32 %v3755_v43, %v11939_v54  ;;  %v3766_v19 = vadd.f32 %v3761_v2, %v3737_v40  ;;  %v3780_v35 = vperm.slane %v3778_v16, 0  ;;  %v7543_v36 = vld [vmem:[%s8267_s1 + $0x53] ss:$8 sm:$0xf] }
 0x368   : > { %v3767_v11 = vadd.f32 %v3762_v15, %v3738_v48  ;;  %v3768_v6 = vadd.f32 %v3763_v55, %v3739_v4  ;;  %v3781_v17 = vperm.slane %v3778_v16, 1  ;;  %v3782_v21 = vperm.slane %v3778_v16, 2  ;;  %v11941_v43 = vld [vmem:[#allocation69_spill] sm:$0xff] }
 0x369   : > { %v3769_v42 = vadd.f32 %v3764_v33, %v3740_v39  ;;  %v3770_v20 = vadd.f32 %v3765_v1, %v3741_v63  ;;  %v3783_v23 = vperm.slane %v3778_v16, 3  ;;  %v3784_v49 = vperm.slane %v3778_v16, 4 }
 0x36a   : > { %v3790_v58 = vmul.f32 %v3780_v35, %v9507_v9  ;;  %v3791_v18 = vmul.f32 %v3781_v17, %v11940_v14  ;;  %v3792_v37 = vmul.f32 %v3782_v21, %v11893_v10  ;;  %v3807_v59 = vor.u32 %v7540_v29, %v7539_v7  ;;  %v11942_v14 = vld [vmem:[#allocation19_spill] sm:$0xff]  ;;  %v11943_v29 = vld [vmem:[#allocation56_spill] sm:$0xff] }
 0x36b   : > { %v3793_v40 = vmul.f32 %v3783_v23, %v11894_v27  ;;  %v3794_v2 = vmul.f32 %v3784_v49, %v11941_v43  ;;  %v3836_v15 = vor.u32 %v7542_v32, %v7541_v47  ;;  %v3865_v55 = vor.u32 %v7544_v26, %v7543_v36  ;;  %v11944_v49 = vld [vmem:[#allocation57_spill] sm:$0xff]  ;;  %v11945_v47 = vld [vmem:[#allocation58_spill] sm:$0xff]  ;;  %v11946_v36 = vld [vmem:[#allocation59_spill] sm:$0xff] }
 0x36c   : > { %v3795_v48 = vadd.f32 %v3790_v58, %v3766_v19  ;;  %v3796_v4 = vadd.f32 %v3791_v18, %v3767_v11  ;;  %v3797_v54 = vadd.f32 %v3792_v37, %v3768_v6  ;;  %v3809_v39 = vperm.slane %v3807_v59, 0  ;;  %v11947_v37 = vld [vmem:[#allocation70_spill] sm:$0xff]  ;;  %v7550_v27 = vld [vmem:[%s8267_s1 + $0x56] ss:$8 sm:$0x10] }
 0x36d   : > { %v3798_v63 = vadd.f32 %v3793_v40, %v3769_v42  ;;  %v3799_v33 = vadd.f32 %v3794_v2, %v3770_v20  ;;  %v3810_v16 = vperm.slane %v3807_v59, 1  ;;  %v3811_v1 = vperm.slane %v3807_v59, 2  ;;  %v7545_v2 = vld [vmem:[%s8267_s1 + $0x54] ss:$8 sm:$0xf] }
 0x36e   : > { %v3812_v35 = vperm.slane %v3807_v59, 3  ;;  %v3813_v17 = vperm.slane %v3807_v59, 4  ;;  %v3819_v21 = vmul.f32 %v3809_v39, %v11942_v14  ;;  %v3838_v7 = vperm.slane %v3836_v15, 0  ;;  %v7546_v39 = vld [vmem:[%s8267_s1 + $0x54] ss:$8 sm:$0x10] }
 0x36f   : > { %v3820_v23 = vmul.f32 %v3810_v16, %v11943_v29  ;;  %v3821_v32 = vmul.f32 %v3811_v1, %v11944_v49  ;;  %v3839_v26 = vperm.slane %v3836_v15, 1  ;;  %v3840_v18 = vperm.slane %v3836_v15, 2  ;;  %v11948_v49 = vld [vmem:[#allocation71_spill] sm:$0xff]  ;;  %v11949_v14 = vld [vmem:[#allocation72_spill] sm:$0xff] }
 0x370   : > { %v3822_v19 = vmul.f32 %v3812_v35, %v11945_v47  ;;  %v3823_v11 = vmul.f32 %v3813_v17, %v11946_v36  ;;  %v3824_v6 = vadd.f32 %v3819_v21, %v3795_v48  ;;  %v3841_v42 = vperm.slane %v3836_v15, 3  ;;  %v7547_v35 = vld [vmem:[%s8267_s1 + $0x55] ss:$8 sm:$0xf] }
 0x371   : > { %v3825_v20 = vadd.f32 %v3820_v23, %v3796_v4  ;;  %v3826_v59 = vadd.f32 %v3821_v32, %v3797_v54  ;;  %v3842_v58 = vperm.slane %v3836_v15, 4  ;;  %v3848_v40 = vmul.f32 %v3838_v7, %v11947_v37  ;;  %v7548_v47 = vld [vmem:[%s8267_s1 + $0x55] ss:$8 sm:$0x10]  ;;  %v11950_v17 = vld [vmem:[#allocation73_spill] sm:$0xff]  ;;  %v11951_v21 = vld [vmem:[#allocation74_spill] sm:$0xff] }
 0x372   : > { %v3827_v16 = vadd.f32 %v3822_v19, %v3798_v63  ;;  %v3828_v1 = vadd.f32 %v3823_v11, %v3799_v33  ;;  %v3849_v29 = vmul.f32 %v3839_v26, %v11948_v49  ;;  %v3850_v43 = vmul.f32 %v3840_v18, %v11949_v14  ;;  %v7549_v15 = vld [vmem:[%s8267_s1 + $0x56] ss:$8 sm:$0xf] }
 0x373   : > { %v3851_v48 = vmul.f32 %v3841_v42, %v11950_v17  ;;  %v3852_v4 = vmul.f32 %v3842_v58, %v11951_v21  ;;  %v3853_v23 = vadd.f32 %v3848_v40, %v3824_v6  ;;  %v3867_v54 = vperm.slane %v3865_v55, 0 }
 0x374   : > { %v3854_v32 = vadd.f32 %v3849_v29, %v3825_v20  ;;  %v3855_v7 = vadd.f32 %v3850_v43, %v3826_v59  ;;  %v3868_v37 = vperm.slane %v3865_v55, 1  ;;  %v3869_v36 = vperm.slane %v3865_v55, 2 }
 0x375   : > { %v3856_v63 = vadd.f32 %v3851_v48, %v3827_v16  ;;  %v3857_v33 = vadd.f32 %v3852_v4, %v3828_v1  ;;  %v3870_v19 = vperm.slane %v3865_v55, 3  ;;  %v3871_v26 = vperm.slane %v3865_v55, 4 }
 0x376   : > { %v3877_v18 = vmul.f32 %v3867_v54, %v11904_v25  ;;  %v3878_v11 = vmul.f32 %v3868_v37, %v11905_v56  ;;  %v3879_v42 = vmul.f32 %v3869_v36, %v11906_v52  ;;  %v3894_v17 = vor.u32 %v7546_v39, %v7545_v2  ;;  %v11952_v56 = vld [vmem:[#allocation84_spill] sm:$0xff]  ;;  %v11953_v39 = vld [vmem:[#allocation85_spill] sm:$0xff] }
 0x377   : > { %v3880_v6 = vmul.f32 %v3870_v19, %v11907_v44  ;;  %v3881_v58 = vmul.f32 %v3871_v26, %v11908_v41  ;;  %v3923_v29 = vor.u32 %v7548_v47, %v7547_v35  ;;  %v3952_v43 = vor.u32 %v7550_v27, %v7549_v15  ;;  %v11954_v26 = vld [vmem:[#allocation86_spill] sm:$0xff]  ;;  %v11964_v52 = vld [vmem:[#allocation81_spill] sm:$0xff] }
 0x378   : > { %v3882_v20 = vadd.f32 %v3877_v18, %v3853_v23  ;;  %v3883_v59 = vadd.f32 %v3878_v11, %v3854_v32  ;;  %v3884_v40 = vadd.f32 %v3879_v42, %v3855_v7  ;;  %v3896_v16 = vperm.slane %v3894_v17, 0  ;;  %v11955_v23 = vld [vmem:[#allocation87_spill] sm:$0xff]  ;;  %v11956_v32 = vld [vmem:[#allocation88_spill] sm:$0xff]  ;;  %v11957_v42 = vld [vmem:[#allocation89_spill] sm:$0xff] }
 0x379   : > { %v3885_v1 = vadd.f32 %v3880_v6, %v3856_v63  ;;  %v3886_v48 = vadd.f32 %v3881_v58, %v3857_v33  ;;  %v3897_v55 = vperm.slane %v3894_v17, 1  ;;  %v3898_v4 = vperm.slane %v3894_v17, 2  ;;  %v7551_v58 = vld [vmem:[%s8267_s1 + $0x57] ss:$8 sm:$0xf] }
 0x37a   : > { %v3899_v54 = vperm.slane %v3894_v17, 3  ;;  %v3900_v37 = vperm.slane %v3894_v17, 4  ;;  %v3906_v36 = vmul.f32 %v3896_v16, %v11952_v56  ;;  %v3925_v2 = vperm.slane %v3923_v29, 0  ;;  %v7552_v16 = vld [vmem:[%s8267_s1 + $0x57] ss:$8 sm:$0x10] }
 0x37b   : > { %v3907_v19 = vmul.f32 %v3897_v55, %v11953_v39  ;;  %v3908_v47 = vmul.f32 %v3898_v4, %v11954_v26  ;;  %v3926_v27 = vperm.slane %v3923_v29, 1  ;;  %v3927_v35 = vperm.slane %v3923_v29, 2  ;;  %v11958_v26 = vld [vmem:[#allocation90_spill] sm:$0xff]  ;;  %v11959_v56 = vld [vmem:[#allocation91_spill] sm:$0xff] }
 0x37c   : > { %v3909_v15 = vmul.f32 %v3899_v54, %v11955_v23  ;;  %v3910_v7 = vmul.f32 %v3900_v37, %v11956_v32  ;;  %v3911_v63 = vadd.f32 %v3906_v36, %v3882_v20  ;;  %v3928_v33 = vperm.slane %v3923_v29, 3  ;;  %v7553_v54 = vld [vmem:[%s8267_s1 + $0x78] ss:$8 sm:$0xf] }
 0x37d   : > { %v3912_v18 = vadd.f32 %v3907_v19, %v3883_v59  ;;  %v3913_v17 = vadd.f32 %v3908_v47, %v3884_v40  ;;  %v3929_v11 = vperm.slane %v3923_v29, 4  ;;  %v3935_v6 = vmul.f32 %v3925_v2, %v11957_v42  ;;  %v7554_v23 = vld [vmem:[%s8267_s1 + $0x78] ss:$8 sm:$0x10]  ;;  %v11960_v37 = vld [vmem:[#allocation92_spill] sm:$0xff] }
 0x37e   : > { %v3914_v55 = vadd.f32 %v3909_v15, %v3885_v1  ;;  %v3915_v4 = vadd.f32 %v3910_v7, %v3886_v48  ;;  %v3936_v39 = vmul.f32 %v3926_v27, %v11958_v26  ;;  %v3937_v41 = vmul.f32 %v3927_v35, %v11959_v56  ;;  %v11961_v36 = vld [vmem:[#allocation93_spill] sm:$0xff]  ;;  %v4043_v44 = vld [vmem:[%s8267_s1] ss:$8 sm:$0x10]  ;;  %v11963_v56 = vld [vmem:[#allocation80_spill] sm:$0xff] }
 0x37f   : > { %v3938_v20 = vmul.f32 %v3928_v33, %v11960_v37  ;;  %v3939_v59 = vmul.f32 %v3929_v11, %v11961_v36  ;;  %v3940_v19 = vadd.f32 %v3935_v6, %v3911_v63  ;;  %v3954_v40 = vperm.slane %v3952_v43, 0  ;;  %v4042_v29 = vld [vmem:[%s8267_s1] ss:$8 sm:$0xf] }
 0x380   : > { %v3941_v47 = vadd.f32 %v3936_v39, %v3912_v18  ;;  %v3942_v2 = vadd.f32 %v3937_v41, %v3913_v17  ;;  %v3955_v42 = vperm.slane %v3952_v43, 1  ;;  %v3956_v32 = vperm.slane %v3952_v43, 2  ;;  %v11962_v7 = vld [vmem:[#allocation37_spill] sm:$0xff]  ;;  %v11965_v11 = vld [vmem:[#allocation82_spill] sm:$0xff]  ;;  %v11966_v6 = vld [vmem:[#allocation83_spill] sm:$0xff] }
 0x381   : > { %v3943_v1 = vadd.f32 %v3938_v20, %v3914_v55  ;;  %v3944_v48 = vadd.f32 %v3939_v59, %v3915_v4  ;;  %v3957_v15 = vperm.slane %v3952_v43, 3  ;;  %v3958_v27 = vperm.slane %v3952_v43, 4 }
 0x382   : > { %v3964_v35 = vmul.f32 %v3954_v40, %v11962_v7  ;;  %v3965_v26 = vmul.f32 %v3955_v42, %v11963_v56  ;;  %v3966_v33 = vmul.f32 %v3956_v32, %v11964_v52  ;;  %v3981_v37 = vor.u32 %v7552_v16, %v7551_v58  ;;  %v11967_v56 = vld [vmem:[#allocation94_spill] sm:$0xff]  ;;  %v11968_v16 = vld [vmem:[#allocation95_spill] sm:$0xff] }
 0x383   : > { %v3967_v63 = vmul.f32 %v3957_v15, %v11965_v11  ;;  %v3968_v36 = vmul.f32 %v3958_v27, %v11966_v6  ;;  %v4010_v39 = vor.u32 %v7554_v23, %v7553_v54  ;;  %v4044_v41 = vor.u32 %v4043_v44, %v4042_v29  ;;  %v11969_v27 = vld [vmem:[#allocation96_spill] sm:$0xff]  ;;  %v11970_v54 = vld [vmem:[#allocation97_spill] sm:$0xff] }
 0x384   : > { %v3969_v18 = vadd.f32 %v3964_v35, %v3940_v19  ;;  %v3970_v17 = vadd.f32 %v3965_v26, %v3941_v47  ;;  %v3971_v25 = vadd.f32 %v3966_v33, %v3942_v2  ;;  %v3983_v55 = vperm.slane %v3981_v37, 0  ;;  %v11972_v35 = vld [vmem:[#allocation99_spill] sm:$0xff] }
 0x385   : > { %v3972_v4 = vadd.f32 %v3967_v63, %v3943_v1  ;;  %v3973_v20 = vadd.f32 %v3968_v36, %v3944_v48  ;;  %v3984_v43 = vperm.slane %v3981_v37, 1  ;;  %v3985_v59 = vperm.slane %v3981_v37, 2  ;;  %v11971_v36 = vld [vmem:[#allocation98_spill] sm:$0xff] }
 0x386   : > { %v3986_v40 = vperm.slane %v3981_v37, 3  ;;  %v3987_v42 = vperm.slane %v3981_v37, 4  ;;  %v3993_v32 = vmul.f32 %v3983_v55, %v11967_v56  ;;  %v4012_v58 = vperm.slane %v4010_v39, 0  ;;  %v7555_v63 = vld [vmem:[%s8267_s1 + $0x1] ss:$8 sm:$0xf] }
 0x387   : > { %v3994_v15 = vmul.f32 %v3984_v43, %v11968_v16  ;;  %v3995_v23 = vmul.f32 %v3985_v59, %v11969_v27  ;;  %v4013_v44 = vperm.slane %v4010_v39, 1  ;;  %v4014_v26 = vperm.slane %v4010_v39, 2  ;;  %v7556_v55 = vld [vmem:[%s8267_s1 + $0x1] ss:$8 sm:$0x10]  ;;  %v11973_v27 = vld [vmem:[#allocation100_spill] sm:$0xff] }
 0x388   : > { %v3996_v19 = vmul.f32 %v3986_v40, %v11970_v54  ;;  %v3997_v29 = vmul.f32 %v3987_v42, %v11971_v36  ;;  %v3998_v47 = vadd.f32 %v3993_v32, %v3969_v18  ;;  %v4015_v2 = vperm.slane %v4010_v39, 3  ;;  %v11974_v56 = vld [vmem:[#allocation101_spill] sm:$0xff]  ;;  %v7558_v42 = vld [vmem:[%s8267_s1 + $0x2] ss:$8 sm:$0x10]  ;;  %v11976_v32 = vld [vmem:[#allocation103_spill] sm:$0xff] }
 0x389   : > { %v3999_v1 = vadd.f32 %v3994_v15, %v3970_v17  ;;  %v4000_v37 = vadd.f32 %v3995_v23, %v3971_v25  ;;  %v4016_v48 = vperm.slane %v4010_v39, 4  ;;  %v4022_v33 = vmul.f32 %v4012_v58, %v11972_v35  ;;  %v7557_v54 = vld [vmem:[%s8267_s1 + $0x2] ss:$8 sm:$0xf] }
 0x38a   : > { %v4001_v43 = vadd.f32 %v3996_v19, %v3972_v4  ;;  %v4002_v59 = vadd.f32 %v3997_v29, %v3973_v20  ;;  %v4023_v16 = vmul.f32 %v4013_v44, %v11973_v27  ;;  %v4024_v40 = vmul.f32 %v4014_v26, %v11974_v56  ;;  %v11975_v18 = vld [vmem:[#allocation102_spill] sm:$0xff] }
 0x38b   : > { %v4025_v17 = vmul.f32 %v4015_v2, %v11975_v18  ;;  %v4026_v25 = vmul.f32 %v4016_v48, %v11976_v32  ;;  %v4027_v39 = vadd.f32 %v4022_v33, %v3998_v47  ;;  %v4046_v15 = vperm.slane %v4044_v41, 0  ;;  %v7559_v58 = vld [vmem:[%s8267_s1 + $0x3] ss:$8 sm:$0xf] }
 0x38c   : > { %v4028_v23 = vadd.f32 %v4023_v16, %v3999_v1  ;;  %v4029_v35 = vadd.f32 %v4024_v40, %v4000_v37  ;;  %v4047_v4 = vperm.slane %v4044_v41, 1  ;;  %v4048_v20 = vperm.slane %v4044_v41, 2  ;;  %v7560_v19 = vld [vmem:[%s8267_s1 + $0x3] ss:$8 sm:$0x10] }
 0x38d   : > { %v4030_v44 = vadd.f32 %v4025_v17, %v4001_v43  ;;  %v4031_v29 = vadd.f32 %v4026_v25, %v4002_v59  ;;  %4032 = vst [vmem:[%s10314_s25 + $0x28] sm:$0xff] %v4027_v39  ;;  %v4049_v26 = vperm.slane %v4044_v41, 3  ;;  %v4050_v56 = vperm.slane %v4044_v41, 4 }
 0x38e   : > { %4033 = vst [vmem:[%s10314_s25 + $0x30] sm:$0xff] %v4028_v23  ;;  %v4056_v2 = vmul.f32 %v4046_v15, %v9182_v8  ;;  %v4057_v47 = vmul.f32 %v4047_v4, %v9187_v62  ;;  %v4058_v48 = vmul.f32 %v4048_v20, %v9192_v3  ;;  %v4074_v33 = vor.u32 %v7556_v55, %v7555_v63  ;;  %v7562_v20 = vld [vmem:[%s8267_s1 + $0x4] ss:$8 sm:$0x10] }
 0x38f   : > { %4034 = vst [vmem:[%s10314_s25 + $0x38] sm:$0xff] %v4029_v35  ;;  %v4059_v16 = vmul.f32 %v4049_v26, %v9198_v34  ;;  %v4060_v1 = vmul.f32 %v4050_v56, %v9203_v53  ;;  %v4104_v37 = vor.u32 %v7558_v42, %v7557_v54  ;;  %v4134_v43 = vor.u32 %v7560_v19, %v7559_v58  ;;  %v11977_v56 = vld [vmem:[#allocation16_spill] sm:$0xff] }
 0x390   : > { %4035 = vst [vmem:[%s10314_s25 + $0x40] sm:$0xff] %v4030_v44  ;;  %v4076_v59 = vperm.slane %v4074_v33, 0  ;;  %v4077_v40 = vperm.slane %v4074_v33, 1  ;;  %v4078_v41 = vperm.slane %v4074_v33, 2  ;;  %v4079_v17 = vperm.slane %v4074_v33, 3 }
 0x391   : > { %4036 = vst [vmem:[%s10314_s25 + $0x48] sm:$0xff] %v4031_v29  ;;  %v4080_v25 = vperm.slane %v4074_v33, 4  ;;  %v4106_v8 = vperm.slane %v4104_v37, 0  ;;  %v4107_v62 = vperm.slane %v4104_v37, 1  ;;  %v4108_v3 = vperm.slane %v4104_v37, 2 }
 0x392   : > { %v4086_v35 = vmul.f32 %v4076_v59, %v9210_v51  ;;  %v4087_v34 = vmul.f32 %v4077_v40, %v9215_v5  ;;  %v4088_v53 = vmul.f32 %v4078_v41, %v9220_v45  ;;  %v4089_v54 = vmul.f32 %v4079_v17, %v11977_v56  ;;  %v7561_v51 = vld [vmem:[%s8267_s1 + $0x4] ss:$8 sm:$0xf]  ;;  %v7564_v29 = vld [vmem:[%s8267_s1 + $0x5] ss:$8 sm:$0x10] }
 0x393   : > { %v4090_v63 = vmul.f32 %v4080_v25, %v9231_v22  ;;  %v4109_v55 = vperm.slane %v4104_v37, 3  ;;  %v4110_v42 = vperm.slane %v4104_v37, 4  ;;  %v4116_v39 = vmul.f32 %v4106_v8, %v9154_v12  ;;  %v7563_v22 = vld [vmem:[%s8267_s1 + $0x5] ss:$8 sm:$0xf] }
 0x394   : > { %v4091_v15 = vadd.f32 %v4086_v35, %v4056_v2  ;;  %v4092_v58 = vadd.f32 %v4087_v34, %v4057_v47  ;;  %v4093_v23 = vadd.f32 %v4088_v53, %v4058_v48  ;;  %v4094_v4 = vadd.f32 %v4089_v54, %v4059_v16  ;;  %v7565_v47 = vld [vmem:[%s8267_s1 + $0x6] ss:$8 sm:$0xf] }
 0x395   : > { %v4095_v5 = vadd.f32 %v4090_v63, %v4060_v1  ;;  %v4117_v45 = vmul.f32 %v4107_v62, %v9158_v13  ;;  %v4118_v19 = vmul.f32 %v4108_v3, %v9162_v61  ;;  %v4119_v44 = vmul.f32 %v4109_v55, %v9166_v60  ;;  %v7566_v40 = vld [vmem:[%s8267_s1 + $0x6] ss:$8 sm:$0x10]  ;;  %v11978_v17 = vld [vmem:[#allocation17_spill] sm:$0xff] }
 0x396   : > { %v4120_v26 = vmul.f32 %v4110_v42, %v9170_v50  ;;  %v4121_v12 = vadd.f32 %v4116_v39, %v4091_v15  ;;  %v4136_v2 = vperm.slane %v4134_v43, 0  ;;  %v4137_v33 = vperm.slane %v4134_v43, 1  ;;  %v11979_v62 = vld [vmem:[#allocation21_spill] sm:$0xff]  ;;  %v11980_v35 = vld [vmem:[#allocation22_spill] sm:$0xff] }
 0x397   : > { %v4122_v48 = vadd.f32 %v4117_v45, %v4092_v58  ;;  %v4123_v16 = vadd.f32 %v4118_v19, %v4093_v23  ;;  %v4124_v37 = vadd.f32 %v4119_v44, %v4094_v4  ;;  %v4138_v59 = vperm.slane %v4134_v43, 2  ;;  %v11982_v4 = vld [vmem:[#allocation32_spill] sm:$0xff]  ;;  %v11984_v19 = vld [vmem:[#allocation26_spill] sm:$0xff] }
 0x398   : > { %v4125_v1 = vadd.f32 %v4120_v26, %v4095_v5  ;;  %v4139_v41 = vperm.slane %v4134_v43, 3  ;;  %v4140_v13 = vperm.slane %v4134_v43, 4  ;;  %v4146_v61 = vmul.f32 %v4136_v2, %v9240_v57  ;;  %v11983_v5 = vld [vmem:[#allocation24_spill] sm:$0xff] }
 0x399   : > { %v4147_v60 = vmul.f32 %v4137_v33, %v9246_v46  ;;  %v4148_v25 = vmul.f32 %v4138_v59, %v11978_v17  ;;  %v4164_v8 = vor.u32 %v7562_v20, %v7561_v51  ;;  %v4193_v50 = vor.u32 %v7564_v29, %v7563_v22  ;;  %v11981_v46 = vld [vmem:[#allocation23_spill] sm:$0xff] }
 0x39a   : > { %v4149_v3 = vmul.f32 %v4139_v41, %v11979_v62  ;;  %v4150_v34 = vmul.f32 %v4140_v13, %v11980_v35  ;;  %v4151_v53 = vadd.f32 %v4146_v61, %v4121_v12  ;;  %v4222_v56 = vor.u32 %v7566_v40, %v7565_v47  ;;  %v7567_v59 = vld [vmem:[%s8267_s1 + $0x7] ss:$8 sm:$0xf] }
 0x39b   : > { %v4152_v54 = vadd.f32 %v4147_v60, %v4122_v48  ;;  %v4153_v63 = vadd.f32 %v4148_v25, %v4123_v16  ;;  %v4166_v55 = vperm.slane %v4164_v8, 0  ;;  %v4167_v42 = vperm.slane %v4164_v8, 1  ;;  %v7568_v40 = vld [vmem:[%s8267_s1 + $0x7] ss:$8 sm:$0x10]  ;;  %v11986_v60 = vld [vmem:[#allocation39_spill] sm:$0xff] }
 0x39c   : > { %v4154_v39 = vadd.f32 %v4149_v3, %v4124_v37  ;;  %v4155_v43 = vadd.f32 %v4150_v34, %v4125_v1  ;;  %v4168_v15 = vperm.slane %v4164_v8, 2  ;;  %v4169_v57 = vperm.slane %v4164_v8, 3  ;;  %v11985_v13 = vld [vmem:[#allocation18_spill] sm:$0xff]  ;;  %v7570_v25 = vld [vmem:[%s8267_s1 + $0x28] ss:$8 sm:$0x10] }
 0x39d   : > { %v4170_v58 = vperm.slane %v4164_v8, 4  ;;  %v4176_v23 = vmul.f32 %v4166_v55, %v11981_v46  ;;  %v4177_v51 = vmul.f32 %v4167_v42, %v11982_v4  ;;  %v4195_v20 = vperm.slane %v4193_v50, 0  ;;  %v11987_v8 = vld [vmem:[#allocation40_spill] sm:$0xff]  ;;  %v7572_v42 = vld [vmem:[%s8267_s1 + $0x29] ss:$8 sm:$0x10] }
 0x39e   : > { %v4178_v45 = vmul.f32 %v4168_v15, %v11983_v5  ;;  %v4179_v44 = vmul.f32 %v4169_v57, %v11984_v19  ;;  %v4196_v22 = vperm.slane %v4193_v50, 1  ;;  %v4197_v29 = vperm.slane %v4193_v50, 2  ;;  %v11988_v57 = vld [vmem:[#allocation41_spill] sm:$0xff]  ;;  %v11989_v46 = vld [vmem:[#allocation42_spill] sm:$0xff]  ;;  %v11990_v4 = vld [vmem:[#allocation43_spill] sm:$0xff] }
 0x39f   : > { %v4180_v26 = vmul.f32 %v4170_v58, %v11914_v24  ;;  %v4181_v12 = vadd.f32 %v4176_v23, %v4151_v53  ;;  %v4182_v2 = vadd.f32 %v4177_v51, %v4152_v54  ;;  %v4198_v33 = vperm.slane %v4193_v50, 3  ;;  %v7569_v24 = vld [vmem:[%s8267_s1 + $0x28] ss:$8 sm:$0xf] }
 0x3a0   : > { %v4183_v47 = vadd.f32 %v4178_v45, %v4153_v63  ;;  %v4184_v48 = vadd.f32 %v4179_v44, %v4154_v39  ;;  %v4199_v16 = vperm.slane %v4193_v50, 4  ;;  %v4205_v37 = vmul.f32 %v4195_v20, %v11866_v38  ;;  %v7571_v50 = vld [vmem:[%s8267_s1 + $0x29] ss:$8 sm:$0xf] }
 0x3a1   : > { %v4185_v1 = vadd.f32 %v4180_v26, %v4155_v43  ;;  %v4206_v41 = vmul.f32 %v4196_v22, %v11915_v28  ;;  %v4207_v61 = vmul.f32 %v4197_v29, %v11985_v13  ;;  %v4208_v17 = vmul.f32 %v4198_v33, %v11986_v60  ;;  %v11991_v45 = vld [vmem:[#allocation44_spill] sm:$0xff]  ;;  %v11992_v44 = vld [vmem:[#allocation45_spill] sm:$0xff] }
 0x3a2   : > { %v4209_v62 = vmul.f32 %v4199_v16, %v11987_v8  ;;  %v4210_v3 = vadd.f32 %v4205_v37, %v4181_v12  ;;  %v4224_v35 = vperm.slane %v4222_v56, 0  ;;  %v4225_v34 = vperm.slane %v4222_v56, 1 }
 0x3a3   : > { %v4211_v53 = vadd.f32 %v4206_v41, %v4182_v2  ;;  %v4212_v54 = vadd.f32 %v4207_v61, %v4183_v47  ;;  %v4213_v63 = vadd.f32 %v4208_v17, %v4184_v48  ;;  %v4226_v55 = vperm.slane %v4222_v56, 2  ;;  %v11993_v41 = vld [vmem:[#allocation33_spill] sm:$0xff] }
 0x3a4   : > { %v4214_v39 = vadd.f32 %v4209_v62, %v4185_v1  ;;  %v4227_v43 = vperm.slane %v4222_v56, 3  ;;  %v4228_v15 = vperm.slane %v4222_v56, 4  ;;  %v4234_v58 = vmul.f32 %v4224_v35, %v11988_v57  ;;  %v11996_v62 = vld [vmem:[#allocation25_spill] sm:$0xff] }
 0x3a5   : > { %v4235_v23 = vmul.f32 %v4225_v34, %v11989_v46  ;;  %v4236_v51 = vmul.f32 %v4226_v55, %v11990_v4  ;;  %v4251_v20 = vor.u32 %v7568_v40, %v7567_v59  ;;  %v4280_v5 = vor.u32 %v7570_v25, %v7569_v24  ;;  %v11994_v59 = vld [vmem:[#allocation35_spill] sm:$0xff]  ;;  %v11995_v24 = vld [vmem:[#allocation36_spill] sm:$0xff] }
 0x3a6   : > { %v4237_v19 = vmul.f32 %v4227_v43, %v11991_v45  ;;  %v4238_v22 = vmul.f32 %v4228_v15, %v11992_v44  ;;  %v4239_v29 = vadd.f32 %v4234_v58, %v4210_v3  ;;  %v4309_v26 = vor.u32 %v7572_v42, %v7571_v50  ;;  %v11997_v50 = vld [vmem:[#allocation27_spill] sm:$0xff] }
 0x3a7   : > { %v4240_v12 = vadd.f32 %v4235_v23, %v4211_v53  ;;  %v4241_v2 = vadd.f32 %v4236_v51, %v4212_v54  ;;  %v4253_v33 = vperm.slane %v4251_v20, 0  ;;  %v4254_v47 = vperm.slane %v4251_v20, 1  ;;  %v7573_v58 = vld [vmem:[%s8267_s1 + $0x2a] ss:$8 sm:$0xf] }
 0x3a8   : > { %v4242_v48 = vadd.f32 %v4237_v19, %v4213_v63  ;;  %v4243_v56 = vadd.f32 %v4238_v22, %v4214_v39  ;;  %v4255_v16 = vperm.slane %v4251_v20, 2  ;;  %v4256_v37 = vperm.slane %v4251_v20, 3  ;;  %v7574_v23 = vld [vmem:[%s8267_s1 + $0x2a] ss:$8 sm:$0x10] }
 0x3a9   : > { %v4257_v1 = vperm.slane %v4251_v20, 4  ;;  %v4263_v61 = vmul.f32 %v4253_v33, %v11993_v41  ;;  %v4264_v40 = vmul.f32 %v4254_v47, %v11994_v59  ;;  %v4282_v17 = vperm.slane %v4280_v5, 0  ;;  %v11998_v20 = vld [vmem:[#allocation47_spill] sm:$0xff]  ;;  %v11999_v33 = vld [vmem:[#allocation49_spill] sm:$0xff] }
 0x3aa   : > { %v4265_v25 = vmul.f32 %v4255_v16, %v11995_v24  ;;  %v4266_v3 = vmul.f32 %v4256_v37, %v11996_v62  ;;  %v4283_v35 = vperm.slane %v4280_v5, 1  ;;  %v4284_v34 = vperm.slane %v4280_v5, 2  ;;  %v7575_v16 = vld [vmem:[%s8267_s1 + $0x2b] ss:$8 sm:$0xf] }
 0x3ab   : > { %v4267_v53 = vmul.f32 %v4257_v1, %v11997_v50  ;;  %v4268_v54 = vadd.f32 %v4263_v61, %v4239_v29  ;;  %v4269_v63 = vadd.f32 %v4264_v40, %v4240_v12  ;;  %v4285_v55 = vperm.slane %v4280_v5, 3  ;;  %v7576_v29 = vld [vmem:[%s8267_s1 + $0x2b] ss:$8 sm:$0x10]  ;;  %v12000_v12 = vld [vmem:[#allocation50_spill] sm:$0xff] }
 0x3ac   : > { %v4270_v42 = vadd.f32 %v4265_v25, %v4241_v2  ;;  %v4271_v39 = vadd.f32 %v4266_v3, %v4242_v48  ;;  %v4286_v43 = vperm.slane %v4280_v5, 4  ;;  %v4292_v15 = vmul.f32 %v4282_v17, %v11877_v30  ;;  %v7577_v5 = vld [vmem:[%s8267_s1 + $0x2c] ss:$8 sm:$0xf] }
 0x3ad   : > { %v4272_v51 = vadd.f32 %v4267_v53, %v4243_v56  ;;  %v4293_v19 = vmul.f32 %v4283_v35, %v11998_v20  ;;  %v4294_v22 = vmul.f32 %v4284_v34, %v11927_v0  ;;  %v4295_v47 = vmul.f32 %v4285_v55, %v11999_v33  ;;  %v7578_v3 = vld [vmem:[%s8267_s1 + $0x2c] ss:$8 sm:$0x10]  ;;  %v12002_v0 = vld [vmem:[#allocation52_spill] sm:$0xff]  ;;  %v12003_v33 = vld [vmem:[#allocation53_spill] sm:$0xff] }
 0x3ae   : > { %v4296_v37 = vmul.f32 %v4286_v43, %v12000_v12  ;;  %v4297_v2 = vadd.f32 %v4292_v15, %v4268_v54  ;;  %v4311_v1 = vperm.slane %v4309_v26, 0  ;;  %v4312_v48 = vperm.slane %v4309_v26, 1  ;;  %v12001_v20 = vld [vmem:[#allocation51_spill] sm:$0xff]  ;;  %v12004_v54 = vld [vmem:[#allocation54_spill] sm:$0xff] }
 0x3af   : > { %v4298_v61 = vadd.f32 %v4293_v19, %v4269_v63  ;;  %v4299_v40 = vadd.f32 %v4294_v22, %v4270_v42  ;;  %v4300_v17 = vadd.f32 %v4295_v47, %v4271_v39  ;;  %v4313_v25 = vperm.slane %v4309_v26, 2  ;;  %v12005_v12 = vld [vmem:[#allocation55_spill] sm:$0xff] }
 0x3b0   : > { %v4301_v56 = vadd.f32 %v4296_v37, %v4272_v51  ;;  %v4314_v53 = vperm.slane %v4309_v26, 3  ;;  %v4315_v35 = vperm.slane %v4309_v26, 4  ;;  %v4321_v34 = vmul.f32 %v4311_v1, %v12001_v20 }
 0x3b1   : > { %v4322_v55 = vmul.f32 %v4312_v48, %v12002_v0  ;;  %v4323_v30 = vmul.f32 %v4313_v25, %v12003_v33  ;;  %v4338_v50 = vor.u32 %v7574_v23, %v7573_v58  ;;  %v4367_v43 = vor.u32 %v7576_v29, %v7575_v16  ;;  %v12006_v48 = vld [vmem:[#allocation60_spill] sm:$0xff]  ;;  %v12007_v16 = vld [vmem:[#allocation62_spill] sm:$0xff] }
 0x3b2   : > { %v4324_v15 = vmul.f32 %v4314_v53, %v12004_v54  ;;  %v4325_v62 = vmul.f32 %v4315_v35, %v12005_v12  ;;  %v4326_v63 = vadd.f32 %v4321_v34, %v4297_v2  ;;  %v4396_v42 = vor.u32 %v7578_v3, %v7577_v5  ;;  %v12008_v2 = vld [vmem:[#allocation63_spill] sm:$0xff] }
 0x3b3   : > { %v4327_v39 = vadd.f32 %v4322_v55, %v4298_v61  ;;  %v4328_v19 = vadd.f32 %v4323_v30, %v4299_v40  ;;  %v4340_v22 = vperm.slane %v4338_v50, 0  ;;  %v4341_v51 = vperm.slane %v4338_v50, 1  ;;  %v12009_v40 = vld [vmem:[#allocation64_spill] sm:$0xff] }
 0x3b4   : > { %v4329_v47 = vadd.f32 %v4324_v15, %v4300_v17  ;;  %v4330_v26 = vadd.f32 %v4325_v62, %v4301_v56  ;;  %v4342_v37 = vperm.slane %v4338_v50, 2  ;;  %v4343_v1 = vperm.slane %v4338_v50, 3  ;;  %v7579_v55 = vld [vmem:[%s8267_s1 + $0x2d] ss:$8 sm:$0xf] }
 0x3b5   : > { %v4344_v20 = vperm.slane %v4338_v50, 4  ;;  %v4350_v25 = vmul.f32 %v4340_v22, %v12006_v48  ;;  %v4351_v58 = vmul.f32 %v4341_v51, %v11936_v31  ;;  %v4369_v23 = vperm.slane %v4367_v43, 0  ;;  %v7580_v15 = vld [vmem:[%s8267_s1 + $0x2d] ss:$8 sm:$0x10]  ;;  %v12010_v51 = vld [vmem:[#allocation66_spill] sm:$0xff] }
 0x3b6   : > { %v4352_v29 = vmul.f32 %v4342_v37, %v12007_v16  ;;  %v4353_v5 = vmul.f32 %v4343_v1, %v12008_v2  ;;  %v4370_v61 = vperm.slane %v4367_v43, 1  ;;  %v4371_v30 = vperm.slane %v4367_v43, 2  ;;  %v12011_v2 = vld [vmem:[#allocation68_spill] sm:$0xff] }
 0x3b7   : > { %v4354_v62 = vmul.f32 %v4344_v20, %v12009_v40  ;;  %v4355_v17 = vadd.f32 %v4350_v25, %v4326_v63  ;;  %v4356_v3 = vadd.f32 %v4351_v58, %v4327_v39  ;;  %v4372_v50 = vperm.slane %v4367_v43, 3  ;;  %v7581_v20 = vld [vmem:[%s8267_s1 + $0x2e] ss:$8 sm:$0xf] }
 0x3b8   : > { %v4357_v56 = vadd.f32 %v4352_v29, %v4328_v19  ;;  %v4358_v53 = vadd.f32 %v4353_v5, %v4329_v47  ;;  %v4373_v35 = vperm.slane %v4367_v43, 4  ;;  %v4379_v34 = vmul.f32 %v4369_v23, %v9507_v9  ;;  %v7582_v63 = vld [vmem:[%s8267_s1 + $0x2e] ss:$8 sm:$0x10]  ;;  %v12012_v39 = vld [vmem:[#allocation69_spill] sm:$0xff] }
 0x3b9   : > { %v4359_v22 = vadd.f32 %v4354_v62, %v4330_v26  ;;  %v4380_v37 = vmul.f32 %v4370_v61, %v12010_v51  ;;  %v4381_v1 = vmul.f32 %v4371_v30, %v11893_v10  ;;  %v4382_v16 = vmul.f32 %v4372_v50, %v12011_v2  ;;  %v7583_v43 = vld [vmem:[%s8267_s1 + $0x2f] ss:$8 sm:$0xf] }
 0x3ba   : > { %v4383_v25 = vmul.f32 %v4373_v35, %v12012_v39  ;;  %v4384_v19 = vadd.f32 %v4379_v34, %v4355_v17  ;;  %v4398_v58 = vperm.slane %v4396_v42, 0  ;;  %v4399_v47 = vperm.slane %v4396_v42, 1  ;;  %v7584_v40 = vld [vmem:[%s8267_s1 + $0x2f] ss:$8 sm:$0x10]  ;;  %v12014_v10 = vld [vmem:[#allocation56_spill] sm:$0xff] }
 0x3bb   : > { %v4385_v29 = vadd.f32 %v4380_v37, %v4356_v3  ;;  %v4386_v23 = vadd.f32 %v4381_v1, %v4357_v56  ;;  %v4387_v5 = vadd.f32 %v4382_v16, %v4358_v53  ;;  %v4400_v9 = vperm.slane %v4396_v42, 2  ;;  %v12013_v51 = vld [vmem:[#allocation19_spill] sm:$0xff]  ;;  %v12015_v2 = vld [vmem:[#allocation57_spill] sm:$0xff]  ;;  %v12016_v17 = vld [vmem:[#allocation58_spill] sm:$0xff] }
 0x3bc   : > { %v4388_v26 = vadd.f32 %v4383_v25, %v4359_v22  ;;  %v4401_v62 = vperm.slane %v4396_v42, 3  ;;  %v4402_v61 = vperm.slane %v4396_v42, 4  ;;  %v4408_v30 = vmul.f32 %v4398_v58, %v12013_v51  ;;  %v12017_v39 = vld [vmem:[#allocation59_spill] sm:$0xff] }
 0x3bd   : > { %v4409_v50 = vmul.f32 %v4399_v47, %v12014_v10  ;;  %v4410_v31 = vmul.f32 %v4400_v9, %v12015_v2  ;;  %v4425_v48 = vor.u32 %v7580_v15, %v7579_v55  ;;  %v4454_v35 = vor.u32 %v7582_v63, %v7581_v20  ;;  %v12018_v47 = vld [vmem:[#allocation70_spill] sm:$0xff]  ;;  %v12019_v63 = vld [vmem:[#allocation73_spill] sm:$0xff] }
 0x3be   : > { %v4411_v34 = vmul.f32 %v4401_v62, %v12016_v17  ;;  %v4412_v12 = vmul.f32 %v4402_v61, %v12017_v39  ;;  %v4413_v3 = vadd.f32 %v4408_v30, %v4384_v19  ;;  %v4483_v56 = vor.u32 %v7584_v40, %v7583_v43  ;;  %v12020_v62 = vld [vmem:[#allocation75_spill] sm:$0xff] }
 0x3bf   : > { %v4414_v16 = vadd.f32 %v4409_v50, %v4385_v29  ;;  %v4415_v53 = vadd.f32 %v4410_v31, %v4386_v23  ;;  %v4427_v37 = vperm.slane %v4425_v48, 0  ;;  %v4428_v22 = vperm.slane %v4425_v48, 1  ;;  %v7585_v30 = vld [vmem:[%s8267_s1 + $0x50] ss:$8 sm:$0xf] }
 0x3c0   : > { %v4416_v1 = vadd.f32 %v4411_v34, %v4387_v5  ;;  %v4417_v42 = vadd.f32 %v4412_v12, %v4388_v26  ;;  %v4429_v25 = vperm.slane %v4425_v48, 2  ;;  %v4430_v58 = vperm.slane %v4425_v48, 3  ;;  %v7586_v50 = vld [vmem:[%s8267_s1 + $0x50] ss:$8 sm:$0x10] }
 0x3c1   : > { %v4431_v51 = vperm.slane %v4425_v48, 4  ;;  %v4437_v9 = vmul.f32 %v4427_v37, %v12018_v47  ;;  %v4438_v55 = vmul.f32 %v4428_v22, %v11948_v49  ;;  %v4456_v15 = vperm.slane %v4454_v35, 0  ;;  %v12021_v37 = vld [vmem:[#allocation76_spill] sm:$0xff] }
 0x3c2   : > { %v4439_v20 = vmul.f32 %v4429_v25, %v11949_v14  ;;  %v4440_v40 = vmul.f32 %v4430_v58, %v12019_v63  ;;  %v4457_v19 = vperm.slane %v4454_v35, 1  ;;  %v4458_v31 = vperm.slane %v4454_v35, 2  ;;  %v12022_v25 = vld [vmem:[#allocation77_spill] sm:$0xff]  ;;  %v12023_v63 = vld [vmem:[#allocation78_spill] sm:$0xff] }
 0x3c3   : > { %v4441_v12 = vmul.f32 %v4431_v51, %v11951_v21  ;;  %v4442_v43 = vadd.f32 %v4437_v9, %v4413_v3  ;;  %v4443_v29 = vadd.f32 %v4438_v55, %v4414_v16  ;;  %v4459_v48 = vperm.slane %v4454_v35, 3  ;;  %v7587_v51 = vld [vmem:[%s8267_s1 + $0x51] ss:$8 sm:$0xf] }
 0x3c4   : > { %v4444_v23 = vadd.f32 %v4439_v20, %v4415_v53  ;;  %v4445_v5 = vadd.f32 %v4440_v40, %v4416_v1  ;;  %v4460_v26 = vperm.slane %v4454_v35, 4  ;;  %v4466_v61 = vmul.f32 %v4456_v15, %v12020_v62  ;;  %v7588_v3 = vld [vmem:[%s8267_s1 + $0x51] ss:$8 sm:$0x10]  ;;  %v12024_v16 = vld [vmem:[#allocation79_spill] sm:$0xff] }
 0x3c5   : > { %v4446_v34 = vadd.f32 %v4441_v12, %v4417_v42  ;;  %v4467_v22 = vmul.f32 %v4457_v19, %v12021_v37  ;;  %v4468_v58 = vmul.f32 %v4458_v31, %v12022_v25  ;;  %v4469_v14 = vmul.f32 %v4459_v48, %v12023_v63  ;;  %v7589_v35 = vld [vmem:[%s8267_s1 + $0x52] ss:$8 sm:$0xf] }
 0x3c6   : > { %v4470_v9 = vmul.f32 %v4460_v26, %v12024_v16  ;;  %v4471_v53 = vadd.f32 %v4466_v61, %v4442_v43  ;;  %v4485_v55 = vperm.slane %v4483_v56, 0  ;;  %v4486_v1 = vperm.slane %v4483_v56, 1  ;;  %v7590_v21 = vld [vmem:[%s8267_s1 + $0x52] ss:$8 sm:$0x10]  ;;  %v12026_v25 = vld [vmem:[#allocation85_spill] sm:$0xff] }
 0x3c7   : > { %v4472_v20 = vadd.f32 %v4467_v22, %v4443_v29  ;;  %v4473_v15 = vadd.f32 %v4468_v58, %v4444_v23  ;;  %v4474_v40 = vadd.f32 %v4469_v14, %v4445_v5  ;;  %v4487_v62 = vperm.slane %v4483_v56, 2  ;;  %v12025_v37 = vld [vmem:[#allocation84_spill] sm:$0xff]  ;;  %v12027_v63 = vld [vmem:[#allocation86_spill] sm:$0xff]  ;;  %v12028_v43 = vld [vmem:[#allocation87_spill] sm:$0xff] }
 0x3c8   : > { %v4475_v42 = vadd.f32 %v4470_v9, %v4446_v34  ;;  %v4488_v12 = vperm.slane %v4483_v56, 3  ;;  %v4489_v19 = vperm.slane %v4483_v56, 4  ;;  %v4495_v31 = vmul.f32 %v4485_v55, %v12025_v37  ;;  %v12029_v16 = vld [vmem:[#allocation88_spill] sm:$0xff] }
 0x3c9   : > { %v4496_v48 = vmul.f32 %v4486_v1, %v12026_v25  ;;  %v4497_v49 = vmul.f32 %v4487_v62, %v12027_v63  ;;  %v4512_v47 = vor.u32 %v7586_v50, %v7585_v30  ;;  %v4541_v26 = vor.u32 %v7588_v3, %v7587_v51  ;;  %v12030_v1 = vld [vmem:[#allocation89_spill] sm:$0xff]  ;;  %v12031_v30 = vld [vmem:[#allocation90_spill] sm:$0xff]  ;;  %v12032_v3 = vld [vmem:[#allocation91_spill] sm:$0xff] }
 0x3ca   : > { %v4498_v61 = vmul.f32 %v4488_v12, %v12028_v43  ;;  %v4499_v39 = vmul.f32 %v4489_v19, %v12029_v16  ;;  %v4500_v29 = vadd.f32 %v4495_v31, %v4471_v53  ;;  %v4570_v23 = vor.u32 %v7590_v21, %v7589_v35  ;;  %v12033_v53 = vld [vmem:[#allocation92_spill] sm:$0xff] }
 0x3cb   : > { %v4501_v14 = vadd.f32 %v4496_v48, %v4472_v20  ;;  %v4502_v5 = vadd.f32 %v4497_v49, %v4473_v15  ;;  %v4514_v22 = vperm.slane %v4512_v47, 0  ;;  %v4515_v34 = vperm.slane %v4512_v47, 1  ;;  %v12034_v20 = vld [vmem:[#allocation93_spill] sm:$0xff] }
 0x3cc   : > { %v4503_v58 = vadd.f32 %v4498_v61, %v4474_v40  ;;  %v4504_v56 = vadd.f32 %v4499_v39, %v4475_v42  ;;  %v4516_v9 = vperm.slane %v4512_v47, 2  ;;  %v4517_v55 = vperm.slane %v4512_v47, 3  ;;  %v7591_v61 = vld [vmem:[%s8267_s1 + $0x53] ss:$8 sm:$0xf] }
 0x3cd   : > { %v4518_v37 = vperm.slane %v4512_v47, 4  ;;  %v4524_v62 = vmul.f32 %v4514_v22, %v12030_v1  ;;  %v4525_v50 = vmul.f32 %v4515_v34, %v12031_v30  ;;  %v4543_v51 = vperm.slane %v4541_v26, 0  ;;  %v7592_v22 = vld [vmem:[%s8267_s1 + $0x53] ss:$8 sm:$0x10] }
 0x3ce   : > { %v4526_v12 = vmul.f32 %v4516_v9, %v12032_v3  ;;  %v4527_v21 = vmul.f32 %v4517_v55, %v12033_v53  ;;  %v4544_v35 = vperm.slane %v4541_v26, 1  ;;  %v4545_v49 = vperm.slane %v4541_v26, 2  ;;  %v12035_v9 = vld [vmem:[#allocation80_spill] sm:$0xff] }
 0x3cf   : > { %v4528_v39 = vmul.f32 %v4518_v37, %v12034_v20  ;;  %v4529_v15 = vadd.f32 %v4524_v62, %v4500_v29  ;;  %v4530_v40 = vadd.f32 %v4525_v50, %v4501_v14  ;;  %v4546_v47 = vperm.slane %v4541_v26, 3  ;;  %v7593_v37 = vld [vmem:[%s8267_s1 + $0x54] ss:$8 sm:$0xf] }
 0x3d0   : > { %v4531_v42 = vadd.f32 %v4526_v12, %v4502_v5  ;;  %v4532_v19 = vadd.f32 %v4527_v21, %v4503_v58  ;;  %v4547_v31 = vperm.slane %v4541_v26, 4  ;;  %v4553_v48 = vmul.f32 %v4543_v51, %v11962_v7  ;;  %v7594_v29 = vld [vmem:[%s8267_s1 + $0x54] ss:$8 sm:$0x10] }
 0x3d1   : > { %v4533_v34 = vadd.f32 %v4528_v39, %v4504_v56  ;;  %v4554_v55 = vmul.f32 %v4544_v35, %v12035_v9  ;;  %v4555_v53 = vmul.f32 %v4545_v49, %v11964_v52  ;;  %v4556_v3 = vmul.f32 %v4546_v47, %v11965_v11  ;;  %v7595_v26 = vld [vmem:[%s8267_s1 + $0x55] ss:$8 sm:$0xf] }
 0x3d2   : > { %v4557_v14 = vmul.f32 %v4547_v31, %v11966_v6  ;;  %v4558_v5 = vadd.f32 %v4553_v48, %v4529_v15  ;;  %v4572_v62 = vperm.slane %v4570_v23, 0  ;;  %v4573_v58 = vperm.slane %v4570_v23, 1  ;;  %v7596_v7 = vld [vmem:[%s8267_s1 + $0x55] ss:$8 sm:$0x10]  ;;  %v12036_v9 = vld [vmem:[#allocation94_spill] sm:$0xff] }
 0x3d3   : > { %v4559_v50 = vadd.f32 %v4554_v55, %v4530_v40  ;;  %v4560_v51 = vadd.f32 %v4555_v53, %v4531_v42  ;;  %v4561_v12 = vadd.f32 %v4556_v3, %v4532_v19  ;;  %v4574_v21 = vperm.slane %v4570_v23, 2  ;;  %v12037_v52 = vld [vmem:[#allocation95_spill] sm:$0xff]  ;;  %v12038_v11 = vld [vmem:[#allocation96_spill] sm:$0xff]  ;;  %v12039_v15 = vld [vmem:[#allocation97_spill] sm:$0xff] }
 0x3d4   : > { %v4562_v56 = vadd.f32 %v4557_v14, %v4533_v34  ;;  %v4575_v39 = vperm.slane %v4570_v23, 3  ;;  %v4576_v35 = vperm.slane %v4570_v23, 4  ;;  %v4582_v49 = vmul.f32 %v4572_v62, %v12036_v9 }
 0x3d5   : > { %v4583_v47 = vmul.f32 %v4573_v58, %v12037_v52  ;;  %v4584_v20 = vmul.f32 %v4574_v21, %v12038_v11  ;;  %v4599_v30 = vor.u32 %v7592_v22, %v7591_v61  ;;  %v4628_v31 = vor.u32 %v7594_v29, %v7593_v37  ;;  %v12040_v58 = vld [vmem:[#allocation99_spill] sm:$0xff]  ;;  %v12041_v37 = vld [vmem:[#allocation101_spill] sm:$0xff] }
 0x3d6   : > { %v4585_v48 = vmul.f32 %v4575_v39, %v12039_v15  ;;  %v4586_v6 = vmul.f32 %v4576_v35, %v11971_v36  ;;  %v4587_v40 = vadd.f32 %v4582_v49, %v4558_v5  ;;  %v4657_v53 = vor.u32 %v7596_v7, %v7595_v26  ;;  %v12042_v39 = vld [vmem:[#allocation108_spill] sm:$0xff] }
 0x3d7   : > { %v4588_v3 = vadd.f32 %v4583_v47, %v4559_v50  ;;  %v4589_v42 = vadd.f32 %v4584_v20, %v4560_v51  ;;  %v4601_v19 = vperm.slane %v4599_v30, 0  ;;  %v4602_v34 = vperm.slane %v4599_v30, 1  ;;  %v7597_v49 = vld [vmem:[%s8267_s1 + $0x56] ss:$8 sm:$0xf] }
 0x3d8   : > { %v4590_v55 = vadd.f32 %v4585_v48, %v4561_v12  ;;  %v4591_v23 = vadd.f32 %v4586_v6, %v4562_v56  ;;  %v4603_v14 = vperm.slane %v4599_v30, 2  ;;  %v4604_v62 = vperm.slane %v4599_v30, 3  ;;  %v7598_v47 = vld [vmem:[%s8267_s1 + $0x56] ss:$8 sm:$0x10] }
 0x3d9   : > { %v4605_v9 = vperm.slane %v4599_v30, 4  ;;  %v4611_v21 = vmul.f32 %v4601_v19, %v12040_v58  ;;  %v4612_v61 = vmul.f32 %v4602_v34, %v11973_v27  ;;  %v4630_v22 = vperm.slane %v4628_v31, 0  ;;  %v12043_v19 = vld [vmem:[#allocation109_spill] sm:$0xff] }
 0x3da   : > { %v4613_v29 = vmul.f32 %v4603_v14, %v12041_v37  ;;  %v4614_v7 = vmul.f32 %v4604_v62, %v11975_v18  ;;  %v4631_v5 = vperm.slane %v4628_v31, 1  ;;  %v4632_v20 = vperm.slane %v4628_v31, 2  ;;  %v12044_v14 = vld [vmem:[#allocation110_spill] sm:$0xff]  ;;  %v12045_v18 = vld [vmem:[#allocation111_spill] sm:$0xff] }
 0x3db   : > { %v4615_v6 = vmul.f32 %v4605_v9, %v11976_v32  ;;  %v4616_v26 = vadd.f32 %v4611_v21, %v4587_v40  ;;  %v4617_v50 = vadd.f32 %v4612_v61, %v4588_v3  ;;  %v4633_v30 = vperm.slane %v4628_v31, 3  ;;  %v7599_v9 = vld [vmem:[%s8267_s1 + $0x57] ss:$8 sm:$0xf] }
 0x3dc   : > { %v4618_v51 = vadd.f32 %v4613_v29, %v4589_v42  ;;  %v4619_v12 = vadd.f32 %v4614_v7, %v4590_v55  ;;  %v4634_v56 = vperm.slane %v4628_v31, 4  ;;  %v4640_v35 = vmul.f32 %v4630_v22, %v12042_v39  ;;  %v7600_v40 = vld [vmem:[%s8267_s1 + $0x57] ss:$8 sm:$0x10] }
 0x3dd   : > { %v4620_v48 = vadd.f32 %v4615_v6, %v4591_v23  ;;  %v4641_v34 = vmul.f32 %v4631_v5, %v12043_v19  ;;  %v4642_v62 = vmul.f32 %v4632_v20, %v12044_v14  ;;  %v4643_v37 = vmul.f32 %v4633_v30, %v12045_v18  ;;  %v12046_v3 = vld [vmem:[#allocation112_spill] sm:$0xff]  ;;  %v7602_v32 = vld [vmem:[%s8267_s1 + $0x78] ss:$8 sm:$0x10]  ;;  %v12048_v14 = vld [vmem:[#allocation114_spill] sm:$0xff] }
 0x3de   : > { %v4644_v21 = vmul.f32 %v4634_v56, %v12046_v3  ;;  %v4645_v42 = vadd.f32 %v4640_v35, %v4616_v26  ;;  %v4659_v61 = vperm.slane %v4657_v53, 0  ;;  %v4660_v55 = vperm.slane %v4657_v53, 1  ;;  %v7601_v31 = vld [vmem:[%s8267_s1 + $0x78] ss:$8 sm:$0xf] }
 0x3df   : > { %v4646_v29 = vadd.f32 %v4641_v34, %v4617_v50  ;;  %v4647_v22 = vadd.f32 %v4642_v62, %v4618_v51  ;;  %v4648_v7 = vadd.f32 %v4643_v37, %v4619_v12  ;;  %v4661_v39 = vperm.slane %v4657_v53, 2  ;;  %v12047_v19 = vld [vmem:[#allocation113_spill] sm:$0xff]  ;;  %v12049_v18 = vld [vmem:[#allocation115_spill] sm:$0xff]  ;;  %v12050_v26 = vld [vmem:[#allocation116_spill] sm:$0xff] }
 0x3e0   : > { %v4649_v23 = vadd.f32 %v4644_v21, %v4620_v48  ;;  %v4662_v6 = vperm.slane %v4657_v53, 3  ;;  %v4663_v5 = vperm.slane %v4657_v53, 4  ;;  %v4669_v20 = vmul.f32 %v4659_v61, %v12047_v19  ;;  %v12051_v3 = vld [vmem:[#allocation117_spill] sm:$0xff] }
 0x3e1   : > { %v4670_v30 = vmul.f32 %v4660_v55, %v12048_v14  ;;  %v4671_v27 = vmul.f32 %v4661_v39, %v12049_v18  ;;  %v4686_v58 = vor.u32 %v7598_v47, %v7597_v49  ;;  %v4715_v56 = vor.u32 %v7600_v40, %v7599_v9  ;;  %v12052_v55 = vld [vmem:[#allocation38_spill] sm:$0xff]  ;;  %v12053_v49 = vld [vmem:[#allocation104_spill] sm:$0xff]  ;;  %v12054_v40 = vld [vmem:[#allocation105_spill] sm:$0xff] }
 0x3e2   : > { %v4672_v35 = vmul.f32 %v4662_v6, %v12050_v26  ;;  %v4673_v36 = vmul.f32 %v4663_v5, %v12051_v3  ;;  %v4674_v50 = vadd.f32 %v4669_v20, %v4645_v42  ;;  %v4744_v51 = vor.u32 %v7602_v32, %v7601_v31  ;;  %v12055_v42 = vld [vmem:[#allocation106_spill] sm:$0xff] }
 0x3e3   : > { %v4675_v37 = vadd.f32 %v4670_v30, %v4646_v29  ;;  %v4676_v12 = vadd.f32 %v4671_v27, %v4647_v22  ;;  %v4688_v34 = vperm.slane %v4686_v58, 0  ;;  %v4689_v48 = vperm.slane %v4686_v58, 1  ;;  %v12056_v29 = vld [vmem:[#allocation107_spill] sm:$0xff]  ;;  %v12057_v30 = vld [vmem:[#allocation118_spill] sm:$0xff] }
 0x3e4   : > { %v4677_v62 = vadd.f32 %v4672_v35, %v4648_v7  ;;  %v4678_v53 = vadd.f32 %v4673_v36, %v4649_v23  ;;  %v4690_v21 = vperm.slane %v4686_v58, 2  ;;  %v4691_v61 = vperm.slane %v4686_v58, 3 }
 0x3e5   : > { %v4692_v19 = vperm.slane %v4686_v58, 4  ;;  %v4698_v39 = vmul.f32 %v4688_v34, %v12052_v55  ;;  %v4699_v47 = vmul.f32 %v4689_v48, %v12053_v49  ;;  %v4717_v9 = vperm.slane %v4715_v56, 0  ;;  %v4776_v34 = vld [vmem:[%s8267_s1] ss:$8 sm:$0xf] }
 0x3e6   : > { %v4700_v6 = vmul.f32 %v4690_v21, %v12054_v40  ;;  %v4701_v32 = vmul.f32 %v4691_v61, %v12055_v42  ;;  %v4718_v31 = vperm.slane %v4715_v56, 1  ;;  %v4719_v27 = vperm.slane %v4715_v56, 2  ;;  %v4777_v48 = vld [vmem:[%s8267_s1] ss:$8 sm:$0x10]  ;;  %v12058_v61 = vld [vmem:[#allocation119_spill] sm:$0xff] }
 0x3e7   : > { %v4702_v36 = vmul.f32 %v4692_v19, %v12056_v29  ;;  %v4703_v22 = vadd.f32 %v4698_v39, %v4674_v50  ;;  %v4704_v7 = vadd.f32 %v4699_v47, %v4675_v37  ;;  %v4720_v58 = vperm.slane %v4715_v56, 3  ;;  %v12059_v40 = vld [vmem:[#allocation120_spill] sm:$0xff]  ;;  %v12060_v55 = vld [vmem:[#allocation121_spill] sm:$0xff]  ;;  %v12061_v37 = vld [vmem:[#allocation122_spill] sm:$0xff] }
 0x3e8   : > { %v4705_v23 = vadd.f32 %v4700_v6, %v4676_v12  ;;  %v4706_v5 = vadd.f32 %v4701_v32, %v4677_v62  ;;  %v4721_v20 = vperm.slane %v4715_v56, 4  ;;  %v4727_v35 = vmul.f32 %v4717_v9, %v12057_v30  ;;  %v7603_v19 = vld [vmem:[%s8267_s1 + $0x1] ss:$8 sm:$0xf] }
 0x3e9   : > { %v4707_v21 = vadd.f32 %v4702_v36, %v4678_v53  ;;  %v4728_v42 = vmul.f32 %v4718_v31, %v12058_v61  ;;  %v4729_v49 = vmul.f32 %v4719_v27, %v12059_v40  ;;  %v4730_v3 = vmul.f32 %v4720_v58, %v12060_v55  ;;  %v7605_v50 = vld [vmem:[%s8267_s1 + $0x2] ss:$8 sm:$0xf]  ;;  %v7604_v56 = vld [vmem:[%s8267_s1 + $0x1] ss:$8 sm:$0x10] }
 0x3ea   : > { %v4731_v39 = vmul.f32 %v4721_v20, %v12061_v37  ;;  %v4732_v12 = vadd.f32 %v4727_v35, %v4703_v22  ;;  %v4746_v47 = vperm.slane %v4744_v51, 0  ;;  %v4747_v62 = vperm.slane %v4744_v51, 1  ;;  %v7606_v29 = vld [vmem:[%s8267_s1 + $0x2] ss:$8 sm:$0x10]  ;;  %v12062_v61 = vld [vmem:[#allocation123_spill] sm:$0xff] }
 0x3eb   : > { %v4733_v6 = vadd.f32 %v4728_v42, %v4704_v7  ;;  %v4734_v9 = vadd.f32 %v4729_v49, %v4705_v23  ;;  %v4735_v32 = vadd.f32 %v4730_v3, %v4706_v5  ;;  %v4748_v30 = vperm.slane %v4744_v51, 2  ;;  %v12063_v58 = vld [vmem:[#allocation124_spill] sm:$0xff]  ;;  %v12064_v40 = vld [vmem:[#allocation125_spill] sm:$0xff]  ;;  %v12065_v35 = vld [vmem:[#allocation126_spill] sm:$0xff] }
 0x3ec   : > { %v4736_v53 = vadd.f32 %v4731_v39, %v4707_v21  ;;  %v4749_v36 = vperm.slane %v4744_v51, 3  ;;  %v4750_v31 = vperm.slane %v4744_v51, 4  ;;  %v4756_v27 = vmul.f32 %v4746_v47, %v12062_v61  ;;  %v12066_v42 = vld [vmem:[#allocation127_spill] sm:$0xff] }
 0x3ed   : > { %v4757_v55 = vmul.f32 %v4747_v62, %v12063_v58  ;;  %v4758_v26 = vmul.f32 %v4748_v30, %v12064_v40  ;;  %v4778_v22 = vor.u32 %v4777_v48, %v4776_v34  ;;  %v4807_v20 = vor.u32 %v7604_v56, %v7603_v19 }
 0x3ee   : > { %v4759_v37 = vmul.f32 %v4749_v36, %v12065_v35  ;;  %v4760_v49 = vmul.f32 %v4750_v31, %v12066_v42  ;;  %v4761_v3 = vadd.f32 %v4756_v27, %v4732_v12  ;;  %v4836_v7 = vor.u32 %v7606_v29, %v7605_v50  ;;  %v7609_v36 = vld [vmem:[%s8267_s1 + $0x4] ss:$8 sm:$0xf] }
 0x3ef   : > { %v4762_v23 = vadd.f32 %v4757_v55, %v4733_v6  ;;  %v4763_v5 = vadd.f32 %v4758_v26, %v4734_v9  ;;  %v4780_v51 = vperm.slane %v4778_v22, 0  ;;  %v4781_v21 = vperm.slane %v4778_v22, 1  ;;  %v7607_v9 = vld [vmem:[%s8267_s1 + $0x3] ss:$8 sm:$0xf] }
 0x3f0   : > { %v4764_v39 = vadd.f32 %v4759_v37, %v4735_v32  ;;  %v4765_v47 = vadd.f32 %v4760_v49, %v4736_v53  ;;  %4766 = vst [vmem:[%s10314_s25 + $0x50] sm:$0xff] %v4761_v3  ;;  %v4782_v62 = vperm.slane %v4778_v22, 2  ;;  %v4783_v30 = vperm.slane %v4778_v22, 3  ;;  %v7610_v31 = vld [vmem:[%s8267_s1 + $0x4] ss:$8 sm:$0x10] }
 0x3f1   : > { %4767 = vst [vmem:[%s10314_s25 + $0x58] sm:$0xff] %v4762_v23  ;;  %v4784_v34 = vperm.slane %v4778_v22, 4  ;;  %v4790_v48 = vmul.f32 %v4780_v51, %v11866_v38  ;;  %v4791_v19 = vmul.f32 %v4781_v21, %v11915_v28  ;;  %v4809_v29 = vperm.slane %v4807_v20, 0  ;;  %v7608_v28 = vld [vmem:[%s8267_s1 + $0x3] ss:$8 sm:$0x10] }
 0x3f2   : > { %4768 = vst [vmem:[%s10314_s25 + $0x60] sm:$0xff] %v4763_v5  ;;  %v4792_v26 = vmul.f32 %v4782_v62, %v11985_v13  ;;  %v4793_v55 = vmul.f32 %v4783_v30, %v11986_v60  ;;  %v4810_v50 = vperm.slane %v4807_v20, 1  ;;  %v4811_v37 = vperm.slane %v4807_v20, 2  ;;  %v7611_v49 = vld [vmem:[%s8267_s1 + $0x5] ss:$8 sm:$0xf] }
 0x3f3   : > { %4769 = vst [vmem:[%s10314_s25 + $0x68] sm:$0xff] %v4764_v39  ;;  %v4794_v12 = vmul.f32 %v4784_v34, %v11987_v8  ;;  %v4812_v56 = vperm.slane %v4807_v20, 3  ;;  %v4813_v6 = vperm.slane %v4807_v20, 4  ;;  %v4819_v38 = vmul.f32 %v4809_v29, %v11988_v57  ;;  %v7612_v51 = vld [vmem:[%s8267_s1 + $0x5] ss:$8 sm:$0x10] }
 0x3f4   : > { %4770 = vst [vmem:[%s10314_s25 + $0x70] sm:$0xff] %v4765_v47  ;;  %v4820_v13 = vmul.f32 %v4810_v50, %v11989_v46  ;;  %v4821_v32 = vmul.f32 %v4811_v37, %v11990_v4  ;;  %v4838_v60 = vperm.slane %v4836_v7, 0  ;;  %v4839_v53 = vperm.slane %v4836_v7, 1  ;;  %v12067_v62 = vld [vmem:[#allocation25_spill] sm:$0xff]  ;;  %v12068_v30 = vld [vmem:[#allocation27_spill] sm:$0xff] }
 0x3f5   : > { %v4822_v27 = vmul.f32 %v4812_v56, %v11991_v45  ;;  %v4823_v8 = vmul.f32 %v4813_v6, %v11992_v44  ;;  %v4824_v22 = vadd.f32 %v4819_v38, %v4790_v48  ;;  %v4840_v20 = vperm.slane %v4836_v7, 2 }
 0x3f6   : > { %v4825_v57 = vadd.f32 %v4820_v13, %v4791_v19  ;;  %v4826_v3 = vadd.f32 %v4821_v32, %v4792_v26  ;;  %v4841_v23 = vperm.slane %v4836_v7, 3  ;;  %v4842_v5 = vperm.slane %v4836_v7, 4 }
 0x3f7   : > { %v4827_v21 = vadd.f32 %v4822_v27, %v4793_v55  ;;  %v4828_v46 = vadd.f32 %v4823_v8, %v4794_v12  ;;  %v4848_v4 = vmul.f32 %v4838_v60, %v11993_v41  ;;  %v4849_v39 = vmul.f32 %v4839_v53, %v11994_v59  ;;  %v12069_v59 = vld [vmem:[#allocation46_spill] sm:$0xff]  ;;  %v12071_v60 = vld [vmem:[#allocation48_spill] sm:$0xff] }
 0x3f8   : > { %v4850_v47 = vmul.f32 %v4840_v20, %v11995_v24  ;;  %v4851_v45 = vmul.f32 %v4841_v23, %v12067_v62  ;;  %v4852_v44 = vmul.f32 %v4842_v5, %v12068_v30  ;;  %v4865_v34 = vor.u32 %v7608_v28, %v7607_v9  ;;  %v12070_v28 = vld [vmem:[#allocation47_spill] sm:$0xff]  ;;  %v12073_v27 = vld [vmem:[#allocation50_spill] sm:$0xff] }
 0x3f9   : > { %v4853_v48 = vadd.f32 %v4848_v4, %v4824_v22  ;;  %v4854_v29 = vadd.f32 %v4849_v39, %v4825_v57  ;;  %v4894_v19 = vor.u32 %v7610_v31, %v7609_v36  ;;  %v4923_v26 = vor.u32 %v7612_v51, %v7611_v49  ;;  %v12072_v36 = vld [vmem:[#allocation49_spill] sm:$0xff]  ;;  %v12074_v57 = vld [vmem:[#allocation51_spill] sm:$0xff]  ;;  %v7614_v4 = vld [vmem:[%s8267_s1 + $0x6] ss:$8 sm:$0x10] }
 0x3fa   : > { %v4855_v50 = vadd.f32 %v4850_v47, %v4826_v3  ;;  %v4856_v7 = vadd.f32 %v4851_v45, %v4827_v21  ;;  %v4857_v37 = vadd.f32 %v4852_v44, %v4828_v46  ;;  %v4867_v55 = vperm.slane %v4865_v34, 0  ;;  %v7613_v46 = vld [vmem:[%s8267_s1 + $0x6] ss:$8 sm:$0xf] }
 0x3fb   : > { %v4868_v12 = vperm.slane %v4865_v34, 1  ;;  %v4869_v56 = vperm.slane %v4865_v34, 2  ;;  %v4870_v41 = vperm.slane %v4865_v34, 3  ;;  %v4871_v6 = vperm.slane %v4865_v34, 4  ;;  %v12075_v30 = vld [vmem:[#allocation55_spill] sm:$0xff] }
 0x3fc   : > { %v4877_v38 = vmul.f32 %v4867_v55, %v12069_v59  ;;  %v4896_v24 = vperm.slane %v4894_v19, 0  ;;  %v4897_v13 = vperm.slane %v4894_v19, 1  ;;  %v4898_v9 = vperm.slane %v4894_v19, 2  ;;  %v7615_v39 = vld [vmem:[%s8267_s1 + $0x7] ss:$8 sm:$0xf] }
 0x3fd   : > { %v4878_v32 = vmul.f32 %v4868_v12, %v12070_v28  ;;  %v4879_v53 = vmul.f32 %v4869_v56, %v12071_v60  ;;  %v4880_v31 = vmul.f32 %v4870_v41, %v12072_v36  ;;  %v4881_v8 = vmul.f32 %v4871_v6, %v12073_v27  ;;  %v7616_v34 = vld [vmem:[%s8267_s1 + $0x7] ss:$8 sm:$0x10]  ;;  %v7618_v12 = vld [vmem:[%s8267_s1 + $0x28] ss:$8 sm:$0x10] }
 0x3fe   : > { %v4882_v22 = vadd.f32 %v4877_v38, %v4853_v48  ;;  %v4899_v20 = vperm.slane %v4894_v19, 3  ;;  %v4900_v49 = vperm.slane %v4894_v19, 4  ;;  %v4906_v3 = vmul.f32 %v4896_v24, %v12074_v57  ;;  %v7617_v48 = vld [vmem:[%s8267_s1 + $0x28] ss:$8 sm:$0xf] }
 0x3ff   : > { %v4883_v23 = vadd.f32 %v4878_v32, %v4854_v29  ;;  %v4884_v5 = vadd.f32 %v4879_v53, %v4855_v50  ;;  %v4885_v51 = vadd.f32 %v4880_v31, %v4856_v7  ;;  %v4886_v21 = vadd.f32 %v4881_v8, %v4857_v37  ;;  %v12079_v60 = vld [vmem:[#allocation63_spill] sm:$0xff]  ;;  %v12080_v36 = vld [vmem:[#allocation64_spill] sm:$0xff] }
 0x400   : > { %v4907_v47 = vmul.f32 %v4897_v13, %v12002_v0  ;;  %v4908_v62 = vmul.f32 %v4898_v9, %v12003_v33  ;;  %v4909_v45 = vmul.f32 %v4899_v20, %v12004_v54  ;;  %v4910_v44 = vmul.f32 %v4900_v49, %v12075_v30  ;;  %v12076_v0 = vld [vmem:[#allocation60_spill] sm:$0xff]  ;;  %v12077_v33 = vld [vmem:[#allocation61_spill] sm:$0xff]  ;;  %v12078_v54 = vld [vmem:[#allocation62_spill] sm:$0xff] }
 0x401   : > { %v4911_v19 = vadd.f32 %v4906_v3, %v4882_v22  ;;  %v4925_v55 = vperm.slane %v4923_v26, 0  ;;  %v4926_v29 = vperm.slane %v4923_v26, 1  ;;  %v4927_v50 = vperm.slane %v4923_v26, 2 }
 0x402   : > { %v4912_v7 = vadd.f32 %v4907_v47, %v4883_v23  ;;  %v4913_v37 = vadd.f32 %v4908_v62, %v4884_v5  ;;  %v4914_v56 = vadd.f32 %v4909_v45, %v4885_v51  ;;  %v4915_v41 = vadd.f32 %v4910_v44, %v4886_v21  ;;  %v12081_v51 = vld [vmem:[#allocation65_spill] sm:$0xff]  ;;  %v12082_v47 = vld [vmem:[#allocation66_spill] sm:$0xff]  ;;  %v12084_v45 = vld [vmem:[#allocation68_spill] sm:$0xff] }
 0x403   : > { %v4928_v6 = vperm.slane %v4923_v26, 3  ;;  %v4929_v59 = vperm.slane %v4923_v26, 4  ;;  %v4935_v38 = vmul.f32 %v4925_v55, %v12076_v0  ;;  %v4936_v24 = vmul.f32 %v4926_v29, %v12077_v33  ;;  %v12085_v44 = vld [vmem:[#allocation69_spill] sm:$0xff] }
 0x404   : > { %v4937_v13 = vmul.f32 %v4927_v50, %v12078_v54  ;;  %v4952_v9 = vor.u32 %v7614_v4, %v7613_v46  ;;  %v4981_v28 = vor.u32 %v7616_v34, %v7615_v39  ;;  %v5010_v32 = vor.u32 %v7618_v12, %v7617_v48  ;;  %v12083_v4 = vld [vmem:[#allocation67_spill] sm:$0xff] }
 0x405   : > { %v4938_v53 = vmul.f32 %v4928_v6, %v12079_v60  ;;  %v4939_v31 = vmul.f32 %v4929_v59, %v12080_v36  ;;  %v4940_v27 = vadd.f32 %v4935_v38, %v4911_v19  ;;  %v4941_v8 = vadd.f32 %v4936_v24, %v4912_v7  ;;  %v7619_v59 = vld [vmem:[%s8267_s1 + $0x29] ss:$8 sm:$0xf]  ;;  %v7621_v24 = vld [vmem:[%s8267_s1 + $0x2a] ss:$8 sm:$0xf] }
 0x406   : > { %v4942_v22 = vadd.f32 %v4937_v13, %v4913_v37  ;;  %v4954_v20 = vperm.slane %v4952_v9, 0  ;;  %v4955_v49 = vperm.slane %v4952_v9, 1  ;;  %v4956_v57 = vperm.slane %v4952_v9, 2  ;;  %v7620_v38 = vld [vmem:[%s8267_s1 + $0x29] ss:$8 sm:$0x10] }
 0x407   : > { %v4943_v26 = vadd.f32 %v4938_v53, %v4914_v56  ;;  %v4944_v3 = vadd.f32 %v4939_v31, %v4915_v41  ;;  %v4957_v23 = vperm.slane %v4952_v9, 3  ;;  %v4958_v5 = vperm.slane %v4952_v9, 4  ;;  %v12086_v41 = vld [vmem:[#allocation19_spill] sm:$0xff] }
 0x408   : > { %v4964_v21 = vmul.f32 %v4954_v20, %v12081_v51  ;;  %v4965_v46 = vmul.f32 %v4955_v49, %v12082_v47  ;;  %v4966_v39 = vmul.f32 %v4956_v57, %v12083_v4  ;;  %v4983_v62 = vperm.slane %v4981_v28, 0 }
 0x409   : > { %v4967_v30 = vmul.f32 %v4957_v23, %v12084_v45  ;;  %v4968_v34 = vmul.f32 %v4958_v5, %v12085_v44  ;;  %v4984_v48 = vperm.slane %v4981_v28, 1  ;;  %v4985_v19 = vperm.slane %v4981_v28, 2 }
 0x40a   : > { %v4969_v55 = vadd.f32 %v4964_v21, %v4940_v27  ;;  %v4970_v29 = vadd.f32 %v4965_v46, %v4941_v8  ;;  %v4971_v50 = vadd.f32 %v4966_v39, %v4942_v22  ;;  %v4986_v12 = vperm.slane %v4981_v28, 3  ;;  %v7622_v27 = vld [vmem:[%s8267_s1 + $0x2a] ss:$8 sm:$0x10] }
 0x40b   : > { %v4972_v7 = vadd.f32 %v4967_v30, %v4943_v26  ;;  %v4973_v37 = vadd.f32 %v4968_v34, %v4944_v3  ;;  %v4987_v56 = vperm.slane %v4981_v28, 4  ;;  %v4993_v6 = vmul.f32 %v4983_v62, %v12086_v41  ;;  %v12087_v8 = vld [vmem:[#allocation59_spill] sm:$0xff]  ;;  %v12088_v62 = vld [vmem:[#allocation70_spill] sm:$0xff] }
 0x40c   : > { %v4994_v13 = vmul.f32 %v4984_v48, %v12014_v10  ;;  %v4995_v9 = vmul.f32 %v4985_v19, %v12015_v2  ;;  %v4996_v53 = vmul.f32 %v4986_v12, %v12016_v17  ;;  %v5012_v31 = vperm.slane %v5010_v32, 0  ;;  %v7623_v28 = vld [vmem:[%s8267_s1 + $0x2b] ss:$8 sm:$0xf] }
 0x40d   : > { %v4997_v22 = vmul.f32 %v4987_v56, %v12087_v8  ;;  %v4998_v20 = vadd.f32 %v4993_v6, %v4969_v55  ;;  %v5013_v49 = vperm.slane %v5010_v32, 1  ;;  %v5014_v57 = vperm.slane %v5010_v32, 2  ;;  %v7624_v21 = vld [vmem:[%s8267_s1 + $0x2b] ss:$8 sm:$0x10]  ;;  %v12090_v19 = vld [vmem:[#allocation72_spill] sm:$0xff] }
 0x40e   : > { %v4999_v26 = vadd.f32 %v4994_v13, %v4970_v29  ;;  %v5000_v3 = vadd.f32 %v4995_v9, %v4971_v50  ;;  %v5001_v23 = vadd.f32 %v4996_v53, %v4972_v7  ;;  %v5015_v5 = vperm.slane %v5010_v32, 3  ;;  %v12089_v34 = vld [vmem:[#allocation71_spill] sm:$0xff]  ;;  %v12091_v17 = vld [vmem:[#allocation73_spill] sm:$0xff]  ;;  %v12092_v6 = vld [vmem:[#allocation74_spill] sm:$0xff] }
 0x40f   : > { %v5002_v46 = vadd.f32 %v4997_v22, %v4973_v37  ;;  %v5016_v39 = vperm.slane %v5010_v32, 4  ;;  %v5022_v30 = vmul.f32 %v5012_v31, %v12088_v62  ;;  %v5023_v48 = vmul.f32 %v5013_v49, %v12089_v34  ;;  %v12093_v49 = vld [vmem:[#allocation75_spill] sm:$0xff] }
 0x410   : > { %v5024_v12 = vmul.f32 %v5014_v57, %v12090_v19  ;;  %v5025_v2 = vmul.f32 %v5015_v5, %v12091_v17  ;;  %v5039_v56 = vor.u32 %v7620_v38, %v7619_v59  ;;  %v5068_v55 = vor.u32 %v7622_v27, %v7621_v24  ;;  %v12094_v57 = vld [vmem:[#allocation76_spill] sm:$0xff]  ;;  %v12095_v24 = vld [vmem:[#allocation77_spill] sm:$0xff] }
 0x411   : > { %v5026_v8 = vmul.f32 %v5016_v39, %v12092_v6  ;;  %v5027_v10 = vadd.f32 %v5022_v30, %v4998_v20  ;;  %v5028_v29 = vadd.f32 %v5023_v48, %v4999_v26  ;;  %v5097_v50 = vor.u32 %v7624_v21, %v7623_v28  ;;  %v12096_v20 = vld [vmem:[#allocation78_spill] sm:$0xff] }
 0x412   : > { %v5029_v7 = vadd.f32 %v5024_v12, %v5000_v3  ;;  %v5030_v13 = vadd.f32 %v5025_v2, %v5001_v23  ;;  %v5041_v9 = vperm.slane %v5039_v56, 0  ;;  %v5042_v37 = vperm.slane %v5039_v56, 1  ;;  %v12097_v2 = vld [vmem:[#allocation79_spill] sm:$0xff]  ;;  %v12098_v12 = vld [vmem:[#allocation84_spill] sm:$0xff] }
 0x413   : > { %v5031_v32 = vadd.f32 %v5026_v8, %v5002_v46  ;;  %v5043_v53 = vperm.slane %v5039_v56, 2  ;;  %v5044_v31 = vperm.slane %v5039_v56, 3  ;;  %v5045_v22 = vperm.slane %v5039_v56, 4 }
 0x414   : > { %v5051_v34 = vmul.f32 %v5041_v9, %v12093_v49  ;;  %v5052_v5 = vmul.f32 %v5042_v37, %v12094_v57  ;;  %v5070_v59 = vperm.slane %v5068_v55, 0  ;;  %v5071_v38 = vperm.slane %v5068_v55, 1  ;;  %v7625_v9 = vld [vmem:[%s8267_s1 + $0x2c] ss:$8 sm:$0xf] }
 0x415   : > { %v5053_v27 = vmul.f32 %v5043_v53, %v12095_v24  ;;  %v5054_v28 = vmul.f32 %v5044_v31, %v12096_v20  ;;  %v5055_v26 = vmul.f32 %v5045_v22, %v12097_v2  ;;  %v5072_v3 = vperm.slane %v5068_v55, 2  ;;  %v7626_v37 = vld [vmem:[%s8267_s1 + $0x2c] ss:$8 sm:$0x10]  ;;  %v12102_v24 = vld [vmem:[#allocation93_spill] sm:$0xff] }
 0x416   : > { %v5056_v8 = vadd.f32 %v5051_v34, %v5027_v10  ;;  %v5057_v23 = vadd.f32 %v5052_v5, %v5028_v29  ;;  %v5073_v21 = vperm.slane %v5068_v55, 3  ;;  %v5074_v46 = vperm.slane %v5068_v55, 4  ;;  %v7627_v53 = vld [vmem:[%s8267_s1 + $0x2d] ss:$8 sm:$0xf] }
 0x417   : > { %v5058_v39 = vadd.f32 %v5053_v27, %v5029_v7  ;;  %v5059_v30 = vadd.f32 %v5054_v28, %v5030_v13  ;;  %v5060_v48 = vadd.f32 %v5055_v26, %v5031_v32  ;;  %v5080_v56 = vmul.f32 %v5070_v59, %v12098_v12  ;;  %v7628_v34 = vld [vmem:[%s8267_s1 + $0x2d] ss:$8 sm:$0x10]  ;;  %v7629_v29 = vld [vmem:[%s8267_s1 + $0x2e] ss:$8 sm:$0xf] }
 0x418   : > { %v5081_v31 = vmul.f32 %v5071_v38, %v12026_v25  ;;  %v5082_v22 = vmul.f32 %v5072_v3, %v12027_v63  ;;  %v5083_v2 = vmul.f32 %v5073_v21, %v12028_v43  ;;  %v5084_v10 = vmul.f32 %v5074_v46, %v12029_v16  ;;  %v7630_v32 = vld [vmem:[%s8267_s1 + $0x2e] ss:$8 sm:$0x10]  ;;  %v12099_v3 = vld [vmem:[#allocation90_spill] sm:$0xff] }
 0x419   : > { %v5085_v55 = vadd.f32 %v5080_v56, %v5056_v8  ;;  %v5099_v7 = vperm.slane %v5097_v50, 0  ;;  %v5100_v13 = vperm.slane %v5097_v50, 1  ;;  %v5101_v5 = vperm.slane %v5097_v50, 2  ;;  %v12100_v21 = vld [vmem:[#allocation91_spill] sm:$0xff]  ;;  %v12101_v8 = vld [vmem:[#allocation92_spill] sm:$0xff] }
 0x41a   : > { %v5086_v27 = vadd.f32 %v5081_v31, %v5057_v23  ;;  %v5087_v59 = vadd.f32 %v5082_v22, %v5058_v39  ;;  %v5088_v28 = vadd.f32 %v5083_v2, %v5059_v30  ;;  %v5089_v26 = vadd.f32 %v5084_v10, %v5060_v48 }
 0x41b   : > { %v5102_v12 = vperm.slane %v5097_v50, 3  ;;  %v5103_v20 = vperm.slane %v5097_v50, 4  ;;  %v5109_v38 = vmul.f32 %v5099_v7, %v12030_v1  ;;  %v5110_v63 = vmul.f32 %v5100_v13, %v12099_v3  ;;  %v12103_v7 = vld [vmem:[#allocation37_spill] sm:$0xff] }
 0x41c   : > { %v5111_v43 = vmul.f32 %v5101_v5, %v12100_v21  ;;  %v5126_v46 = vor.u32 %v7626_v37, %v7625_v9  ;;  %v5155_v16 = vor.u32 %v7628_v34, %v7627_v53  ;;  %v5184_v25 = vor.u32 %v7630_v32, %v7629_v29  ;;  %v12104_v5 = vld [vmem:[#allocation80_spill] sm:$0xff]  ;;  %v12105_v37 = vld [vmem:[#allocation81_spill] sm:$0xff]  ;;  %v12106_v53 = vld [vmem:[#allocation82_spill] sm:$0xff] }
 0x41d   : > { %v5112_v56 = vmul.f32 %v5102_v12, %v12101_v8  ;;  %v5113_v57 = vmul.f32 %v5103_v20, %v12102_v24  ;;  %v5114_v49 = vadd.f32 %v5109_v38, %v5085_v55  ;;  %v5115_v23 = vadd.f32 %v5110_v63, %v5086_v27 }
 0x41e   : > { %v5116_v39 = vadd.f32 %v5111_v43, %v5087_v59  ;;  %v5128_v2 = vperm.slane %v5126_v46, 0  ;;  %v5129_v30 = vperm.slane %v5126_v46, 1  ;;  %v5130_v48 = vperm.slane %v5126_v46, 2  ;;  %v12107_v43 = vld [vmem:[#allocation83_spill] sm:$0xff] }
 0x41f   : > { %v5117_v50 = vadd.f32 %v5112_v56, %v5088_v28  ;;  %v5118_v31 = vadd.f32 %v5113_v57, %v5089_v26  ;;  %v5131_v22 = vperm.slane %v5126_v46, 3  ;;  %v5132_v10 = vperm.slane %v5126_v46, 4  ;;  %v12108_v46 = vld [vmem:[#allocation94_spill] sm:$0xff] }
 0x420   : > { %v5138_v13 = vmul.f32 %v5128_v2, %v12103_v7  ;;  %v5139_v9 = vmul.f32 %v5129_v30, %v12104_v5  ;;  %v5140_v12 = vmul.f32 %v5130_v48, %v12105_v37  ;;  %v5157_v20 = vperm.slane %v5155_v16, 0  ;;  %v7631_v2 = vld [vmem:[%s8267_s1 + $0x2f] ss:$8 sm:$0xf] }
 0x421   : > { %v5141_v63 = vmul.f32 %v5131_v22, %v12106_v53  ;;  %v5142_v34 = vmul.f32 %v5132_v10, %v12107_v43  ;;  %v5158_v29 = vperm.slane %v5155_v16, 1  ;;  %v5159_v55 = vperm.slane %v5155_v16, 2  ;;  %v7632_v30 = vld [vmem:[%s8267_s1 + $0x2f] ss:$8 sm:$0x10]  ;;  %v12113_v5 = vld [vmem:[#allocation102_spill] sm:$0xff] }
 0x422   : > { %v5143_v57 = vadd.f32 %v5138_v13, %v5114_v49  ;;  %v5144_v32 = vadd.f32 %v5139_v9, %v5115_v23  ;;  %v5145_v27 = vadd.f32 %v5140_v12, %v5116_v39  ;;  %v5160_v59 = vperm.slane %v5155_v16, 3  ;;  %v7633_v48 = vld [vmem:[%s8267_s1 + $0x50] ss:$8 sm:$0xf] }
 0x423   : > { %v5146_v28 = vadd.f32 %v5141_v63, %v5117_v50  ;;  %v5147_v26 = vadd.f32 %v5142_v34, %v5118_v31  ;;  %v5161_v38 = vperm.slane %v5155_v16, 4  ;;  %v5167_v56 = vmul.f32 %v5157_v20, %v12108_v46  ;;  %v7634_v23 = vld [vmem:[%s8267_s1 + $0x50] ss:$8 sm:$0x10]  ;;  %v12109_v39 = vld [vmem:[#allocation98_spill] sm:$0xff] }
 0x424   : > { %v5168_v22 = vmul.f32 %v5158_v29, %v12037_v52  ;;  %v5169_v10 = vmul.f32 %v5159_v55, %v12038_v11  ;;  %v5170_v43 = vmul.f32 %v5160_v59, %v12039_v15  ;;  %v5186_v49 = vperm.slane %v5184_v25, 0  ;;  %v7635_v16 = vld [vmem:[%s8267_s1 + $0x51] ss:$8 sm:$0xf] }
 0x425   : > { %v5171_v13 = vmul.f32 %v5161_v38, %v12109_v39  ;;  %v5172_v50 = vadd.f32 %v5167_v56, %v5143_v57  ;;  %v5187_v9 = vperm.slane %v5184_v25, 1  ;;  %v5188_v31 = vperm.slane %v5184_v25, 2  ;;  %v7636_v46 = vld [vmem:[%s8267_s1 + $0x51] ss:$8 sm:$0x10]  ;;  %v12110_v29 = vld [vmem:[#allocation99_spill] sm:$0xff] }
 0x426   : > { %v5173_v12 = vadd.f32 %v5168_v22, %v5144_v32  ;;  %v5174_v20 = vadd.f32 %v5169_v10, %v5145_v27  ;;  %v5175_v63 = vadd.f32 %v5170_v43, %v5146_v28  ;;  %v5189_v34 = vperm.slane %v5184_v25, 3  ;;  %v12111_v55 = vld [vmem:[#allocation100_spill] sm:$0xff]  ;;  %v12112_v59 = vld [vmem:[#allocation101_spill] sm:$0xff]  ;;  %v12114_v56 = vld [vmem:[#allocation103_spill] sm:$0xff] }
 0x427   : > { %v5176_v53 = vadd.f32 %v5171_v13, %v5147_v26  ;;  %v5190_v37 = vperm.slane %v5184_v25, 4  ;;  %v5196_v52 = vmul.f32 %v5186_v49, %v12110_v29  ;;  %v5197_v11 = vmul.f32 %v5187_v9, %v12111_v55  ;;  %v12115_v9 = vld [vmem:[#allocation108_spill] sm:$0xff] }
 0x428   : > { %v5198_v15 = vmul.f32 %v5188_v31, %v12112_v59  ;;  %v5199_v7 = vmul.f32 %v5189_v34, %v12113_v5  ;;  %v5213_v38 = vor.u32 %v7632_v30, %v7631_v2  ;;  %v5242_v57 = vor.u32 %v7634_v23, %v7633_v48  ;;  %v12116_v31 = vld [vmem:[#allocation109_spill] sm:$0xff] }
 0x429   : > { %v5200_v39 = vmul.f32 %v5190_v37, %v12114_v56  ;;  %v5201_v24 = vadd.f32 %v5196_v52, %v5172_v50  ;;  %v5202_v32 = vadd.f32 %v5197_v11, %v5173_v12  ;;  %v5271_v27 = vor.u32 %v7636_v46, %v7635_v16  ;;  %v12117_v52 = vld [vmem:[#allocation110_spill] sm:$0xff]  ;;  %v12118_v46 = vld [vmem:[#allocation111_spill] sm:$0xff] }
 0x42a   : > { %v5203_v43 = vadd.f32 %v5198_v15, %v5174_v20  ;;  %v5204_v28 = vadd.f32 %v5199_v7, %v5175_v63  ;;  %v5215_v22 = vperm.slane %v5213_v38, 0  ;;  %v5216_v26 = vperm.slane %v5213_v38, 1  ;;  %v12119_v7 = vld [vmem:[#allocation112_spill] sm:$0xff]  ;;  %v12120_v63 = vld [vmem:[#allocation113_spill] sm:$0xff]  ;;  %v12127_v56 = vld [vmem:[#allocation107_spill] sm:$0xff] }
 0x42b   : > { %v5205_v25 = vadd.f32 %v5200_v39, %v5176_v53  ;;  %v5217_v10 = vperm.slane %v5213_v38, 2  ;;  %v5218_v49 = vperm.slane %v5213_v38, 3  ;;  %v5219_v13 = vperm.slane %v5213_v38, 4 }
 0x42c   : > { %v5225_v55 = vmul.f32 %v5215_v22, %v12115_v9  ;;  %v5226_v34 = vmul.f32 %v5216_v26, %v12116_v31  ;;  %v5244_v2 = vperm.slane %v5242_v57, 0  ;;  %v5245_v37 = vperm.slane %v5242_v57, 1  ;;  %v7637_v22 = vld [vmem:[%s8267_s1 + $0x52] ss:$8 sm:$0xf] }
 0x42d   : > { %v5227_v11 = vmul.f32 %v5217_v10, %v12117_v52  ;;  %v5228_v15 = vmul.f32 %v5218_v49, %v12118_v46  ;;  %v5229_v30 = vmul.f32 %v5219_v13, %v12119_v7  ;;  %v5246_v48 = vperm.slane %v5242_v57, 2  ;;  %v7638_v26 = vld [vmem:[%s8267_s1 + $0x52] ss:$8 sm:$0x10] }
 0x42e   : > { %v5230_v53 = vadd.f32 %v5225_v55, %v5201_v24  ;;  %v5231_v23 = vadd.f32 %v5226_v34, %v5202_v32  ;;  %v5247_v39 = vperm.slane %v5242_v57, 3  ;;  %v5248_v50 = vperm.slane %v5242_v57, 4  ;;  %v7639_v10 = vld [vmem:[%s8267_s1 + $0x53] ss:$8 sm:$0xf] }
 0x42f   : > { %v5232_v16 = vadd.f32 %v5227_v11, %v5203_v43  ;;  %v5233_v12 = vadd.f32 %v5228_v15, %v5204_v28  ;;  %v5234_v20 = vadd.f32 %v5229_v30, %v5205_v25  ;;  %v5254_v38 = vmul.f32 %v5244_v2, %v12120_v63  ;;  %v12121_v7 = vld [vmem:[#allocation116_spill] sm:$0xff]  ;;  %v12122_v24 = vld [vmem:[#allocation117_spill] sm:$0xff] }
 0x430   : > { %v5255_v49 = vmul.f32 %v5245_v37, %v12048_v14  ;;  %v5256_v13 = vmul.f32 %v5246_v48, %v12049_v18  ;;  %v5257_v46 = vmul.f32 %v5247_v39, %v12121_v7  ;;  %v5258_v55 = vmul.f32 %v5248_v50, %v12122_v24  ;;  %v7640_v32 = vld [vmem:[%s8267_s1 + $0x53] ss:$8 sm:$0x10]  ;;  %v7641_v34 = vld [vmem:[%s8267_s1 + $0x54] ss:$8 sm:$0xf] }
 0x431   : > { %v5259_v57 = vadd.f32 %v5254_v38, %v5230_v53  ;;  %v5273_v43 = vperm.slane %v5271_v27, 0  ;;  %v5274_v28 = vperm.slane %v5271_v27, 1  ;;  %v5275_v11 = vperm.slane %v5271_v27, 2  ;;  %v7642_v25 = vld [vmem:[%s8267_s1 + $0x54] ss:$8 sm:$0x10] }
 0x432   : > { %v5260_v15 = vadd.f32 %v5255_v49, %v5231_v23  ;;  %v5261_v2 = vadd.f32 %v5256_v13, %v5232_v16  ;;  %v5262_v30 = vadd.f32 %v5257_v46, %v5233_v12  ;;  %v5263_v63 = vadd.f32 %v5258_v55, %v5234_v20  ;;  %v12123_v37 = vld [vmem:[#allocation38_spill] sm:$0xff]  ;;  %v12124_v48 = vld [vmem:[#allocation104_spill] sm:$0xff]  ;;  %v12125_v39 = vld [vmem:[#allocation105_spill] sm:$0xff] }
 0x433   : > { %v5276_v52 = vperm.slane %v5271_v27, 3  ;;  %v5277_v31 = vperm.slane %v5271_v27, 4  ;;  %v5283_v14 = vmul.f32 %v5273_v43, %v12123_v37  ;;  %v5284_v18 = vmul.f32 %v5274_v28, %v12124_v48  ;;  %v12126_v53 = vld [vmem:[#allocation106_spill] sm:$0xff] }
 0x434   : > { %v5285_v7 = vmul.f32 %v5275_v11, %v12125_v39  ;;  %v5300_v50 = vor.u32 %v7638_v26, %v7637_v22  ;;  %v5329_v24 = vor.u32 %v7640_v32, %v7639_v10  ;;  %v5358_v9 = vor.u32 %v7642_v25, %v7641_v34  ;;  %v12128_v43 = vld [vmem:[#allocation118_spill] sm:$0xff]  ;;  %v12129_v11 = vld [vmem:[#allocation119_spill] sm:$0xff]  ;;  %v12130_v26 = vld [vmem:[#allocation120_spill] sm:$0xff] }
 0x435   : > { %v5286_v38 = vmul.f32 %v5276_v52, %v12126_v53  ;;  %v5287_v5 = vmul.f32 %v5277_v31, %v12127_v56  ;;  %v5288_v59 = vadd.f32 %v5283_v14, %v5259_v57  ;;  %v5289_v23 = vadd.f32 %v5284_v18, %v5260_v15  ;;  %v12131_v14 = vld [vmem:[#allocation121_spill] sm:$0xff] }
 0x436   : > { %v5290_v16 = vadd.f32 %v5285_v7, %v5261_v2  ;;  %v5302_v46 = vperm.slane %v5300_v50, 0  ;;  %v5303_v12 = vperm.slane %v5300_v50, 1  ;;  %v5304_v20 = vperm.slane %v5300_v50, 2  ;;  %v12132_v7 = vld [vmem:[#allocation122_spill] sm:$0xff] }
 0x437   : > { %v5291_v27 = vadd.f32 %v5286_v38, %v5262_v30  ;;  %v5292_v49 = vadd.f32 %v5287_v5, %v5263_v63  ;;  %v5305_v13 = vperm.slane %v5300_v50, 3  ;;  %v5306_v55 = vperm.slane %v5300_v50, 4  ;;  %v7643_v38 = vld [vmem:[%s8267_s1 + $0x55] ss:$8 sm:$0xf] }
 0x438   : > { %v5312_v28 = vmul.f32 %v5302_v46, %v12128_v43  ;;  %v5313_v22 = vmul.f32 %v5303_v12, %v12129_v11  ;;  %v5314_v52 = vmul.f32 %v5304_v20, %v12130_v26  ;;  %v5331_v31 = vperm.slane %v5329_v24, 0  ;;  %v7644_v46 = vld [vmem:[%s8267_s1 + $0x55] ss:$8 sm:$0x10] }
 0x439   : > { %v5315_v18 = vmul.f32 %v5305_v13, %v12131_v14  ;;  %v5316_v10 = vmul.f32 %v5306_v55, %v12132_v7  ;;  %v5332_v32 = vperm.slane %v5329_v24, 1  ;;  %v5333_v34 = vperm.slane %v5329_v24, 2  ;;  %v7645_v12 = vld [vmem:[%s8267_s1 + $0x56] ss:$8 sm:$0xf] }
 0x43a   : > { %v5317_v5 = vadd.f32 %v5312_v28, %v5288_v59  ;;  %v5318_v63 = vadd.f32 %v5313_v22, %v5289_v23  ;;  %v5319_v57 = vadd.f32 %v5314_v52, %v5290_v16  ;;  %v5334_v25 = vperm.slane %v5329_v24, 3  ;;  %v7646_v23 = vld [vmem:[%s8267_s1 + $0x56] ss:$8 sm:$0x10]  ;;  %v12136_v14 = vld [vmem:[#allocation134_spill] sm:$0xff] }
 0x43b   : > { %v5320_v15 = vadd.f32 %v5315_v18, %v5291_v27  ;;  %v5321_v2 = vadd.f32 %v5316_v10, %v5292_v49  ;;  %v5335_v30 = vperm.slane %v5329_v24, 4  ;;  %v5341_v50 = vmul.f32 %v5331_v31, %v12062_v61  ;;  %v7647_v24 = vld [vmem:[%s8267_s1 + $0x57] ss:$8 sm:$0xf] }
 0x43c   : > { %v5342_v20 = vmul.f32 %v5332_v32, %v12063_v58  ;;  %v5343_v13 = vmul.f32 %v5333_v34, %v12064_v40  ;;  %v5344_v55 = vmul.f32 %v5334_v25, %v12065_v35  ;;  %v5360_v59 = vperm.slane %v5358_v9, 0  ;;  %v7648_v10 = vld [vmem:[%s8267_s1 + $0x57] ss:$8 sm:$0x10]  ;;  %v12133_v32 = vld [vmem:[#allocation131_spill] sm:$0xff]  ;;  %v12135_v25 = vld [vmem:[#allocation133_spill] sm:$0xff] }
 0x43d   : > { %v5345_v16 = vmul.f32 %v5335_v30, %v12066_v42  ;;  %v5346_v27 = vadd.f32 %v5341_v50, %v5317_v5  ;;  %v5361_v28 = vperm.slane %v5358_v9, 1  ;;  %v5362_v49 = vperm.slane %v5358_v9, 2  ;;  %v12134_v34 = vld [vmem:[#allocation132_spill] sm:$0xff]  ;;  %v12137_v50 = vld [vmem:[#allocation135_spill] sm:$0xff] }
 0x43e   : > { %v5347_v22 = vadd.f32 %v5342_v20, %v5318_v63  ;;  %v5348_v52 = vadd.f32 %v5343_v13, %v5319_v57  ;;  %v5349_v31 = vadd.f32 %v5344_v55, %v5320_v15  ;;  %v5363_v18 = vperm.slane %v5358_v9, 3 }
 0x43f   : > { %v5350_v61 = vadd.f32 %v5345_v16, %v5321_v2  ;;  %v5364_v7 = vperm.slane %v5358_v9, 4  ;;  %v5370_v58 = vmul.f32 %v5360_v59, %v12133_v32  ;;  %v5371_v40 = vmul.f32 %v5361_v28, %v12134_v34  ;;  %v12138_v28 = vld [vmem:[#allocation136_spill] sm:$0xff] }
 0x440   : > { %v5372_v35 = vmul.f32 %v5362_v49, %v12135_v25  ;;  %v5373_v26 = vmul.f32 %v5363_v18, %v12136_v14  ;;  %v5387_v30 = vor.u32 %v7644_v46, %v7643_v38  ;;  %v5416_v5 = vor.u32 %v7646_v23, %v7645_v12  ;;  %v12139_v49 = vld [vmem:[#allocation137_spill] sm:$0xff]  ;;  %v12141_v46 = vld [vmem:[#allocation139_spill] sm:$0xff] }
 0x441   : > { %v5374_v42 = vmul.f32 %v5364_v7, %v12137_v50  ;;  %v5375_v11 = vadd.f32 %v5370_v58, %v5346_v27  ;;  %v5376_v63 = vadd.f32 %v5371_v40, %v5347_v22  ;;  %v5445_v57 = vor.u32 %v7648_v10, %v7647_v24  ;;  %v12140_v58 = vld [vmem:[#allocation138_spill] sm:$0xff]  ;;  %v12143_v10 = vld [vmem:[#allocation128_spill] sm:$0xff]  ;;  %v12152_v25 = vld [vmem:[#allocation145_spill] sm:$0xff] }
 0x442   : > { %v5377_v15 = vadd.f32 %v5372_v35, %v5348_v52  ;;  %v5378_v20 = vadd.f32 %v5373_v26, %v5349_v31  ;;  %v5389_v13 = vperm.slane %v5387_v30, 0  ;;  %v5390_v2 = vperm.slane %v5387_v30, 1  ;;  %v12142_v26 = vld [vmem:[#allocation140_spill] sm:$0xff] }
 0x443   : > { %v5379_v9 = vadd.f32 %v5374_v42, %v5350_v61  ;;  %v5391_v55 = vperm.slane %v5387_v30, 2  ;;  %v5392_v59 = vperm.slane %v5387_v30, 3  ;;  %v5393_v16 = vperm.slane %v5387_v30, 4 }
 0x444   : > { %v5399_v34 = vmul.f32 %v5389_v13, %v12138_v28  ;;  %v5400_v18 = vmul.f32 %v5390_v2, %v12139_v49  ;;  %v5418_v38 = vperm.slane %v5416_v5, 0  ;;  %v5419_v7 = vperm.slane %v5416_v5, 1  ;;  %v7649_v13 = vld [vmem:[%s8267_s1 + $0x78] ss:$8 sm:$0xf] }
 0x445   : > { %v5401_v40 = vmul.f32 %v5391_v55, %v12140_v58  ;;  %v5402_v35 = vmul.f32 %v5392_v59, %v12141_v46  ;;  %v5403_v12 = vmul.f32 %v5393_v16, %v12142_v26  ;;  %v5420_v23 = vperm.slane %v5416_v5, 2  ;;  %v7650_v2 = vld [vmem:[%s8267_s1 + $0x78] ss:$8 sm:$0x10]  ;;  %v12145_v46 = vld [vmem:[#allocation20_spill] sm:$0xff]  ;;  %v12146_v26 = vld [vmem:[#allocation31_spill] sm:$0xff] }
 0x446   : > { %v5404_v61 = vadd.f32 %v5399_v34, %v5375_v11  ;;  %v5405_v42 = vadd.f32 %v5400_v18, %v5376_v63  ;;  %v5421_v27 = vperm.slane %v5416_v5, 3  ;;  %v5422_v24 = vperm.slane %v5416_v5, 4  ;;  %v5506_v55 = vld [vmem:[%s8267_s1] ss:$8 sm:$0xf] }
 0x447   : > { %v5406_v22 = vadd.f32 %v5401_v40, %v5377_v15  ;;  %v5407_v52 = vadd.f32 %v5402_v35, %v5378_v20  ;;  %v5408_v31 = vadd.f32 %v5403_v12, %v5379_v9  ;;  %v5428_v30 = vmul.f32 %v5418_v38, %v12143_v10  ;;  %v12144_v58 = vld [vmem:[#allocation129_spill] sm:$0xff]  ;;  %v12147_v11 = vld [vmem:[#allocation130_spill] sm:$0xff] }
 0x448   : > { %v5429_v59 = vmul.f32 %v5419_v7, %v12144_v58  ;;  %v5430_v16 = vmul.f32 %v5420_v23, %v12145_v46  ;;  %v5431_v49 = vmul.f32 %v5421_v27, %v12146_v26  ;;  %v5432_v34 = vmul.f32 %v5422_v24, %v12147_v11  ;;  %v5507_v63 = vld [vmem:[%s8267_s1] ss:$8 sm:$0x10]  ;;  %v7651_v18 = vld [vmem:[%s8267_s1 + $0x1] ss:$8 sm:$0xf] }
 0x449   : > { %v5433_v5 = vadd.f32 %v5428_v30, %v5404_v61  ;;  %v5447_v15 = vperm.slane %v5445_v57, 0  ;;  %v5448_v20 = vperm.slane %v5445_v57, 1  ;;  %v5449_v40 = vperm.slane %v5445_v57, 2  ;;  %v7652_v9 = vld [vmem:[%s8267_s1 + $0x1] ss:$8 sm:$0x10] }
 0x44a   : > { %v5434_v35 = vadd.f32 %v5429_v59, %v5405_v42  ;;  %v5435_v38 = vadd.f32 %v5430_v16, %v5406_v22  ;;  %v5436_v12 = vadd.f32 %v5431_v49, %v5407_v52  ;;  %v5437_v10 = vadd.f32 %v5432_v34, %v5408_v31  ;;  %v12148_v7 = vld [vmem:[#allocation141_spill] sm:$0xff]  ;;  %v12149_v23 = vld [vmem:[#allocation142_spill] sm:$0xff]  ;;  %v12150_v27 = vld [vmem:[#allocation143_spill] sm:$0xff] }
 0x44b   : > { %v5450_v28 = vperm.slane %v5445_v57, 3  ;;  %v5451_v50 = vperm.slane %v5445_v57, 4  ;;  %v5457_v58 = vmul.f32 %v5447_v15, %v12148_v7  ;;  %v5458_v46 = vmul.f32 %v5448_v20, %v12149_v23  ;;  %v12151_v61 = vld [vmem:[#allocation144_spill] sm:$0xff] }
 0x44c   : > { %v5459_v26 = vmul.f32 %v5449_v40, %v12150_v27  ;;  %v5474_v24 = vor.u32 %v7650_v2, %v7649_v13  ;;  %v5508_v11 = vor.u32 %v5507_v63, %v5506_v55  ;;  %v5537_v14 = vor.u32 %v7652_v9, %v7651_v18  ;;  %v12153_v13 = vld [vmem:[#allocation146_spill] sm:$0xff]  ;;  %v12155_v63 = vld [vmem:[#allocation147_spill] sm:$0xff]  ;;  %v12157_v18 = vld [vmem:[#allocation149_spill] sm:$0xff] }
 0x44d   : > { %v5460_v30 = vmul.f32 %v5450_v28, %v12151_v61  ;;  %v5461_v32 = vmul.f32 %v5451_v50, %v12152_v25  ;;  %v5462_v43 = vadd.f32 %v5457_v58, %v5433_v5  ;;  %v5463_v42 = vadd.f32 %v5458_v46, %v5434_v35  ;;  %v12154_v55 = vld [vmem:[#allocation30_spill] sm:$0xff]  ;;  %v12156_v46 = vld [vmem:[#allocation148_spill] sm:$0xff] }
 0x44e   : > { %v5464_v22 = vadd.f32 %v5459_v26, %v5435_v38  ;;  %v5476_v49 = vperm.slane %v5474_v24, 0  ;;  %v5477_v57 = vperm.slane %v5474_v24, 1  ;;  %v5478_v52 = vperm.slane %v5474_v24, 2  ;;  %v7653_v40 = vld [vmem:[%s8267_s1 + $0x2] ss:$8 sm:$0xf] }
 0x44f   : > { %v5465_v31 = vadd.f32 %v5460_v30, %v5436_v12  ;;  %v5466_v59 = vadd.f32 %v5461_v32, %v5437_v10  ;;  %v5479_v16 = vperm.slane %v5474_v24, 3  ;;  %v5480_v34 = vperm.slane %v5474_v24, 4  ;;  %v7654_v32 = vld [vmem:[%s8267_s1 + $0x2] ss:$8 sm:$0x10] }
 0x450   : > { %v5486_v2 = vmul.f32 %v5476_v49, %v12153_v13  ;;  %v5487_v28 = vmul.f32 %v5477_v57, %v12154_v55  ;;  %v5488_v50 = vmul.f32 %v5478_v52, %v12155_v63  ;;  %v5510_v58 = vperm.slane %v5508_v11, 0  ;;  %v7655_v10 = vld [vmem:[%s8267_s1 + $0x3] ss:$8 sm:$0xf] }
 0x451   : > { %v5489_v26 = vmul.f32 %v5479_v16, %v12156_v46  ;;  %v5490_v5 = vmul.f32 %v5480_v34, %v12157_v18  ;;  %v5511_v15 = vperm.slane %v5508_v11, 1  ;;  %v5512_v20 = vperm.slane %v5508_v11, 2  ;;  %v7656_v24 = vld [vmem:[%s8267_s1 + $0x3] ss:$8 sm:$0x10] }
 0x452   : > { %v5491_v9 = vadd.f32 %v5486_v2, %v5462_v43  ;;  %v5492_v35 = vadd.f32 %v5487_v28, %v5463_v42  ;;  %v5493_v38 = vadd.f32 %v5488_v50, %v5464_v22  ;;  %v5513_v12 = vperm.slane %v5508_v11, 3  ;;  %v7657_v16 = vld [vmem:[%s8267_s1 + $0x4] ss:$8 sm:$0xf] }
 0x453   : > { %v5494_v30 = vadd.f32 %v5489_v26, %v5465_v31  ;;  %v5495_v49 = vadd.f32 %v5490_v5, %v5466_v59  ;;  %v5514_v57 = vperm.slane %v5508_v11, 4  ;;  %v5520_v52 = vmul.f32 %v5510_v58, %v12076_v0  ;;  %v7658_v42 = vld [vmem:[%s8267_s1 + $0x4] ss:$8 sm:$0x10] }
 0x454   : > { %5496 = vst [vmem:[%s10314_s25 + $0x78] sm:$0xff] %v5491_v9  ;;  %v5521_v34 = vmul.f32 %v5511_v15, %v12077_v33  ;;  %v5522_v18 = vmul.f32 %v5512_v20, %v12078_v54  ;;  %v5523_v43 = vmul.f32 %v5513_v12, %v12079_v60  ;;  %v5539_v2 = vperm.slane %v5537_v14, 0  ;;  %v12159_v12 = vld [vmem:[#allocation57_spill] sm:$0xff] }
 0x455   : > { %5497 = vst [vmem:[%s10314_s25 + $0x80] sm:$0xff] %v5492_v35  ;;  %v5524_v22 = vmul.f32 %v5514_v57, %v12080_v36  ;;  %v5540_v31 = vperm.slane %v5537_v14, 1  ;;  %v5541_v59 = vperm.slane %v5537_v14, 2  ;;  %v5542_v11 = vperm.slane %v5537_v14, 3 }
 0x456   : > { %5498 = vst [vmem:[%s10314_s25 + $0x88] sm:$0xff] %v5493_v38  ;;  %v5543_v0 = vperm.slane %v5537_v14, 4  ;;  %v5549_v28 = vmul.f32 %v5539_v2, %v12081_v51  ;;  %v5566_v50 = vor.u32 %v7654_v32, %v7653_v40  ;;  %v5595_v58 = vor.u32 %v7656_v24, %v7655_v10  ;;  %v12158_v38 = vld [vmem:[#allocation56_spill] sm:$0xff] }
 0x457   : > { %5499 = vst [vmem:[%s10314_s25 + $0x90] sm:$0xff] %v5494_v30  ;;  %v5550_v33 = vmul.f32 %v5540_v31, %v12082_v47  ;;  %v5551_v54 = vmul.f32 %v5541_v59, %v12083_v4  ;;  %v5552_v60 = vmul.f32 %v5542_v11, %v12084_v45  ;;  %v5624_v26 = vor.u32 %v7658_v42, %v7657_v16  ;;  %v12160_v30 = vld [vmem:[#allocation58_spill] sm:$0xff]  ;;  %v12162_v59 = vld [vmem:[#allocation71_spill] sm:$0xff] }
 0x458   : > { %5500 = vst [vmem:[%s10314_s25 + $0x98] sm:$0xff] %v5495_v49  ;;  %v5553_v36 = vmul.f32 %v5543_v0, %v12085_v44  ;;  %v5554_v5 = vadd.f32 %v5549_v28, %v5520_v52  ;;  %v5568_v15 = vperm.slane %v5566_v50, 0  ;;  %v5569_v20 = vperm.slane %v5566_v50, 1  ;;  %v7659_v0 = vld [vmem:[%s8267_s1 + $0x5] ss:$8 sm:$0xf] }
 0x459   : > { %v5555_v9 = vadd.f32 %v5550_v33, %v5521_v34  ;;  %v5556_v14 = vadd.f32 %v5551_v54, %v5522_v18  ;;  %v5557_v35 = vadd.f32 %v5552_v60, %v5523_v43  ;;  %v5570_v51 = vperm.slane %v5566_v50, 2  ;;  %v12161_v18 = vld [vmem:[#allocation59_spill] sm:$0xff]  ;;  %v7660_v28 = vld [vmem:[%s8267_s1 + $0x5] ss:$8 sm:$0x10] }
 0x45a   : > { %v5558_v40 = vadd.f32 %v5553_v36, %v5524_v22  ;;  %v5571_v32 = vperm.slane %v5566_v50, 3  ;;  %v5572_v10 = vperm.slane %v5566_v50, 4  ;;  %v5578_v47 = vmul.f32 %v5568_v15, %v12086_v41  ;;  %v7661_v50 = vld [vmem:[%s8267_s1 + $0x6] ss:$8 sm:$0xf] }
 0x45b   : > { %v5579_v4 = vmul.f32 %v5569_v20, %v12158_v38  ;;  %v5580_v45 = vmul.f32 %v5570_v51, %v12159_v12  ;;  %v5597_v24 = vperm.slane %v5595_v58, 0  ;;  %v5598_v44 = vperm.slane %v5595_v58, 1  ;;  %v7662_v33 = vld [vmem:[%s8267_s1 + $0x6] ss:$8 sm:$0x10]  ;;  %v12165_v12 = vld [vmem:[#allocation77_spill] sm:$0xff] }
 0x45c   : > { %v5581_v49 = vmul.f32 %v5571_v32, %v12160_v30  ;;  %v5582_v57 = vmul.f32 %v5572_v10, %v12161_v18  ;;  %v5583_v52 = vadd.f32 %v5578_v47, %v5554_v5  ;;  %v5599_v16 = vperm.slane %v5595_v58, 2  ;;  %v7663_v15 = vld [vmem:[%s8267_s1 + $0x7] ss:$8 sm:$0xf] }
 0x45d   : > { %v5584_v34 = vadd.f32 %v5579_v4, %v5555_v9  ;;  %v5585_v43 = vadd.f32 %v5580_v45, %v5556_v14  ;;  %v5600_v41 = vperm.slane %v5595_v58, 3  ;;  %v5601_v2 = vperm.slane %v5595_v58, 4  ;;  %v12163_v47 = vld [vmem:[#allocation75_spill] sm:$0xff]  ;;  %v12164_v4 = vld [vmem:[#allocation76_spill] sm:$0xff]  ;;  %v12166_v45 = vld [vmem:[#allocation78_spill] sm:$0xff] }
 0x45e   : > { %v5586_v42 = vadd.f32 %v5581_v49, %v5557_v35  ;;  %v5587_v22 = vadd.f32 %v5582_v57, %v5558_v40  ;;  %v5607_v31 = vmul.f32 %v5597_v24, %v12088_v62  ;;  %v5608_v11 = vmul.f32 %v5598_v44, %v12162_v59  ;;  %v7664_v35 = vld [vmem:[%s8267_s1 + $0x7] ss:$8 sm:$0x10]  ;;  %v12167_v49 = vld [vmem:[#allocation79_spill] sm:$0xff]  ;;  %v12168_v59 = vld [vmem:[#allocation84_spill] sm:$0xff] }
 0x45f   : > { %v5609_v54 = vmul.f32 %v5599_v16, %v12090_v19  ;;  %v5610_v60 = vmul.f32 %v5600_v41, %v12091_v17  ;;  %v5611_v36 = vmul.f32 %v5601_v2, %v12092_v6  ;;  %v5626_v5 = vperm.slane %v5624_v26, 0 }
 0x460   : > { %v5612_v58 = vadd.f32 %v5607_v31, %v5583_v52  ;;  %v5613_v20 = vadd.f32 %v5608_v11, %v5584_v34  ;;  %v5627_v9 = vperm.slane %v5624_v26, 1  ;;  %v5628_v14 = vperm.slane %v5624_v26, 2 }
 0x461   : > { %v5614_v62 = vadd.f32 %v5609_v54, %v5585_v43  ;;  %v5615_v51 = vadd.f32 %v5610_v60, %v5586_v42  ;;  %v5616_v40 = vadd.f32 %v5611_v36, %v5587_v22  ;;  %v5629_v32 = vperm.slane %v5624_v26, 3  ;;  %v12169_v54 = vld [vmem:[#allocation85_spill] sm:$0xff]  ;;  %v12171_v60 = vld [vmem:[#allocation87_spill] sm:$0xff] }
 0x462   : > { %v5630_v10 = vperm.slane %v5624_v26, 4  ;;  %v5636_v38 = vmul.f32 %v5626_v5, %v12163_v47  ;;  %v5637_v19 = vmul.f32 %v5627_v9, %v12164_v4  ;;  %v5638_v17 = vmul.f32 %v5628_v14, %v12165_v12  ;;  %v12172_v5 = vld [vmem:[#allocation88_spill] sm:$0xff] }
 0x463   : > { %v5639_v6 = vmul.f32 %v5629_v32, %v12166_v45  ;;  %v5653_v24 = vor.u32 %v7660_v28, %v7659_v0  ;;  %v5682_v44 = vor.u32 %v7662_v33, %v7661_v50  ;;  %v5711_v30 = vor.u32 %v7664_v35, %v7663_v15  ;;  %v12170_v28 = vld [vmem:[#allocation86_spill] sm:$0xff]  ;;  %v12173_v45 = vld [vmem:[#allocation93_spill] sm:$0xff] }
 0x464   : > { %v5640_v18 = vmul.f32 %v5630_v10, %v12167_v49  ;;  %v5641_v57 = vadd.f32 %v5636_v38, %v5612_v58  ;;  %v5642_v52 = vadd.f32 %v5637_v19, %v5613_v20  ;;  %v5643_v16 = vadd.f32 %v5638_v17, %v5614_v62  ;;  %v7665_v47 = vld [vmem:[%s8267_s1 + $0x28] ss:$8 sm:$0xf]  ;;  %v7667_v4 = vld [vmem:[%s8267_s1 + $0x29] ss:$8 sm:$0xf] }
 0x465   : > { %v5644_v34 = vadd.f32 %v5639_v6, %v5615_v51  ;;  %v5655_v43 = vperm.slane %v5653_v24, 0  ;;  %v5656_v41 = vperm.slane %v5653_v24, 1  ;;  %v5657_v26 = vperm.slane %v5653_v24, 2  ;;  %v7666_v38 = vld [vmem:[%s8267_s1 + $0x28] ss:$8 sm:$0x10] }
 0x466   : > { %v5645_v2 = vadd.f32 %v5640_v18, %v5616_v40  ;;  %v5658_v42 = vperm.slane %v5653_v24, 3  ;;  %v5659_v22 = vperm.slane %v5653_v24, 4  ;;  %v5684_v31 = vperm.slane %v5682_v44, 0  ;;  %v7668_v19 = vld [vmem:[%s8267_s1 + $0x29] ss:$8 sm:$0x10] }
 0x467   : > { %v5665_v11 = vmul.f32 %v5655_v43, %v12168_v59  ;;  %v5666_v0 = vmul.f32 %v5656_v41, %v12169_v54  ;;  %v5667_v50 = vmul.f32 %v5657_v26, %v12170_v28  ;;  %v5685_v33 = vperm.slane %v5682_v44, 1  ;;  %v7669_v49 = vld [vmem:[%s8267_s1 + $0x2a] ss:$8 sm:$0xf] }
 0x468   : > { %v5668_v36 = vmul.f32 %v5658_v42, %v12171_v60  ;;  %v5669_v15 = vmul.f32 %v5659_v22, %v12172_v5  ;;  %v5686_v58 = vperm.slane %v5682_v44, 2  ;;  %v5687_v20 = vperm.slane %v5682_v44, 3  ;;  %v12174_v42 = vld [vmem:[#allocation37_spill] sm:$0xff] }
 0x469   : > { %v5670_v9 = vadd.f32 %v5665_v11, %v5641_v57  ;;  %v5671_v14 = vadd.f32 %v5666_v0, %v5642_v52  ;;  %v5672_v35 = vadd.f32 %v5667_v50, %v5643_v16  ;;  %v5688_v62 = vperm.slane %v5682_v44, 4  ;;  %v7670_v16 = vld [vmem:[%s8267_s1 + $0x2a] ss:$8 sm:$0x10]  ;;  %v12176_v0 = vld [vmem:[#allocation81_spill] sm:$0xff] }
 0x46a   : > { %v5673_v51 = vadd.f32 %v5668_v36, %v5644_v34  ;;  %v5674_v40 = vadd.f32 %v5669_v15, %v5645_v2  ;;  %v5694_v32 = vmul.f32 %v5684_v31, %v12030_v1  ;;  %v5695_v10 = vmul.f32 %v5685_v33, %v12099_v3  ;;  %v12175_v31 = vld [vmem:[#allocation80_spill] sm:$0xff]  ;;  %v12177_v33 = vld [vmem:[#allocation82_spill] sm:$0xff] }
 0x46b   : > { %v5696_v12 = vmul.f32 %v5686_v58, %v12100_v21  ;;  %v5697_v17 = vmul.f32 %v5687_v20, %v12101_v8  ;;  %v5698_v6 = vmul.f32 %v5688_v62, %v12173_v45  ;;  %v5713_v24 = vperm.slane %v5711_v30, 0 }
 0x46c   : > { %v5699_v44 = vadd.f32 %v5694_v32, %v5670_v9  ;;  %v5700_v18 = vadd.f32 %v5695_v10, %v5671_v14  ;;  %v5714_v57 = vperm.slane %v5711_v30, 1  ;;  %v5715_v52 = vperm.slane %v5711_v30, 2  ;;  %v12178_v9 = vld [vmem:[#allocation83_spill] sm:$0xff] }
 0x46d   : > { %v5701_v34 = vadd.f32 %v5696_v12, %v5672_v35  ;;  %v5702_v43 = vadd.f32 %v5697_v17, %v5673_v51  ;;  %v5703_v41 = vadd.f32 %v5698_v6, %v5674_v40  ;;  %v5716_v26 = vperm.slane %v5711_v30, 3 }
 0x46e   : > { %v5717_v2 = vperm.slane %v5711_v30, 4  ;;  %v5723_v22 = vmul.f32 %v5713_v24, %v12174_v42  ;;  %v5724_v11 = vmul.f32 %v5714_v57, %v12175_v31  ;;  %v5725_v50 = vmul.f32 %v5715_v52, %v12176_v0  ;;  %v12179_v57 = vld [vmem:[#allocation94_spill] sm:$0xff]  ;;  %v12180_v0 = vld [vmem:[#allocation95_spill] sm:$0xff] }
 0x46f   : > { %v5726_v36 = vmul.f32 %v5716_v26, %v12177_v33  ;;  %v5740_v15 = vor.u32 %v7666_v38, %v7665_v47  ;;  %v5769_v58 = vor.u32 %v7668_v19, %v7667_v4  ;;  %v5798_v20 = vor.u32 %v7670_v16, %v7669_v49  ;;  %v12181_v38 = vld [vmem:[#allocation96_spill] sm:$0xff]  ;;  %v12182_v49 = vld [vmem:[#allocation97_spill] sm:$0xff] }
 0x470   : > { %v5727_v14 = vmul.f32 %v5717_v2, %v12178_v9  ;;  %v5728_v62 = vadd.f32 %v5723_v22, %v5699_v44  ;;  %v5729_v32 = vadd.f32 %v5724_v11, %v5700_v18  ;;  %v5730_v35 = vadd.f32 %v5725_v50, %v5701_v34  ;;  %v12183_v18 = vld [vmem:[#allocation98_spill] sm:$0xff] }
 0x471   : > { %v5731_v51 = vadd.f32 %v5726_v36, %v5702_v43  ;;  %v5742_v40 = vperm.slane %v5740_v15, 0  ;;  %v5743_v10 = vperm.slane %v5740_v15, 1  ;;  %v5744_v30 = vperm.slane %v5740_v15, 2 }
 0x472   : > { %v5732_v12 = vadd.f32 %v5727_v14, %v5703_v41  ;;  %v5745_v17 = vperm.slane %v5740_v15, 3  ;;  %v5746_v6 = vperm.slane %v5740_v15, 4  ;;  %v5771_v24 = vperm.slane %v5769_v58, 0  ;;  %v12184_v15 = vld [vmem:[#allocation100_spill] sm:$0xff] }
 0x473   : > { %v5752_v52 = vmul.f32 %v5742_v40, %v12179_v57  ;;  %v5753_v47 = vmul.f32 %v5743_v10, %v12180_v0  ;;  %v5754_v4 = vmul.f32 %v5744_v30, %v12181_v38  ;;  %v5772_v19 = vperm.slane %v5769_v58, 1  ;;  %v7671_v40 = vld [vmem:[%s8267_s1 + $0x2b] ss:$8 sm:$0xf] }
 0x474   : > { %v5755_v44 = vmul.f32 %v5745_v17, %v12182_v49  ;;  %v5756_v16 = vmul.f32 %v5746_v6, %v12183_v18  ;;  %v5773_v34 = vperm.slane %v5769_v58, 2  ;;  %v5774_v43 = vperm.slane %v5769_v58, 3  ;;  %v7672_v10 = vld [vmem:[%s8267_s1 + $0x2b] ss:$8 sm:$0x10]  ;;  %v12185_v49 = vld [vmem:[#allocation101_spill] sm:$0xff] }
 0x475   : > { %v5757_v41 = vadd.f32 %v5752_v52, %v5728_v62  ;;  %v5758_v26 = vadd.f32 %v5753_v47, %v5729_v32  ;;  %v5759_v2 = vadd.f32 %v5754_v4, %v5730_v35  ;;  %v5775_v22 = vperm.slane %v5769_v58, 4  ;;  %v7673_v30 = vld [vmem:[%s8267_s1 + $0x2c] ss:$8 sm:$0xf] }
 0x476   : > { %v5760_v11 = vadd.f32 %v5755_v44, %v5731_v51  ;;  %v5761_v50 = vadd.f32 %v5756_v16, %v5732_v12  ;;  %v5781_v36 = vmul.f32 %v5771_v24, %v12110_v29  ;;  %v5782_v14 = vmul.f32 %v5772_v19, %v12184_v15  ;;  %v7674_v17 = vld [vmem:[%s8267_s1 + $0x2c] ss:$8 sm:$0x10]  ;;  %v12186_v18 = vld [vmem:[#allocation102_spill] sm:$0xff]  ;;  %v12188_v29 = vld [vmem:[#allocation108_spill] sm:$0xff] }
 0x477   : > { %v5783_v6 = vmul.f32 %v5773_v34, %v12185_v49  ;;  %v5784_v38 = vmul.f32 %v5774_v43, %v12186_v18  ;;  %v12187_v62 = vld [vmem:[#allocation103_spill] sm:$0xff]  ;;  %v5800_v32 = vperm.slane %v5798_v20, 0  ;;  %v5801_v12 = vperm.slane %v5798_v20, 1  ;;  %v12189_v57 = vld [vmem:[#allocation109_spill] sm:$0xff]  ;;  %v12190_v49 = vld [vmem:[#allocation110_spill] sm:$0xff] }
 0x478   : > { %v5785_v52 = vmul.f32 %v5775_v22, %v12187_v62  ;;  %v7675_v35 = vld [vmem:[%s8267_s1 + $0x2d] ss:$8 sm:$0xf]  ;;  %v5786_v58 = vadd.f32 %v5781_v36, %v5757_v41  ;;  %v5787_v51 = vadd.f32 %v5782_v14, %v5758_v26  ;;  %v5802_v47 = vperm.slane %v5798_v20, 2 }
 0x479   : > { %v7676_v4 = vld [vmem:[%s8267_s1 + $0x2d] ss:$8 sm:$0x10]  ;;  %v5788_v24 = vadd.f32 %v5783_v6, %v5759_v2  ;;  %v5789_v44 = vadd.f32 %v5784_v38, %v5760_v11  ;;  %v5803_v16 = vperm.slane %v5798_v20, 3  ;;  %v5804_v15 = vperm.slane %v5798_v20, 4  ;;  %v12192_v26 = vld [vmem:[#allocation112_spill] sm:$0xff] }
 0x47a   : > { %v5790_v19 = vadd.f32 %v5785_v52, %v5761_v50  ;;  %v5810_v0 = vmul.f32 %v5800_v32, %v12188_v29  ;;  %v5811_v34 = vmul.f32 %v5801_v12, %v12189_v57  ;;  %v5812_v43 = vmul.f32 %v5802_v47, %v12190_v49  ;;  %v12191_v18 = vld [vmem:[#allocation111_spill] sm:$0xff]  ;;  %v12193_v57 = vld [vmem:[#allocation113_spill] sm:$0xff]  ;;  %v12194_v49 = vld [vmem:[#allocation114_spill] sm:$0xff] }
 0x47b   : > { %v5813_v22 = vmul.f32 %v5803_v16, %v12191_v18  ;;  %v5827_v62 = vor.u32 %v7672_v10, %v7671_v40  ;;  %v5856_v9 = vor.u32 %v7674_v17, %v7673_v30  ;;  %v5885_v41 = vor.u32 %v7676_v4, %v7675_v35  ;;  %v12195_v10 = vld [vmem:[#allocation115_spill] sm:$0xff]  ;;  %v12197_v35 = vld [vmem:[#allocation117_spill] sm:$0xff] }
 0x47c   : > { %v5814_v36 = vmul.f32 %v5804_v15, %v12192_v26  ;;  %v5815_v14 = vadd.f32 %v5810_v0, %v5786_v58  ;;  %v5816_v33 = vadd.f32 %v5811_v34, %v5787_v51  ;;  %v5817_v2 = vadd.f32 %v5812_v43, %v5788_v24  ;;  %v12196_v15 = vld [vmem:[#allocation116_spill] sm:$0xff] }
 0x47d   : > { %v5818_v38 = vadd.f32 %v5813_v22, %v5789_v44  ;;  %v5829_v11 = vperm.slane %v5827_v62, 0  ;;  %v5830_v50 = vperm.slane %v5827_v62, 1  ;;  %v5831_v20 = vperm.slane %v5827_v62, 2 }
 0x47e   : > { %v5819_v6 = vadd.f32 %v5814_v36, %v5790_v19  ;;  %v5832_v52 = vperm.slane %v5827_v62, 3  ;;  %v5833_v32 = vperm.slane %v5827_v62, 4  ;;  %v5858_v12 = vperm.slane %v5856_v9, 0  ;;  %v7677_v36 = vld [vmem:[%s8267_s1 + $0x2e] ss:$8 sm:$0xf] }
 0x47f   : > { %v5839_v47 = vmul.f32 %v5829_v11, %v12193_v57  ;;  %v5840_v40 = vmul.f32 %v5830_v50, %v12194_v49  ;;  %v5841_v30 = vmul.f32 %v5831_v20, %v12195_v10  ;;  %v5859_v0 = vperm.slane %v5856_v9, 1  ;;  %v7678_v11 = vld [vmem:[%s8267_s1 + $0x2e] ss:$8 sm:$0x10] }
 0x480   : > { %v5842_v17 = vmul.f32 %v5832_v52, %v12196_v15  ;;  %v5843_v58 = vmul.f32 %v5833_v32, %v12197_v35  ;;  %v5860_v51 = vperm.slane %v5856_v9, 2  ;;  %v5861_v4 = vperm.slane %v5856_v9, 3  ;;  %v7679_v50 = vld [vmem:[%s8267_s1 + $0x2f] ss:$8 sm:$0xf] }
 0x481   : > { %v5844_v24 = vadd.f32 %v5839_v47, %v5815_v14  ;;  %v5845_v62 = vadd.f32 %v5840_v40, %v5816_v33  ;;  %v5846_v44 = vadd.f32 %v5841_v30, %v5817_v2  ;;  %v5862_v19 = vperm.slane %v5856_v9, 4  ;;  %v7680_v20 = vld [vmem:[%s8267_s1 + $0x2f] ss:$8 sm:$0x10] }
 0x482   : > { %v5847_v16 = vadd.f32 %v5842_v17, %v5818_v38  ;;  %v5848_v34 = vadd.f32 %v5843_v58, %v5819_v6  ;;  %v5868_v43 = vmul.f32 %v5858_v12, %v12123_v37  ;;  %v5869_v22 = vmul.f32 %v5859_v0, %v12124_v48  ;;  %v7681_v2 = vld [vmem:[%s8267_s1 + $0x50] ss:$8 sm:$0xf] }
 0x483   : > { %v5870_v52 = vmul.f32 %v5860_v51, %v12125_v39  ;;  %v5871_v32 = vmul.f32 %v5861_v4, %v12126_v53  ;;  %v5872_v14 = vmul.f32 %v5862_v19, %v12127_v56  ;;  %v5887_v33 = vperm.slane %v5885_v41, 0  ;;  %v7682_v40 = vld [vmem:[%s8267_s1 + $0x50] ss:$8 sm:$0x10]  ;;  %v12198_v48 = vld [vmem:[#allocation118_spill] sm:$0xff]  ;;  %v12199_v35 = vld [vmem:[#allocation119_spill] sm:$0xff] }
 0x484   : > { %v5873_v9 = vadd.f32 %v5868_v43, %v5844_v24  ;;  %v5874_v38 = vadd.f32 %v5869_v22, %v5845_v62  ;;  %v5888_v6 = vperm.slane %v5885_v41, 1  ;;  %v5889_v47 = vperm.slane %v5885_v41, 2  ;;  %v12200_v39 = vld [vmem:[#allocation120_spill] sm:$0xff]  ;;  %v12201_v53 = vld [vmem:[#allocation121_spill] sm:$0xff]  ;;  %v12202_v62 = vld [vmem:[#allocation122_spill] sm:$0xff] }
 0x485   : > { %v5875_v12 = vadd.f32 %v5870_v52, %v5846_v44  ;;  %v5876_v30 = vadd.f32 %v5871_v32, %v5847_v16  ;;  %v5877_v0 = vadd.f32 %v5872_v14, %v5848_v34  ;;  %v5890_v17 = vperm.slane %v5885_v41, 3 }
 0x486   : > { %v5891_v58 = vperm.slane %v5885_v41, 4  ;;  %v5897_v37 = vmul.f32 %v5887_v33, %v12198_v48  ;;  %v5898_v51 = vmul.f32 %v5888_v6, %v12199_v35  ;;  %v5899_v4 = vmul.f32 %v5889_v47, %v12200_v39  ;;  %v12203_v35 = vld [vmem:[#allocation123_spill] sm:$0xff]  ;;  %v12204_v39 = vld [vmem:[#allocation124_spill] sm:$0xff] }
 0x487   : > { %v5900_v19 = vmul.f32 %v5890_v17, %v12201_v53  ;;  %v5914_v56 = vor.u32 %v7678_v11, %v7677_v36  ;;  %v5943_v15 = vor.u32 %v7680_v20, %v7679_v50  ;;  %v5972_v24 = vor.u32 %v7682_v40, %v7681_v2  ;;  %v12205_v11 = vld [vmem:[#allocation125_spill] sm:$0xff]  ;;  %v12206_v20 = vld [vmem:[#allocation126_spill] sm:$0xff] }
 0x488   : > { %v5901_v43 = vmul.f32 %v5891_v58, %v12202_v62  ;;  %v5902_v22 = vadd.f32 %v5897_v37, %v5873_v9  ;;  %v5903_v10 = vadd.f32 %v5898_v51, %v5874_v38  ;;  %v5904_v44 = vadd.f32 %v5899_v4, %v5875_v12  ;;  %v12207_v9 = vld [vmem:[#allocation127_spill] sm:$0xff]  ;;  %v12214_v62 = vld [vmem:[#allocation137_spill] sm:$0xff] }
 0x489   : > { %v5905_v16 = vadd.f32 %v5900_v19, %v5876_v30  ;;  %v5916_v34 = vperm.slane %v5914_v56, 0  ;;  %v5917_v52 = vperm.slane %v5914_v56, 1  ;;  %v5918_v41 = vperm.slane %v5914_v56, 2  ;;  %v12208_v4 = vld [vmem:[#allocation131_spill] sm:$0xff] }
 0x48a   : > { %v5906_v32 = vadd.f32 %v5901_v43, %v5877_v0  ;;  %v5919_v14 = vperm.slane %v5914_v56, 3  ;;  %v5920_v33 = vperm.slane %v5914_v56, 4  ;;  %v5945_v6 = vperm.slane %v5943_v15, 0  ;;  %v12209_v43 = vld [vmem:[#allocation132_spill] sm:$0xff] }
 0x48b   : > { %v5926_v47 = vmul.f32 %v5916_v34, %v12203_v35  ;;  %v5927_v36 = vmul.f32 %v5917_v52, %v12204_v39  ;;  %v5928_v50 = vmul.f32 %v5918_v41, %v12205_v11  ;;  %v5946_v37 = vperm.slane %v5943_v15, 1  ;;  %v7683_v52 = vld [vmem:[%s8267_s1 + $0x51] ss:$8 sm:$0xf] }
 0x48c   : > { %v5929_v2 = vmul.f32 %v5919_v14, %v12206_v20  ;;  %v5930_v38 = vmul.f32 %v5920_v33, %v12207_v9  ;;  %v5947_v40 = vperm.slane %v5943_v15, 2  ;;  %v5948_v12 = vperm.slane %v5943_v15, 3  ;;  %v7684_v41 = vld [vmem:[%s8267_s1 + $0x51] ss:$8 sm:$0x10]  ;;  %v12210_v20 = vld [vmem:[#allocation133_spill] sm:$0xff] }
 0x48d   : > { %v5931_v30 = vadd.f32 %v5926_v47, %v5902_v22  ;;  %v5932_v56 = vadd.f32 %v5927_v36, %v5903_v10  ;;  %v5933_v0 = vadd.f32 %v5928_v50, %v5904_v44  ;;  %v5949_v17 = vperm.slane %v5943_v15, 4  ;;  %v7685_v11 = vld [vmem:[%s8267_s1 + $0x52] ss:$8 sm:$0xf] }
 0x48e   : > { %v5934_v58 = vadd.f32 %v5929_v2, %v5905_v16  ;;  %v5935_v51 = vadd.f32 %v5930_v38, %v5906_v32  ;;  %v5955_v19 = vmul.f32 %v5945_v6, %v12208_v4  ;;  %v5956_v34 = vmul.f32 %v5946_v37, %v12209_v43  ;;  %v7686_v14 = vld [vmem:[%s8267_s1 + $0x52] ss:$8 sm:$0x10]  ;;  %v12211_v9 = vld [vmem:[#allocation134_spill] sm:$0xff]  ;;  %v12212_v22 = vld [vmem:[#allocation135_spill] sm:$0xff] }
 0x48f   : > { %v5957_v33 = vmul.f32 %v5947_v40, %v12210_v20  ;;  %v5958_v39 = vmul.f32 %v5948_v12, %v12211_v9  ;;  %v5959_v47 = vmul.f32 %v5949_v17, %v12212_v22  ;;  %v5974_v10 = vperm.slane %v5972_v24, 0  ;;  %v7687_v44 = vld [vmem:[%s8267_s1 + $0x53] ss:$8 sm:$0xf] }
 0x490   : > { %v5960_v15 = vadd.f32 %v5955_v19, %v5931_v30  ;;  %v5961_v16 = vadd.f32 %v5956_v34, %v5932_v56  ;;  %v5975_v32 = vperm.slane %v5972_v24, 1  ;;  %v5976_v36 = vperm.slane %v5972_v24, 2  ;;  %v7688_v50 = vld [vmem:[%s8267_s1 + $0x53] ss:$8 sm:$0x10]  ;;  %v12215_v20 = vld [vmem:[#allocation138_spill] sm:$0xff] }
 0x491   : > { %v5962_v6 = vadd.f32 %v5957_v33, %v5933_v0  ;;  %v5963_v2 = vadd.f32 %v5958_v39, %v5934_v58  ;;  %v5964_v37 = vadd.f32 %v5959_v47, %v5935_v51  ;;  %v5977_v38 = vperm.slane %v5972_v24, 3  ;;  %v12213_v4 = vld [vmem:[#allocation136_spill] sm:$0xff]  ;;  %v12216_v9 = vld [vmem:[#allocation139_spill] sm:$0xff] }
 0x492   : > { %v5978_v43 = vperm.slane %v5972_v24, 4  ;;  %v5984_v35 = vmul.f32 %v5974_v10, %v12213_v4  ;;  %v5985_v40 = vmul.f32 %v5975_v32, %v12214_v62  ;;  %v5986_v12 = vmul.f32 %v5976_v36, %v12215_v20  ;;  %v12217_v56 = vld [vmem:[#allocation140_spill] sm:$0xff]  ;;  %v12219_v20 = vld [vmem:[#allocation129_spill] sm:$0xff] }
 0x493   : > { %v5987_v17 = vmul.f32 %v5977_v38, %v12216_v9  ;;  %v6001_v22 = vor.u32 %v7684_v41, %v7683_v52  ;;  %v6030_v53 = vor.u32 %v7686_v14, %v7685_v11  ;;  %v6059_v30 = vor.u32 %v7688_v50, %v7687_v44  ;;  %v12218_v62 = vld [vmem:[#allocation128_spill] sm:$0xff]  ;;  %v12222_v44 = vld [vmem:[#allocation130_spill] sm:$0xff] }
 0x494   : > { %v5988_v19 = vmul.f32 %v5978_v43, %v12217_v56  ;;  %v5989_v34 = vadd.f32 %v5984_v35, %v5960_v15  ;;  %v5990_v48 = vadd.f32 %v5985_v40, %v5961_v16  ;;  %v5991_v0 = vadd.f32 %v5986_v12, %v5962_v6  ;;  %v12220_v11 = vld [vmem:[#allocation20_spill] sm:$0xff]  ;;  %v12221_v43 = vld [vmem:[#allocation31_spill] sm:$0xff] }
 0x495   : > { %v5992_v39 = vadd.f32 %v5987_v17, %v5963_v2  ;;  %v6003_v58 = vperm.slane %v6001_v22, 0  ;;  %v6004_v51 = vperm.slane %v6001_v22, 1  ;;  %v6005_v24 = vperm.slane %v6001_v22, 2 }
 0x496   : > { %v5993_v33 = vadd.f32 %v5988_v19, %v5964_v37  ;;  %v6006_v47 = vperm.slane %v6001_v22, 3  ;;  %v6007_v10 = vperm.slane %v6001_v22, 4  ;;  %v6032_v32 = vperm.slane %v6030_v53, 0  ;;  %v7689_v19 = vld [vmem:[%s8267_s1 + $0x54] ss:$8 sm:$0xf] }
 0x497   : > { %v6013_v36 = vmul.f32 %v6003_v58, %v12218_v62  ;;  %v6014_v52 = vmul.f32 %v6004_v51, %v12219_v20  ;;  %v6015_v41 = vmul.f32 %v6005_v24, %v12220_v11  ;;  %v6033_v35 = vperm.slane %v6030_v53, 1  ;;  %v7690_v58 = vld [vmem:[%s8267_s1 + $0x54] ss:$8 sm:$0x10] }
 0x498   : > { %v6016_v14 = vmul.f32 %v6006_v47, %v12221_v43  ;;  %v6017_v15 = vmul.f32 %v6007_v10, %v12222_v44  ;;  %v6034_v16 = vperm.slane %v6030_v53, 2  ;;  %v6035_v50 = vperm.slane %v6030_v53, 3  ;;  %v7691_v51 = vld [vmem:[%s8267_s1 + $0x55] ss:$8 sm:$0xf] }
 0x499   : > { %v6018_v6 = vadd.f32 %v6013_v36, %v5989_v34  ;;  %v6019_v22 = vadd.f32 %v6014_v52, %v5990_v48  ;;  %v6020_v2 = vadd.f32 %v6015_v41, %v5991_v0  ;;  %v6036_v37 = vperm.slane %v6030_v53, 4  ;;  %v7692_v24 = vld [vmem:[%s8267_s1 + $0x55] ss:$8 sm:$0x10] }
 0x49a   : > { %v6021_v38 = vadd.f32 %v6016_v14, %v5992_v39  ;;  %v6022_v40 = vadd.f32 %v6017_v15, %v5993_v33  ;;  %v6042_v12 = vmul.f32 %v6032_v32, %v12148_v7  ;;  %v6043_v17 = vmul.f32 %v6033_v35, %v12149_v23  ;;  %v7693_v0 = vld [vmem:[%s8267_s1 + $0x56] ss:$8 sm:$0xf] }
 0x49b   : > { %v6044_v47 = vmul.f32 %v6034_v16, %v12150_v27  ;;  %v6045_v10 = vmul.f32 %v6035_v50, %v12151_v61  ;;  %v6046_v34 = vmul.f32 %v6036_v37, %v12152_v25  ;;  %v6061_v48 = vperm.slane %v6059_v30, 0  ;;  %v7694_v52 = vld [vmem:[%s8267_s1 + $0x56] ss:$8 sm:$0x10] }
 0x49c   : > { %v6047_v53 = vadd.f32 %v6042_v12, %v6018_v6  ;;  %v6048_v39 = vadd.f32 %v6043_v17, %v6019_v22  ;;  %v6062_v33 = vperm.slane %v6059_v30, 1  ;;  %v6063_v36 = vperm.slane %v6059_v30, 2  ;;  %v12223_v22 = vld [vmem:[#allocation149_spill] sm:$0xff] }
 0x49d   : > { %v6049_v32 = vadd.f32 %v6044_v47, %v6020_v2  ;;  %v6050_v41 = vadd.f32 %v6045_v10, %v6021_v38  ;;  %v6051_v35 = vadd.f32 %v6046_v34, %v6022_v40  ;;  %v6064_v14 = vperm.slane %v6059_v30, 3 }
 0x49e   : > { %v6065_v15 = vperm.slane %v6059_v30, 4  ;;  %v6071_v23 = vmul.f32 %v6061_v48, %v12153_v13  ;;  %v6072_v16 = vmul.f32 %v6062_v33, %v12154_v55  ;;  %v6073_v50 = vmul.f32 %v6063_v36, %v12155_v63  ;;  %v12224_v55 = vld [vmem:[#allocation155_spill] sm:$0xff]  ;;  %v12225_v63 = vld [vmem:[#allocation156_spill] sm:$0xff] }
 0x49f   : > { %v6074_v37 = vmul.f32 %v6064_v14, %v12156_v46  ;;  %v6088_v25 = vor.u32 %v7690_v58, %v7689_v19  ;;  %v6117_v61 = vor.u32 %v7692_v24, %v7691_v51  ;;  %v6146_v6 = vor.u32 %v7694_v52, %v7693_v0  ;;  %v12226_v58 = vld [vmem:[#allocation157_spill] sm:$0xff]  ;;  %v12227_v24 = vld [vmem:[#allocation158_spill] sm:$0xff] }
 0x4a0   : > { %v6075_v12 = vmul.f32 %v6065_v15, %v12223_v22  ;;  %v6076_v17 = vadd.f32 %v6071_v23, %v6047_v53  ;;  %v6077_v27 = vadd.f32 %v6072_v16, %v6048_v39  ;;  %v6078_v2 = vadd.f32 %v6073_v50, %v6049_v32  ;;  %v12228_v53 = vld [vmem:[#allocation159_spill] sm:$0xff]  ;;  %v12229_v50 = vld [vmem:[#allocation160_spill] sm:$0xff] }
 0x4a1   : > { %v6079_v38 = vadd.f32 %v6074_v37, %v6050_v41  ;;  %v6090_v40 = vperm.slane %v6088_v25, 0  ;;  %v6091_v47 = vperm.slane %v6088_v25, 1  ;;  %v6092_v30 = vperm.slane %v6088_v25, 2  ;;  %v12235_v22 = vld [vmem:[#allocation151_spill] sm:$0xff] }
 0x4a2   : > { %v6080_v10 = vadd.f32 %v6075_v12, %v6051_v35  ;;  %v6093_v34 = vperm.slane %v6088_v25, 3  ;;  %v6094_v48 = vperm.slane %v6088_v25, 4  ;;  %v6119_v33 = vperm.slane %v6117_v61, 0  ;;  %v12230_v12 = vld [vmem:[#allocation161_spill] sm:$0xff] }
 0x4a3   : > { %v6100_v36 = vmul.f32 %v6090_v40, %v12224_v55  ;;  %v6101_v19 = vmul.f32 %v6091_v47, %v12225_v63  ;;  %v6102_v51 = vmul.f32 %v6092_v30, %v12226_v58  ;;  %v6120_v23 = vperm.slane %v6117_v61, 1  ;;  %v7695_v47 = vld [vmem:[%s8267_s1 + $0x57] ss:$8 sm:$0xf] }
 0x4a4   : > { %v6103_v0 = vmul.f32 %v6093_v34, %v12227_v24  ;;  %v6104_v39 = vmul.f32 %v6094_v48, %v12228_v53  ;;  %v6121_v52 = vperm.slane %v6117_v61, 2  ;;  %v6122_v32 = vperm.slane %v6117_v61, 3  ;;  %v7696_v30 = vld [vmem:[%s8267_s1 + $0x57] ss:$8 sm:$0x10]  ;;  %v12231_v24 = vld [vmem:[#allocation162_spill] sm:$0xff] }
 0x4a5   : > { %v6105_v41 = vadd.f32 %v6100_v36, %v6076_v17  ;;  %v6106_v25 = vadd.f32 %v6101_v19, %v6077_v27  ;;  %v6107_v35 = vadd.f32 %v6102_v51, %v6078_v2  ;;  %v6123_v14 = vperm.slane %v6117_v61, 4  ;;  %v7697_v58 = vld [vmem:[%s8267_s1 + $0x78] ss:$8 sm:$0xf] }
 0x4a6   : > { %v6108_v15 = vadd.f32 %v6103_v0, %v6079_v38  ;;  %v6109_v16 = vadd.f32 %v6104_v39, %v6080_v10  ;;  %v6129_v37 = vmul.f32 %v6119_v33, %v12229_v50  ;;  %v6130_v40 = vmul.f32 %v6120_v23, %v12230_v12  ;;  %v7698_v34 = vld [vmem:[%s8267_s1 + $0x78] ss:$8 sm:$0x10]  ;;  %v12232_v53 = vld [vmem:[#allocation163_spill] sm:$0xff]  ;;  %v12233_v17 = vld [vmem:[#allocation164_spill] sm:$0xff] }
 0x4a7   : > { %v6131_v48 = vmul.f32 %v6121_v52, %v12231_v24  ;;  %v6132_v63 = vmul.f32 %v6122_v32, %v12232_v53  ;;  %v6133_v36 = vmul.f32 %v6123_v14, %v12233_v17  ;;  %v6148_v27 = vperm.slane %v6146_v6, 0  ;;  %v6236_v2 = vld [vmem:[%s8267_s1] ss:$8 sm:$0xf] }
 0x4a8   : > { %v6134_v61 = vadd.f32 %v6129_v37, %v6105_v41  ;;  %v6135_v38 = vadd.f32 %v6130_v40, %v6106_v25  ;;  %v6149_v10 = vperm.slane %v6146_v6, 1  ;;  %v6150_v19 = vperm.slane %v6146_v6, 2  ;;  %v6237_v51 = vld [vmem:[%s8267_s1] ss:$8 sm:$0x10]  ;;  %v12236_v24 = vld [vmem:[#allocation152_spill] sm:$0xff] }
 0x4a9   : > { %v6136_v33 = vadd.f32 %v6131_v48, %v6107_v35  ;;  %v6137_v0 = vadd.f32 %v6132_v63, %v6108_v15  ;;  %v6138_v23 = vadd.f32 %v6133_v36, %v6109_v16  ;;  %v6151_v39 = vperm.slane %v6146_v6, 3  ;;  %v12234_v50 = vld [vmem:[#allocation150_spill] sm:$0xff]  ;;  %v12237_v53 = vld [vmem:[#allocation153_spill] sm:$0xff] }
 0x4aa   : > { %v6152_v12 = vperm.slane %v6146_v6, 4  ;;  %v6158_v55 = vmul.f32 %v6148_v27, %v12234_v50  ;;  %v6159_v52 = vmul.f32 %v6149_v10, %v12235_v22  ;;  %v6160_v32 = vmul.f32 %v6150_v19, %v12236_v24  ;;  %v12238_v25 = vld [vmem:[#allocation154_spill] sm:$0xff]  ;;  %v12239_v19 = vld [vmem:[#allocation165_spill] sm:$0xff] }
 0x4ab   : > { %v6161_v14 = vmul.f32 %v6151_v39, %v12237_v53  ;;  %v6175_v17 = vor.u32 %v7696_v30, %v7695_v47  ;;  %v6204_v46 = vor.u32 %v7698_v34, %v7697_v58  ;;  %v10986_v41 = vor.u32 %v6237_v51, %v6236_v2  ;;  %v12240_v39 = vld [vmem:[#allocation166_spill] sm:$0xff]  ;;  %v12241_v47 = vld [vmem:[#allocation167_spill] sm:$0xff]  ;;  %v12243_v2 = vld [vmem:[#allocation169_spill] sm:$0xff] }
 0x4ac   : > { %v6162_v37 = vmul.f32 %v6152_v12, %v12238_v25  ;;  %v6163_v40 = vadd.f32 %v6158_v55, %v6134_v61  ;;  %v6164_v35 = vadd.f32 %v6159_v52, %v6135_v38  ;;  %v6165_v63 = vadd.f32 %v6160_v32, %v6136_v33  ;;  %v12242_v12 = vld [vmem:[#allocation168_spill] sm:$0xff] }
 0x4ad   : > { %v6166_v15 = vadd.f32 %v6161_v14, %v6137_v0  ;;  %v6177_v16 = vperm.slane %v6175_v17, 0  ;;  %v6178_v6 = vperm.slane %v6175_v17, 1  ;;  %v6179_v48 = vperm.slane %v6175_v17, 2  ;;  %v12244_v14 = vld [vmem:[#allocation170_spill] sm:$0xff] }
 0x4ae   : > { %v6167_v36 = vadd.f32 %v6162_v37, %v6138_v23  ;;  %v6180_v27 = vperm.slane %v6175_v17, 3  ;;  %v6181_v10 = vperm.slane %v6175_v17, 4  ;;  %v6206_v22 = vperm.slane %v6204_v46, 0 }
 0x4af   : > { %v6187_v24 = vmul.f32 %v6177_v16, %v12239_v19  ;;  %v6188_v58 = vmul.f32 %v6178_v6, %v12240_v39  ;;  %v6189_v30 = vmul.f32 %v6179_v48, %v12241_v47  ;;  %v6207_v55 = vperm.slane %v6204_v46, 1  ;;  %v12245_v16 = vld [vmem:[#allocation171_spill] sm:$0xff] }
 0x4b0   : > { %v6190_v34 = vmul.f32 %v6180_v27, %v12242_v12  ;;  %v6191_v61 = vmul.f32 %v6181_v10, %v12243_v2  ;;  %v6208_v38 = vperm.slane %v6204_v46, 2  ;;  %v6209_v17 = vperm.slane %v6204_v46, 3  ;;  %v7699_v48 = vld [vmem:[%s8267_s1 + $0x1] ss:$8 sm:$0xf] }
 0x4b1   : > { %v6192_v51 = vadd.f32 %v6187_v24, %v6163_v40  ;;  %v6193_v33 = vadd.f32 %v6188_v58, %v6164_v35  ;;  %v6194_v0 = vadd.f32 %v6189_v30, %v6165_v63  ;;  %v6210_v23 = vperm.slane %v6204_v46, 4  ;;  %v7700_v27 = vld [vmem:[%s8267_s1 + $0x1] ss:$8 sm:$0x10]  ;;  %v12246_v40 = vld [vmem:[#allocation172_spill] sm:$0xff]  ;;  %v12247_v63 = vld [vmem:[#allocation173_spill] sm:$0xff] }
 0x4b2   : > { %v6195_v52 = vadd.f32 %v6190_v34, %v6166_v15  ;;  %v6196_v32 = vadd.f32 %v6191_v61, %v6167_v36  ;;  %v6216_v37 = vmul.f32 %v6206_v22, %v12244_v14  ;;  %v6217_v6 = vmul.f32 %v6207_v55, %v12245_v16  ;;  %v7701_v10 = vld [vmem:[%s8267_s1 + $0x2] ss:$8 sm:$0xf]  ;;  %v7703_v12 = vld [vmem:[%s8267_s1 + $0x3] ss:$8 sm:$0xf] }
 0x4b3   : > { %v7702_v2 = vld [vmem:[%s8267_s1 + $0x2] ss:$8 sm:$0x10]  ;;  %v7704_v24 = vld [vmem:[%s8267_s1 + $0x3] ss:$8 sm:$0x10]  ;;  %v6218_v35 = vmul.f32 %v6208_v38, %v12246_v40  ;;  %v6219_v46 = vmul.f32 %v6209_v17, %v12247_v63 }
 0x4b4   : > { %v12248_v58 = vld [vmem:[#allocation174_spill] sm:$0xff]  ;;  %v6240_v36 = vperm.slane %v10986_v41, 0  ;;  %v6221_v61 = vadd.f32 %v6216_v37, %v6192_v51  ;;  %v6222_v16 = vadd.f32 %v6217_v6, %v6193_v33  ;;  %v6241_v14 = vperm.slane %v10986_v41, 1 }
 0x4b5   : > { %v6220_v15 = vmul.f32 %v6210_v23, %v12248_v58  ;;  %v7705_v22 = vld [vmem:[%s8267_s1 + $0x4] ss:$8 sm:$0xf]  ;;  %v7707_v55 = vld [vmem:[%s8267_s1 + $0x5] ss:$8 sm:$0xf]  ;;  %v6223_v17 = vadd.f32 %v6218_v35, %v6194_v0  ;;  %v6224_v63 = vadd.f32 %v6219_v46, %v6195_v52  ;;  %v6267_v0 = vor.u32 %v7700_v27, %v7699_v48 }
 0x4b6   : > { %v7706_v30 = vld [vmem:[%s8267_s1 + $0x4] ss:$8 sm:$0x10]  ;;  %v7708_v34 = vld [vmem:[%s8267_s1 + $0x5] ss:$8 sm:$0x10]  ;;  %v6250_v19 = vmul.f32 %v6240_v36, %v12168_v59  ;;  %v6251_v51 = vmul.f32 %v6241_v14, %v12169_v54  ;;  %v6296_v52 = vor.u32 %v7702_v2, %v7701_v10 }
 0x4b7   : > { %v6242_v47 = vperm.slane %v10986_v41, 2  ;;  %v7709_v38 = vld [vmem:[%s8267_s1 + $0x6] ss:$8 sm:$0xf]  ;;  %v6225_v40 = vadd.f32 %v6220_v15, %v6196_v32  ;;  %v6243_v23 = vperm.slane %v10986_v41, 3  ;;  %6226 = vst [vmem:[%s10314_s25 + $0xa0] sm:$0xff] %v6221_v61  ;;  %v6325_v32 = vor.u32 %v7704_v24, %v7703_v12 }
 0x4b8   : > { %v7710_v58 = vld [vmem:[%s8267_s1 + $0x6] ss:$8 sm:$0x10]  ;;  %v6244_v39 = vperm.slane %v10986_v41, 4  ;;  %6227 = vst [vmem:[%s10314_s25 + $0xa8] sm:$0xff] %v6222_v16  ;;  %v6354_v35 = vor.u32 %v7706_v30, %v7705_v22  ;;  %v11024_v46 = vor.u32 %v7708_v34, %v7707_v55  ;;  %v6269_v59 = vperm.slane %v6267_v0, 0 }
 0x4b9   : > { %v6252_v33 = vmul.f32 %v6242_v47, %v12170_v28  ;;  %v6253_v37 = vmul.f32 %v6243_v23, %v12171_v60  ;;  %6228 = vst [vmem:[%s10314_s25 + $0xb0] sm:$0xff] %v6223_v17  ;;  %v11026_v41 = vor.u32 %v7710_v58, %v7709_v38  ;;  %v6270_v54 = vperm.slane %v6267_v0, 1 }
 0x4ba   : > { %v6254_v6 = vmul.f32 %v6244_v39, %v12172_v5  ;;  %6229 = vst [vmem:[%s10314_s25 + $0xb8] sm:$0xff] %v6224_v63  ;;  %v6271_v14 = vperm.slane %v6267_v0, 2  ;;  %v6272_v28 = vperm.slane %v6267_v0, 3  ;;  %v6273_v47 = vperm.slane %v6267_v0, 4 }
 0x4bb   : > { %6230 = vst [vmem:[%s10314_s25 + $0xc0] sm:$0xff] %v6225_v40  ;;  %v6298_v16 = vperm.slane %v6296_v52, 0  ;;  %v6299_v60 = vperm.slane %v6296_v52, 1  ;;  %v6300_v48 = vperm.slane %v6296_v52, 2  ;;  %v6279_v12 = vmul.f32 %v6269_v59, %v12030_v1  ;;  %v12249_v1 = vld [vmem:[#allocation81_spill] sm:$0xff]  ;;  %v12254_v59 = vld [vmem:[#allocation96_spill] sm:$0xff] }
 0x4bc   : > { %v6280_v2 = vmul.f32 %v6270_v54, %v12099_v3  ;;  %v6281_v5 = vmul.f32 %v6271_v14, %v12100_v21  ;;  %v6282_v39 = vmul.f32 %v6272_v28, %v12101_v8  ;;  %v6283_v27 = vmul.f32 %v6273_v47, %v12173_v45  ;;  %v12250_v3 = vld [vmem:[#allocation82_spill] sm:$0xff]  ;;  %v12251_v21 = vld [vmem:[#allocation83_spill] sm:$0xff]  ;;  %v12255_v47 = vld [vmem:[#allocation97_spill] sm:$0xff] }
 0x4bd   : > { %v6301_v10 = vperm.slane %v6296_v52, 3  ;;  %v6302_v24 = vperm.slane %v6296_v52, 4  ;;  %v6308_v63 = vmul.f32 %v6298_v16, %v12174_v42  ;;  %v6284_v58 = vadd.f32 %v6279_v12, %v6250_v19 }
 0x4be   : > { %v6285_v40 = vadd.f32 %v6280_v2, %v6251_v51  ;;  %v6286_v15 = vadd.f32 %v6281_v5, %v6252_v33  ;;  %v6287_v36 = vadd.f32 %v6282_v39, %v6253_v37  ;;  %v6288_v22 = vadd.f32 %v6283_v27, %v6254_v6  ;;  %v12252_v37 = vld [vmem:[#allocation94_spill] sm:$0xff]  ;;  %v12253_v6 = vld [vmem:[#allocation95_spill] sm:$0xff] }
 0x4bf   : > { %v6309_v30 = vmul.f32 %v6299_v60, %v12175_v31  ;;  %v6310_v55 = vmul.f32 %v6300_v48, %v12249_v1  ;;  %v6311_v34 = vmul.f32 %v6301_v10, %v12250_v3  ;;  %v6312_v61 = vmul.f32 %v6302_v24, %v12251_v21  ;;  %v12256_v60 = vld [vmem:[#allocation98_spill] sm:$0xff] }
 0x4c0   : > { %v6313_v8 = vadd.f32 %v6308_v63, %v6284_v58  ;;  %v6327_v38 = vperm.slane %v6325_v32, 0  ;;  %v6328_v45 = vperm.slane %v6325_v32, 1  ;;  %v6329_v42 = vperm.slane %v6325_v32, 2  ;;  %v12257_v63 = vld [vmem:[#allocation99_spill] sm:$0xff] }
 0x4c1   : > { %v6314_v17 = vadd.f32 %v6309_v30, %v6285_v40  ;;  %v6315_v23 = vadd.f32 %v6310_v55, %v6286_v15  ;;  %v6316_v0 = vadd.f32 %v6311_v34, %v6287_v36  ;;  %v6317_v19 = vadd.f32 %v6312_v61, %v6288_v22  ;;  %v12258_v40 = vld [vmem:[#allocation100_spill] sm:$0xff]  ;;  %v12259_v36 = vld [vmem:[#allocation101_spill] sm:$0xff]  ;;  %v12260_v30 = vld [vmem:[#allocation102_spill] sm:$0xff] }
 0x4c2   : > { %v6330_v51 = vperm.slane %v6325_v32, 3  ;;  %v6331_v33 = vperm.slane %v6325_v32, 4  ;;  %v6337_v52 = vmul.f32 %v6327_v38, %v12252_v37  ;;  %v6338_v31 = vmul.f32 %v6328_v45, %v12253_v6  ;;  %v12261_v55 = vld [vmem:[#allocation103_spill] sm:$0xff] }
 0x4c3   : > { %v6339_v54 = vmul.f32 %v6329_v42, %v12254_v59  ;;  %v6356_v14 = vperm.slane %v6354_v35, 0  ;;  %v6357_v28 = vperm.slane %v6354_v35, 1  ;;  %v6358_v2 = vperm.slane %v6354_v35, 2 }
 0x4c4   : > { %v6340_v16 = vmul.f32 %v6330_v51, %v12255_v47  ;;  %v6341_v48 = vmul.f32 %v6331_v33, %v12256_v60  ;;  %v6342_v12 = vadd.f32 %v6337_v52, %v6313_v8  ;;  %v6343_v5 = vadd.f32 %v6338_v31, %v6314_v17  ;;  %v12263_v33 = vld [vmem:[#allocation110_spill] sm:$0xff] }
 0x4c5   : > { %v6344_v39 = vadd.f32 %v6339_v54, %v6315_v23  ;;  %v6359_v27 = vperm.slane %v6354_v35, 3  ;;  %v6360_v10 = vperm.slane %v6354_v35, 4  ;;  %v6366_v58 = vmul.f32 %v6356_v14, %v12257_v63  ;;  %v7711_v52 = vld [vmem:[%s8267_s1 + $0x7] ss:$8 sm:$0xf] }
 0x4c6   : > { %v6345_v24 = vadd.f32 %v6340_v16, %v6316_v0  ;;  %v6346_v32 = vadd.f32 %v6341_v48, %v6317_v19  ;;  %v6367_v15 = vmul.f32 %v6357_v28, %v12258_v40  ;;  %v6368_v22 = vmul.f32 %v6358_v2, %v12259_v36  ;;  %v12262_v19 = vld [vmem:[#allocation109_spill] sm:$0xff]  ;;  %v7712_v14 = vld [vmem:[%s8267_s1 + $0x7] ss:$8 sm:$0x10] }
 0x4c7   : > { %v6369_v1 = vmul.f32 %v6359_v27, %v12260_v30  ;;  %v6370_v3 = vmul.f32 %v6360_v10, %v12261_v55  ;;  %v6385_v34 = vperm.slane %v11024_v46, 0  ;;  %v6371_v21 = vadd.f32 %v6366_v58, %v6342_v12  ;;  %v7713_v60 = vld [vmem:[%s8267_s1 + $0x28] ss:$8 sm:$0xf] }
 0x4c8   : > { %v6372_v61 = vadd.f32 %v6367_v15, %v6343_v5  ;;  %v6386_v35 = vperm.slane %v11024_v46, 1  ;;  %v6387_v8 = vperm.slane %v11024_v46, 2  ;;  %v6373_v38 = vadd.f32 %v6368_v22, %v6344_v39  ;;  %v7714_v48 = vld [vmem:[%s8267_s1 + $0x28] ss:$8 sm:$0x10]  ;;  %v12265_v58 = vld [vmem:[#allocation116_spill] sm:$0xff] }
 0x4c9   : > { %v6374_v45 = vadd.f32 %v6369_v1, %v6345_v24  ;;  %v6375_v17 = vadd.f32 %v6370_v3, %v6346_v32  ;;  %v6388_v23 = vperm.slane %v11024_v46, 3  ;;  %v6389_v0 = vperm.slane %v11024_v46, 4  ;;  %v12264_v24 = vld [vmem:[#allocation115_spill] sm:$0xff]  ;;  %v12266_v15 = vld [vmem:[#allocation117_spill] sm:$0xff] }
 0x4ca   : > { %v6395_v42 = vmul.f32 %v6385_v34, %v12188_v29  ;;  %v6396_v51 = vmul.f32 %v6386_v35, %v12262_v19  ;;  %v6397_v37 = vmul.f32 %v6387_v8, %v12263_v33  ;;  %v6414_v31 = vperm.slane %v11026_v41, 0 }
 0x4cb   : > { %v6398_v6 = vmul.f32 %v6388_v23, %v12191_v18  ;;  %v6415_v59 = vperm.slane %v11026_v41, 1  ;;  %v6416_v54 = vperm.slane %v11026_v41, 2  ;;  %v6399_v28 = vmul.f32 %v6389_v0, %v12192_v26 }
 0x4cc   : > { %v6400_v47 = vadd.f32 %v6395_v42, %v6371_v21  ;;  %v6401_v46 = vadd.f32 %v6396_v51, %v6372_v61  ;;  %v6402_v16 = vadd.f32 %v6397_v37, %v6373_v38  ;;  %v6417_v2 = vperm.slane %v11026_v41, 3  ;;  %v12267_v38 = vld [vmem:[#allocation38_spill] sm:$0xff]  ;;  %v7716_v51 = vld [vmem:[%s8267_s1 + $0x29] ss:$8 sm:$0x10] }
 0x4cd   : > { %v6403_v12 = vadd.f32 %v6398_v6, %v6374_v45  ;;  %v6418_v5 = vperm.slane %v11026_v41, 4  ;;  %v6424_v39 = vmul.f32 %v6414_v31, %v12193_v57  ;;  %v6404_v27 = vadd.f32 %v6399_v28, %v6375_v17  ;;  %v12268_v17 = vld [vmem:[#allocation104_spill] sm:$0xff]  ;;  %v12270_v31 = vld [vmem:[#allocation106_spill] sm:$0xff]  ;;  %v7718_v28 = vld [vmem:[%s8267_s1 + $0x2a] ss:$8 sm:$0x10] }
 0x4ce   : > { %v6425_v10 = vmul.f32 %v6415_v59, %v12194_v49  ;;  %v6426_v32 = vmul.f32 %v6416_v54, %v12264_v24  ;;  %v6441_v63 = vor.u32 %v7712_v14, %v7711_v52  ;;  %v6427_v40 = vmul.f32 %v6417_v2, %v12265_v58  ;;  %v7715_v42 = vld [vmem:[%s8267_s1 + $0x29] ss:$8 sm:$0xf]  ;;  %v7717_v37 = vld [vmem:[%s8267_s1 + $0x2a] ss:$8 sm:$0xf] }
 0x4cf   : > { %v6428_v36 = vmul.f32 %v6418_v5, %v12266_v15  ;;  %v6429_v22 = vadd.f32 %v6424_v39, %v6400_v47  ;;  %v6470_v30 = vor.u32 %v7714_v48, %v7713_v60  ;;  %v12269_v52 = vld [vmem:[#allocation105_spill] sm:$0xff]  ;;  %v12271_v47 = vld [vmem:[#allocation107_spill] sm:$0xff] }
 0x4d0   : > { %v6430_v1 = vadd.f32 %v6425_v10, %v6401_v46  ;;  %v6431_v55 = vadd.f32 %v6426_v32, %v6402_v16  ;;  %v6443_v41 = vperm.slane %v6441_v63, 0  ;;  %v6444_v3 = vperm.slane %v6441_v63, 1  ;;  %v7720_v32 = vld [vmem:[%s8267_s1 + $0x2b] ss:$8 sm:$0x10] }
 0x4d1   : > { %v6432_v34 = vadd.f32 %v6427_v40, %v6403_v12  ;;  %v6433_v21 = vadd.f32 %v6428_v36, %v6404_v27  ;;  %v6445_v61 = vperm.slane %v6441_v63, 2  ;;  %v6446_v35 = vperm.slane %v6441_v63, 3  ;;  %v7719_v12 = vld [vmem:[%s8267_s1 + $0x2b] ss:$8 sm:$0xf] }
 0x4d2   : > { %v6447_v8 = vperm.slane %v6441_v63, 4  ;;  %v6453_v45 = vmul.f32 %v6443_v41, %v12267_v38  ;;  %v6454_v23 = vmul.f32 %v6444_v3, %v12268_v17  ;;  %v6472_v0 = vperm.slane %v6470_v30, 0  ;;  %v12272_v27 = vld [vmem:[#allocation118_spill] sm:$0xff]  ;;  %v12273_v40 = vld [vmem:[#allocation119_spill] sm:$0xff]  ;;  %v12274_v41 = vld [vmem:[#allocation120_spill] sm:$0xff] }
 0x4d3   : > { %v6455_v6 = vmul.f32 %v6445_v61, %v12269_v52  ;;  %v6456_v59 = vmul.f32 %v6446_v35, %v12270_v31  ;;  %v6473_v54 = vperm.slane %v6470_v30, 1  ;;  %v6474_v14 = vperm.slane %v6470_v30, 2  ;;  %v12275_v61 = vld [vmem:[#allocation121_spill] sm:$0xff]  ;;  %v12276_v31 = vld [vmem:[#allocation122_spill] sm:$0xff] }
 0x4d4   : > { %v6457_v46 = vmul.f32 %v6447_v8, %v12271_v47  ;;  %v6458_v16 = vadd.f32 %v6453_v45, %v6429_v22  ;;  %v6459_v60 = vadd.f32 %v6454_v23, %v6430_v1  ;;  %v6475_v48 = vperm.slane %v6470_v30, 3 }
 0x4d5   : > { %v6460_v2 = vadd.f32 %v6455_v6, %v6431_v55  ;;  %v6461_v5 = vadd.f32 %v6456_v59, %v6432_v34  ;;  %v6476_v39 = vperm.slane %v6470_v30, 4  ;;  %v6482_v10 = vmul.f32 %v6472_v0, %v12272_v27 }
 0x4d6   : > { %v6462_v63 = vadd.f32 %v6457_v46, %v6433_v21  ;;  %v6483_v36 = vmul.f32 %v6473_v54, %v12273_v40  ;;  %v6484_v3 = vmul.f32 %v6474_v14, %v12274_v41  ;;  %v6485_v35 = vmul.f32 %v6475_v48, %v12275_v61  ;;  %v12277_v48 = vld [vmem:[#allocation123_spill] sm:$0xff] }
 0x4d7   : > { %v6486_v52 = vmul.f32 %v6476_v39, %v12276_v31  ;;  %v6487_v8 = vadd.f32 %v6482_v10, %v6458_v16  ;;  %v6499_v22 = vor.u32 %v7716_v51, %v7715_v42  ;;  %v6528_v1 = vor.u32 %v7718_v28, %v7717_v37  ;;  %v12278_v39 = vld [vmem:[#allocation124_spill] sm:$0xff]  ;;  %v12279_v42 = vld [vmem:[#allocation125_spill] sm:$0xff]  ;;  %v12280_v28 = vld [vmem:[#allocation126_spill] sm:$0xff] }
 0x4d8   : > { %v6488_v45 = vadd.f32 %v6483_v36, %v6459_v60  ;;  %v6489_v23 = vadd.f32 %v6484_v3, %v6460_v2  ;;  %v6490_v55 = vadd.f32 %v6485_v35, %v6461_v5  ;;  %v6557_v34 = vor.u32 %v7720_v32, %v7719_v12  ;;  %v12281_v60 = vld [vmem:[#allocation127_spill] sm:$0xff] }
 0x4d9   : > { %v6491_v30 = vadd.f32 %v6486_v52, %v6462_v63  ;;  %v6501_v6 = vperm.slane %v6499_v22, 0  ;;  %v6502_v0 = vperm.slane %v6499_v22, 1  ;;  %v6503_v59 = vperm.slane %v6499_v22, 2  ;;  %v12282_v36 = vld [vmem:[#allocation131_spill] sm:$0xff] }
 0x4da   : > { %v6504_v21 = vperm.slane %v6499_v22, 3  ;;  %v6505_v54 = vperm.slane %v6499_v22, 4  ;;  %v6530_v14 = vperm.slane %v6528_v1, 0  ;;  %v6531_v46 = vperm.slane %v6528_v1, 1 }
 0x4db   : > { %v6511_v61 = vmul.f32 %v6501_v6, %v12277_v48  ;;  %v6512_v16 = vmul.f32 %v6502_v0, %v12278_v39  ;;  %v6513_v51 = vmul.f32 %v6503_v59, %v12279_v42  ;;  %v6532_v37 = vperm.slane %v6528_v1, 2  ;;  %v7721_v35 = vld [vmem:[%s8267_s1 + $0x2c] ss:$8 sm:$0xf] }
 0x4dc   : > { %v6514_v52 = vmul.f32 %v6504_v21, %v12280_v28  ;;  %v6515_v12 = vmul.f32 %v6505_v54, %v12281_v60  ;;  %v6533_v2 = vperm.slane %v6528_v1, 3  ;;  %v6534_v5 = vperm.slane %v6528_v1, 4  ;;  %v7722_v22 = vld [vmem:[%s8267_s1 + $0x2c] ss:$8 sm:$0x10]  ;;  %v12283_v59 = vld [vmem:[#allocation132_spill] sm:$0xff] }
 0x4dd   : > { %v6516_v10 = vadd.f32 %v6511_v61, %v6487_v8  ;;  %v6517_v32 = vadd.f32 %v6512_v16, %v6488_v45  ;;  %v6518_v63 = vadd.f32 %v6513_v51, %v6489_v23  ;;  %v6540_v3 = vmul.f32 %v6530_v14, %v12282_v36  ;;  %v12284_v39 = vld [vmem:[#allocation133_spill] sm:$0xff]  ;;  %v7724_v28 = vld [vmem:[%s8267_s1 + $0x2d] ss:$8 sm:$0x10]  ;;  %v12285_v54 = vld [vmem:[#allocation134_spill] sm:$0xff] }
 0x4de   : > { %v6519_v6 = vadd.f32 %v6514_v52, %v6490_v55  ;;  %v6520_v0 = vadd.f32 %v6515_v12, %v6491_v30  ;;  %v6541_v42 = vmul.f32 %v6531_v46, %v12283_v59  ;;  %v6542_v48 = vmul.f32 %v6532_v37, %v12284_v39  ;;  %v7723_v21 = vld [vmem:[%s8267_s1 + $0x2d] ss:$8 sm:$0xf]  ;;  %v7725_v23 = vld [vmem:[%s8267_s1 + $0x2e] ss:$8 sm:$0xf] }
 0x4df   : > { %v6543_v60 = vmul.f32 %v6533_v2, %v12285_v54  ;;  %v12286_v1 = vld [vmem:[#allocation135_spill] sm:$0xff]  ;;  %v6545_v8 = vadd.f32 %v6540_v3, %v6516_v10  ;;  %v6559_v45 = vperm.slane %v6557_v34, 0  ;;  %v6560_v51 = vperm.slane %v6557_v34, 1  ;;  %v12287_v12 = vld [vmem:[#allocation137_spill] sm:$0xff]  ;;  %v12288_v59 = vld [vmem:[#allocation138_spill] sm:$0xff] }
 0x4e0   : > { %v6544_v61 = vmul.f32 %v6534_v5, %v12286_v1  ;;  %v6546_v16 = vadd.f32 %v6541_v42, %v6517_v32  ;;  %v6547_v14 = vadd.f32 %v6542_v48, %v6518_v63  ;;  %v6561_v36 = vperm.slane %v6557_v34, 2  ;;  %v7726_v31 = vld [vmem:[%s8267_s1 + $0x2e] ss:$8 sm:$0x10] }
 0x4e1   : > { %v6548_v55 = vadd.f32 %v6543_v60, %v6519_v6  ;;  %v6562_v52 = vperm.slane %v6557_v34, 3  ;;  %v6563_v46 = vperm.slane %v6557_v34, 4  ;;  %v6569_v37 = vmul.f32 %v6559_v45, %v12213_v4 }
 0x4e2   : > { %v6549_v30 = vadd.f32 %v6544_v61, %v6520_v0  ;;  %v6570_v39 = vmul.f32 %v6560_v51, %v12287_v12  ;;  %v6571_v2 = vmul.f32 %v6561_v36, %v12288_v59  ;;  %v6586_v54 = vor.u32 %v7722_v22, %v7721_v35 }
 0x4e3   : > { %v6572_v5 = vmul.f32 %v6562_v52, %v12216_v9  ;;  %v6573_v10 = vmul.f32 %v6563_v46, %v12217_v56  ;;  %v6615_v42 = vor.u32 %v7724_v28, %v7723_v21  ;;  %v6644_v48 = vor.u32 %v7726_v31, %v7725_v23  ;;  %v7727_v52 = vld [vmem:[%s8267_s1 + $0x2f] ss:$8 sm:$0xf] }
 0x4e4   : > { %v6574_v32 = vadd.f32 %v6569_v37, %v6545_v8  ;;  %v6575_v63 = vadd.f32 %v6570_v39, %v6546_v16  ;;  %v6576_v3 = vadd.f32 %v6571_v2, %v6547_v14  ;;  %v6588_v60 = vperm.slane %v6586_v54, 0  ;;  %v7728_v46 = vld [vmem:[%s8267_s1 + $0x2f] ss:$8 sm:$0x10] }
 0x4e5   : > { %v6577_v6 = vadd.f32 %v6572_v5, %v6548_v55  ;;  %v6578_v0 = vadd.f32 %v6573_v10, %v6549_v30  ;;  %v6589_v34 = vperm.slane %v6586_v54, 1  ;;  %v6590_v61 = vperm.slane %v6586_v54, 2  ;;  %v12289_v5 = vld [vmem:[#allocation142_spill] sm:$0xff] }
 0x4e6   : > { %v6591_v45 = vperm.slane %v6586_v54, 3  ;;  %v6592_v51 = vperm.slane %v6586_v54, 4  ;;  %v6598_v36 = vmul.f32 %v6588_v60, %v12218_v62  ;;  %v6617_v35 = vperm.slane %v6615_v42, 0  ;;  %v12290_v60 = vld [vmem:[#allocation143_spill] sm:$0xff] }
 0x4e7   : > { %v6599_v22 = vmul.f32 %v6589_v34, %v12219_v20  ;;  %v6600_v28 = vmul.f32 %v6590_v61, %v12220_v11  ;;  %v6618_v31 = vperm.slane %v6615_v42, 1  ;;  %v6619_v39 = vperm.slane %v6615_v42, 2  ;;  %v7729_v61 = vld [vmem:[%s8267_s1 + $0x50] ss:$8 sm:$0xf] }
 0x4e8   : > { %v6601_v21 = vmul.f32 %v6591_v45, %v12221_v43  ;;  %v6602_v8 = vmul.f32 %v6592_v51, %v12222_v44  ;;  %v6603_v23 = vadd.f32 %v6598_v36, %v6574_v32  ;;  %v6620_v16 = vperm.slane %v6615_v42, 3  ;;  %v7730_v45 = vld [vmem:[%s8267_s1 + $0x50] ss:$8 sm:$0x10]  ;;  %v12292_v36 = vld [vmem:[#allocation145_spill] sm:$0xff] }
 0x4e9   : > { %v6604_v14 = vadd.f32 %v6599_v22, %v6575_v63  ;;  %v6605_v54 = vadd.f32 %v6600_v28, %v6576_v3  ;;  %v6621_v55 = vperm.slane %v6615_v42, 4  ;;  %v6627_v30 = vmul.f32 %v6617_v35, %v12148_v7  ;;  %v12291_v51 = vld [vmem:[#allocation144_spill] sm:$0xff] }
 0x4ea   : > { %v6606_v37 = vadd.f32 %v6601_v21, %v6577_v6  ;;  %v6607_v2 = vadd.f32 %v6602_v8, %v6578_v0  ;;  %v6628_v10 = vmul.f32 %v6618_v31, %v12289_v5  ;;  %v6629_v34 = vmul.f32 %v6619_v39, %v12290_v60  ;;  %v7731_v42 = vld [vmem:[%s8267_s1 + $0x51] ss:$8 sm:$0xf] }
 0x4eb   : > { %v6630_v32 = vmul.f32 %v6620_v16, %v12291_v51  ;;  %v6631_v63 = vmul.f32 %v6621_v55, %v12292_v36  ;;  %v6632_v22 = vadd.f32 %v6627_v30, %v6603_v23  ;;  %v6646_v3 = vperm.slane %v6644_v48, 0  ;;  %v7732_v43 = vld [vmem:[%s8267_s1 + $0x51] ss:$8 sm:$0x10]  ;;  %v12293_v8 = vld [vmem:[#allocation30_spill] sm:$0xff]  ;;  %v12294_v5 = vld [vmem:[#allocation147_spill] sm:$0xff] }
 0x4ec   : > { %v6633_v28 = vadd.f32 %v6628_v10, %v6604_v14  ;;  %v6634_v35 = vadd.f32 %v6629_v34, %v6605_v54  ;;  %v6647_v7 = vperm.slane %v6644_v48, 1  ;;  %v6648_v44 = vperm.slane %v6644_v48, 2  ;;  %v12295_v55 = vld [vmem:[#allocation148_spill] sm:$0xff]  ;;  %v12296_v30 = vld [vmem:[#allocation149_spill] sm:$0xff] }
 0x4ed   : > { %v6635_v6 = vadd.f32 %v6630_v32, %v6606_v37  ;;  %v6636_v0 = vadd.f32 %v6631_v63, %v6607_v2  ;;  %v6649_v21 = vperm.slane %v6644_v48, 3  ;;  %v6650_v31 = vperm.slane %v6644_v48, 4 }
 0x4ee   : > { %v6656_v39 = vmul.f32 %v6646_v3, %v12153_v13  ;;  %v6657_v60 = vmul.f32 %v6647_v7, %v12293_v8  ;;  %v6658_v16 = vmul.f32 %v6648_v44, %v12294_v5  ;;  %v6673_v51 = vor.u32 %v7728_v46, %v7727_v52  ;;  %v12297_v8 = vld [vmem:[#allocation155_spill] sm:$0xff]  ;;  %v12298_v46 = vld [vmem:[#allocation156_spill] sm:$0xff] }
 0x4ef   : > { %v6659_v23 = vmul.f32 %v6649_v21, %v12295_v55  ;;  %v6660_v36 = vmul.f32 %v6650_v31, %v12296_v30  ;;  %v6702_v14 = vor.u32 %v7730_v45, %v7729_v61  ;;  %v6731_v54 = vor.u32 %v7732_v43, %v7731_v42  ;;  %v12299_v31 = vld [vmem:[#allocation157_spill] sm:$0xff]  ;;  %v12300_v45 = vld [vmem:[#allocation158_spill] sm:$0xff] }
 0x4f0   : > { %v6661_v10 = vadd.f32 %v6656_v39, %v6632_v22  ;;  %v6662_v34 = vadd.f32 %v6657_v60, %v6633_v28  ;;  %v6663_v11 = vadd.f32 %v6658_v16, %v6634_v35  ;;  %v6675_v37 = vperm.slane %v6673_v51, 0  ;;  %v12302_v39 = vld [vmem:[#allocation160_spill] sm:$0xff]  ;;  %v6822_v55 = vld [vmem:[%s8267_s1] ss:$8 sm:$0x10] }
 0x4f1   : > { %v6664_v2 = vadd.f32 %v6659_v23, %v6635_v6  ;;  %v6665_v32 = vadd.f32 %v6660_v36, %v6636_v0  ;;  %v6676_v48 = vperm.slane %v6673_v51, 1  ;;  %v6677_v63 = vperm.slane %v6673_v51, 2  ;;  %v12301_v36 = vld [vmem:[#allocation159_spill] sm:$0xff] }
 0x4f2   : > { %v6678_v3 = vperm.slane %v6673_v51, 3  ;;  %v6679_v7 = vperm.slane %v6673_v51, 4  ;;  %v6685_v44 = vmul.f32 %v6675_v37, %v12297_v8  ;;  %v6704_v52 = vperm.slane %v6702_v14, 0  ;;  %v7733_v23 = vld [vmem:[%s8267_s1 + $0x52] ss:$8 sm:$0xf] }
 0x4f3   : > { %v6686_v21 = vmul.f32 %v6676_v48, %v12298_v46  ;;  %v6687_v61 = vmul.f32 %v6677_v63, %v12299_v31  ;;  %v6705_v43 = vperm.slane %v6702_v14, 1  ;;  %v6706_v60 = vperm.slane %v6702_v14, 2  ;;  %v7734_v37 = vld [vmem:[%s8267_s1 + $0x52] ss:$8 sm:$0x10]  ;;  %v12303_v31 = vld [vmem:[#allocation161_spill] sm:$0xff] }
 0x4f4   : > { %v6688_v22 = vmul.f32 %v6678_v3, %v12300_v45  ;;  %v6689_v42 = vmul.f32 %v6679_v7, %v12301_v36  ;;  %v6690_v28 = vadd.f32 %v6685_v44, %v6661_v10  ;;  %v6707_v35 = vperm.slane %v6702_v14, 3  ;;  %v12304_v8 = vld [vmem:[#allocation162_spill] sm:$0xff]  ;;  %v7736_v45 = vld [vmem:[%s8267_s1 + $0x53] ss:$8 sm:$0x10]  ;;  %v12305_v7 = vld [vmem:[#allocation163_spill] sm:$0xff] }
 0x4f5   : > { %v6691_v6 = vadd.f32 %v6686_v21, %v6662_v34  ;;  %v6692_v51 = vadd.f32 %v6687_v61, %v6663_v11  ;;  %v6708_v0 = vperm.slane %v6702_v14, 4  ;;  %v6714_v16 = vmul.f32 %v6704_v52, %v12302_v39  ;;  %v7735_v3 = vld [vmem:[%s8267_s1 + $0x53] ss:$8 sm:$0xf] }
 0x4f6   : > { %v6693_v48 = vadd.f32 %v6688_v22, %v6664_v2  ;;  %v6694_v63 = vadd.f32 %v6689_v42, %v6665_v32  ;;  %v6715_v46 = vmul.f32 %v6705_v43, %v12303_v31  ;;  %v6716_v30 = vmul.f32 %v6706_v60, %v12304_v8  ;;  %v12306_v44 = vld [vmem:[#allocation164_spill] sm:$0xff]  ;;  %v12307_v42 = vld [vmem:[#allocation151_spill] sm:$0xff] }
 0x4f7   : > { %v6717_v10 = vmul.f32 %v6707_v35, %v12305_v7  ;;  %v6718_v34 = vmul.f32 %v6708_v0, %v12306_v44  ;;  %v6719_v21 = vadd.f32 %v6714_v16, %v6690_v28  ;;  %v6733_v11 = vperm.slane %v6731_v54, 0  ;;  %v6821_v14 = vld [vmem:[%s8267_s1] ss:$8 sm:$0xf] }
 0x4f8   : > { %v6720_v61 = vadd.f32 %v6715_v46, %v6691_v6  ;;  %v6721_v52 = vadd.f32 %v6716_v30, %v6692_v51  ;;  %v6734_v39 = vperm.slane %v6731_v54, 1  ;;  %v6735_v36 = vperm.slane %v6731_v54, 2  ;;  %v12308_v31 = vld [vmem:[#allocation152_spill] sm:$0xff] }
 0x4f9   : > { %v6722_v2 = vadd.f32 %v6717_v10, %v6693_v48  ;;  %v6723_v32 = vadd.f32 %v6718_v34, %v6694_v63  ;;  %v6736_v22 = vperm.slane %v6731_v54, 3  ;;  %v6737_v43 = vperm.slane %v6731_v54, 4 }
 0x4fa   : > { %v6743_v60 = vmul.f32 %v6733_v11, %v12234_v50  ;;  %v6744_v8 = vmul.f32 %v6734_v39, %v12307_v42  ;;  %v6745_v35 = vmul.f32 %v6735_v36, %v12308_v31  ;;  %v6760_v7 = vor.u32 %v7734_v37, %v7733_v23  ;;  %v12309_v42 = vld [vmem:[#allocation165_spill] sm:$0xff]  ;;  %v12310_v37 = vld [vmem:[#allocation166_spill] sm:$0xff] }
 0x4fb   : > { %v6746_v28 = vmul.f32 %v6736_v22, %v12237_v53  ;;  %v6747_v0 = vmul.f32 %v6737_v43, %v12238_v25  ;;  %v6789_v46 = vor.u32 %v7736_v45, %v7735_v3  ;;  %v6823_v30 = vor.u32 %v6822_v55, %v6821_v14  ;;  %v12311_v43 = vld [vmem:[#allocation167_spill] sm:$0xff]  ;;  %v12312_v3 = vld [vmem:[#allocation168_spill] sm:$0xff]  ;;  %v12313_v14 = vld [vmem:[#allocation169_spill] sm:$0xff] }
 0x4fc   : > { %v6748_v6 = vadd.f32 %v6743_v60, %v6719_v21  ;;  %v6749_v51 = vadd.f32 %v6744_v8, %v6720_v61  ;;  %v6750_v16 = vadd.f32 %v6745_v35, %v6721_v52  ;;  %v6762_v48 = vperm.slane %v6760_v7, 0  ;;  %v12314_v35 = vld [vmem:[#allocation170_spill] sm:$0xff] }
 0x4fd   : > { %v6751_v63 = vadd.f32 %v6746_v28, %v6722_v2  ;;  %v6752_v10 = vadd.f32 %v6747_v0, %v6723_v32  ;;  %v6763_v54 = vperm.slane %v6760_v7, 1  ;;  %v6764_v34 = vperm.slane %v6760_v7, 2  ;;  %v7737_v0 = vld [vmem:[%s8267_s1 + $0x1] ss:$8 sm:$0xf] }
 0x4fe   : > { %v6765_v11 = vperm.slane %v6760_v7, 3  ;;  %v6766_v39 = vperm.slane %v6760_v7, 4  ;;  %v6772_v36 = vmul.f32 %v6762_v48, %v12309_v42  ;;  %v6791_v23 = vperm.slane %v6789_v46, 0  ;;  %v7738_v48 = vld [vmem:[%s8267_s1 + $0x1] ss:$8 sm:$0x10] }
 0x4ff   : > { %v6773_v22 = vmul.f32 %v6763_v54, %v12310_v37  ;;  %v6774_v45 = vmul.f32 %v6764_v34, %v12311_v43  ;;  %v6792_v55 = vperm.slane %v6789_v46, 1  ;;  %v6793_v8 = vperm.slane %v6789_v46, 2  ;;  %v12315_v43 = vld [vmem:[#allocation171_spill] sm:$0xff]  ;;  %v12316_v42 = vld [vmem:[#allocation172_spill] sm:$0xff] }
 0x500   : > { %v6775_v21 = vmul.f32 %v6765_v11, %v12312_v3  ;;  %v6776_v61 = vmul.f32 %v6766_v39, %v12313_v14  ;;  %v6777_v52 = vadd.f32 %v6772_v36, %v6748_v6  ;;  %v6794_v2 = vperm.slane %v6789_v46, 3  ;;  %v7739_v3 = vld [vmem:[%s8267_s1 + $0x2] ss:$8 sm:$0xf] }
 0x501   : > { %v6778_v32 = vadd.f32 %v6773_v22, %v6749_v51  ;;  %v6779_v7 = vadd.f32 %v6774_v45, %v6750_v16  ;;  %v6795_v60 = vperm.slane %v6789_v46, 4  ;;  %v6801_v28 = vmul.f32 %v6791_v23, %v12314_v35  ;;  %v7740_v39 = vld [vmem:[%s8267_s1 + $0x2] ss:$8 sm:$0x10]  ;;  %v12317_v6 = vld [vmem:[#allocation173_spill] sm:$0xff] }
 0x502   : > { %v6780_v54 = vadd.f32 %v6775_v21, %v6751_v63  ;;  %v6781_v34 = vadd.f32 %v6776_v61, %v6752_v10  ;;  %v6802_v37 = vmul.f32 %v6792_v55, %v12315_v43  ;;  %v6803_v11 = vmul.f32 %v6793_v8, %v12316_v42  ;;  %v12318_v36 = vld [vmem:[#allocation174_spill] sm:$0xff] }
 0x503   : > { %v6804_v51 = vmul.f32 %v6794_v2, %v12317_v6  ;;  %v6805_v16 = vmul.f32 %v6795_v60, %v12318_v36  ;;  %v6806_v46 = vadd.f32 %v6801_v28, %v6777_v52  ;;  %v6825_v22 = vperm.slane %v6823_v30, 0  ;;  %v7741_v23 = vld [vmem:[%s8267_s1 + $0x3] ss:$8 sm:$0xf] }
 0x504   : > { %v6807_v45 = vadd.f32 %v6802_v37, %v6778_v32  ;;  %v6808_v35 = vadd.f32 %v6803_v11, %v6779_v7  ;;  %v6826_v63 = vperm.slane %v6823_v30, 1  ;;  %v6827_v10 = vperm.slane %v6823_v30, 2  ;;  %v7742_v21 = vld [vmem:[%s8267_s1 + $0x3] ss:$8 sm:$0x10] }
 0x505   : > { %v6809_v55 = vadd.f32 %v6804_v51, %v6780_v54  ;;  %v6810_v61 = vadd.f32 %v6805_v16, %v6781_v34  ;;  %6811 = vst [vmem:[%s10314_s25 + $0xc8] sm:$0xff] %v6806_v46  ;;  %v6828_v8 = vperm.slane %v6823_v30, 3  ;;  %v6829_v42 = vperm.slane %v6823_v30, 4 }
 0x506   : > { %6812 = vst [vmem:[%s10314_s25 + $0xd0] sm:$0xff] %v6807_v45  ;;  %v6835_v2 = vmul.f32 %v6825_v22, %v12188_v29  ;;  %v6836_v52 = vmul.f32 %v6826_v63, %v12262_v19  ;;  %v6837_v60 = vmul.f32 %v6827_v10, %v12263_v33  ;;  %v6852_v28 = vor.u32 %v7738_v48, %v7737_v0  ;;  %v7744_v63 = vld [vmem:[%s8267_s1 + $0x4] ss:$8 sm:$0x10]  ;;  %v12319_v10 = vld [vmem:[#allocation105_spill] sm:$0xff] }
 0x507   : > { %6813 = vst [vmem:[%s10314_s25 + $0xd8] sm:$0xff] %v6808_v35  ;;  %v6838_v37 = vmul.f32 %v6828_v8, %v12191_v18  ;;  %v6839_v32 = vmul.f32 %v6829_v42, %v12192_v26  ;;  %v6881_v7 = vor.u32 %v7740_v39, %v7739_v3  ;;  %v6910_v54 = vor.u32 %v7742_v21, %v7741_v23  ;;  %v12320_v21 = vld [vmem:[#allocation106_spill] sm:$0xff] }
 0x508   : > { %6814 = vst [vmem:[%s10314_s25 + $0xe0] sm:$0xff] %v6809_v55  ;;  %v6854_v34 = vperm.slane %v6852_v28, 0  ;;  %v6855_v11 = vperm.slane %v6852_v28, 1  ;;  %v6856_v30 = vperm.slane %v6852_v28, 2  ;;  %v6857_v51 = vperm.slane %v6852_v28, 3 }
 0x509   : > { %6815 = vst [vmem:[%s10314_s25 + $0xe8] sm:$0xff] %v6810_v61  ;;  %v6858_v16 = vperm.slane %v6852_v28, 4  ;;  %v6883_v29 = vperm.slane %v6881_v7, 0  ;;  %v6884_v19 = vperm.slane %v6881_v7, 1  ;;  %v6885_v33 = vperm.slane %v6881_v7, 2 }
 0x50a   : > { %v6864_v35 = vmul.f32 %v6854_v34, %v12193_v57  ;;  %v6865_v18 = vmul.f32 %v6855_v11, %v12194_v49  ;;  %v6866_v26 = vmul.f32 %v6856_v30, %v12264_v24  ;;  %v6867_v42 = vmul.f32 %v6857_v51, %v12265_v58  ;;  %v7743_v57 = vld [vmem:[%s8267_s1 + $0x4] ss:$8 sm:$0xf]  ;;  %v7746_v61 = vld [vmem:[%s8267_s1 + $0x5] ss:$8 sm:$0x10] }
 0x50b   : > { %v6868_v3 = vmul.f32 %v6858_v16, %v12266_v15  ;;  %v6886_v0 = vperm.slane %v6881_v7, 3  ;;  %v6887_v48 = vperm.slane %v6881_v7, 4  ;;  %v6893_v39 = vmul.f32 %v6883_v29, %v12267_v38  ;;  %v7745_v15 = vld [vmem:[%s8267_s1 + $0x5] ss:$8 sm:$0xf] }
 0x50c   : > { %v6869_v46 = vadd.f32 %v6864_v35, %v6835_v2  ;;  %v6870_v22 = vadd.f32 %v6865_v18, %v6836_v52  ;;  %v6871_v23 = vadd.f32 %v6866_v26, %v6837_v60  ;;  %v6872_v45 = vadd.f32 %v6867_v42, %v6838_v37  ;;  %v7747_v52 = vld [vmem:[%s8267_s1 + $0x6] ss:$8 sm:$0xf] }
 0x50d   : > { %v6873_v49 = vadd.f32 %v6868_v3, %v6839_v32  ;;  %v6894_v24 = vmul.f32 %v6884_v19, %v12268_v17  ;;  %v6895_v58 = vmul.f32 %v6885_v33, %v12319_v10  ;;  %v6896_v55 = vmul.f32 %v6886_v0, %v12320_v21  ;;  %v7748_v11 = vld [vmem:[%s8267_s1 + $0x6] ss:$8 sm:$0x10]  ;;  %v12321_v33 = vld [vmem:[#allocation121_spill] sm:$0xff] }
 0x50e   : > { %v6897_v8 = vmul.f32 %v6887_v48, %v12271_v47  ;;  %v6898_v38 = vadd.f32 %v6893_v39, %v6869_v46  ;;  %v6912_v2 = vperm.slane %v6910_v54, 0  ;;  %v6913_v28 = vperm.slane %v6910_v54, 1  ;;  %v12322_v18 = vld [vmem:[#allocation122_spill] sm:$0xff] }
 0x50f   : > { %v6899_v60 = vadd.f32 %v6894_v24, %v6870_v22  ;;  %v6900_v37 = vadd.f32 %v6895_v58, %v6871_v23  ;;  %v6901_v7 = vadd.f32 %v6896_v55, %v6872_v45  ;;  %v6914_v34 = vperm.slane %v6910_v54, 2  ;;  %v12325_v24 = vld [vmem:[#allocation125_spill] sm:$0xff]  ;;  %v12326_v58 = vld [vmem:[#allocation126_spill] sm:$0xff] }
 0x510   : > { %v6902_v32 = vadd.f32 %v6897_v8, %v6873_v49  ;;  %v6915_v30 = vperm.slane %v6910_v54, 3  ;;  %v6916_v17 = vperm.slane %v6910_v54, 4  ;;  %v6922_v51 = vmul.f32 %v6912_v2, %v12272_v27 }
 0x511   : > { %v6923_v16 = vmul.f32 %v6913_v28, %v12273_v40  ;;  %v6924_v29 = vmul.f32 %v6914_v34, %v12274_v41  ;;  %v6939_v19 = vor.u32 %v7744_v63, %v7743_v57  ;;  %v6968_v47 = vor.u32 %v7746_v61, %v7745_v15  ;;  %v12323_v40 = vld [vmem:[#allocation123_spill] sm:$0xff]  ;;  %v12324_v57 = vld [vmem:[#allocation124_spill] sm:$0xff] }
 0x512   : > { %v6925_v35 = vmul.f32 %v6915_v30, %v12321_v33  ;;  %v6926_v26 = vmul.f32 %v6916_v17, %v12322_v18  ;;  %v6927_v42 = vadd.f32 %v6922_v51, %v6898_v38  ;;  %v6997_v3 = vor.u32 %v7748_v11, %v7747_v52  ;;  %v12327_v61 = vld [vmem:[#allocation127_spill] sm:$0xff]  ;;  %v12329_v17 = vld [vmem:[#allocation132_spill] sm:$0xff] }
 0x513   : > { %v6928_v0 = vadd.f32 %v6923_v16, %v6899_v60  ;;  %v6929_v48 = vadd.f32 %v6924_v29, %v6900_v37  ;;  %v6941_v39 = vperm.slane %v6939_v19, 0  ;;  %v6942_v46 = vperm.slane %v6939_v19, 1  ;;  %v7749_v11 = vld [vmem:[%s8267_s1 + $0x7] ss:$8 sm:$0xf] }
 0x514   : > { %v6930_v22 = vadd.f32 %v6925_v35, %v6901_v7  ;;  %v6931_v54 = vadd.f32 %v6926_v26, %v6902_v32  ;;  %v6943_v23 = vperm.slane %v6939_v19, 2  ;;  %v6944_v27 = vperm.slane %v6939_v19, 3  ;;  %v12328_v7 = vld [vmem:[#allocation131_spill] sm:$0xff]  ;;  %v7750_v32 = vld [vmem:[%s8267_s1 + $0x7] ss:$8 sm:$0x10] }
 0x515   : > { %v6945_v45 = vperm.slane %v6939_v19, 4  ;;  %v6951_v41 = vmul.f32 %v6941_v39, %v12323_v40  ;;  %v6952_v63 = vmul.f32 %v6942_v46, %v12324_v57  ;;  %v6970_v49 = vperm.slane %v6968_v47, 0  ;;  %v12330_v16 = vld [vmem:[#allocation133_spill] sm:$0xff]  ;;  %v12331_v19 = vld [vmem:[#allocation134_spill] sm:$0xff] }
 0x516   : > { %v6953_v10 = vmul.f32 %v6943_v23, %v12325_v24  ;;  %v6954_v21 = vmul.f32 %v6944_v27, %v12326_v58  ;;  %v6971_v55 = vperm.slane %v6968_v47, 1  ;;  %v6972_v15 = vperm.slane %v6968_v47, 2  ;;  %v7751_v35 = vld [vmem:[%s8267_s1 + $0x28] ss:$8 sm:$0xf] }
 0x517   : > { %v6955_v8 = vmul.f32 %v6945_v45, %v12327_v61  ;;  %v6956_v38 = vadd.f32 %v6951_v41, %v6927_v42  ;;  %v6957_v2 = vadd.f32 %v6952_v63, %v6928_v0  ;;  %v6973_v28 = vperm.slane %v6968_v47, 3  ;;  %v7752_v18 = vld [vmem:[%s8267_s1 + $0x28] ss:$8 sm:$0x10] }
 0x518   : > { %v6958_v52 = vadd.f32 %v6953_v10, %v6929_v48  ;;  %v6959_v60 = vadd.f32 %v6954_v21, %v6930_v22  ;;  %v6974_v37 = vperm.slane %v6968_v47, 4  ;;  %v6980_v34 = vmul.f32 %v6970_v49, %v12328_v7  ;;  %v7753_v47 = vld [vmem:[%s8267_s1 + $0x29] ss:$8 sm:$0xf] }
 0x519   : > { %v6960_v30 = vadd.f32 %v6955_v8, %v6931_v54  ;;  %v6981_v51 = vmul.f32 %v6971_v55, %v12329_v17  ;;  %v6982_v29 = vmul.f32 %v6972_v15, %v12330_v16  ;;  %v6983_v33 = vmul.f32 %v6973_v28, %v12331_v19  ;;  %v7754_v27 = vld [vmem:[%s8267_s1 + $0x29] ss:$8 sm:$0x10]  ;;  %v12335_v19 = vld [vmem:[#allocation141_spill] sm:$0xff] }
 0x51a   : > { %v6984_v26 = vmul.f32 %v6974_v37, %v12286_v1  ;;  %v6985_v42 = vadd.f32 %v6980_v34, %v6956_v38  ;;  %v6999_v0 = vperm.slane %v6997_v3, 0  ;;  %v7000_v48 = vperm.slane %v6997_v3, 1 }
 0x51b   : > { %v6986_v39 = vadd.f32 %v6981_v51, %v6957_v2  ;;  %v6987_v46 = vadd.f32 %v6982_v29, %v6958_v52  ;;  %v6988_v22 = vadd.f32 %v6983_v33, %v6959_v60  ;;  %v7001_v23 = vperm.slane %v6997_v3, 2  ;;  %v12332_v52 = vld [vmem:[#allocation20_spill] sm:$0xff]  ;;  %v12333_v60 = vld [vmem:[#allocation31_spill] sm:$0xff] }
 0x51c   : > { %v6989_v54 = vadd.f32 %v6984_v26, %v6960_v30  ;;  %v7002_v45 = vperm.slane %v6997_v3, 3  ;;  %v7003_v40 = vperm.slane %v6997_v3, 4  ;;  %v7009_v41 = vmul.f32 %v6999_v0, %v12213_v4  ;;  %v7755_v33 = vld [vmem:[%s8267_s1 + $0x2a] ss:$8 sm:$0xf] }
 0x51d   : > { %v7010_v57 = vmul.f32 %v7000_v48, %v12287_v12  ;;  %v7011_v63 = vmul.f32 %v7001_v23, %v12288_v59  ;;  %v7026_v49 = vor.u32 %v7750_v32, %v7749_v11  ;;  %v7055_v1 = vor.u32 %v7752_v18, %v7751_v35  ;;  %v12334_v11 = vld [vmem:[#allocation130_spill] sm:$0xff]  ;;  %v7756_v35 = vld [vmem:[%s8267_s1 + $0x2a] ss:$8 sm:$0x10]  ;;  %v12339_v23 = vld [vmem:[#allocation145_spill] sm:$0xff] }
 0x51e   : > { %v7012_v24 = vmul.f32 %v7002_v45, %v12216_v9  ;;  %v7013_v10 = vmul.f32 %v7003_v40, %v12217_v56  ;;  %v7014_v58 = vadd.f32 %v7009_v41, %v6985_v42  ;;  %v7084_v21 = vor.u32 %v7754_v27, %v7753_v47  ;;  %v12336_v26 = vld [vmem:[#allocation142_spill] sm:$0xff]  ;;  %v12337_v0 = vld [vmem:[#allocation143_spill] sm:$0xff]  ;;  %v12338_v47 = vld [vmem:[#allocation144_spill] sm:$0xff] }
 0x51f   : > { %v7015_v55 = vadd.f32 %v7010_v57, %v6986_v39  ;;  %v7016_v15 = vadd.f32 %v7011_v63, %v6987_v46  ;;  %v7028_v61 = vperm.slane %v7026_v49, 0  ;;  %v7029_v8 = vperm.slane %v7026_v49, 1  ;;  %v7757_v46 = vld [vmem:[%s8267_s1 + $0x2b] ss:$8 sm:$0xf] }
 0x520   : > { %v7017_v38 = vadd.f32 %v7012_v24, %v6988_v22  ;;  %v7018_v3 = vadd.f32 %v7013_v10, %v6989_v54  ;;  %v7030_v2 = vperm.slane %v7026_v49, 2  ;;  %v7031_v4 = vperm.slane %v7026_v49, 3  ;;  %v7758_v22 = vld [vmem:[%s8267_s1 + $0x2b] ss:$8 sm:$0x10] }
 0x521   : > { %v7032_v28 = vperm.slane %v7026_v49, 4  ;;  %v7038_v59 = vmul.f32 %v7028_v61, %v12218_v62  ;;  %v7039_v12 = vmul.f32 %v7029_v8, %v12219_v20  ;;  %v7057_v9 = vperm.slane %v7055_v1, 0  ;;  %v7759_v41 = vld [vmem:[%s8267_s1 + $0x2c] ss:$8 sm:$0xf] }
 0x522   : > { %v7040_v56 = vmul.f32 %v7030_v2, %v12332_v52  ;;  %v7041_v37 = vmul.f32 %v7031_v4, %v12333_v60  ;;  %v7058_v7 = vperm.slane %v7055_v1, 1  ;;  %v7059_v34 = vperm.slane %v7055_v1, 2  ;;  %v7760_v24 = vld [vmem:[%s8267_s1 + $0x2c] ss:$8 sm:$0x10]  ;;  %v12340_v61 = vld [vmem:[#allocation30_spill] sm:$0xff] }
 0x523   : > { %v7042_v32 = vmul.f32 %v7032_v28, %v12334_v11  ;;  %v7043_v30 = vadd.f32 %v7038_v59, %v7014_v58  ;;  %v7044_v17 = vadd.f32 %v7039_v12, %v7015_v55  ;;  %v7060_v51 = vperm.slane %v7055_v1, 3  ;;  %v12341_v4 = vld [vmem:[#allocation148_spill] sm:$0xff]  ;;  %v12342_v59 = vld [vmem:[#allocation149_spill] sm:$0xff] }
 0x524   : > { %v7045_v16 = vadd.f32 %v7040_v56, %v7016_v15  ;;  %v7046_v62 = vadd.f32 %v7041_v37, %v7017_v38  ;;  %v7061_v29 = vperm.slane %v7055_v1, 4  ;;  %v7067_v20 = vmul.f32 %v7057_v9, %v12335_v19  ;;  %v12346_v19 = vld [vmem:[#allocation158_spill] sm:$0xff] }
 0x525   : > { %v7047_v18 = vadd.f32 %v7042_v32, %v7018_v3  ;;  %v7068_v42 = vmul.f32 %v7058_v7, %v12336_v26  ;;  %v7069_v48 = vmul.f32 %v7059_v34, %v12337_v0  ;;  %v7070_v39 = vmul.f32 %v7060_v51, %v12338_v47 }
 0x526   : > { %v7071_v27 = vmul.f32 %v7061_v29, %v12339_v23  ;;  %v7072_v54 = vadd.f32 %v7067_v20, %v7043_v30  ;;  %v7086_v45 = vperm.slane %v7084_v21, 0  ;;  %v7087_v40 = vperm.slane %v7084_v21, 1  ;;  %v12343_v30 = vld [vmem:[#allocation155_spill] sm:$0xff] }
 0x527   : > { %v7073_v57 = vadd.f32 %v7068_v42, %v7044_v17  ;;  %v7074_v63 = vadd.f32 %v7069_v48, %v7045_v16  ;;  %v7075_v49 = vadd.f32 %v7070_v39, %v7046_v62  ;;  %v7088_v1 = vperm.slane %v7084_v21, 2  ;;  %v12344_v17 = vld [vmem:[#allocation156_spill] sm:$0xff]  ;;  %v12345_v62 = vld [vmem:[#allocation157_spill] sm:$0xff] }
 0x528   : > { %v7076_v10 = vadd.f32 %v7071_v27, %v7047_v18  ;;  %v7089_v58 = vperm.slane %v7084_v21, 3  ;;  %v7090_v55 = vperm.slane %v7084_v21, 4  ;;  %v7096_v15 = vmul.f32 %v7086_v45, %v12153_v13  ;;  %v12347_v18 = vld [vmem:[#allocation159_spill] sm:$0xff]  ;;  %v12349_v45 = vld [vmem:[#allocation161_spill] sm:$0xff] }
 0x529   : > { %v7097_v8 = vmul.f32 %v7087_v40, %v12340_v61  ;;  %v7098_v38 = vmul.f32 %v7088_v1, %v12294_v5  ;;  %v7113_v3 = vor.u32 %v7756_v35, %v7755_v33  ;;  %v7142_v2 = vor.u32 %v7758_v22, %v7757_v46  ;;  %v12348_v22 = vld [vmem:[#allocation160_spill] sm:$0xff]  ;;  %v7762_v1 = vld [vmem:[%s8267_s1 + $0x2d] ss:$8 sm:$0x10] }
 0x52a   : > { %v7099_v28 = vmul.f32 %v7089_v58, %v12341_v4  ;;  %v7100_v12 = vmul.f32 %v7090_v55, %v12342_v59  ;;  %v7101_v9 = vadd.f32 %v7096_v15, %v7072_v54  ;;  %v7171_v52 = vor.u32 %v7760_v24, %v7759_v41  ;;  %v7761_v27 = vld [vmem:[%s8267_s1 + $0x2d] ss:$8 sm:$0xf]  ;;  %v7763_v24 = vld [vmem:[%s8267_s1 + $0x2e] ss:$8 sm:$0xf] }
 0x52b   : > { %v7102_v56 = vadd.f32 %v7097_v8, %v7073_v57  ;;  %v7103_v60 = vadd.f32 %v7098_v38, %v7074_v63  ;;  %v7115_v37 = vperm.slane %v7113_v3, 0  ;;  %v7116_v7 = vperm.slane %v7113_v3, 1  ;;  %v12350_v41 = vld [vmem:[#allocation162_spill] sm:$0xff]  ;;  %v12351_v63 = vld [vmem:[#allocation163_spill] sm:$0xff] }
 0x52c   : > { %v7104_v34 = vadd.f32 %v7099_v28, %v7075_v49  ;;  %v7105_v21 = vadd.f32 %v7100_v12, %v7076_v10  ;;  %v7117_v11 = vperm.slane %v7113_v3, 2  ;;  %v7118_v13 = vperm.slane %v7113_v3, 3  ;;  %v7764_v61 = vld [vmem:[%s8267_s1 + $0x2e] ss:$8 sm:$0x10] }
 0x52d   : > { %v7119_v32 = vperm.slane %v7113_v3, 4  ;;  %v7125_v5 = vmul.f32 %v7115_v37, %v12343_v30  ;;  %v7126_v51 = vmul.f32 %v7116_v7, %v12344_v17  ;;  %v7144_v16 = vperm.slane %v7142_v2, 0 }
 0x52e   : > { %v7127_v29 = vmul.f32 %v7117_v11, %v12345_v62  ;;  %v7128_v20 = vmul.f32 %v7118_v13, %v12346_v19  ;;  %v7145_v33 = vperm.slane %v7142_v2, 1  ;;  %v7146_v35 = vperm.slane %v7142_v2, 2 }
 0x52f   : > { %v7129_v26 = vmul.f32 %v7119_v32, %v12347_v18  ;;  %v7130_v42 = vadd.f32 %v7125_v5, %v7101_v9  ;;  %v7131_v0 = vadd.f32 %v7126_v51, %v7102_v56  ;;  %v7147_v48 = vperm.slane %v7142_v2, 3  ;;  %v12352_v9 = vld [vmem:[#allocation151_spill] sm:$0xff] }
 0x530   : > { %v7132_v47 = vadd.f32 %v7127_v29, %v7103_v60  ;;  %v7133_v39 = vadd.f32 %v7128_v20, %v7104_v34  ;;  %v7148_v46 = vperm.slane %v7142_v2, 4  ;;  %v7154_v23 = vmul.f32 %v7144_v16, %v12348_v22  ;;  %v12353_v16 = vld [vmem:[#allocation165_spill] sm:$0xff]  ;;  %v12354_v29 = vld [vmem:[#allocation166_spill] sm:$0xff]  ;;  %v12355_v20 = vld [vmem:[#allocation167_spill] sm:$0xff] }
 0x531   : > { %v7134_v54 = vadd.f32 %v7129_v26, %v7105_v21  ;;  %v7155_v40 = vmul.f32 %v7145_v33, %v12349_v45  ;;  %v7156_v57 = vmul.f32 %v7146_v35, %v12350_v41  ;;  %v7157_v49 = vmul.f32 %v7147_v48, %v12351_v63  ;;  %v12357_v22 = vld [vmem:[#allocation170_spill] sm:$0xff]  ;;  %v12358_v45 = vld [vmem:[#allocation172_spill] sm:$0xff] }
 0x532   : > { %v7158_v10 = vmul.f32 %v7148_v46, %v12306_v44  ;;  %v7159_v58 = vadd.f32 %v7154_v23, %v7130_v42  ;;  %v7173_v55 = vperm.slane %v7171_v52, 0  ;;  %v7174_v15 = vperm.slane %v7171_v52, 1 }
 0x533   : > { %v7160_v8 = vadd.f32 %v7155_v40, %v7131_v0  ;;  %v7161_v38 = vadd.f32 %v7156_v57, %v7132_v47  ;;  %v7162_v3 = vadd.f32 %v7157_v49, %v7133_v39  ;;  %v7175_v2 = vperm.slane %v7171_v52, 2 }
 0x534   : > { %v7163_v4 = vadd.f32 %v7158_v10, %v7134_v54  ;;  %v7176_v28 = vperm.slane %v7171_v52, 3  ;;  %v7177_v59 = vperm.slane %v7171_v52, 4  ;;  %v7183_v12 = vmul.f32 %v7173_v55, %v12234_v50  ;;  %v7284_v10 = vld [vmem:[%s10314_s25 + $0x18] sm:$0xff] (%p8133_p9)  ;;  %v7288_v55 = vld [vmem:[%s10314_s25 + $0x28] sm:$0xff] (%p8133_p9) }
 0x535   : > { %v7184_v56 = vmul.f32 %v7174_v15, %v12352_v9  ;;  %v7185_v60 = vmul.f32 %v7175_v2, %v12308_v31  ;;  %v7200_v37 = vor.u32 %v7762_v1, %v7761_v27  ;;  %v7229_v7 = vor.u32 %v7764_v61, %v7763_v24  ;;  %7285 = vst [vmem:[%s11284_s24 + $0x18] sm:$0xff] (%p8133_p9), %v7284_v10  ;;  %v7290_v15 = vld [vmem:[%s10314_s25 + $0x30] sm:$0xff] (%p8133_p9)  ;;  %v7292_v61 = vld [vmem:[%s10314_s25 + $0x38] sm:$0xff] (%p8133_p9)  ;;  %v7310_v9 = vld [vmem:[%s10314_s25 + $0x80] sm:$0xff] (%p8133_p9) }
 0x536   : > { %v7186_v44 = vmul.f32 %v7176_v28, %v12237_v53  ;;  %v7187_v34 = vmul.f32 %v7177_v59, %v12238_v25  ;;  %v7188_v21 = vadd.f32 %v7183_v12, %v7159_v58  ;;  %v12356_v53 = vld [vmem:[#allocation168_spill] sm:$0xff]  ;;  %v7286_v58 = vld [vmem:[%s10314_s25 + $0x20] sm:$0xff] (%p8133_p9)  ;;  %7289 = vst [vmem:[%s11284_s24 + $0x50] sm:$0xff] (%p8133_p9), %v7288_v55  ;;  %v7304_v28 = vld [vmem:[%s10314_s25 + $0x68] sm:$0xff] (%p8133_p9) }
 0x537   : > { %v7189_v11 = vadd.f32 %v7184_v56, %v7160_v8  ;;  %v7190_v13 = vadd.f32 %v7185_v60, %v7161_v38  ;;  %v7202_v32 = vperm.slane %v7200_v37, 0  ;;  %v7203_v30 = vperm.slane %v7200_v37, 1  ;;  %7287 = vst [vmem:[%s11284_s24 + $0x20] sm:$0xff] (%p8133_p9), %v7286_v58  ;;  %v7294_v8 = vld [vmem:[%s10314_s25 + $0x40] sm:$0xff] (%p8133_p9)  ;;  %v7296_v38 = vld [vmem:[%s10314_s25 + $0x48] sm:$0xff] (%p8133_p9)  ;;  %v7300_v2 = vld [vmem:[%s10314_s25 + $0x58] sm:$0xff] (%p8133_p9) }
 0x538   : > { %v7191_v5 = vadd.f32 %v7186_v44, %v7162_v3  ;;  %v7192_v17 = vadd.f32 %v7187_v34, %v7163_v4  ;;  %v7204_v52 = vperm.slane %v7200_v37, 2  ;;  %v7205_v51 = vperm.slane %v7200_v37, 3  ;;  %7291 = vst [vmem:[%s11284_s24 + $0x58] sm:$0xff] (%p8133_p9), %v7290_v15  ;;  %v7298_v3 = vld [vmem:[%s10314_s25 + $0x50] sm:$0xff] (%p8133_p9)  ;;  %v7302_v4 = vld [vmem:[%s10314_s25 + $0x60] sm:$0xff] (%p8133_p9)  ;;  %v7308_v12 = vld [vmem:[%s10314_s25 + $0x78] sm:$0xff] (%p8133_p9) }
 0x539   : > { %v7206_v50 = vperm.slane %v7200_v37, 4  ;;  %v7212_v62 = vmul.f32 %v7202_v32, %v12353_v16  ;;  %v7213_v31 = vmul.f32 %v7203_v30, %v12354_v29  ;;  %v7231_v19 = vperm.slane %v7229_v7, 0  ;;  %7293 = vst [vmem:[%s11284_s24 + $0x60] sm:$0xff] (%p8133_p9), %v7292_v61  ;;  %v7306_v59 = vld [vmem:[%s10314_s25 + $0x70] sm:$0xff] (%p8133_p9)  ;;  %v7312_v56 = vld [vmem:[%s10314_s25 + $0x88] sm:$0xff] (%p8133_p9)  ;;  %v7316_v37 = vld [vmem:[%s10314_s25 + $0x98] sm:$0xff] (%p8133_p9) }
 0x53a   : > { %v7214_v33 = vmul.f32 %v7204_v52, %v12355_v20  ;;  %v7215_v35 = vmul.f32 %v7205_v51, %v12356_v53  ;;  %v7232_v25 = vperm.slane %v7229_v7, 1  ;;  %v7233_v18 = vperm.slane %v7229_v7, 2  ;;  %7295 = vst [vmem:[%s11284_s24 + $0x68] sm:$0xff] (%p8133_p9), %v7294_v8  ;;  %v7314_v60 = vld [vmem:[%s10314_s25 + $0x90] sm:$0xff] (%p8133_p9)  ;;  %v7320_v44 = vld [vmem:[%s10314_s25 + $0xa8] sm:$0xff] (%p8133_p9)  ;;  %v7332_v30 = vld [vmem:[%s10314_s25 + $0xd8] sm:$0xff] (%p8133_p9) }
 0x53b   : > { %v7216_v26 = vmul.f32 %v7206_v50, %v12313_v14  ;;  %v7217_v42 = vadd.f32 %v7212_v62, %v7188_v21  ;;  %v7218_v0 = vadd.f32 %v7213_v31, %v7189_v11  ;;  %v7234_v48 = vperm.slane %v7229_v7, 3  ;;  %7297 = vst [vmem:[%s11284_s24 + $0x70] sm:$0xff] (%p8133_p9), %v7296_v38  ;;  %v7322_v34 = vld [vmem:[%s10314_s25 + $0xb0] sm:$0xff] (%p8133_p9)  ;;  %v7324_v21 = vld [vmem:[%s10314_s25 + $0xb8] sm:$0xff] (%p8133_p9)  ;;  %v7326_v11 = vld [vmem:[%s10314_s25 + $0xc0] sm:$0xff] (%p8133_p9) }
 0x53c   : > { %v7219_v47 = vadd.f32 %v7214_v33, %v7190_v13  ;;  %v7220_v39 = vadd.f32 %v7215_v35, %v7191_v5  ;;  %v7235_v46 = vperm.slane %v7229_v7, 4  ;;  %v7241_v23 = vmul.f32 %v7231_v19, %v12357_v22  ;;  %7299 = vst [vmem:[%s11284_s24 + $0xa0] sm:$0xff] (%p8133_p9), %v7298_v3  ;;  %v7318_v7 = vld [vmem:[%s10314_s25 + $0xa0] sm:$0xff] (%p8133_p9)  ;;  %v7328_v13 = vld [vmem:[%s10314_s25 + $0xc8] sm:$0xff] (%p8133_p9)  ;;  %v7330_v32 = vld [vmem:[%s10314_s25 + $0xd0] sm:$0xff] (%p8133_p9) }
 0x53d   : > { %v7221_v27 = vadd.f32 %v7216_v26, %v7192_v17  ;;  %v7242_v54 = vmul.f32 %v7232_v25, %v12315_v43  ;;  %v7243_v40 = vmul.f32 %v7233_v18, %v12358_v45  ;;  %v7244_v14 = vmul.f32 %v7234_v48, %v12317_v6  ;;  %v7278_v43 = vld [vmem:[%s10314_s25] sm:$0xff] (%p8133_p9)  ;;  %v7280_v6 = vld [vmem:[%s10314_s25 + $0x8] sm:$0xff] (%p8133_p9)  ;;  %7301 = vst [vmem:[%s11284_s24 + $0xa8] sm:$0xff] (%p8133_p9), %v7300_v2 }
 0x53e   : > { %v7245_v41 = vmul.f32 %v7235_v46, %v12318_v36  ;;  %v7246_v57 = vadd.f32 %v7241_v23, %v7217_v42  ;;  %v7282_v36 = vld [vmem:[%s10314_s25 + $0x10] sm:$0xff] (%p8133_p9)  ;;  %7279 = vst [vmem:[%s11284_s24] sm:$0xff] (%p8133_p9), %v7278_v43  ;;  %v7334_v5 = vld [vmem:[%s10314_s25 + $0xe0] sm:$0xff] (%p8133_p9)  ;;  %v7336_v17 = vld [vmem:[%s10314_s25 + $0xe8] sm:$0xff] (%p8133_p9) }
 0x53f   : > { %v7247_v63 = vadd.f32 %v7242_v54, %v7218_v0  ;;  %v7248_v49 = vadd.f32 %v7243_v40, %v7219_v47  ;;  %v7249_v1 = vadd.f32 %v7244_v14, %v7220_v39  ;;  %7281 = vst [vmem:[%s11284_s24 + $0x8] sm:$0xff] (%p8133_p9), %v7280_v6 }
 0x540   : > { %v7250_v24 = vadd.f32 %v7245_v41, %v7221_v27  ;;  %7251 = vst [vmem:[%s10314_s25 + $0xf0] sm:$0xff] %v7246_v57  ;;  %7262 = sbr.rel (!%p8133_p9) target bundleno = 1373 (0x55d), region = 60 }
 0x541   : > { %7252 = vst [vmem:[%s10314_s25 + $0xf8] sm:$0xff] %v7247_v63 }
 0x542   : > { %7253 = vst [vmem:[%s10314_s25 + $0x100] sm:$0xff] %v7248_v49 }
 0x543   : > { %7254 = vst [vmem:[%s10314_s25 + $0x108] sm:$0xff] %v7249_v1 }
 0x544   : > { %7255 = vst [vmem:[%s10314_s25 + $0x110] sm:$0xff] %v7250_v24 }
 0x545   : > { %7283 = vst [vmem:[%s11284_s24 + $0x10] sm:$0xff] %v7282_v36 }
 0x546   : > { %7303 = vst [vmem:[%s11284_s24 + $0xb0] sm:$0xff] %v7302_v4 }
 0x547   : > { %7305 = vst [vmem:[%s11284_s24 + $0xb8] sm:$0xff] %v7304_v28  ;;  %v7338_v52 = vld [vmem:[%s10314_s25 + $0xf0] sm:$0xff] }
 0x548   : > { %7307 = vst [vmem:[%s11284_s24 + $0xc0] sm:$0xff] %v7306_v59  ;;  %v7340_v51 = vld [vmem:[%s10314_s25 + $0xf8] sm:$0xff] }
 0x549   : > { %7309 = vst [vmem:[%s11284_s24 + $0xf0] sm:$0xff] %v7308_v12  ;;  %v7342_v50 = vld [vmem:[%s10314_s25 + $0x100] sm:$0xff] }
 0x54a   : > { %7311 = vst [vmem:[%s11284_s24 + $0xf8] sm:$0xff] %v7310_v9  ;;  %v7344_v16 = vld [vmem:[%s10314_s25 + $0x108] sm:$0xff] }
 0x54b   : > { %7313 = vst [vmem:[%s11284_s24 + $0x100] sm:$0xff] %v7312_v56  ;;  %v7346_v62 = vld [vmem:[%s10314_s25 + $0x110] sm:$0xff] }
 0x54c   : > { %7315 = vst [vmem:[%s11284_s24 + $0x108] sm:$0xff] %v7314_v60 }
 0x54d   : > { %7317 = vst [vmem:[%s11284_s24 + $0x110] sm:$0xff] %v7316_v37 }
 0x54e   : > { %7319 = vst [vmem:[%s11284_s24 + $0x140] sm:$0xff] %v7318_v7 }
 0x54f   : > { %7321 = vst [vmem:[%s11284_s24 + $0x148] sm:$0xff] %v7320_v44 }
 0x550   : > { %7323 = vst [vmem:[%s11284_s24 + $0x150] sm:$0xff] %v7322_v34 }
 0x551   : > { %7325 = vst [vmem:[%s11284_s24 + $0x158] sm:$0xff] %v7324_v21 }
 0x552   : > { %7327 = vst [vmem:[%s11284_s24 + $0x160] sm:$0xff] %v7326_v11 }
 0x553   : > { %7329 = vst [vmem:[%s11284_s24 + $0x190] sm:$0xff] %v7328_v13 }
 0x554   : > { %7331 = vst [vmem:[%s11284_s24 + $0x198] sm:$0xff] %v7330_v32 }
 0x555   : > { %7333 = vst [vmem:[%s11284_s24 + $0x1a0] sm:$0xff] %v7332_v30 }
 0x556   : > { %7335 = vst [vmem:[%s11284_s24 + $0x1a8] sm:$0xff] %v7334_v5 }
 0x557   : > { %7337 = vst [vmem:[%s11284_s24 + $0x1b0] sm:$0xff] %v7336_v17 }
 0x558   : > { %7339 = vst [vmem:[%s11284_s24 + $0x1e0] sm:$0xff] %v7338_v52 }
 0x559   : > { %7341 = vst [vmem:[%s11284_s24 + $0x1e8] sm:$0xff] %v7340_v51 }
 0x55a   : > { %7343 = vst [vmem:[%s11284_s24 + $0x1f0] sm:$0xff] %v7342_v50 }
 0x55b   : > { %7345 = vst [vmem:[%s11284_s24 + $0x1f8] sm:$0xff] %v7344_v16 }
 0x55c   : > { %7347 = vst [vmem:[%s11284_s24 + $0x200] sm:$0xff] %v7346_v62 }
 0x55d PF: > { %s12359_s22 = sld [smem:[#allocation15_spill]]  ;;  %p21_p7 = scmp.ge.s32.totalorder %s8114_s23, 4  }
 0x55e   : > { %s12360_s18 = smov %s8048_s19  ;;  %s12361_s19 = smov %s8052_s20 }
 0x55f   : > { %s12363_s21 = smov %s8114_s23  ;;  %23 = sbr.rel (!%p21_p7) target bundleno = 10 (0xa), region = 164 }
 0x563   : > { %s12362_s20 = smov %s12359_s22 }
 0x564   :  { %7363 = vsyncpa [#allocation5], 1 }
 0x565   :  { %7365 = vsyncpa [#allocation5 + $0x1], 1 }
 0x566   :  { %7366 = vsyncpa [#allocation7], 1 }
 0x567   :  { %7368 = vsyncpa [#allocation7 + $0x1], 1 }
 0x568   :  { %7369 = vsyncpa [#allocation10], 1 }
 0x569   :  { %7371 = vsyncpa [#allocation10 + $0x1], 1 }

</bundles_post_ra>
